<compile_context>
chip_gen: v7x
topology: tpu7x:2x2x1
jax: 0.10.0
libtpu: 0.0.40
codegen_flags: <defaults>
</compile_context>

<pallas_src>
import jax
import jax.numpy as jnp
from jax import lax
from jax.experimental import pallas as pl
from jax.experimental.pallas import tpu as pltpu

EPS = 1e-5
LANE = 128


def _im2col_3x3(xpad, N, H, W):
    """(N, H+2, W+2, C) bf16 -> (N*H*W, 9*C) bf16 patch slab, (dy, dx, c) minor."""
    C = xpad.shape[-1]
    cols = [xpad[:, dy:dy + H, dx:dx + W, :] for dy in range(3) for dx in range(3)]
    return jnp.concatenate(cols, axis=-1).reshape(N * H * W, 9 * C)


def _bn_scale_shift(y, gamma, beta, inv_n):
    """Training-mode BatchNorm on (rows, C) f32: one-pass per-channel stats."""
    s = jnp.sum(y, axis=0, keepdims=True)
    sq = jnp.sum(y * y, axis=0, keepdims=True)
    mean = s * inv_n
    var = jnp.maximum(sq * inv_n - mean * mean, 0.0)   # guard tiny cancellation
    scale = gamma * lax.rsqrt(var + EPS)
    shift = beta - mean * scale
    return scale, shift


def basic_block_kernel(x_ref, w1_ref, g1_ref, b1_ref,
                       w2_ref, g2_ref, b2_ref,
                       ws_ref, gs_ref, bs_ref,
                       out_ref, xpad_ref, midpad_ref):
    N, H, W, Cin = x_ref.shape          # lane-padded channel counts
    Cout = w1_ref.shape[-1]
    inv_n = 1.0 / float(N * H * W)

    # ---- zero-pad x into bf16 VMEM scratch: one contiguous memset + interior.
    xpad_ref[...] = jnp.zeros(xpad_ref.shape, jnp.bfloat16)
    xpad_ref[:, 1:H + 1, 1:W + 1, :] = x_ref[...]

    # ---- conv1 (one K = 9*Cin matmul) -> bn1 -> relu (bf16 activations).
    p1 = _im2col_3x3(xpad_ref[...], N, H, W)
    y1 = jnp.dot(p1, w1_ref[...], preferred_element_type=jnp.float32)
    s1, t1 = _bn_scale_shift(y1, g1_ref[...], b1_ref[...], inv_n)
    a1 = jnp.maximum(y1 * s1 + t1, 0.0).astype(jnp.bfloat16)

    midpad_ref[...] = jnp.zeros(midpad_ref.shape, jnp.bfloat16)
    midpad_ref[:, 1:H + 1, 1:W + 1, :] = a1.reshape(N, H, W, Cout)

    # ---- conv2 (one K = 9*Cout matmul) -> bn2.
    p2 = _im2col_3x3(midpad_ref[...], N, H, W)
    y2 = jnp.dot(p2, w2_ref[...], preferred_element_type=jnp.float32)
    s2, t2 = _bn_scale_shift(y2, g2_ref[...], b2_ref[...], inv_n)

    # ---- projection shortcut: 1x1 conv matmul + BN, computed in the epilogue
    #      (kept as a live value, no VMEM accumulator round-trip), fused with
    #      residual add + ReLU into the final lane-dense store.
    sc = jnp.dot(x_ref[...].reshape(N * H * W, Cin), ws_ref[...],
                 preferred_element_type=jnp.float32)
    ss, ts = _bn_scale_shift(sc, gs_ref[...], bs_ref[...], inv_n)

    out_ref[...] = jnp.maximum(y2 * s2 + t2 + sc * ss + ts, 0.0)


def basic_block(x_nchw, params):
    """Wrapper: NCHW in / NCHW out (PyTorch convention)."""
    x = jnp.transpose(x_nchw, (0, 2, 3, 1)).astype(jnp.float32)  # NHWC
    N, H, W, Cin = x.shape
    Cout = params["w1"].shape[-1]
    Cin_p = pl.cdiv(Cin, LANE) * LANE
    Cout_p = pl.cdiv(Cout, LANE) * LANE
    nhw = N * H * W

    # Lane-pad channels (zero-padded channels remain exactly zero through
    # conv + BN + ReLU), cast conv operands to bf16, pre-reshape weights to
    # im2col (9*Cin, Cout) layout.
    xp = jnp.pad(x, ((0, 0), (0, 0), (0, 0), (0, Cin_p - Cin))).astype(jnp.bfloat16)
    w1 = jnp.pad(params["w1"],
                 ((0, 0), (0, 0), (0, Cin_p - Cin), (0, Cout_p - Cout))
                 ).reshape(9 * Cin_p, Cout_p).astype(jnp.bfloat16)
    w2 = jnp.pad(params["w2"],
                 ((0, 0), (0, 0), (0, Cout_p - Cout), (0, Cout_p - Cout))
                 ).reshape(9 * Cout_p, Cout_p).astype(jnp.bfloat16)
    ws = jnp.pad(params["ws"],
                 ((0, Cin_p - Cin), (0, Cout_p - Cout))).astype(jnp.bfloat16)
    pc = ((0, 0), (0, Cout_p - Cout))
    g1, b1 = jnp.pad(params["g1"], pc), jnp.pad(params["b1"], pc)
    g2, b2 = jnp.pad(params["g2"], pc), jnp.pad(params["b2"], pc)
    gs, bs = jnp.pad(params["gs"], pc), jnp.pad(params["bs"], pc)

    flops = 2 * nhw * Cout_p * (9 * Cin_p + 9 * Cout_p + Cin_p)
    bytes_accessed = (2 * nhw * Cin_p + 4 * nhw * Cout_p            # x in, out
                      + 2 * Cout_p * (9 * Cin_p + 9 * Cout_p + Cin_p)  # weights
                      + 4 * 6 * Cout_p)                             # BN params

    # Explicit scoped-VMEM budget: scratches + operands + transient im2col /
    # conv-output slabs, with 2x headroom (default scoped cap is 16/32 MiB).
    pad_rows = N * (H + 2) * (W + 2)
    vmem_est = (2 * pad_rows * (Cin_p + Cout_p)                     # bf16 scratches
                + 2 * nhw * Cin_p + 4 * nhw * Cout_p                # in (bf16), out (f32)
                + 2 * Cout_p * (9 * Cin_p + 9 * Cout_p + Cin_p)     # bf16 weights
                + 2 * nhw * 9 * (Cin_p + Cout_p)                    # bf16 im2col slabs
                + 3 * 4 * nhw * Cout_p)                             # f32 conv outputs
    vmem_limit = int(min(64 * 1024 * 1024, max(16 * 1024 * 1024, 2 * vmem_est)))

    vmem = pl.BlockSpec(memory_space=pltpu.MemorySpace.VMEM)
    out2d = pl.pallas_call(
        basic_block_kernel,
        out_shape=jax.ShapeDtypeStruct((nhw, Cout_p), jnp.float32),
        in_specs=[vmem] * 10,
        out_specs=vmem,
        scratch_shapes=[
            pltpu.VMEM((N, H + 2, W + 2, Cin_p), jnp.bfloat16),   # padded input
            pltpu.VMEM((N, H + 2, W + 2, Cout_p), jnp.bfloat16),  # padded conv1 act
        ],
        compiler_params=pltpu.CompilerParams(vmem_limit_bytes=vmem_limit),
        cost_estimate=pl.CostEstimate(flops=flops, transcendentals=3 * Cout_p,
                                      bytes_accessed=bytes_accessed),
    )(xp, w1, g1, b1, w2, g2, b2, ws, gs, bs)

    out = out2d.reshape(N, H, W, Cout_p)[..., :Cout]
    return jnp.transpose(out, (0, 3, 1, 2))  # NCHW


def reference(x_nchw, params):
    """Pure-JAX reference (same math; bf16 conv operands, f32 accumulation/BN)."""
    x = jnp.transpose(x_nchw, (0, 2, 3, 1)).astype(jnp.float32)

    def conv(h, w):
        return lax.conv_general_dilated(
            h.astype(jnp.bfloat16), w.astype(jnp.bfloat16), (1, 1), "SAME",
            dimension_numbers=("NHWC", "HWIO", "NHWC"),
            preferred_element_type=jnp.float32)

    def bn(h, g, b):
        m = jnp.mean(h, axis=(0, 1, 2), keepdims=True)
        v = jnp.mean(jnp.square(h - m), axis=(0, 1, 2), keepdims=True)
        return (h - m) * lax.rsqrt(v + EPS) * g + b

    o = jax.nn.relu(bn(conv(x, params["w1"]), params["g1"], params["b1"]))
    o = bn(conv(o, params["w2"]), params["g2"], params["b2"])
    ws = params["ws"].reshape(1, 1, *params["ws"].shape)
    s = bn(conv(x, ws), params["gs"], params["bs"])
    return jnp.transpose(jax.nn.relu(o + s), (0, 3, 1, 2))


if __name__ == "__main__":
    N, in_planes, H, W = 2, 4, 16, 16
    planes = 8  # in_planes != planes -> projection shortcut path is exercised

    key = jax.random.PRNGKey(0)
    k0, k1, k2, k3 = jax.random.split(key, 4)

    x = jax.random.normal(k0, (N, in_planes, H, W), jnp.float32)  # NCHW input

    params = dict(
        # conv weights in HWIO
        w1=0.2 * jax.random.normal(k1, (3, 3, in_planes, planes), jnp.float32),
        g1=jnp.ones((1, planes), jnp.float32),
        b1=jnp.zeros((1, planes), jnp.float32),
        w2=0.2 * jax.random.normal(k2, (3, 3, planes, planes), jnp.float32),
        g2=jnp.ones((1, planes), jnp.float32),
        b2=jnp.zeros((1, planes), jnp.float32),
        ws=0.2 * jax.random.normal(k3, (in_planes, planes), jnp.float32),
        gs=jnp.ones((1, planes), jnp.float32),
        bs=jnp.zeros((1, planes), jnp.float32),
    )

    out = jax.block_until_ready(basic_block(x, params))
    ref = jax.block_until_ready(reference(x, params))

    assert out.shape == (N, planes, H, W), out.shape
    err = float(jnp.max(jnp.abs(out - ref)))
    assert err < 2e-2, f"max abs error too large: {err}"

    print("KERNEL_OK")
</pallas_src>

<mosaic_0001>
module attributes {stable_mosaic.version = 11 : i64} {
  func.func @basic_block_kernel(%arg0: memref<2x16x16x128xbf16, #tpu.memory_space<vmem>>, %arg1: memref<1152x128xbf16, #tpu.memory_space<vmem>>, %arg2: memref<1x128xf32, #tpu.memory_space<vmem>>, %arg3: memref<1x128xf32, #tpu.memory_space<vmem>>, %arg4: memref<1152x128xbf16, #tpu.memory_space<vmem>>, %arg5: memref<1x128xf32, #tpu.memory_space<vmem>>, %arg6: memref<1x128xf32, #tpu.memory_space<vmem>>, %arg7: memref<128x128xbf16, #tpu.memory_space<vmem>>, %arg8: memref<1x128xf32, #tpu.memory_space<vmem>>, %arg9: memref<1x128xf32, #tpu.memory_space<vmem>>, %arg10: memref<512x128xf32, #tpu.memory_space<vmem>>, %arg11: memref<2x18x18x128xbf16, #tpu.memory_space<vmem>>, %arg12: memref<2x18x18x128xbf16, #tpu.memory_space<vmem>>) attributes {dimension_semantics = [], scalar_prefetch = 0 : i64, scratch_operands = 2 : i64, tpu.core_type = #tpu.core_type<tc>} {
    %cst = arith.constant 0.000000e+00 : bf16
    %0 = vector.broadcast %cst : bf16 to vector<2x18x18x128xbf16>
    %c0 = arith.constant 0 : index
    %c0_0 = arith.constant 0 : index
    %c0_1 = arith.constant 0 : index
    %c0_2 = arith.constant 0 : index
    %1 = vector.load %arg11[%c0, %c0_0, %c0_1, %c0_2] : memref<2x18x18x128xbf16, #tpu.memory_space<vmem>>, vector<2x18x18x128xbf16>
    tpu.vector_store %arg11[%c0, %c0_0, %c0_1, %c0_2], %0 {strides = array<i32>} : memref<2x18x18x128xbf16, #tpu.memory_space<vmem>>, vector<2x18x18x128xbf16>,
    %c0_3 = arith.constant 0 : index
    %c0_4 = arith.constant 0 : index
    %c0_5 = arith.constant 0 : index
    %c0_6 = arith.constant 0 : index
    %2 = vector.load %arg0[%c0_3, %c0_4, %c0_5, %c0_6] : memref<2x16x16x128xbf16, #tpu.memory_space<vmem>>, vector<2x16x16x128xbf16>
    %c0_7 = arith.constant 0 : index
    %c1 = arith.constant 1 : index
    %c1_8 = arith.constant 1 : index
    %c0_9 = arith.constant 0 : index
    %3 = vector.load %arg11[%c0_7, %c1, %c1_8, %c0_9] : memref<2x18x18x128xbf16, #tpu.memory_space<vmem>>, vector<2x16x16x128xbf16>
    tpu.vector_store %arg11[%c0_7, %c1, %c1_8, %c0_9], %2 {strides = array<i32>} : memref<2x18x18x128xbf16, #tpu.memory_space<vmem>>, vector<2x16x16x128xbf16>,
    %c0_10 = arith.constant 0 : index
    %c0_11 = arith.constant 0 : index
    %c0_12 = arith.constant 0 : index
    %c0_13 = arith.constant 0 : index
    %4 = vector.load %arg11[%c0_10, %c0_11, %c0_12, %c0_13] : memref<2x18x18x128xbf16, #tpu.memory_space<vmem>>, vector<2x18x18x128xbf16>
    %5 = vector.extract_strided_slice %4 {offsets = [0, 0, 0, 0], sizes = [2, 16, 16, 128], strides = [1, 1, 1, 1]} : vector<2x18x18x128xbf16> to vector<2x16x16x128xbf16>
    %6 = vector.extract_strided_slice %4 {offsets = [0, 0, 1, 0], sizes = [2, 16, 16, 128], strides = [1, 1, 1, 1]} : vector<2x18x18x128xbf16> to vector<2x16x16x128xbf16>
    %7 = vector.extract_strided_slice %4 {offsets = [0, 0, 2, 0], sizes = [2, 16, 16, 128], strides = [1, 1, 1, 1]} : vector<2x18x18x128xbf16> to vector<2x16x16x128xbf16>
    %8 = vector.extract_strided_slice %4 {offsets = [0, 1, 0, 0], sizes = [2, 16, 16, 128], strides = [1, 1, 1, 1]} : vector<2x18x18x128xbf16> to vector<2x16x16x128xbf16>
    %9 = vector.extract_strided_slice %4 {offsets = [0, 1, 1, 0], sizes = [2, 16, 16, 128], strides = [1, 1, 1, 1]} : vector<2x18x18x128xbf16> to vector<2x16x16x128xbf16>
    %10 = vector.extract_strided_slice %4 {offsets = [0, 1, 2, 0], sizes = [2, 16, 16, 128], strides = [1, 1, 1, 1]} : vector<2x18x18x128xbf16> to vector<2x16x16x128xbf16>
    %11 = vector.extract_strided_slice %4 {offsets = [0, 2, 0, 0], sizes = [2, 16, 16, 128], strides = [1, 1, 1, 1]} : vector<2x18x18x128xbf16> to vector<2x16x16x128xbf16>
    %12 = vector.extract_strided_slice %4 {offsets = [0, 2, 1, 0], sizes = [2, 16, 16, 128], strides = [1, 1, 1, 1]} : vector<2x18x18x128xbf16> to vector<2x16x16x128xbf16>
    %13 = vector.extract_strided_slice %4 {offsets = [0, 2, 2, 0], sizes = [2, 16, 16, 128], strides = [1, 1, 1, 1]} : vector<2x18x18x128xbf16> to vector<2x16x16x128xbf16>
    %14 = tpu.concatenate %5, %6, %7, %8, %9, %10, %11, %12, %13 in 3 : vector<2x16x16x128xbf16>, vector<2x16x16x128xbf16>, vector<2x16x16x128xbf16>, vector<2x16x16x128xbf16>, vector<2x16x16x128xbf16>, vector<2x16x16x128xbf16>, vector<2x16x16x128xbf16>, vector<2x16x16x128xbf16>, vector<2x16x16x128xbf16> -> vector<2x16x16x1152xbf16>
    %15 = vector.shape_cast %14 : vector<2x16x16x1152xbf16> to vector<512x1152xbf16>
    %c0_14 = arith.constant 0 : index
    %c0_15 = arith.constant 0 : index
    %16 = vector.load %arg1[%c0_14, %c0_15] : memref<1152x128xbf16, #tpu.memory_space<vmem>>, vector<1152x128xbf16>
    %cst_16 = arith.constant dense<0.000000e+00> : vector<512x128xf32>
    %17 = tpu.matmul %15, %16, %cst_16 {dimension_numbers = #tpu.dot_dimension_numbers<[1], [0], [0], [1], [0, 0, 1, 1], [], []>} : vector<512x1152xbf16>, vector<1152x128xbf16>, vector<512x128xf32> -> vector<512x128xf32>
    %c0_17 = arith.constant 0 : index
    %c0_18 = arith.constant 0 : index
    %18 = vector.load %arg2[%c0_17, %c0_18] : memref<1x128xf32, #tpu.memory_space<vmem>>, vector<1x128xf32>
    %c0_19 = arith.constant 0 : index
    %c0_20 = arith.constant 0 : index
    %19 = vector.load %arg3[%c0_19, %c0_20] : memref<1x128xf32, #tpu.memory_space<vmem>>, vector<1x128xf32>
    %cst_21 = arith.constant dense<0.000000e+00> : vector<128xf32>
    %20 = vector.multi_reduction <add>, %17, %cst_21 [0] : vector<512x128xf32> to vector<128xf32>
    %21 = vector.shape_cast %20 : vector<128xf32> to vector<1x128xf32>
    %22 = arith.mulf %17, %17 : vector<512x128xf32>
    %cst_22 = arith.constant dense<0.000000e+00> : vector<128xf32>
    %23 = vector.multi_reduction <add>, %22, %cst_22 [0] : vector<512x128xf32> to vector<128xf32>
    %24 = vector.shape_cast %23 : vector<128xf32> to vector<1x128xf32>
    %cst_23 = arith.constant 0.001953125 : f32
    %25 = vector.broadcast %cst_23 : f32 to vector<1x128xf32>
    %26 = arith.mulf %21, %25 : vector<1x128xf32>
    %cst_24 = arith.constant 0.001953125 : f32
    %27 = vector.broadcast %cst_24 : f32 to vector<1x128xf32>
    %28 = arith.mulf %24, %27 : vector<1x128xf32>
    %29 = arith.mulf %26, %26 : vector<1x128xf32>
    %30 = arith.subf %28, %29 : vector<1x128xf32>
    %cst_25 = arith.constant 0.000000e+00 : f32
    %31 = vector.broadcast %cst_25 : f32 to vector<1x128xf32>
    %32 = arith.maximumf %30, %31 : vector<1x128xf32>
    %cst_26 = arith.constant 9.99999974E-6 : f32
    %33 = vector.broadcast %cst_26 : f32 to vector<1x128xf32>
    %34 = arith.addf %32, %33 : vector<1x128xf32>
    %35 = math.rsqrt %34 : vector<1x128xf32>
    %36 = arith.mulf %18, %35 : vector<1x128xf32>
    %37 = arith.mulf %26, %36 : vector<1x128xf32>
    %38 = arith.subf %19, %37 : vector<1x128xf32>
    %39 = vector.broadcast %36 : vector<1x128xf32> to vector<512x128xf32>
    %40 = arith.mulf %17, %39 : vector<512x128xf32>
    %41 = vector.broadcast %38 : vector<1x128xf32> to vector<512x128xf32>
    %42 = arith.addf %40, %41 : vector<512x128xf32>
    %cst_27 = arith.constant 0.000000e+00 : f32
    %43 = vector.broadcast %cst_27 : f32 to vector<512x128xf32>
    %44 = arith.maximumf %42, %43 : vector<512x128xf32>
    %45 = arith.truncf %44 : vector<512x128xf32> to vector<512x128xbf16>
    %cst_28 = arith.constant 0.000000e+00 : bf16
    %46 = vector.broadcast %cst_28 : bf16 to vector<2x18x18x128xbf16>
    %c0_29 = arith.constant 0 : index
    %c0_30 = arith.constant 0 : index
    %c0_31 = arith.constant 0 : index
    %c0_32 = arith.constant 0 : index
    %47 = vector.load %arg12[%c0_29, %c0_30, %c0_31, %c0_32] : memref<2x18x18x128xbf16, #tpu.memory_space<vmem>>, vector<2x18x18x128xbf16>
    tpu.vector_store %arg12[%c0_29, %c0_30, %c0_31, %c0_32], %46 {strides = array<i32>} : memref<2x18x18x128xbf16, #tpu.memory_space<vmem>>, vector<2x18x18x128xbf16>,
    %48 = vector.shape_cast %45 : vector<512x128xbf16> to vector<2x16x16x128xbf16>
    %c0_33 = arith.constant 0 : index
    %c1_34 = arith.constant 1 : index
    %c1_35 = arith.constant 1 : index
    %c0_36 = arith.constant 0 : index
    %49 = vector.load %arg12[%c0_33, %c1_34, %c1_35, %c0_36] : memref<2x18x18x128xbf16, #tpu.memory_space<vmem>>, vector<2x16x16x128xbf16>
    tpu.vector_store %arg12[%c0_33, %c1_34, %c1_35, %c0_36], %48 {strides = array<i32>} : memref<2x18x18x128xbf16, #tpu.memory_space<vmem>>, vector<2x16x16x128xbf16>,
    %c0_37 = arith.constant 0 : index
    %c0_38 = arith.constant 0 : index
    %c0_39 = arith.constant 0 : index
    %c0_40 = arith.constant 0 : index
    %50 = vector.load %arg12[%c0_37, %c0_38, %c0_39, %c0_40] : memref<2x18x18x128xbf16, #tpu.memory_space<vmem>>, vector<2x18x18x128xbf16>
    %51 = vector.extract_strided_slice %50 {offsets = [0, 0, 0, 0], sizes = [2, 16, 16, 128], strides = [1, 1, 1, 1]} : vector<2x18x18x128xbf16> to vector<2x16x16x128xbf16>
    %52 = vector.extract_strided_slice %50 {offsets = [0, 0, 1, 0], sizes = [2, 16, 16, 128], strides = [1, 1, 1, 1]} : vector<2x18x18x128xbf16> to vector<2x16x16x128xbf16>
    %53 = vector.extract_strided_slice %50 {offsets = [0, 0, 2, 0], sizes = [2, 16, 16, 128], strides = [1, 1, 1, 1]} : vector<2x18x18x128xbf16> to vector<2x16x16x128xbf16>
    %54 = vector.extract_strided_slice %50 {offsets = [0, 1, 0, 0], sizes = [2, 16, 16, 128], strides = [1, 1, 1, 1]} : vector<2x18x18x128xbf16> to vector<2x16x16x128xbf16>
    %55 = vector.extract_strided_slice %50 {offsets = [0, 1, 1, 0], sizes = [2, 16, 16, 128], strides = [1, 1, 1, 1]} : vector<2x18x18x128xbf16> to vector<2x16x16x128xbf16>
    %56 = vector.extract_strided_slice %50 {offsets = [0, 1, 2, 0], sizes = [2, 16, 16, 128], strides = [1, 1, 1, 1]} : vector<2x18x18x128xbf16> to vector<2x16x16x128xbf16>
    %57 = vector.extract_strided_slice %50 {offsets = [0, 2, 0, 0], sizes = [2, 16, 16, 128], strides = [1, 1, 1, 1]} : vector<2x18x18x128xbf16> to vector<2x16x16x128xbf16>
    %58 = vector.extract_strided_slice %50 {offsets = [0, 2, 1, 0], sizes = [2, 16, 16, 128], strides = [1, 1, 1, 1]} : vector<2x18x18x128xbf16> to vector<2x16x16x128xbf16>
    %59 = vector.extract_strided_slice %50 {offsets = [0, 2, 2, 0], sizes = [2, 16, 16, 128], strides = [1, 1, 1, 1]} : vector<2x18x18x128xbf16> to vector<2x16x16x128xbf16>
    %60 = tpu.concatenate %51, %52, %53, %54, %55, %56, %57, %58, %59 in 3 : vector<2x16x16x128xbf16>, vector<2x16x16x128xbf16>, vector<2x16x16x128xbf16>, vector<2x16x16x128xbf16>, vector<2x16x16x128xbf16>, vector<2x16x16x128xbf16>, vector<2x16x16x128xbf16>, vector<2x16x16x128xbf16>, vector<2x16x16x128xbf16> -> vector<2x16x16x1152xbf16>
    %61 = vector.shape_cast %60 : vector<2x16x16x1152xbf16> to vector<512x1152xbf16>
    %c0_41 = arith.constant 0 : index
    %c0_42 = arith.constant 0 : index
    %62 = vector.load %arg4[%c0_41, %c0_42] : memref<1152x128xbf16, #tpu.memory_space<vmem>>, vector<1152x128xbf16>
    %cst_43 = arith.constant dense<0.000000e+00> : vector<512x128xf32>
    %63 = tpu.matmul %61, %62, %cst_43 {dimension_numbers = #tpu.dot_dimension_numbers<[1], [0], [0], [1], [0, 0, 1, 1], [], []>} : vector<512x1152xbf16>, vector<1152x128xbf16>, vector<512x128xf32> -> vector<512x128xf32>
    %c0_44 = arith.constant 0 : index
    %c0_45 = arith.constant 0 : index
    %64 = vector.load %arg5[%c0_44, %c0_45] : memref<1x128xf32, #tpu.memory_space<vmem>>, vector<1x128xf32>
    %c0_46 = arith.constant 0 : index
    %c0_47 = arith.constant 0 : index
    %65 = vector.load %arg6[%c0_46, %c0_47] : memref<1x128xf32, #tpu.memory_space<vmem>>, vector<1x128xf32>
    %cst_48 = arith.constant dense<0.000000e+00> : vector<128xf32>
    %66 = vector.multi_reduction <add>, %63, %cst_48 [0] : vector<512x128xf32> to vector<128xf32>
    %67 = vector.shape_cast %66 : vector<128xf32> to vector<1x128xf32>
    %68 = arith.mulf %63, %63 : vector<512x128xf32>
    %cst_49 = arith.constant dense<0.000000e+00> : vector<128xf32>
    %69 = vector.multi_reduction <add>, %68, %cst_49 [0] : vector<512x128xf32> to vector<128xf32>
    %70 = vector.shape_cast %69 : vector<128xf32> to vector<1x128xf32>
    %cst_50 = arith.constant 0.001953125 : f32
    %71 = vector.broadcast %cst_50 : f32 to vector<1x128xf32>
    %72 = arith.mulf %67, %71 : vector<1x128xf32>
    %cst_51 = arith.constant 0.001953125 : f32
    %73 = vector.broadcast %cst_51 : f32 to vector<1x128xf32>
    %74 = arith.mulf %70, %73 : vector<1x128xf32>
    %75 = arith.mulf %72, %72 : vector<1x128xf32>
    %76 = arith.subf %74, %75 : vector<1x128xf32>
    %cst_52 = arith.constant 0.000000e+00 : f32
    %77 = vector.broadcast %cst_52 : f32 to vector<1x128xf32>
    %78 = arith.maximumf %76, %77 : vector<1x128xf32>
    %cst_53 = arith.constant 9.99999974E-6 : f32
    %79 = vector.broadcast %cst_53 : f32 to vector<1x128xf32>
    %80 = arith.addf %78, %79 : vector<1x128xf32>
    %81 = math.rsqrt %80 : vector<1x128xf32>
    %82 = arith.mulf %64, %81 : vector<1x128xf32>
    %83 = arith.mulf %72, %82 : vector<1x128xf32>
    %84 = arith.subf %65, %83 : vector<1x128xf32>
    %c0_54 = arith.constant 0 : index
    %c0_55 = arith.constant 0 : index
    %c0_56 = arith.constant 0 : index
    %c0_57 = arith.constant 0 : index
    %85 = vector.load %arg0[%c0_54, %c0_55, %c0_56, %c0_57] : memref<2x16x16x128xbf16, #tpu.memory_space<vmem>>, vector<2x16x16x128xbf16>
    %86 = vector.shape_cast %85 : vector<2x16x16x128xbf16> to vector<512x128xbf16>
    %c0_58 = arith.constant 0 : index
    %c0_59 = arith.constant 0 : index
    %87 = vector.load %arg7[%c0_58, %c0_59] : memref<128x128xbf16, #tpu.memory_space<vmem>>, vector<128x128xbf16>
    %cst_60 = arith.constant dense<0.000000e+00> : vector<512x128xf32>
    %88 = tpu.matmul %86, %87, %cst_60 {dimension_numbers = #tpu.dot_dimension_numbers<[1], [0], [0], [1], [0, 0, 1, 1], [], []>} : vector<512x128xbf16>, vector<128x128xbf16>, vector<512x128xf32> -> vector<512x128xf32>
    %c0_61 = arith.constant 0 : index
    %c0_62 = arith.constant 0 : index
    %89 = vector.load %arg8[%c0_61, %c0_62] : memref<1x128xf32, #tpu.memory_space<vmem>>, vector<1x128xf32>
    %c0_63 = arith.constant 0 : index
    %c0_64 = arith.constant 0 : index
    %90 = vector.load %arg9[%c0_63, %c0_64] : memref<1x128xf32, #tpu.memory_space<vmem>>, vector<1x128xf32>
    %cst_65 = arith.constant dense<0.000000e+00> : vector<128xf32>
    %91 = vector.multi_reduction <add>, %88, %cst_65 [0] : vector<512x128xf32> to vector<128xf32>
    %92 = vector.shape_cast %91 : vector<128xf32> to vector<1x128xf32>
    %93 = arith.mulf %88, %88 : vector<512x128xf32>
    %cst_66 = arith.constant dense<0.000000e+00> : vector<128xf32>
    %94 = vector.multi_reduction <add>, %93, %cst_66 [0] : vector<512x128xf32> to vector<128xf32>
    %95 = vector.shape_cast %94 : vector<128xf32> to vector<1x128xf32>
    %cst_67 = arith.constant 0.001953125 : f32
    %96 = vector.broadcast %cst_67 : f32 to vector<1x128xf32>
    %97 = arith.mulf %92, %96 : vector<1x128xf32>
    %cst_68 = arith.constant 0.001953125 : f32
    %98 = vector.broadcast %cst_68 : f32 to vector<1x128xf32>
    %99 = arith.mulf %95, %98 : vector<1x128xf32>
    %100 = arith.mulf %97, %97 : vector<1x128xf32>
    %101 = arith.subf %99, %100 : vector<1x128xf32>
    %cst_69 = arith.constant 0.000000e+00 : f32
    %102 = vector.broadcast %cst_69 : f32 to vector<1x128xf32>
    %103 = arith.maximumf %101, %102 : vector<1x128xf32>
    %cst_70 = arith.constant 9.99999974E-6 : f32
    %104 = vector.broadcast %cst_70 : f32 to vector<1x128xf32>
    %105 = arith.addf %103, %104 : vector<1x128xf32>
    %106 = math.rsqrt %105 : vector<1x128xf32>
    %107 = arith.mulf %89, %106 : vector<1x128xf32>
    %108 = arith.mulf %97, %107 : vector<1x128xf32>
    %109 = arith.subf %90, %108 : vector<1x128xf32>
    %110 = vector.broadcast %82 : vector<1x128xf32> to vector<512x128xf32>
    %111 = arith.mulf %63, %110 : vector<512x128xf32>
    %112 = vector.broadcast %84 : vector<1x128xf32> to vector<512x128xf32>
    %113 = arith.addf %111, %112 : vector<512x128xf32>
    %114 = vector.broadcast %107 : vector<1x128xf32> to vector<512x128xf32>
    %115 = arith.mulf %88, %114 : vector<512x128xf32>
    %116 = arith.addf %113, %115 : vector<512x128xf32>
    %117 = vector.broadcast %109 : vector<1x128xf32> to vector<512x128xf32>
    %118 = arith.addf %116, %117 : vector<512x128xf32>
    %cst_71 = arith.constant 0.000000e+00 : f32
    %119 = vector.broadcast %cst_71 : f32 to vector<512x128xf32>
    %120 = arith.maximumf %118, %119 : vector<512x128xf32>
    %c0_72 = arith.constant 0 : index
    %c0_73 = arith.constant 0 : index
    %121 = vector.load %arg10[%c0_72, %c0_73] : memref<512x128xf32, #tpu.memory_space<vmem>>, vector<512x128xf32>
    tpu.vector_store %arg10[%c0_72, %c0_73], %120 {strides = array<i32>} : memref<512x128xf32, #tpu.memory_space<vmem>>, vector<512x128xf32>,
    return
  }
}

</mosaic_0001>

<bundles_post_ra>
// kernel: tpu_custom_call.1
= control target key start
LH: loop header
LB: loop body
LE: loop exit
PB: predicated region body
PF: predicated region fallthrough
CT: control target
= control target key end

     0   :  { %15 = vsyncpa [#allocation5], 0  ;;  %s19171_s0 = inlined_call_operand.hbm [shape: bf16[2,16,16,128], index: 0, kind: input, shape index: {}]   ;;  %s19172_s1 = inlined_call_operand.hbm [shape: bf16[1152,128], index: 1, kind: input, shape index: {}]   ;;  %s19173_s2 = inlined_call_operand.vmem [shape: f32[1,128], index: 2, kind: input, shape index: {}]   ;;  %s19174_s3 = inlined_call_operand.vmem [shape: f32[1,128], index: 3, kind: input, shape index: {}]   ;;  %s19175_s4 = inlined_call_operand.hbm [shape: bf16[1152,128], index: 4, kind: input, shape index: {}]   ;;  %s19176_s5 = inlined_call_operand.vmem [shape: f32[1,128], index: 5, kind: input, shape index: {}]   ;;  %s19177_s6 = inlined_call_operand.vmem [shape: f32[1,128], index: 6, kind: input, shape index: {}]   ;;  %s19178_s7 = inlined_call_operand.hbm [shape: bf16[128,128], index: 7, kind: input, shape index: {}]   ;;  %s19179_s8 = inlined_call_operand.vmem [shape: f32[1,128], index: 8, kind: input, shape index: {}]   ;;  %s19180_s9 = inlined_call_operand.vmem [shape: f32[1,128], index: 9, kind: input, shape index: {}]   ;;  %s19181_s10 = inlined_call_operand.hbm [shape: f32[512,128], index: 10, kind: output, shape index: {}]  }
   0x1   :  { %16 = vsyncpa [#allocation8], 0 }
   0x2   :  { %17 = vsyncpa [#allocation11], 0 }
   0x3   :  { %18 = vsyncpa [#allocation6], 0  ;;  %s12540_s13 = smov [#allocation7]   ;;  %s12541_s15 = smov [#allocation4]  }
   0x4   :  { %s36_s14 = sshll.u32 %s12540_s13, 4  ;;  %s24_s16 = sshll.u32 %s12541_s15, 4  ;;  %s37_s14 = int_to_ptr.vmem [resolvable:$true] %s36_s14  ;;  %s12605_s16 = int_to_ptr.vmem [resolvable:$true] %s24_s16 }
   0x5   :  { %s12422_s19 = scalar_lea.hbm %s19172_s1, 9216 }
   0x6   :  { %p12423_p0 = scmp.ne.s32.totalorder %s19172_s1, %s12422_s19  ;;  %p12426_p1 = scmp.lt.u32.totalorder %s12422_s19, %s19172_s1 }
   0x8   :  { %p12428_p2 = pnand %p12426_p1, %p12423_p0 }
   0xa   :  { %12431 = shalt.err (!%p12428_p2)
}
   0xb   :  { %s12432_s24 = scalar_lea.vmem %s37_s14, 9216  ;;  %p12437_p4 = scmp.lt.s32.totalorder %s37_s14, %s37_s14 }
   0xc   :  { %p12433_p3 = scmp.ne.s32.totalorder %s37_s14, %s12432_s24  ;;  %p12438_p5 = scmp.lt.s32.totalorder %s12432_s24, %s12432_s24 }
   0xe   :  { %p12439_p6 = por %p12438_p5, %p12437_p4 }
  0x10   :  { %p12440_p7 = pnand %p12439_p6, %p12433_p3 }
  0x12   :  { %12443 = shalt.err (!%p12440_p7)
}
  0x13   :  { %s12542_s25 = smov 64   ;;  %s12543_s26 = smov 4  }
  0x14   :  { %42 = dma.hbm_to_vmem [thread:$0]  %s19172_s1, 9216, %s37_s14, [#allocation8], %s12542_s25, %s12542_s25, %s12543_s26  }
  0x15   :  { %s12444_s11 = scalar_lea.hbm %s19171_s0, 4096 }
  0x16   :  { %p12445_p8 = scmp.ne.s32.totalorder %s19171_s0, %s12444_s11  ;;  %p12448_p9 = scmp.lt.u32.totalorder %s12444_s11, %s19171_s0 }
  0x18   :  { %p12450_p10 = pnand %p12448_p9, %p12445_p8 }
  0x1a   :  { %12453 = shalt.err (!%p12450_p10)
}
  0x1b   :  { %s12454_s18 = scalar_lea.vmem %s12605_s16, 4096  ;;  %p12459_p12 = scmp.lt.s32.totalorder %s12605_s16, %s12605_s16 }
  0x1c   :  { %p12455_p11 = scmp.ne.s32.totalorder %s12605_s16, %s12454_s18  ;;  %p12460_p13 = scmp.lt.s32.totalorder %s12454_s18, %s12454_s18 }
  0x1e   :  { %p12461_p0 = por %p12460_p13, %p12459_p12 }
  0x20   :  { %p12462_p1 = pnand %p12461_p0, %p12455_p11 }
  0x22   :  { %12465 = shalt.err (!%p12462_p1)
}
  0x23   :  { %30 = dma.hbm_to_vmem [thread:$0]  %s19171_s0, 4096, %s12605_s16, [#allocation5], %s12542_s25, %s12542_s25, %s12543_s26  }
  0x24   :  { %s12544_s19 = smov [#allocation9]   ;;  %s12545_s21 = smov [#allocation10]  }
  0x25   :  { %s52_s20 = sshll.u32 %s12544_s19, 4  ;;  %s68_s22 = sshll.u32 %s12545_s21, 4  ;;  %s53_s20 = int_to_ptr.vmem [resolvable:$true] %s52_s20  ;;  %s12642_s22 = int_to_ptr.vmem [resolvable:$true] %s68_s22 }
  0x26   :  { %s12466_s27 = scalar_lea.hbm %s19175_s4, 9216 }
  0x27   :  { %p12467_p2 = scmp.ne.s32.totalorder %s19175_s4, %s12466_s27  ;;  %p12470_p3 = scmp.lt.u32.totalorder %s12466_s27, %s19175_s4 }
  0x29   :  { %p12472_p4 = pnand %p12470_p3, %p12467_p2 }
  0x2b   :  { %12475 = shalt.err (!%p12472_p4)
}
  0x2c   :  { %s12476_s0 = scalar_lea.vmem %s53_s20, 9216  ;;  %p12481_p6 = scmp.lt.s32.totalorder %s53_s20, %s53_s20 }
  0x2d   :  { %p12477_p5 = scmp.ne.s32.totalorder %s53_s20, %s12476_s0  ;;  %p12482_p7 = scmp.lt.s32.totalorder %s12476_s0, %s12476_s0 }
  0x2f   :  { %p12483_p8 = por %p12482_p7, %p12481_p6 }
  0x31   :  { %p12484_p9 = pnand %p12483_p8, %p12477_p5 }
  0x33   :  { %12487 = shalt.err (!%p12484_p9)
}
  0x34   :  { %58 = dma.hbm_to_vmem [thread:$0]  %s19175_s4, 9216, %s53_s20, [#allocation8], %s12542_s25, %s12542_s25, %s12543_s26  }
  0x35   :  { %s12488_s17 = scalar_lea.hbm %s19178_s7, 1024 }
  0x36   :  { %p12489_p10 = scmp.ne.s32.totalorder %s19178_s7, %s12488_s17  ;;  %p12492_p11 = scmp.lt.u32.totalorder %s12488_s17, %s19178_s7 }
  0x38   :  { %p12494_p12 = pnand %p12492_p11, %p12489_p10 }
  0x3a   :  { %12497 = shalt.err (!%p12494_p12)
}
  0x3b   :  { %s12498_s21 = scalar_lea.vmem %s12642_s22, 1024  ;;  %p12503_p0 = scmp.lt.s32.totalorder %s12642_s22, %s12642_s22 }
  0x3c   :  { %p12499_p13 = scmp.ne.s32.totalorder %s12642_s22, %s12498_s21  ;;  %p12504_p1 = scmp.lt.s32.totalorder %s12498_s21, %s12498_s21 }
  0x3e   :  { %p12505_p2 = por %p12504_p1, %p12503_p0 }
  0x40   :  { %p12506_p3 = pnand %p12505_p2, %p12499_p13 }
  0x42   :  { %12509 = shalt.err (!%p12506_p3)
}
  0x43   :  { %74 = dma.hbm_to_vmem [thread:$0]  %s19178_s7, 1024, %s12642_s22, [#allocation11], %s12542_s25, %s12542_s25, %s12543_s26  }
  0x44   :  { %12532 = dma.done.wait [#allocation5], 4096  }
  0x45   :  { %12533 = vsyncadd [#allocation5], 4294963200 }
  0x46   :  { %12534 = dma.done.wait [#allocation8], 18432  }
  0x47   :  { %12535 = vsyncadd [#allocation8], 4294948864 }
  0x48   :  { %12536 = dma.done.wait [#allocation11], 1024  }
  0x49   :  { %12537 = vsyncadd [#allocation11], 4294966272  ;;  %v19186_v0 = vmov 0   ;;  %v11990_v1 = vld [vmem:[#allocation7] sm:$0xff]   ;;  %v11991_v2 = vld [vmem:[#allocation7 + $0x8] sm:$0xff]   ;;  %vm908_vm4 = vcmask 1043456  }
  0x4a   :  { %2759 = vmatprep.subr.bf16.mxu0 %v19186_v0  ;;  %92 = vst [vmem:[#allocation2] sm:$0xf] %v19186_v0  ;;  %93 = vst [vmem:[#allocation2 + $0x4] sm:$0xf] %v19186_v0  ;;  %v11992_v3 = vld [vmem:[#allocation7 + $0x10] sm:$0xff]   ;;  %v11993_v4 = vld [vmem:[#allocation7 + $0x18] sm:$0xff]  }
  0x4b   :  { %94 = vst [vmem:[#allocation2 + $0x8] sm:$0x1] %v19186_v0  ;;  %95 = vst [vmem:[#allocation2 + $0xc] sm:$0xf] %v19186_v0  ;;  %2760 = vmatpush1.bf16.msra.mxu0 %v11990_v1  ;;  %vm264_vm0 = vsmask.f32 256 }
  0x4c   :  { %96 = vst [vmem:[#allocation2 + $0x10] sm:$0xf] %v19186_v0  ;;  %97 = vst [vmem:[#allocation2 + $0x14] sm:$0x1] %v19186_v0  ;;  %2761 = vmatprep.subr.bf16.mxu0 %v19186_v0  ;;  %vm265_vm1 = vsmask.f32 4368 }
  0x4d   :  { %98 = vst [vmem:[#allocation2 + $0x18] sm:$0xf] %v19186_v0  ;;  %99 = vst [vmem:[#allocation2 + $0x1c] sm:$0xf] %v19186_v0  ;;  %v11994_v5 = vld [vmem:[#allocation7 + $0x20] sm:$0xff]   ;;  %v11995_v8 = vld [vmem:[#allocation7 + $0x28] sm:$0xff]  }
  0x4e   :  { %100 = vst [vmem:[#allocation2 + $0x20] sm:$0x1] %v19186_v0  ;;  %101 = vst [vmem:[#allocation2 + $0x24] sm:$0xf] %v19186_v0  ;;  %vm1533_vm2 = vsmask.f32 7424 }
  0x4f   :  { %102 = vst [vmem:[#allocation2 + $0x28] sm:$0xf] %v19186_v0  ;;  %103 = vst [vmem:[#allocation2 + $0x2c] sm:$0x1] %v19186_v0  ;;  %2762 = vmatpush1.bf16.msra.mxu0 %v11991_v2  ;;  %vm909_vm3 = vsmask.f32 7938 }
  0x50   :  { %104 = vst [vmem:[#allocation2 + $0x30] sm:$0xf] %v19186_v0  ;;  %105 = vst [vmem:[#allocation2 + $0x34] sm:$0xf] %v19186_v0  ;;  %2763 = vmatprep.subr.bf16.mxu0 %v19186_v0  ;;  %v200_v9 = vld [vmem:[#allocation4] sm:$0xf] }
  0x51   :  { %106 = vst [vmem:[#allocation2 + $0x38] sm:$0x1] %v19186_v0  ;;  %107 = vst [vmem:[#allocation2 + $0x3c] sm:$0xf] %v19186_v0  ;;  %v12900_v6 = vld [vmem:[#allocation2] sm:$0xff]   ;;  %vm915_vm5 = vcmask 1040384  }
  0x52   :  { %108 = vst [vmem:[#allocation2 + $0x40] sm:$0xf] %v19186_v0  ;;  %109 = vst [vmem:[#allocation2 + $0x44] sm:$0x1] %v19186_v0  ;;  %v1535_v10 = vshrl.u32 %v12900_v6, 16  ;;  %v1537_v11 = vshll.u32 %v12900_v6, 16 }
  0x53   :  { %110 = vst [vmem:[#allocation2 + $0x48] sm:$0xf] %v19186_v0  ;;  %111 = vst [vmem:[#allocation2 + $0x4c] sm:$0xf] %v19186_v0  ;;  %2764 = vmatpush1.bf16.msra.mxu0 %v11992_v3  ;;  %v201_v13 = vld [vmem:[#allocation4 + $0x4] sm:$0xf] }
  0x54   :  { %112 = vst [vmem:[#allocation2 + $0x50] sm:$0x1] %v19186_v0  ;;  %113 = vst [vmem:[#allocation2 + $0x54] sm:$0xf] %v19186_v0  ;;  %2765 = vmatprep.subr.bf16.mxu0 %v19186_v0  ;;  %v268_v14 = vshrl.u32 %v200_v9, 16  ;;  %v271_v15 = vshll.u32 %v200_v9, 16 }
  0x55   :  { %114 = vst [vmem:[#allocation2 + $0x58] sm:$0xf] %v19186_v0  ;;  %115 = vst [vmem:[#allocation2 + $0x5c] sm:$0x1] %v19186_v0  ;;  %v276_v16 = vshrl.u32 %v201_v13, 16  ;;  %v279_v17 = vshll.u32 %v201_v13, 16 }
  0x56   :  { %116 = vst [vmem:[#allocation2 + $0x60] sm:$0xf] %v19186_v0  ;;  %117 = vst [vmem:[#allocation2 + $0x64] sm:$0xf] %v19186_v0  ;;  %v1539_v18 = vrot.slane %v1537_v11, 1  ;;  %v19460_v20 = vmov 0 }
  0x57   :  { %118 = vst [vmem:[#allocation2 + $0x68] sm:$0x1] %v19186_v0  ;;  %119 = vst [vmem:[#allocation2 + $0x6c] sm:$0xf] %v19186_v0  ;;  %2766 = vmatpush1.bf16.msra.mxu0 %v11993_v4  ;;  %v911_v21 = vld [vmem:[#allocation2 + $0xc] sm:$0xf] }
  0x58   :  { %120 = vst [vmem:[#allocation2 + $0x70] sm:$0xf] %v19186_v0  ;;  %121 = vst [vmem:[#allocation2 + $0x74] sm:$0x1] %v19186_v0  ;;  %2767 = vmatprep.subr.bf16.mxu0 %v19186_v0  ;;  %v202_v22 = vld [vmem:[#allocation4 + $0x8] sm:$0xf]  ;;  %v1540_v29 = vor.u32 %v1539_v18, %v1535_v10 }
  0x59   :  { %122 = vst [vmem:[#allocation2 + $0x78] sm:$0xf] %v19186_v0  ;;  %123 = vst [vmem:[#allocation2 + $0x7c] sm:$0xf] %v19186_v0  ;;  %v11996_v23 = vld [vmem:[#allocation7 + $0x30] sm:$0xff]   ;;  %v270_v24 = vrot.slane %v268_v14, 7 }
  0x5a   :  { %124 = vst [vmem:[#allocation2 + $0x80] sm:$0x1] %v19186_v0  ;;  %125 = vst [vmem:[#allocation2 + $0x84] sm:$0xf] %v19186_v0  ;;  %v278_v25 = vrot.slane %v276_v16, 7  ;;  %v19463_v26 = vmov 0 }
  0x5b   :  { %126 = vst [vmem:[#allocation2 + $0x88] sm:$0xf] %v19186_v0  ;;  %127 = vst [vmem:[#allocation2 + $0x8c] sm:$0x1] %v19186_v0  ;;  %2768 = vmatpush1.bf16.msra.mxu0 %v11994_v5  ;;  %v203_v27 = vld [vmem:[#allocation4 + $0xc] sm:$0xf]  ;;  %v273_v35 = vor.u32 %v271_v15, %v270_v24 }
  0x5c   :  { %128 = vst [vmem:[#allocation2 + $0x90] sm:$0xf] %v19186_v0  ;;  %129 = vst [vmem:[#allocation2 + $0x94] sm:$0xf] %v19186_v0  ;;  %2769 = vmatprep.subr.bf16.mxu0 %v19186_v0  ;;  %v285_v28 = vshrl.u32 %v202_v22, 16  ;;  %v19466_v30 = vmov 0  ;;  %v281_v37 = vor.u32 %v279_v17, %v278_v25 }
  0x5d   :  { %130 = vst [vmem:[#allocation2 + $0x98] sm:$0x1] %v19186_v0  ;;  %131 = vst [vmem:[#allocation2 + $0x9c] sm:$0xf] %v19186_v0  ;;  %v917_v31 = vld [vmem:[#allocation2 + $0x14] sm:$0x1] }
  0x5e   :  { %132 = vst [vmem:[#allocation2 + $0xa0] sm:$0xf] %v19186_v0  ;;  %133 = vst [vmem:[#allocation2 + $0xa4] sm:$0x1] %v19186_v0  ;;  %v288_v32 = vshll.u32 %v202_v22, 16  ;;  %v293_v33 = vshrl.u32 %v203_v27, 16 }
  0x5f   :  { %134 = vst [vmem:[#allocation2 + $0xa8] sm:$0xf] %v19186_v0  ;;  %135 = vst [vmem:[#allocation2 + $0xac] sm:$0xf] %v19186_v0  ;;  %2770 = vmatpush1.bf16.msra.mxu0 %v11995_v8  ;;  %v296_v34 = vshll.u32 %v203_v27, 16  ;;  %v274_v36 = vrot.slane %v270_v24, 4 }
  0x60   :  { %136 = vst [vmem:[#allocation2 + $0xb0] sm:$0x1] %v19186_v0  ;;  %137 = vst [vmem:[#allocation2 + $0xb4] sm:$0xf] %v19186_v0  ;;  %2771 = vmatprep.subr.bf16.mxu0 %v19186_v0  ;;  %v283_v38 = vrot.slane %v278_v25, 4  ;;  %v287_v40 = vrot.slane %v285_v28, 7 }
  0x61   :  { %138 = vst [vmem:[#allocation2 + $0xb8] sm:$0xf] %v19186_v0  ;;  %139 = vst [vmem:[#allocation2 + $0xbc] sm:$0x1] %v19186_v0  ;;  %v295_v41 = vrot.slane %v293_v33, 7  ;;  %v11997_v44 = vld [vmem:[#allocation7 + $0x38] sm:$0xff]  }
  0x62   :  { %140 = vst [vmem:[#allocation2 + $0xc0] sm:$0xf] %v19186_v0  ;;  %141 = vst [vmem:[#allocation2 + $0xc4] sm:$0xf] %v19186_v0  ;;  %v920_v42 = vld [vmem:[#allocation2 + $0x18] sm:$0xf]  ;;  %v290_v51 = vor.u32 %v288_v32, %v287_v40 }
  0x63   :  { %142 = vst [vmem:[#allocation2 + $0xc8] sm:$0x1] %v19186_v0  ;;  %143 = vst [vmem:[#allocation2 + $0xcc] sm:$0xf] %v19186_v0  ;;  %v204_v43 = vld [vmem:[#allocation4 + $0x10] sm:$0xf]  ;;  %2772 = vmatpush1.bf16.msra.mxu0 %v11996_v23  ;;  %v298_v53 = vor.u32 %v296_v34, %v295_v41 }
  0x64   :  { %144 = vst [vmem:[#allocation2 + $0xd0] sm:$0xf] %v19186_v0  ;;  %145 = vst [vmem:[#allocation2 + $0xd4] sm:$0x1] %v19186_v0  ;;  %v924_v48 = vld [vmem:[#allocation2 + $0x20] sm:$0x1]  ;;  %2773 = vmatprep.subr.bf16.mxu0 %v19186_v0 }
  0x65   :  { %146 = vst [vmem:[#allocation2 + $0xd8] sm:$0xf] %v19186_v0  ;;  %147 = vst [vmem:[#allocation2 + $0xdc] sm:$0xf] %v19186_v0  ;;  %v205_v49 = vld [vmem:[#allocation4 + $0x14] sm:$0xf] }
  0x66   :  { %148 = vst [vmem:[#allocation2 + $0xe0] sm:$0x1] %v19186_v0  ;;  %149 = vst [vmem:[#allocation2 + $0xe4] sm:$0xf] %v19186_v0  ;;  %v302_v50 = vshrl.u32 %v204_v43, 16  ;;  %v291_v52 = vrot.slane %v287_v40, 4 }
  0x67   :  { %150 = vst [vmem:[#allocation2 + $0xe8] sm:$0xf] %v19186_v0  ;;  %151 = vst [vmem:[#allocation2 + $0xec] sm:$0x1] %v19186_v0  ;;  %v300_v54 = vrot.slane %v295_v41, 4  ;;  %v305_v57 = vshll.u32 %v204_v43, 16  ;;  %2774 = vmatpush1.bf16.msra.mxu0 %v11997_v44 }
  0x68   :  { %152 = vst [vmem:[#allocation2 + $0xf0] sm:$0xf] %v19186_v0  ;;  %153 = vst [vmem:[#allocation2 + $0xf4] sm:$0xf] %v19186_v0  ;;  %v206_v55 = vld [vmem:[#allocation4 + $0x18] sm:$0xf]  ;;  %2775 = vmatprep.subr.bf16.mxu0 %v19186_v0 }
  0x69   :  { %154 = vst [vmem:[#allocation2 + $0xf8] sm:$0x1] %v19186_v0  ;;  %155 = vst [vmem:[#allocation2 + $0xfc] sm:$0xf] %v19186_v0  ;;  %v304_v56 = vrot.slane %v302_v50, 7  ;;  %v310_v58 = vshrl.u32 %v205_v49, 16 }
  0x6a   :  { %156 = vst [vmem:[#allocation2 + $0x100] sm:$0xf] %v19186_v0  ;;  %157 = vst [vmem:[#allocation2 + $0x104] sm:$0x1] %v19186_v0  ;;  %v313_v59 = vshll.u32 %v205_v49, 16  ;;  %v319_v3 = vshrl.u32 %v206_v55, 16 }
  0x6b   :  { %158 = vst [vmem:[#allocation2 + $0x108] sm:$0xf] %v19186_v0  ;;  %159 = vst [vmem:[#allocation2 + $0x10c] sm:$0xf] %v19186_v0  ;;  %v207_v60 = vld [vmem:[#allocation4 + $0x1c] sm:$0xf]  ;;  %v307_v5 = vor.u32 %v305_v57, %v304_v56 }
  0x6c   :  { %160 = vst [vmem:[#allocation2 + $0x110] sm:$0x1] %v19186_v0  ;;  %161 = vst [vmem:[#allocation2 + $0x114] sm:$0xf] %v19186_v0  ;;  %v927_v1 = vld [vmem:[#allocation2 + $0x24] sm:$0xf] }
  0x6d   :  { %162 = vst [vmem:[#allocation2 + $0x118] sm:$0xf] %v19186_v0  ;;  %163 = vst [vmem:[#allocation2 + $0x11c] sm:$0x1] %v19186_v0  ;;  %v931_v2 = vld [vmem:[#allocation2 + $0x2c] sm:$0x1] }
  0x6e   :  { %164 = vst [vmem:[#allocation2 + $0x120] sm:$0xf] %v19186_v0  ;;  %165 = vst [vmem:[#allocation2 + $0x124] sm:$0xf] %v19186_v0  ;;  %v11998_v4 = vld [vmem:[#allocation7 + $0x40] sm:$0xff]   ;;  %v312_v8 = vrot.slane %v310_v58, 7 }
  0x6f   :  { %166 = vst [vmem:[#allocation2 + $0x128] sm:$0x1] %v19186_v0  ;;  %167 = vst [vmem:[#allocation2 + $0x12c] sm:$0xf] %v19186_v0  ;;  %v322_v9 = vshll.u32 %v206_v55, 16  ;;  %v321_v10 = vrot.slane %v319_v3, 7  ;;  %2776 = vmatpush1.bf16.msra.mxu0 %v11998_v4 }
  0x70   :  { %168 = vst [vmem:[#allocation2 + $0x130] sm:$0xf] %v19186_v0  ;;  %169 = vst [vmem:[#allocation2 + $0x134] sm:$0x1] %v19186_v0  ;;  %v327_v11 = vshrl.u32 %v207_v60, 16  ;;  %v315_v13 = vor.u32 %v313_v59, %v312_v8  ;;  %v317_v14 = vrot.slane %v312_v8, 4  ;;  %2777 = vmatprep.subr.bf16.mxu0 %v19186_v0 }
  0x71   :  { %170 = vst [vmem:[#allocation2 + $0x138] sm:$0xf] %v19186_v0  ;;  %171 = vst [vmem:[#allocation2 + $0x13c] sm:$0xf] %v19186_v0  ;;  %v934_v16 = vld [vmem:[#allocation2 + $0x30] sm:$0xf] }
  0x72   :  { %172 = vst [vmem:[#allocation2 + $0x140] sm:$0x1] %v19186_v0  ;;  %173 = vst [vmem:[#allocation2 + $0x144] sm:$0xf] %v19186_v0  ;;  %v208_v17 = vld [vmem:[#allocation4 + $0x20] sm:$0xf] }
  0x73   :  { %174 = vst [vmem:[#allocation2 + $0x148] sm:$0xf] %v19186_v0  ;;  %175 = vst [vmem:[#allocation2 + $0x14c] sm:$0x1] %v19186_v0  ;;  %v11999_v18 = vld [vmem:[#allocation7 + $0x48] sm:$0xff]   ;;  %v329_v22 = vrot.slane %v327_v11, 7 }
  0x74   :  { %176 = vst [vmem:[#allocation2 + $0x150] sm:$0xf] %v19186_v0  ;;  %177 = vst [vmem:[#allocation2 + $0x154] sm:$0xf] %v19186_v0  ;;  %v209_v23 = vld [vmem:[#allocation4 + $0x24] sm:$0xf]  ;;  %2778 = vmatpush1.bf16.msra.mxu0 %v11999_v18 }
  0x75   :  { %178 = vst [vmem:[#allocation2 + $0x158] sm:$0x1] %v19186_v0  ;;  %179 = vst [vmem:[#allocation2 + $0x15c] sm:$0xf] %v19186_v0  ;;  %v336_v24 = vshrl.u32 %v208_v17, 16  ;;  %v339_v34 = vshll.u32 %v208_v17, 16  ;;  %2779 = vmatprep.subr.bf16.mxu0 %v19186_v0 }
  0x76   :  { %180 = vst [vmem:[#allocation2 + $0x160] sm:$0xf] %v19186_v0  ;;  %181 = vst [vmem:[#allocation2 + $0x164] sm:$0x1] %v19186_v0  ;;  %v938_v32 = vld [vmem:[#allocation2 + $0x38] sm:$0x1] }
  0x77   :  { %182 = vst [vmem:[#allocation2 + $0x168] sm:$0xf] %v19186_v0  ;;  %183 = vst [vmem:[#allocation2 + $0x16c] sm:$0xf] %v19186_v0  ;;  %v338_v33 = vrot.slane %v336_v24, 7  ;;  %vm1950_vm9 = vcmask 1046528  }
  0x78   :  { %184 = vst [vmem:[#allocation2 + $0x170] sm:$0x1] %v19186_v0  ;;  %185 = vst [vmem:[#allocation2 + $0x174] sm:$0xf] %v19186_v0  ;;  %v945_v44 = vld [vmem:[#allocation2 + $0x44] sm:$0x1] }
  0x79   :  { %186 = vst [vmem:[#allocation2 + $0x178] sm:$0xf] %v19186_v0  ;;  %187 = vst [vmem:[#allocation2 + $0x17c] sm:$0x1] %v19186_v0  ;;  %v341_v41 = vor.u32 %v339_v34, %v338_v33  ;;  %v211_v49 = vld [vmem:[#allocation4 + $0x2c] sm:$0xf] }
  0x7a   :  { %188 = vst [vmem:[#allocation2 + $0x180] sm:$0xf] %v19186_v0  ;;  %189 = vst [vmem:[#allocation2 + $0x184] sm:$0xf] %v19186_v0  ;;  %v361_v58 = vshrl.u32 %v211_v49, 16 }
  0x7b   :  { %190 = vst [vmem:[#allocation2 + $0x188] sm:$0x1] %v19186_v0  ;;  %191 = vst [vmem:[#allocation2 + $0x18c] sm:$0xf] %v19186_v0  ;;  %v948_v59 = vld [vmem:[#allocation2 + $0x48] sm:$0xf] }
  0x7c   :  { %192 = vst [vmem:[#allocation2 + $0x190] sm:$0xf] %v19186_v0  ;;  %193 = vst [vmem:[#allocation2 + $0x194] sm:$0x1] %v19186_v0  ;;  %v213_v11 = vld [vmem:[#allocation4 + $0x34] sm:$0xf] }
  0x7d   :  { %194 = vst [vmem:[#allocation2 + $0x198] sm:$0xf] %v19186_v0  ;;  %195 = vst [vmem:[#allocation2 + $0x19c] sm:$0xf] %v19186_v0 }
  0x7e   :  { %196 = vst [vmem:[#allocation2 + $0x1a0] sm:$0x1] %v19186_v0  ;;  %197 = vst [vmem:[#allocation2 + $0x1a4] sm:$0xf] %v19186_v0 }
  0x7f   :  { %198 = vst [vmem:[#allocation2 + $0x1a8] sm:$0xf] %v19186_v0  ;;  %199 = vst [vmem:[#allocation2 + $0x1ac] sm:$0x1] %v19186_v0 }
  0x80   :  { %4654 = vst [vmem:[#allocation3] sm:$0xf] %v19186_v0  ;;  %4655 = vst [vmem:[#allocation3 + $0x4] sm:$0xf] %v19186_v0 }
  0x81   :  { %4656 = vst [vmem:[#allocation3 + $0x8] sm:$0x1] %v19186_v0  ;;  %4657 = vst [vmem:[#allocation3 + $0xc] sm:$0xf] %v19186_v0 }
  0x82   :  { %4658 = vst [vmem:[#allocation3 + $0x10] sm:$0xf] %v19186_v0  ;;  %4659 = vst [vmem:[#allocation3 + $0x14] sm:$0x1] %v19186_v0 }
  0x83   :  { %4660 = vst [vmem:[#allocation3 + $0x18] sm:$0xf] %v19186_v0  ;;  %4661 = vst [vmem:[#allocation3 + $0x1c] sm:$0xf] %v19186_v0 }
  0x84   :  { %4662 = vst [vmem:[#allocation3 + $0x20] sm:$0x1] %v19186_v0  ;;  %4663 = vst [vmem:[#allocation3 + $0x24] sm:$0xf] %v19186_v0 }
  0x85   :  { %4664 = vst [vmem:[#allocation3 + $0x28] sm:$0xf] %v19186_v0  ;;  %4665 = vst [vmem:[#allocation3 + $0x2c] sm:$0x1] %v19186_v0 }
  0x86   :  { %4666 = vst [vmem:[#allocation3 + $0x30] sm:$0xf] %v19186_v0  ;;  %4667 = vst [vmem:[#allocation3 + $0x34] sm:$0xf] %v19186_v0 }
  0x87   :  { %4668 = vst [vmem:[#allocation3 + $0x38] sm:$0x1] %v19186_v0  ;;  %4669 = vst [vmem:[#allocation3 + $0x3c] sm:$0xf] %v19186_v0 }
  0x88   :  { %4670 = vst [vmem:[#allocation3 + $0x40] sm:$0xf] %v19186_v0  ;;  %4671 = vst [vmem:[#allocation3 + $0x44] sm:$0x1] %v19186_v0 }
  0x89   :  { %4672 = vst [vmem:[#allocation3 + $0x48] sm:$0xf] %v19186_v0  ;;  %4673 = vst [vmem:[#allocation3 + $0x4c] sm:$0xf] %v19186_v0 }
  0x8a   :  { %4674 = vst [vmem:[#allocation3 + $0x50] sm:$0x1] %v19186_v0  ;;  %4675 = vst [vmem:[#allocation3 + $0x54] sm:$0xf] %v19186_v0 }
  0x8b   :  { %4676 = vst [vmem:[#allocation3 + $0x58] sm:$0xf] %v19186_v0  ;;  %4677 = vst [vmem:[#allocation3 + $0x5c] sm:$0x1] %v19186_v0 }
  0x8c   :  { %4678 = vst [vmem:[#allocation3 + $0x60] sm:$0xf] %v19186_v0  ;;  %4679 = vst [vmem:[#allocation3 + $0x64] sm:$0xf] %v19186_v0 }
  0x8d   :  { %4680 = vst [vmem:[#allocation3 + $0x68] sm:$0x1] %v19186_v0  ;;  %4681 = vst [vmem:[#allocation3 + $0x6c] sm:$0xf] %v19186_v0 }
  0x8e   :  { %4682 = vst [vmem:[#allocation3 + $0x70] sm:$0xf] %v19186_v0  ;;  %4683 = vst [vmem:[#allocation3 + $0x74] sm:$0x1] %v19186_v0 }
  0x8f   :  { %4684 = vst [vmem:[#allocation3 + $0x78] sm:$0xf] %v19186_v0  ;;  %4685 = vst [vmem:[#allocation3 + $0x7c] sm:$0xf] %v19186_v0 }
  0x90   :  { %4686 = vst [vmem:[#allocation3 + $0x80] sm:$0x1] %v19186_v0  ;;  %4687 = vst [vmem:[#allocation3 + $0x84] sm:$0xf] %v19186_v0 }
  0x91   :  { %4688 = vst [vmem:[#allocation3 + $0x88] sm:$0xf] %v19186_v0  ;;  %4689 = vst [vmem:[#allocation3 + $0x8c] sm:$0x1] %v19186_v0 }
  0x92   :  { %4690 = vst [vmem:[#allocation3 + $0x90] sm:$0xf] %v19186_v0  ;;  %4691 = vst [vmem:[#allocation3 + $0x94] sm:$0xf] %v19186_v0 }
  0x93   :  { %4692 = vst [vmem:[#allocation3 + $0x98] sm:$0x1] %v19186_v0  ;;  %4693 = vst [vmem:[#allocation3 + $0x9c] sm:$0xf] %v19186_v0 }
  0x94   :  { %4694 = vst [vmem:[#allocation3 + $0xa0] sm:$0xf] %v19186_v0  ;;  %4695 = vst [vmem:[#allocation3 + $0xa4] sm:$0x1] %v19186_v0 }
  0x95   :  { %4696 = vst [vmem:[#allocation3 + $0xa8] sm:$0xf] %v19186_v0  ;;  %4697 = vst [vmem:[#allocation3 + $0xac] sm:$0xf] %v19186_v0 }
  0x96   :  { %4698 = vst [vmem:[#allocation3 + $0xb0] sm:$0x1] %v19186_v0  ;;  %4699 = vst [vmem:[#allocation3 + $0xb4] sm:$0xf] %v19186_v0 }
  0x97   :  { %4700 = vst [vmem:[#allocation3 + $0xb8] sm:$0xf] %v19186_v0  ;;  %4701 = vst [vmem:[#allocation3 + $0xbc] sm:$0x1] %v19186_v0 }
  0x98   :  { %4702 = vst [vmem:[#allocation3 + $0xc0] sm:$0xf] %v19186_v0  ;;  %4703 = vst [vmem:[#allocation3 + $0xc4] sm:$0xf] %v19186_v0 }
  0x99   :  { %4704 = vst [vmem:[#allocation3 + $0xc8] sm:$0x1] %v19186_v0  ;;  %4705 = vst [vmem:[#allocation3 + $0xcc] sm:$0xf] %v19186_v0 }
  0x9a   :  { %4706 = vst [vmem:[#allocation3 + $0xd0] sm:$0xf] %v19186_v0  ;;  %4707 = vst [vmem:[#allocation3 + $0xd4] sm:$0x1] %v19186_v0 }
  0x9b   :  { %4708 = vst [vmem:[#allocation3 + $0xd8] sm:$0xf] %v19186_v0  ;;  %4709 = vst [vmem:[#allocation3 + $0xdc] sm:$0xf] %v19186_v0 }
  0x9c   :  { %4710 = vst [vmem:[#allocation3 + $0xe0] sm:$0x1] %v19186_v0  ;;  %4711 = vst [vmem:[#allocation3 + $0xe4] sm:$0xf] %v19186_v0 }
  0x9d   :  { %4712 = vst [vmem:[#allocation3 + $0xe8] sm:$0xf] %v19186_v0  ;;  %4713 = vst [vmem:[#allocation3 + $0xec] sm:$0x1] %v19186_v0 }
  0x9e   :  { %4714 = vst [vmem:[#allocation3 + $0xf0] sm:$0xf] %v19186_v0  ;;  %4715 = vst [vmem:[#allocation3 + $0xf4] sm:$0xf] %v19186_v0 }
  0x9f   :  { %4716 = vst [vmem:[#allocation3 + $0xf8] sm:$0x1] %v19186_v0  ;;  %4717 = vst [vmem:[#allocation3 + $0xfc] sm:$0xf] %v19186_v0 }
  0xa0   :  { %4718 = vst [vmem:[#allocation3 + $0x100] sm:$0xf] %v19186_v0  ;;  %4719 = vst [vmem:[#allocation3 + $0x104] sm:$0x1] %v19186_v0 }
  0xa1   :  { %4720 = vst [vmem:[#allocation3 + $0x108] sm:$0xf] %v19186_v0  ;;  %4721 = vst [vmem:[#allocation3 + $0x10c] sm:$0xf] %v19186_v0 }
  0xa2   :  { %4722 = vst [vmem:[#allocation3 + $0x110] sm:$0x1] %v19186_v0  ;;  %4723 = vst [vmem:[#allocation3 + $0x114] sm:$0xf] %v19186_v0 }
  0xa3   :  { %4724 = vst [vmem:[#allocation3 + $0x118] sm:$0xf] %v19186_v0  ;;  %4725 = vst [vmem:[#allocation3 + $0x11c] sm:$0x1] %v19186_v0 }
  0xa4   :  { %4726 = vst [vmem:[#allocation3 + $0x120] sm:$0xf] %v19186_v0  ;;  %4727 = vst [vmem:[#allocation3 + $0x124] sm:$0xf] %v19186_v0 }
  0xa5   :  { %4728 = vst [vmem:[#allocation3 + $0x128] sm:$0x1] %v19186_v0  ;;  %4729 = vst [vmem:[#allocation3 + $0x12c] sm:$0xf] %v19186_v0 }
  0xa6   :  { %4730 = vst [vmem:[#allocation3 + $0x130] sm:$0xf] %v19186_v0  ;;  %4731 = vst [vmem:[#allocation3 + $0x134] sm:$0x1] %v19186_v0 }
  0xa7   :  { %4732 = vst [vmem:[#allocation3 + $0x138] sm:$0xf] %v19186_v0  ;;  %4733 = vst [vmem:[#allocation3 + $0x13c] sm:$0xf] %v19186_v0 }
  0xa8   :  { %4734 = vst [vmem:[#allocation3 + $0x140] sm:$0x1] %v19186_v0  ;;  %4735 = vst [vmem:[#allocation3 + $0x144] sm:$0xf] %v19186_v0 }
  0xa9   :  { %4736 = vst [vmem:[#allocation3 + $0x148] sm:$0xf] %v19186_v0  ;;  %4737 = vst [vmem:[#allocation3 + $0x14c] sm:$0x1] %v19186_v0 }
  0xaa   :  { %4738 = vst [vmem:[#allocation3 + $0x150] sm:$0xf] %v19186_v0  ;;  %4739 = vst [vmem:[#allocation3 + $0x154] sm:$0xf] %v19186_v0 }
  0xab   :  { %4740 = vst [vmem:[#allocation3 + $0x158] sm:$0x1] %v19186_v0  ;;  %4741 = vst [vmem:[#allocation3 + $0x15c] sm:$0xf] %v19186_v0 }
  0xac   :  { %4742 = vst [vmem:[#allocation3 + $0x160] sm:$0xf] %v19186_v0  ;;  %4743 = vst [vmem:[#allocation3 + $0x164] sm:$0x1] %v19186_v0 }
  0xad   :  { %4744 = vst [vmem:[#allocation3 + $0x168] sm:$0xf] %v19186_v0  ;;  %4745 = vst [vmem:[#allocation3 + $0x16c] sm:$0xf] %v19186_v0 }
  0xae   :  { %4746 = vst [vmem:[#allocation3 + $0x170] sm:$0x1] %v19186_v0  ;;  %4747 = vst [vmem:[#allocation3 + $0x174] sm:$0xf] %v19186_v0 }
  0xaf   :  { %4748 = vst [vmem:[#allocation3 + $0x178] sm:$0xf] %v19186_v0  ;;  %4749 = vst [vmem:[#allocation3 + $0x17c] sm:$0x1] %v19186_v0 }
  0xb0   :  { %4750 = vst [vmem:[#allocation3 + $0x180] sm:$0xf] %v19186_v0  ;;  %4751 = vst [vmem:[#allocation3 + $0x184] sm:$0xf] %v19186_v0 }
  0xb1   :  { %4752 = vst [vmem:[#allocation3 + $0x188] sm:$0x1] %v19186_v0  ;;  %4753 = vst [vmem:[#allocation3 + $0x18c] sm:$0xf] %v19186_v0 }
  0xb2   :  { %4754 = vst [vmem:[#allocation3 + $0x190] sm:$0xf] %v19186_v0  ;;  %4755 = vst [vmem:[#allocation3 + $0x194] sm:$0x1] %v19186_v0 }
  0xb3   :  { %4756 = vst [vmem:[#allocation3 + $0x198] sm:$0xf] %v19186_v0  ;;  %4757 = vst [vmem:[#allocation3 + $0x19c] sm:$0xf] %v19186_v0 }
  0xb4   :  { %4758 = vst [vmem:[#allocation3 + $0x1a0] sm:$0x1] %v19186_v0  ;;  %4759 = vst [vmem:[#allocation3 + $0x1a4] sm:$0xf] %v19186_v0 }
  0xb5   :  { %4760 = vst [vmem:[#allocation3 + $0x1a8] sm:$0xf] %v19186_v0  ;;  %4761 = vst [vmem:[#allocation3 + $0x1ac] sm:$0x1] %v19186_v0 }
  0xb6   :  { %v12007_v7 = vld [vmem:[#allocation2 + $0x8] ss:$0 sps:$4 sm:$0x11]   ;;  %vm12907_vm6 = vmor %vm264_vm0, %vm265_vm1 }
  0xb7   :  { %v1542_v12 = vshll.u32 %v12007_v7, 16  ;;  %v19461_v20 = vsel %vm12907_vm6, 4294967295, %v19460_v20  ;;  %vm12913_vm7 = vmand %vm908_vm4, %vm909_vm3  ;;  %v282_v45 = vsel %vm12907_vm6, %v274_v36, %v281_v37  ;;  %v299_v61 = vsel %vm12907_vm6, %v291_v52, %v298_v53  ;;  %v12000_v37 = vld [vmem:[#allocation7 + $0x50] sm:$0xff]  }
  0xb8   :  { %19462 = vst [vmem:[#allocation17_spill] sm:$0xff] %v19461_v20  ;;  %v19464_v26 = vsel %vm12913_vm7, 4294967295, %v19463_v26  ;;  %vm12920_vm8 = vmand %vm915_vm5, %vm264_vm0  ;;  %v912_v46 = vsel %vm12913_vm7, %v273_v35, %v911_v21  ;;  %v921_v62 = vsel %vm12913_vm7, %v290_v51, %v920_v42  ;;  %v308_v7 = vrot.slane %v304_v56, 4  ;;  %2780 = vmatpush1.bf16.msra.mxu0 %v12000_v37  ;;  %v12001_v51 = vld [vmem:[#allocation7 + $0x58] sm:$0xff]  }
  0xb9   :  { %v1544_v19 = vrot.slane %v1542_v12, 1  ;;  %19465 = vst [vmem:[#allocation18_spill] sm:$0xff] %v19464_v26  ;;  %v19467_v30 = vsel %vm12920_vm8, 4294967295, %v19466_v30  ;;  %v918_v47 = vsel %vm12920_vm8, %v283_v38, %v917_v31  ;;  %913 = vst [vmem:[#allocation2 + $0xc] sm:$0xf] %v912_v46  ;;  %v925_v63 = vsel %vm12920_vm8, %v300_v54, %v924_v48  ;;  %2781 = vmatprep.subr.bf16.mxu0 %v19186_v0 }
  0xba   :  { %19468 = vst [vmem:[#allocation19_spill] sm:$0xff] %v19467_v30  ;;  %914 = vst [vmem:[#allocation2 + $0x10] sm:$0xf] %v282_v45  ;;  %v330_v12 = vshll.u32 %v207_v60, 16  ;;  %v928_v15 = vsel %vm12913_vm7, %v307_v5, %v927_v1  ;;  %v325_v21 = vrot.slane %v321_v10, 4  ;;  %v316_v25 = vsel %vm12907_vm6, %v308_v7, %v315_v13  ;;  %v12002_v60 = vld [vmem:[#allocation7 + $0x60] sm:$0xff]  }
  0xbb   :  { %v1545_v39 = vsel %vm1533_vm2, %v1540_v29, %v1544_v19  ;;  %919 = vst [vmem:[#allocation2 + $0x14] sm:$0x1] %v918_v47  ;;  %922 = vst [vmem:[#allocation2 + $0x18] sm:$0xf] %v921_v62  ;;  %v324_v19 = vor.u32 %v322_v9, %v321_v10  ;;  %v932_v27 = vsel %vm12920_vm8, %v317_v14, %v931_v2  ;;  %v334_v29 = vrot.slane %v329_v22, 4  ;;  %v13834_v30 = vld [vmem:[#allocation7 + $0x230] sm:$0xff]  }
  0xbc   :  { %2791 = vmatprep.mubr.bf16.mxu0 %v1545_v39  ;;  %923 = vst [vmem:[#allocation2 + $0x1c] sm:$0xf] %v299_v61  ;;  %926 = vst [vmem:[#allocation2 + $0x20] sm:$0x1] %v925_v63  ;;  %v332_v28 = vor.u32 %v330_v12, %v329_v22  ;;  %v344_v35 = vshrl.u32 %v209_v23, 16  ;;  %v347_v36 = vshll.u32 %v209_v23, 16  ;;  %2782 = vmatpush1.bf16.msra.mxu0 %v12001_v51 }
  0xbd   :  { %929 = vst [vmem:[#allocation2 + $0x24] sm:$0xf] %v928_v15  ;;  %930 = vst [vmem:[#allocation2 + $0x28] sm:$0xf] %v316_v25  ;;  %v935_v31 = vsel %vm12913_vm7, %v324_v19, %v934_v16  ;;  %v941_v39 = vld [vmem:[#allocation2 + $0x3c] sm:$0xf]  ;;  %v939_v40 = vsel %vm12920_vm8, %v334_v29, %v938_v32  ;;  %2783 = vmatprep.subr.bf16.mxu0 %v19186_v0 }
  0xbe   :  { %933 = vst [vmem:[#allocation2 + $0x2c] sm:$0x1] %v932_v27  ;;  %936 = vst [vmem:[#allocation2 + $0x30] sm:$0xf] %v935_v31  ;;  %v333_v38 = vsel %vm12907_vm6, %v325_v21, %v332_v28  ;;  %v342_v42 = vrot.slane %v338_v33, 4  ;;  %v346_v43 = vrot.slane %v344_v35, 7  ;;  %v942_v47 = vsel %vm12913_vm7, %v341_v41, %v941_v39 }
  0xbf   :  { %937 = vst [vmem:[#allocation2 + $0x34] sm:$0xf] %v333_v38  ;;  %940 = vst [vmem:[#allocation2 + $0x38] sm:$0x1] %v939_v40  ;;  %v210_v48 = vld [vmem:[#allocation4 + $0x28] sm:$0xf] }
  0xc0   :  { %v349_v45 = vor.u32 %v347_v36, %v346_v43  ;;  %v351_v46 = vrot.slane %v346_v43, 4  ;;  %943 = vst [vmem:[#allocation2 + $0x3c] sm:$0xf] %v942_v47  ;;  %v353_v50 = vshrl.u32 %v210_v48, 16  ;;  %v356_v54 = vshll.u32 %v210_v48, 16  ;;  %v12003_v63 = vld [vmem:[#allocation7 + $0x68] sm:$0xff]   ;;  %2784 = vmatpush1.bf16.msra.mxu0 %v12002_v60 }
  0xc1   :  { %v12960_v57 = vld [vmem:[#allocation2 + $0xc] sm:$0xff]   ;;  %v364_v62 = vshll.u32 %v211_v49, 16  ;;  %v363_v2 = vrot.slane %v361_v58, 7  ;;  %2785 = vmatprep.subr.bf16.mxu0 %v19186_v0  ;;  %v955_v21 = vld [vmem:[#allocation2 + $0x54] sm:$0xf]  ;;  %v378_v25 = vshrl.u32 %v213_v11, 16 }
  0xc2   :  { %v350_v52 = vsel %vm12907_vm6, %v342_v42, %v349_v45  ;;  %v946_v53 = vsel %vm12920_vm8, %v351_v46, %v945_v44  ;;  %v12010_v55 = vld [vmem:[#allocation2 + $0x14] ss:$0 sps:$4 sm:$0x11]   ;;  %v355_v56 = vrot.slane %v353_v50, 7  ;;  %v1549_v4 = vshll.u32 %v12960_v57, 16  ;;  %v12005_v45 = vld [vmem:[#allocation7 + $0x78] sm:$0xff]  }
  0xc3   :  { %944 = vst [vmem:[#allocation2 + $0x40] sm:$0xf] %v350_v52  ;;  %947 = vst [vmem:[#allocation2 + $0x44] sm:$0x1] %v946_v53  ;;  %v1554_v5 = vshll.u32 %v12010_v55, 16  ;;  %v366_v8 = vor.u32 %v364_v62, %v363_v2  ;;  %v368_v10 = vrot.slane %v363_v2, 4 }
  0xc4   :  { %v358_v61 = vor.u32 %v356_v54, %v355_v56  ;;  %v359_v1 = vrot.slane %v355_v56, 4  ;;  %v212_v7 = vld [vmem:[#allocation4 + $0x30] sm:$0xf]  ;;  %v1547_v13 = vshrl.u32 %v12960_v57, 16  ;;  %v12968_v14 = vld [vmem:[#allocation2 + $0x18] sm:$0xff]   ;;  %v1551_v17 = vrot.slane %v1549_v4, 1  ;;  %2786 = vmatpush1.bf16.msra.mxu0 %v12003_v63 }
  0xc5   :  { %v952_v9 = vld [vmem:[#allocation2 + $0x50] sm:$0x1]  ;;  %v370_v16 = vshrl.u32 %v212_v7, 16  ;;  %v373_v19 = vshll.u32 %v212_v7, 16  ;;  %v214_v22 = vld [vmem:[#allocation4 + $0x38] sm:$0xf]  ;;  %2787 = vmatprep.subr.bf16.mxu0 %v19186_v0 }
  0xc6   :  { %v949_v3 = vsel %vm12913_vm7, %v358_v61, %v948_v59  ;;  %v12004_v12 = vld [vmem:[#allocation7 + $0x70] sm:$0xff]   ;;  %v367_v15 = vsel %vm12907_vm6, %v359_v1, %v366_v8  ;;  %v953_v18 = vsel %vm12920_vm8, %v368_v10, %v952_v9  ;;  %v1556_v23 = vrot.slane %v1554_v5, 1  ;;  %v215_v28 = vld [vmem:[#allocation4 + $0x3c] sm:$0xf]  ;;  %v962_v39 = vld [vmem:[#allocation2 + $0x60] sm:$0xf] }
  0xc7   :  { %950 = vst [vmem:[#allocation2 + $0x48] sm:$0xf] %v949_v3  ;;  %951 = vst [vmem:[#allocation2 + $0x4c] sm:$0xf] %v367_v15  ;;  %v372_v24 = vrot.slane %v370_v16, 7  ;;  %v381_v27 = vshll.u32 %v213_v11, 16  ;;  %v1552_v46 = vor.u32 %v1551_v17, %v1547_v13 }
  0xc8   :  { %954 = vst [vmem:[#allocation2 + $0x50] sm:$0x1] %v953_v18  ;;  %v1559_v29 = vshrl.u32 %v12968_v14, 16  ;;  %v959_v31 = vld [vmem:[#allocation2 + $0x5c] sm:$0x1]  ;;  %v387_v32 = vshrl.u32 %v214_v22, 16  ;;  %2788 = vmatpush1.bf16.msra.mxu0 %v12004_v12 }
  0xc9   :  { %v390_v33 = vshll.u32 %v214_v22, 16  ;;  %v395_v34 = vshrl.u32 %v215_v28, 16  ;;  %v12976_v35 = vld [vmem:[#allocation2 + $0x20] ss:$0 sps:$4 sm:$0x11]   ;;  %v375_v36 = vor.u32 %v373_v19, %v372_v24  ;;  %v376_v37 = vrot.slane %v372_v24, 4  ;;  %2789 = vmatprep.subr.bf16.mxu0 %v19186_v0 }
  0xca   :  { %v380_v38 = vrot.slane %v378_v25, 7  ;;  %v966_v40 = vld [vmem:[#allocation2 + $0x68] sm:$0x1]  ;;  %v1561_v41 = vshll.u32 %v12968_v14, 16  ;;  %v389_v42 = vrot.slane %v387_v32, 7  ;;  %v398_v44 = vshll.u32 %v215_v28, 16 }
  0xcb   :  { %v397_v43 = vrot.slane %v395_v34, 7  ;;  %v956_v49 = vsel %vm12913_vm7, %v375_v36, %v955_v21  ;;  %v216_v50 = vld [vmem:[#allocation4 + $0x40] sm:$0xf]  ;;  %v217_v55 = vld [vmem:[#allocation4 + $0x44] sm:$0xf]  ;;  %v1566_v4 = vshll.u32 %v12976_v35, 16  ;;  %v12997_v9 = vsel %vm1533_vm2, %v1552_v46, %v1556_v23 }
  0xcc   :  { %v383_v47 = vor.u32 %v381_v27, %v380_v38  ;;  %v385_v48 = vrot.slane %v380_v38, 4  ;;  %957 = vst [vmem:[#allocation2 + $0x54] sm:$0xf] %v956_v49  ;;  %v392_v51 = vor.u32 %v390_v33, %v389_v42  ;;  %v393_v52 = vrot.slane %v389_v42, 4  ;;  %v12008_v61 = vld [vmem:[#allocation7 + $0x80] sm:$0xff]   ;;  %2790 = vmatpush1.bf16.msra.mxu0 %v12005_v45  ;;  %v12013_v19 = vld [vmem:[#allocation7 + $0x88] sm:$0xff]  }
  0xcd   :  { %v400_v53 = vor.u32 %v398_v44, %v397_v43  ;;  %v402_v54 = vrot.slane %v397_v43, 4  ;;  %v404_v59 = vshrl.u32 %v216_v50, 16  ;;  %v407_v60 = vshll.u32 %v216_v50, 16  ;;  %v12986_v62 = vld [vmem:[#allocation2 + $0x24] sm:$0xff]   ;;  %3048 = vmatprep.subr.bf16.mxu0 %v19186_v0  ;;  %v969_v12 = vld [vmem:[#allocation2 + $0x6c] sm:$0xf] }
  0xce   :  { %v384_v56 = vsel %vm12907_vm6, %v376_v37, %v383_v47  ;;  %v960_v58 = vsel %vm12920_vm8, %v385_v48, %v959_v31  ;;  %v963_v1 = vsel %vm12913_vm7, %v392_v51, %v962_v39  ;;  %v412_v3 = vshrl.u32 %v217_v55, 16  ;;  %v12015_v5 = vld [vmem:[#allocation2 + $0x2c] ss:$0 sps:$4 sm:$0x11]   ;;  %v218_v13 = vld [vmem:[#allocation4 + $0x48] sm:$0xf] }
  0xcf   :  { %958 = vst [vmem:[#allocation2 + $0x58] sm:$0xf] %v384_v56  ;;  %961 = vst [vmem:[#allocation2 + $0x5c] sm:$0x1] %v960_v58  ;;  %v401_v63 = vsel %vm12907_vm6, %v393_v52, %v400_v53  ;;  %v967_v2 = vsel %vm12920_vm8, %v402_v54, %v966_v40  ;;  %v406_v7 = vrot.slane %v404_v59, 7  ;;  %v415_v8 = vshll.u32 %v217_v55, 16  ;;  %2792 = vmatmul.mubr.bf16.vlgmr.msra.gmra.mrb[0].mxu0 %v12900_v6 }
  0xd0   :  { %964 = vst [vmem:[#allocation2 + $0x60] sm:$0xf] %v963_v1  ;;  %965 = vst [vmem:[#allocation2 + $0x64] sm:$0xf] %v401_v63  ;;  %v1563_v10 = vrot.slane %v1561_v41, 1  ;;  %v414_v11 = vrot.slane %v412_v3, 7  ;;  %3049 = vmatpush1.bf16.msra.mxu0 %v12008_v61  ;;  %2799 = vmatprep.mubr.bf16.mxu0 %v12997_v9 }
  0xd1   :  { %968 = vst [vmem:[#allocation2 + $0x68] sm:$0x1] %v967_v2  ;;  %v409_v15 = vor.u32 %v407_v60, %v406_v7  ;;  %v410_v16 = vrot.slane %v406_v7, 4  ;;  %v973_v17 = vld [vmem:[#allocation2 + $0x74] sm:$0x1]  ;;  %v421_v18 = vshrl.u32 %v218_v13, 16  ;;  %3050 = vmatprep.subr.bf16.mxu0 %v19186_v0 }
  0xd2   :  { %v1573_v21 = vshll.u32 %v12986_v62, 16  ;;  %v417_v22 = vor.u32 %v415_v8, %v414_v11  ;;  %v419_v24 = vrot.slane %v414_v11, 4  ;;  %v219_v25 = vld [vmem:[#allocation4 + $0x4c] sm:$0xf]  ;;  %v424_v27 = vshll.u32 %v218_v13, 16  ;;  %v12018_v42 = vld [vmem:[#allocation7 + $0x90] sm:$0xff]  }
  0xd3   :  { %v1568_v23 = vrot.slane %v1566_v4, 1  ;;  %v970_v28 = vsel %vm12913_vm7, %v409_v15, %v969_v12  ;;  %v423_v31 = vrot.slane %v421_v18, 7  ;;  %v1564_v32 = vor.u32 %v1563_v10, %v1559_v29  ;;  %v12017_v33 = vld [vmem:[#allocation2 + $0x38] ss:$0 sps:$4 sm:$0x11]   ;;  %v13012_v29 = vld [vmem:[#allocation2 + $0x30] sm:$0xff]  }
  0xd4   :  { %v1571_v6 = vshrl.u32 %v12986_v62, 16  ;;  %v418_v34 = vsel %vm12907_vm6, %v410_v16, %v417_v22  ;;  %971 = vst [vmem:[#allocation2 + $0x6c] sm:$0xf] %v970_v28  ;;  %v974_v35 = vsel %vm12920_vm8, %v419_v24, %v973_v17  ;;  %v976_v36 = vld [vmem:[#allocation2 + $0x78] sm:$0xf]  ;;  %v1578_v37 = vshll.u32 %v12015_v5, 16  ;;  %3051 = vmatpush1.bf16.msra.mxu0 %v12013_v19 }
  0xd5   :  { %972 = vst [vmem:[#allocation2 + $0x70] sm:$0xf] %v418_v34  ;;  %975 = vst [vmem:[#allocation2 + $0x74] sm:$0x1] %v974_v35  ;;  %v426_v38 = vor.u32 %v424_v27, %v423_v31  ;;  %v429_v39 = vshrl.u32 %v219_v25, 16  ;;  %v1575_v40 = vrot.slane %v1573_v21, 1  ;;  %v13017_v45 = vsel %vm1533_vm2, %v1564_v32, %v1568_v23  ;;  %3052 = vmatprep.subr.bf16.mxu0 %v19186_v0 }
  0xd6   :  { %v220_v41 = vld [vmem:[#allocation4 + $0x50] sm:$0xf]  ;;  %v432_v43 = vshll.u32 %v219_v25, 16  ;;  %v427_v46 = vrot.slane %v423_v31, 4  ;;  %v221_v48 = vld [vmem:[#allocation4 + $0x54] sm:$0xf] }
  0xd7   :  { %v977_v44 = vsel %vm12913_vm7, %v426_v38, %v976_v36  ;;  %v431_v47 = vrot.slane %v429_v39, 7  ;;  %v438_v49 = vshrl.u32 %v220_v41, 16  ;;  %v441_v50 = vshll.u32 %v220_v41, 16  ;;  %2800 = vmatmul.mubr.bf16.gmra.mrb[4].mxu0 %v12960_v57  ;;  %v980_v55 = vld [vmem:[#allocation2 + $0x80] sm:$0x1]  ;;  %v12023_v56 = vld [vmem:[#allocation7 + $0x98] sm:$0xff]  }
  0xd8   :  { %978 = vst [vmem:[#allocation2 + $0x78] sm:$0xf] %v977_v44  ;;  %v1576_v51 = vor.u32 %v1575_v40, %v1571_v6  ;;  %v1580_v52 = vrot.slane %v1578_v37, 1  ;;  %v1585_v53 = vshll.u32 %v13012_v29, 16  ;;  %v1590_v54 = vshll.u32 %v12017_v33, 16  ;;  %2807 = vmatprep.mubr.bf16.mxu0 %v13017_v45  ;;  %3053 = vmatpush1.bf16.msra.mxu0 %v12018_v42  ;;  %v12028_v8 = vld [vmem:[#allocation7 + $0xa0] sm:$0xff]  }
  0xd9   :  { %v434_v58 = vor.u32 %v432_v43, %v431_v47  ;;  %v436_v59 = vrot.slane %v431_v47, 4  ;;  %v440_v60 = vrot.slane %v438_v49, 7  ;;  %v446_v61 = vshrl.u32 %v221_v48, 16  ;;  %3054 = vmatprep.subr.bf16.mxu0 %v19186_v0  ;;  %v983_v63 = vld [vmem:[#allocation2 + $0x84] sm:$0xf]  ;;  %v13032_v11 = vld [vmem:[#allocation2 + $0x3c] sm:$0xff]  }
  0xda   :  { %v222_v3 = vld [vmem:[#allocation4 + $0x58] sm:$0xf]  ;;  %v13029_v4 = vsel %vm1533_vm2, %v1576_v51, %v1580_v52  ;;  %v1583_v5 = vshrl.u32 %v13012_v29, 16  ;;  %v1587_v7 = vrot.slane %v1585_v53, 1  ;;  %v223_v10 = vld [vmem:[#allocation4 + $0x5c] sm:$0xf] }
  0xdb   :  { %v435_v57 = vsel %vm12907_vm6, %v427_v46, %v434_v58  ;;  %v981_v1 = vsel %vm12920_vm8, %v436_v59, %v980_v55  ;;  %v443_v2 = vor.u32 %v441_v50, %v440_v60  ;;  %v444_v12 = vrot.slane %v440_v60, 4  ;;  %v987_v18 = vld [vmem:[#allocation2 + $0x8c] sm:$0x1]  ;;  %v13037_v24 = vld [vmem:[#allocation2 + $0x44] ss:$0 sps:$4 sm:$0x11]  }
  0xdc   :  { %979 = vst [vmem:[#allocation2 + $0x7c] sm:$0xf] %v435_v57  ;;  %982 = vst [vmem:[#allocation2 + $0x80] sm:$0x1] %v981_v1  ;;  %3055 = vmatpush1.bf16.msra.mxu0 %v12023_v56  ;;  %v448_v13 = vrot.slane %v446_v61, 7  ;;  %v449_v15 = vshll.u32 %v221_v48, 16  ;;  %v1588_v33 = vor.u32 %v1587_v7, %v1583_v5 }
  0xdd   :  { %v984_v16 = vsel %vm12913_vm7, %v443_v2, %v983_v63  ;;  %v1592_v17 = vrot.slane %v1590_v54, 1  ;;  %3056 = vmatprep.subr.bf16.mxu0 %v19186_v0  ;;  %v455_v19 = vshrl.u32 %v222_v3, 16  ;;  %v458_v21 = vshll.u32 %v222_v3, 16  ;;  %v12033_v27 = vld [vmem:[#allocation7 + $0xa8] sm:$0xff]   ;;  %v990_v36 = vld [vmem:[#allocation2 + $0x90] sm:$0xf] }
  0xde   :  { %985 = vst [vmem:[#allocation2 + $0x84] sm:$0xf] %v984_v16  ;;  %v463_v22 = vshrl.u32 %v223_v10, 16  ;;  %v1595_v25 = vshrl.u32 %v13032_v11, 16  ;;  %v451_v23 = vor.u32 %v449_v15, %v448_v13  ;;  %v453_v28 = vrot.slane %v448_v13, 4  ;;  %v13049_v47 = vld [vmem:[#allocation2 + $0x48] sm:$0xff]  }
  0xdf   :  { %v466_v31 = vshll.u32 %v223_v10, 16  ;;  %2808 = vmatmul.mubr.bf16.gmra.mrb[8].mxu0 %v12968_v14  ;;  %v457_v32 = vrot.slane %v455_v19, 7  ;;  %v994_v37 = vld [vmem:[#allocation2 + $0x98] sm:$0x1]  ;;  %v224_v38 = vld [vmem:[#allocation4 + $0x60] sm:$0xf]  ;;  %v13056_v53 = vsel %vm1533_vm2, %v1588_v33, %v1592_v17 }
  0xe0   :  { %v465_v6 = vrot.slane %v463_v22, 7  ;;  %2815 = vmatprep.mubr.bf16.mxu0 %v13029_v4  ;;  %3057 = vmatpush1.bf16.msra.mxu0 %v12028_v8  ;;  %v452_v34 = vsel %vm12907_vm6, %v444_v12, %v451_v23  ;;  %v988_v35 = vsel %vm12920_vm8, %v453_v28, %v987_v18  ;;  %v1597_v39 = vshll.u32 %v13032_v11, 16  ;;  %v225_v42 = vld [vmem:[#allocation4 + $0x64] sm:$0xf]  ;;  %v226_v43 = vld [vmem:[#allocation4 + $0x68] sm:$0xf] }
  0xe1   :  { %3058 = vmatprep.subr.bf16.mxu0 %v19186_v0  ;;  %986 = vst [vmem:[#allocation2 + $0x88] sm:$0xf] %v452_v34  ;;  %989 = vst [vmem:[#allocation2 + $0x8c] sm:$0x1] %v988_v35  ;;  %v460_v14 = vor.u32 %v458_v21, %v457_v32  ;;  %v461_v40 = vrot.slane %v457_v32, 4  ;;  %v1602_v44 = vshll.u32 %v13037_v24, 16 }
  0xe2   :  { %v468_v41 = vor.u32 %v466_v31, %v465_v6  ;;  %v470_v46 = vrot.slane %v465_v6, 4  ;;  %v12038_v50 = vld [vmem:[#allocation7 + $0xb0] sm:$0xff]   ;;  %v472_v51 = vshrl.u32 %v224_v38, 16  ;;  %v475_v52 = vshll.u32 %v224_v38, 16  ;;  %v227_v61 = vld [vmem:[#allocation4 + $0x6c] sm:$0xf] }
  0xe3   :  { %v991_v49 = vsel %vm12913_vm7, %v460_v14, %v990_v36  ;;  %v12022_v54 = vld [vmem:[#allocation2 + $0x50] ss:$0 sps:$4 sm:$0x11]   ;;  %v480_v56 = vshrl.u32 %v225_v42, 16  ;;  %v1599_v58 = vrot.slane %v1597_v39, 1  ;;  %v483_v60 = vshll.u32 %v225_v42, 16 }
  0xe4   :  { %v469_v48 = vsel %vm12907_vm6, %v461_v40, %v468_v41  ;;  %3059 = vmatpush1.bf16.msra.mxu0 %v12033_v27  ;;  %992 = vst [vmem:[#allocation2 + $0x90] sm:$0xf] %v991_v49  ;;  %v995_v55 = vsel %vm12920_vm8, %v470_v46, %v994_v37  ;;  %v474_v59 = vrot.slane %v472_v51, 7  ;;  %v489_v63 = vshrl.u32 %v226_v43, 16  ;;  %v997_v1 = vld [vmem:[#allocation2 + $0x9c] sm:$0xf] }
  0xe5   :  { %993 = vst [vmem:[#allocation2 + $0x94] sm:$0xf] %v469_v48  ;;  %996 = vst [vmem:[#allocation2 + $0x98] sm:$0x1] %v995_v55  ;;  %3060 = vmatprep.subr.bf16.mxu0 %v19186_v0  ;;  %v482_v57 = vrot.slane %v480_v56, 7  ;;  %v492_v3 = vshll.u32 %v226_v43, 16  ;;  %v1600_v18 = vor.u32 %v1599_v58, %v1595_v25 }
  0xe6   :  { %v1001_v2 = vld [vmem:[#allocation2 + $0xa4] sm:$0x1]  ;;  %v477_v5 = vor.u32 %v475_v52, %v474_v59  ;;  %v478_v7 = vrot.slane %v474_v59, 4  ;;  %v491_v8 = vrot.slane %v489_v63, 7  ;;  %v497_v10 = vshrl.u32 %v227_v61, 16  ;;  %v12043_v13 = vld [vmem:[#allocation7 + $0xb8] sm:$0xff]  }
  0xe7   :  { %2816 = vmatmul.mubr.bf16.gmra.mrb[12].mxu0 %v12986_v62  ;;  %v1004_v12 = vld [vmem:[#allocation2 + $0xa8] sm:$0xf]  ;;  %v1609_v15 = vshll.u32 %v13049_v47, 16  ;;  %v485_v16 = vor.u32 %v483_v60, %v482_v57  ;;  %v487_v17 = vrot.slane %v482_v57, 4  ;;  %v1604_v19 = vrot.slane %v1602_v44, 1  ;;  %v13071_v27 = vld [vmem:[#allocation2 + $0x54] sm:$0xff]  }
  0xe8   :  { %2823 = vmatprep.mubr.bf16.mxu0 %v13056_v53  ;;  %3061 = vmatpush1.bf16.msra.mxu0 %v12038_v50  ;;  %v998_v62 = vsel %vm12913_vm7, %v477_v5, %v997_v1  ;;  %v494_v21 = vor.u32 %v492_v3, %v491_v8  ;;  %v1614_v22 = vshll.u32 %v12022_v54, 16  ;;  %v499_v28 = vrot.slane %v497_v10, 7  ;;  %v12048_v6 = vld [vmem:[#allocation7 + $0xc0] sm:$0xff]   ;;  %v1008_v36 = vld [vmem:[#allocation2 + $0xb0] sm:$0x1]  ;;  %v12053_v52 = vld [vmem:[#allocation7 + $0xc8] sm:$0xff]  }
  0xe9   :  { %3062 = vmatprep.subr.bf16.mxu0 %v19186_v0  ;;  %v486_v24 = vsel %vm12907_vm6, %v478_v7, %v485_v16  ;;  %999 = vst [vmem:[#allocation2 + $0x9c] sm:$0xf] %v998_v62  ;;  %v1002_v23 = vsel %vm12920_vm8, %v487_v17, %v1001_v2  ;;  %v1607_v31 = vshrl.u32 %v13049_v47, 16  ;;  %v1611_v32 = vrot.slane %v1609_v15, 1  ;;  %v228_v37 = vld [vmem:[#allocation4 + $0x70] sm:$0xf] }
  0xea   :  { %1000 = vst [vmem:[#allocation2 + $0xa0] sm:$0xf] %v486_v24  ;;  %v1005_v25 = vsel %vm12913_vm7, %v494_v21, %v1004_v12  ;;  %1003 = vst [vmem:[#allocation2 + $0xa4] sm:$0x1] %v1002_v23  ;;  %v13079_v33 = vsel %vm1533_vm2, %v1600_v18, %v1604_v19  ;;  %v495_v34 = vrot.slane %v491_v8, 4  ;;  %v500_v35 = vshll.u32 %v227_v61, 16 }
  0xeb   :  { %1006 = vst [vmem:[#allocation2 + $0xa8] sm:$0xf] %v1005_v25  ;;  %v1616_v38 = vrot.slane %v1614_v22, 1  ;;  %v12025_v39 = vld [vmem:[#allocation2 + $0x5c] ss:$0 sps:$4 sm:$0x11]   ;;  %v1612_v54 = vor.u32 %v1611_v32, %v1607_v31 }
  0xec   :  { %3063 = vmatpush1.bf16.msra.mxu0 %v12043_v13  ;;  %v504_v14 = vrot.slane %v499_v28, 4  ;;  %v229_v40 = vld [vmem:[#allocation4 + $0x74] sm:$0xf]  ;;  %v506_v41 = vshrl.u32 %v228_v37, 16  ;;  %v1621_v42 = vshll.u32 %v13071_v27, 16  ;;  %v502_v43 = vor.u32 %v500_v35, %v499_v28  ;;  %v13091_v1 = vld [vmem:[#allocation2 + $0x60] sm:$0xff]  }
  0xed   :  { %3064 = vmatprep.subr.bf16.mxu0 %v19186_v0  ;;  %v509_v44 = vshll.u32 %v228_v37, 16  ;;  %v514_v46 = vshrl.u32 %v229_v40, 16  ;;  %v1011_v48 = vld [vmem:[#allocation2 + $0xb4] sm:$0xf]  ;;  %v1015_v51 = vld [vmem:[#allocation2 + $0xbc] sm:$0x1]  ;;  %v13096_v5 = vsel %vm1533_vm2, %v1612_v54, %v1616_v38 }
  0xee   :  { %v1009_v49 = vsel %vm12920_vm8, %v504_v14, %v1008_v36  ;;  %v508_v50 = vrot.slane %v506_v41, 7  ;;  %v503_v55 = vsel %vm12907_vm6, %v495_v34, %v502_v43  ;;  %v517_v56 = vshll.u32 %v229_v40, 16  ;;  %v12058_v3 = vld [vmem:[#allocation7 + $0xd0] sm:$0xff]   ;;  %v12027_v8 = vld [vmem:[#allocation2 + $0x68] ss:$0 sps:$4 sm:$0x11]  }
  0xef   :  { %2824 = vmatmul.mubr.bf16.gmra.mrb[16].mxu0 %v13012_v29  ;;  %1010 = vst [vmem:[#allocation2 + $0xb0] sm:$0x1] %v1009_v49  ;;  %v516_v29 = vrot.slane %v514_v46, 7  ;;  %1007 = vst [vmem:[#allocation2 + $0xac] sm:$0xf] %v503_v55  ;;  %v1619_v63 = vshrl.u32 %v13071_v27, 16 }
  0xf0   :  { %2831 = vmatprep.mubr.bf16.mxu0 %v13079_v33  ;;  %3065 = vmatpush1.bf16.msra.mxu0 %v12048_v6  ;;  %v511_v58 = vor.u32 %v509_v44, %v508_v50  ;;  %v512_v59 = vrot.slane %v508_v50, 4  ;;  %v1626_v57 = vshll.u32 %v12025_v39, 16  ;;  %v1623_v7 = vrot.slane %v1621_v42, 1  ;;  %v232_v13 = vld [vmem:[#allocation4 + $0x80] sm:$0xf]  ;;  %v13106_v22 = vld [vmem:[#allocation2 + $0x6c] sm:$0xff]  }
  0xf1   :  { %3066 = vmatprep.subr.bf16.mxu0 %v19186_v0  ;;  %v519_v60 = vor.u32 %v517_v56, %v516_v29  ;;  %v521_v61 = vrot.slane %v516_v29, 4  ;;  %v233_v15 = vld [vmem:[#allocation4 + $0x84] sm:$0xf]  ;;  %v540_v16 = vshrl.u32 %v232_v13, 16  ;;  %v543_v17 = vshll.u32 %v232_v13, 16 }
  0xf2   :  { %v1012_v2 = vsel %vm12913_vm7, %v511_v58, %v1011_v48  ;;  %v1633_v18 = vshll.u32 %v13091_v1, 16  ;;  %v548_v19 = vshrl.u32 %v233_v15, 16  ;;  %v1624_v62 = vor.u32 %v1623_v7, %v1619_v63  ;;  %v1025_v25 = vld [vmem:[#allocation2 + $0xe4] sm:$0xf]  ;;  %v1029_v34 = vld [vmem:[#allocation2 + $0xec] sm:$0x1] }
  0xf3   :  { %v520_v10 = vsel %vm12907_vm6, %v512_v59, %v519_v60  ;;  %1013 = vst [vmem:[#allocation2 + $0xb4] sm:$0xf] %v1012_v2  ;;  %v1016_v12 = vsel %vm12920_vm8, %v521_v61, %v1015_v51  ;;  %v1628_v21 = vrot.slane %v1626_v57, 1  ;;  %v542_v24 = vrot.slane %v540_v16, 7  ;;  %v234_v35 = vld [vmem:[#allocation4 + $0x88] sm:$0xf] }
  0xf4   :  { %3067 = vmatpush1.bf16.msra.mxu0 %v12053_v52  ;;  %1014 = vst [vmem:[#allocation2 + $0xb8] sm:$0xf] %v520_v10  ;;  %1017 = vst [vmem:[#allocation2 + $0xbc] sm:$0x1] %v1016_v12  ;;  %v551_v23 = vshll.u32 %v233_v15, 16  ;;  %v550_v28 = vrot.slane %v548_v19, 7 }
  0xf5   :  { %3068 = vmatprep.subr.bf16.mxu0 %v19186_v0  ;;  %v1638_v31 = vshll.u32 %v12027_v8, 16  ;;  %v12030_v32 = vld [vmem:[#allocation2 + $0x74] ss:$0 sps:$4 sm:$0x11]   ;;  %v545_v6 = vor.u32 %v543_v17, %v542_v24  ;;  %v546_v36 = vrot.slane %v542_v24, 4  ;;  %v13111_v14 = vsel %vm1533_vm2, %v1624_v62, %v1628_v21  ;;  %v12063_v52 = vld [vmem:[#allocation7 + $0xd8] sm:$0xff]  }
  0xf6   :  { %v553_v37 = vor.u32 %v551_v23, %v550_v28  ;;  %v555_v38 = vrot.slane %v550_v28, 4  ;;  %v235_v39 = vld [vmem:[#allocation4 + $0x8c] sm:$0xf]  ;;  %v1635_v40 = vrot.slane %v1633_v18, 1  ;;  %v1645_v41 = vshll.u32 %v13106_v22, 16  ;;  %v13126_v12 = vld [vmem:[#allocation2 + $0x78] sm:$0xff]  }
  0xf7   :  { %2832 = vmatmul.mubr.bf16.gmra.mrb[20].mxu0 %v13032_v11  ;;  %v1631_v11 = vshrl.u32 %v13091_v1, 16  ;;  %v1026_v42 = vsel %vm12913_vm7, %v545_v6, %v1025_v25  ;;  %v557_v46 = vshrl.u32 %v234_v35, 16  ;;  %v560_v48 = vshll.u32 %v234_v35, 16  ;;  %v1032_v29 = vld [vmem:[#allocation2 + $0xf0] sm:$0xf] }
  0xf8   :  { %2839 = vmatprep.mubr.bf16.mxu0 %v13096_v5  ;;  %3069 = vmatpush1.bf16.msra.mxu0 %v12058_v3  ;;  %v554_v43 = vsel %vm12907_vm6, %v546_v36, %v553_v37  ;;  %1027 = vst [vmem:[#allocation2 + $0xe4] sm:$0xf] %v1026_v42  ;;  %v1030_v44 = vsel %vm12920_vm8, %v555_v38, %v1029_v34  ;;  %v1640_v49 = vrot.slane %v1638_v31, 1  ;;  %v1643_v50 = vshrl.u32 %v13106_v22, 16  ;;  %v1036_v56 = vld [vmem:[#allocation2 + $0xf8] sm:$0x1] }
  0xf9   :  { %3070 = vmatprep.subr.bf16.mxu0 %v19186_v0  ;;  %1028 = vst [vmem:[#allocation2 + $0xe8] sm:$0xf] %v554_v43  ;;  %1031 = vst [vmem:[#allocation2 + $0xec] sm:$0x1] %v1030_v44  ;;  %v565_v51 = vshrl.u32 %v235_v39, 16  ;;  %v559_v54 = vrot.slane %v557_v46, 7  ;;  %v1636_v58 = vor.u32 %v1635_v40, %v1631_v11 }
  0xfa   :  { %v568_v55 = vshll.u32 %v235_v39, 16  ;;  %v1650_v59 = vshll.u32 %v12030_v32, 16  ;;  %v1647_v61 = vrot.slane %v1645_v41, 1  ;;  %v236_v57 = vld [vmem:[#allocation4 + $0x90] sm:$0xf]  ;;  %v1655_v37 = vshrl.u32 %v13126_v12, 16 }
  0xfb   :  { %v567_v60 = vrot.slane %v565_v51, 7  ;;  %v562_v63 = vor.u32 %v560_v48, %v559_v54  ;;  %v237_v2 = vld [vmem:[#allocation4 + $0x94] sm:$0xf]  ;;  %v13124_v3 = vld [vmem:[#allocation2 + $0x80] ss:$0 sps:$4 sm:$0x11]   ;;  %v13131_v62 = vsel %vm1533_vm2, %v1636_v58, %v1640_v49 }
  0xfc   :  { %3071 = vmatpush1.bf16.msra.mxu0 %v12063_v52  ;;  %v574_v10 = vshrl.u32 %v236_v57, 16  ;;  %v577_v15 = vshll.u32 %v236_v57, 16  ;;  %v582_v16 = vshrl.u32 %v237_v2, 16  ;;  %v585_v17 = vshll.u32 %v237_v2, 16  ;;  %v1039_v18 = vld [vmem:[#allocation2 + $0xfc] sm:$0xf] }
  0xfd   :  { %3072 = vmatprep.subr.bf16.mxu0 %v19186_v0  ;;  %v570_v7 = vor.u32 %v568_v55, %v567_v60  ;;  %v572_v8 = vrot.slane %v567_v60, 4  ;;  %v1033_v13 = vsel %vm12913_vm7, %v562_v63, %v1032_v29  ;;  %v238_v19 = vld [vmem:[#allocation4 + $0x98] sm:$0xf]  ;;  %v239_v28 = vld [vmem:[#allocation4 + $0x9c] sm:$0xf]  ;;  %v1648_v25 = vor.u32 %v1647_v61, %v1643_v50  ;;  %v13144_v46 = vld [vmem:[#allocation2 + $0x84] sm:$0xff]  }
  0xfe   :  { %1034 = vst [vmem:[#allocation2 + $0xf0] sm:$0xf] %v1033_v13  ;;  %v576_v23 = vrot.slane %v574_v10, 7  ;;  %v1652_v11 = vrot.slane %v1650_v59, 1  ;;  %v584_v31 = vrot.slane %v582_v16, 7  ;;  %v591_v35 = vshrl.u32 %v238_v19, 16 }
  0xff   :  { %2840 = vmatmul.mubr.bf16.gmra.mrb[24].mxu0 %v13049_v47  ;;  %v563_v47 = vrot.slane %v559_v54, 4  ;;  %v1037_v24 = vsel %vm12920_vm8, %v572_v8, %v1036_v56  ;;  %v1043_v34 = vld [vmem:[#allocation2 + $0x104] sm:$0x1]  ;;  %v594_v36 = vshll.u32 %v238_v19, 16  ;;  %v1657_v38 = vshll.u32 %v13126_v12, 16 }
 0x100   :  { %2847 = vmatprep.mubr.bf16.mxu0 %v13111_v14  ;;  %1038 = vst [vmem:[#allocation2 + $0xf8] sm:$0x1] %v1037_v24  ;;  %v579_v32 = vor.u32 %v577_v15, %v576_v23  ;;  %v580_v6 = vrot.slane %v576_v23, 4  ;;  %v587_v39 = vor.u32 %v585_v17, %v584_v31  ;;  %v589_v40 = vrot.slane %v584_v31, 4  ;;  %v1046_v44 = vld [vmem:[#allocation2 + $0x108] sm:$0xf] }
 0x101   :  { %v571_v21 = vsel %vm12907_vm6, %v563_v47, %v570_v7  ;;  %v1662_v41 = vshll.u32 %v13124_v3, 16  ;;  %v593_v43 = vrot.slane %v591_v35, 7  ;;  %v602_v50 = vshll.u32 %v239_v28, 16  ;;  %v1050_v55 = vld [vmem:[#allocation2 + $0x110] sm:$0x1] }
 0x102   :  { %1035 = vst [vmem:[#allocation2 + $0xf4] sm:$0xf] %v571_v21  ;;  %v1040_v42 = vsel %vm12913_vm7, %v579_v32, %v1039_v18  ;;  %v588_v48 = vsel %vm12907_vm6, %v580_v6, %v587_v39  ;;  %v1044_v49 = vsel %vm12920_vm8, %v589_v40, %v1043_v34  ;;  %v240_v29 = vld [vmem:[#allocation4 + $0xa0] sm:$0xf]  ;;  %v13151_v56 = vsel %vm1533_vm2, %v1648_v25, %v1652_v11  ;;  %v241_v58 = vld [vmem:[#allocation4 + $0xa4] sm:$0xf] }
 0x103   :  { %1041 = vst [vmem:[#allocation2 + $0xfc] sm:$0xf] %v1040_v42  ;;  %1042 = vst [vmem:[#allocation2 + $0x100] sm:$0xf] %v588_v48  ;;  %v596_v51 = vor.u32 %v594_v36, %v593_v43  ;;  %v597_v52 = vrot.slane %v593_v43, 4  ;;  %v608_v59 = vshrl.u32 %v240_v29, 16 }
 0x104   :  { %1045 = vst [vmem:[#allocation2 + $0x104] sm:$0x1] %v1044_v49  ;;  %v611_v60 = vshll.u32 %v240_v29, 16  ;;  %v1659_v61 = vrot.slane %v1657_v38, 1  ;;  %v616_v3 = vshrl.u32 %v241_v58, 16  ;;  %v619_v7 = vshll.u32 %v241_v58, 16 }
 0x105   :  { %v1047_v57 = vsel %vm12913_vm7, %v596_v51, %v1046_v44  ;;  %v610_v2 = vrot.slane %v608_v59, 7  ;;  %v1664_v8 = vrot.slane %v1662_v41, 1  ;;  %v12035_v10 = vld [vmem:[#allocation2 + $0x8c] ss:$0 sps:$4 sm:$0x11]   ;;  %v1669_v17 = vshll.u32 %v13144_v46, 16 }
 0x106   :  { %1048 = vst [vmem:[#allocation2 + $0x108] sm:$0xf] %v1047_v57  ;;  %v1053_v16 = vld [vmem:[#allocation2 + $0x114] sm:$0xf]  ;;  %v618_v21 = vrot.slane %v616_v3, 7  ;;  %v1660_v23 = vor.u32 %v1659_v61, %v1655_v37  ;;  %v1667_v38 = vshrl.u32 %v13144_v46, 16 }
 0x107   :  { %2848 = vmatmul.mubr.bf16.gmra.mrb[28].mxu0 %v13071_v27  ;;  %v599_v27 = vshrl.u32 %v239_v28, 16  ;;  %v613_v18 = vor.u32 %v611_v60, %v610_v2  ;;  %v614_v19 = vrot.slane %v610_v2, 4  ;;  %v242_v24 = vld [vmem:[#allocation4 + $0xa8] sm:$0xf]  ;;  %v13162_v28 = vld [vmem:[#allocation2 + $0x90] sm:$0xff]   ;;  %v1674_v39 = vshll.u32 %v12035_v10, 16 }
 0x108   :  { %2855 = vmatprep.mubr.bf16.mxu0 %v13131_v62  ;;  %v243_v25 = vld [vmem:[#allocation4 + $0xac] sm:$0xf]  ;;  %v625_v11 = vshrl.u32 %v242_v24, 16  ;;  %v621_v31 = vor.u32 %v619_v7, %v618_v21  ;;  %v1057_v6 = vld [vmem:[#allocation2 + $0x11c] sm:$0x1]  ;;  %v623_v34 = vrot.slane %v618_v21, 4  ;;  %v13171_v42 = vsel %vm1533_vm2, %v1660_v23, %v1664_v8 }
 0x109   :  { %v601_v54 = vrot.slane %v599_v27, 7  ;;  %v1054_v32 = vsel %vm12913_vm7, %v613_v18, %v1053_v16  ;;  %v628_v36 = vshll.u32 %v242_v24, 16  ;;  %v633_v40 = vshrl.u32 %v243_v25, 16  ;;  %v1060_v41 = vld [vmem:[#allocation2 + $0x120] sm:$0xf]  ;;  %v13190_v18 = vld [vmem:[#allocation2 + $0xd8] sm:$0xff]  }
 0x10a   :  { %1055 = vst [vmem:[#allocation2 + $0x114] sm:$0xf] %v1054_v32  ;;  %v627_v35 = vrot.slane %v625_v11, 7  ;;  %v622_v37 = vsel %vm12907_vm6, %v614_v19, %v621_v31  ;;  %v1671_v43 = vrot.slane %v1669_v17, 1  ;;  %v1058_v44 = vsel %vm12920_vm8, %v623_v34, %v1057_v6  ;;  %v244_v61 = vld [vmem:[#allocation4 + $0xb0] sm:$0xf] }
 0x10b   :  { %v604_v63 = vor.u32 %v602_v50, %v601_v54  ;;  %v606_v47 = vrot.slane %v601_v54, 4  ;;  %v12037_v27 = vld [vmem:[#allocation2 + $0x98] ss:$0 sps:$4 sm:$0x11]   ;;  %1056 = vst [vmem:[#allocation2 + $0x118] sm:$0xf] %v622_v37 }
 0x10c   :  { %v630_v48 = vor.u32 %v628_v36, %v627_v35  ;;  %v1681_v49 = vshll.u32 %v13162_v28, 16  ;;  %1059 = vst [vmem:[#allocation2 + $0x11c] sm:$0x1] %v1058_v44  ;;  %v631_v50 = vrot.slane %v627_v35, 4  ;;  %v635_v51 = vrot.slane %v633_v40, 7  ;;  %v13181_v2 = vld [vmem:[#allocation2 + $0x9c] sm:$0xff]  }
 0x10d   :  { %v605_v13 = vsel %vm12907_vm6, %v597_v52, %v604_v63  ;;  %v1051_v15 = vsel %vm12920_vm8, %v606_v47, %v1050_v55  ;;  %v636_v52 = vshll.u32 %v243_v25, 16  ;;  %v1064_v55 = vld [vmem:[#allocation2 + $0x128] sm:$0x1]  ;;  %v1672_v59 = vor.u32 %v1671_v43, %v1667_v38  ;;  %v245_v63 = vld [vmem:[#allocation4 + $0xb4] sm:$0xf] }
 0x10e   :  { %1049 = vst [vmem:[#allocation2 + $0x10c] sm:$0xf] %v605_v13  ;;  %1052 = vst [vmem:[#allocation2 + $0x110] sm:$0x1] %v1051_v15  ;;  %v1061_v54 = vsel %vm12913_vm7, %v630_v48, %v1060_v41  ;;  %v640_v58 = vrot.slane %v635_v51, 4  ;;  %v1676_v60 = vrot.slane %v1674_v39, 1 }
 0x10f   :  { %2856 = vmatmul.mubr.bf16.gmra.mrb[32].mxu0 %v13091_v1  ;;  %v12068_v1 = vld [vmem:[#allocation7 + $0xe0] sm:$0xff]   ;;  %v638_v29 = vor.u32 %v636_v52, %v635_v51  ;;  %1062 = vst [vmem:[#allocation2 + $0x120] sm:$0xf] %v1061_v54  ;;  %v1679_v47 = vshrl.u32 %v13162_v28, 16  ;;  %v1686_v57 = vshll.u32 %v12037_v27, 16  ;;  %v1683_v7 = vrot.slane %v1681_v49, 1 }
 0x110   :  { %2863 = vmatprep.mubr.bf16.mxu0 %v13151_v56  ;;  %3073 = vmatpush1.bf16.msra.mxu0 %v12068_v1  ;;  %v1065_v3 = vsel %vm12920_vm8, %v640_v58, %v1064_v55  ;;  %v642_v8 = vshrl.u32 %v244_v61, 16  ;;  %v645_v10 = vshll.u32 %v244_v61, 16  ;;  %v650_v13 = vshrl.u32 %v245_v63, 16  ;;  %v12040_v15 = vld [vmem:[#allocation2 + $0xa4] ss:$0 sps:$4 sm:$0x11]  }
 0x111   :  { %3074 = vmatprep.subr.bf16.mxu0 %v19186_v0  ;;  %1066 = vst [vmem:[#allocation2 + $0x128] sm:$0x1] %v1065_v3  ;;  %v653_v16 = vshll.u32 %v245_v63, 16  ;;  %v13188_v17 = vsel %vm1533_vm2, %v1672_v59, %v1676_v60  ;;  %v1067_v21 = vld [vmem:[#allocation2 + $0x12c] sm:$0xf]  ;;  %v1693_v24 = vshll.u32 %v13181_v2, 16  ;;  %v1684_v11 = vor.u32 %v1683_v7, %v1679_v47 }
 0x112   :  { %v644_v19 = vrot.slane %v642_v8, 7  ;;  %v652_v1 = vrot.slane %v650_v13, 7  ;;  %v1071_v23 = vld [vmem:[#allocation2 + $0x134] sm:$0x1]  ;;  %v246_v25 = vld [vmem:[#allocation4 + $0xb8] sm:$0xf] }
 0x113   :  { %v1688_v31 = vrot.slane %v1686_v57, 1  ;;  %v247_v34 = vld [vmem:[#allocation4 + $0xbc] sm:$0xf]  ;;  %v1691_v35 = vshrl.u32 %v13181_v2, 16  ;;  %v659_v39 = vshrl.u32 %v246_v25, 16  ;;  %v12073_v37 = vld [vmem:[#allocation7 + $0xe8] sm:$0xff]  }
 0x114   :  { %v647_v32 = vor.u32 %v645_v10, %v644_v19  ;;  %v648_v6 = vrot.slane %v644_v19, 4  ;;  %v655_v36 = vor.u32 %v653_v16, %v652_v1  ;;  %v657_v38 = vrot.slane %v652_v1, 4  ;;  %3075 = vmatpush1.bf16.msra.mxu0 %v12073_v37  ;;  %v1074_v55 = vld [vmem:[#allocation2 + $0x138] sm:$0xf]  ;;  %v1078_v60 = vld [vmem:[#allocation2 + $0x140] sm:$0x1] }
 0x115   :  { %v1698_v40 = vshll.u32 %v12040_v15, 16  ;;  %v662_v43 = vshll.u32 %v246_v25, 16  ;;  %v667_v27 = vshrl.u32 %v247_v34, 16  ;;  %v661_v49 = vrot.slane %v659_v39, 7  ;;  %3076 = vmatprep.subr.bf16.mxu0 %v19186_v0  ;;  %v249_v10 = vld [vmem:[#allocation4 + $0xc4] sm:$0xf] }
 0x116   :  { %v1068_v41 = vsel %vm12913_vm7, %v647_v32, %v1067_v21  ;;  %v656_v44 = vsel %vm12907_vm6, %v648_v6, %v655_v36  ;;  %v1072_v48 = vsel %vm12920_vm8, %v657_v38, %v1071_v23  ;;  %v1729_v51 = vshll.u32 %v13190_v18, 16  ;;  %v12047_v58 = vld [vmem:[#allocation2 + $0xe0] ss:$0 sps:$4 sm:$0x11]   ;;  %v1081_v1 = vld [vmem:[#allocation2 + $0x144] sm:$0xf] }
 0x117   :  { %2864 = vmatmul.mubr.bf16.gmra.mrb[36].mxu0 %v13106_v22  ;;  %v639_v22 = vsel %vm12907_vm6, %v631_v50, %v638_v29  ;;  %1069 = vst [vmem:[#allocation2 + $0x12c] sm:$0xf] %v1068_v41  ;;  %v13202_v50 = vld [vmem:[#allocation2 + $0xa8] sm:$0xff]   ;;  %1070 = vst [vmem:[#allocation2 + $0x130] sm:$0xf] %v656_v44  ;;  %v669_v52 = vrot.slane %v667_v27, 7  ;;  %v13207_v29 = vsel %vm1533_vm2, %v1684_v11, %v1688_v31 }
 0x118   :  { %2871 = vmatprep.mubr.bf16.mxu0 %v13171_v42  ;;  %1063 = vst [vmem:[#allocation2 + $0x124] sm:$0xf] %v639_v22  ;;  %1073 = vst [vmem:[#allocation2 + $0x134] sm:$0x1] %v1072_v48  ;;  %v670_v54 = vshll.u32 %v247_v34, 16  ;;  %v664_v59 = vor.u32 %v662_v43, %v661_v49  ;;  %v1700_v61 = vrot.slane %v1698_v40, 1 }
 0x119   :  { %v665_v63 = vrot.slane %v661_v49, 4  ;;  %v674_v57 = vrot.slane %v669_v52, 4  ;;  %v248_v22 = vld [vmem:[#allocation4 + $0xc0] sm:$0xf]  ;;  %v1705_v16 = vshll.u32 %v13202_v50, 16  ;;  %v687_v25 = vshll.u32 %v249_v10, 16 }
 0x11a   :  { %v672_v47 = vor.u32 %v670_v54, %v669_v52  ;;  %v12042_v7 = vld [vmem:[#allocation2 + $0xb0] ss:$0 sps:$4 sm:$0x11]   ;;  %v1075_v8 = vsel %vm12913_vm7, %v664_v59, %v1074_v55  ;;  %v676_v13 = vshrl.u32 %v248_v22, 16  ;;  %v679_v15 = vshll.u32 %v248_v22, 16  ;;  %v13222_v48 = vld [vmem:[#allocation2 + $0xb4] sm:$0xff]  }
 0x11b   :  { %1076 = vst [vmem:[#allocation2 + $0x138] sm:$0xf] %v1075_v8  ;;  %v1079_v21 = vsel %vm12920_vm8, %v674_v57, %v1078_v60  ;;  %v1085_v11 = vld [vmem:[#allocation2 + $0x14c] sm:$0x1]  ;;  %v250_v31 = vld [vmem:[#allocation4 + $0xc8] sm:$0xf] }
 0x11c   :  { %v673_v19 = vsel %vm12907_vm6, %v665_v63, %v672_v47  ;;  %1080 = vst [vmem:[#allocation2 + $0x140] sm:$0x1] %v1079_v21  ;;  %v678_v23 = vrot.slane %v676_v13, 7  ;;  %v693_v6 = vshrl.u32 %v250_v31, 16  ;;  %v696_v34 = vshll.u32 %v250_v31, 16  ;;  %v13635_v26 = vld [vmem:[#allocation2 + $0x114] sm:$0xff]  }
 0x11d   :  { %1077 = vst [vmem:[#allocation2 + $0x13c] sm:$0xf] %v673_v19  ;;  %v1734_v38 = vshll.u32 %v12047_v58, 16  ;;  %v1710_v44 = vshll.u32 %v12042_v7, 16  ;;  %v1088_v54 = vld [vmem:[#allocation2 + $0x150] sm:$0xf] }
 0x11e   :  { %v681_v39 = vor.u32 %v679_v15, %v678_v23  ;;  %v682_v37 = vrot.slane %v678_v23, 4  ;;  %v695_v43 = vrot.slane %v693_v6, 7  ;;  %v1707_v55 = vrot.slane %v1705_v16, 1  ;;  %v12045_v59 = vld [vmem:[#allocation2 + $0xbc] ss:$0 sps:$4 sm:$0x11]  }
 0x11f   :  { %2872 = vmatmul.mubr.bf16.gmra.mrb[40].mxu0 %v13126_v12  ;;  %v1695_v12 = vrot.slane %v1693_v24, 1  ;;  %v684_v24 = vshrl.u32 %v249_v10, 16  ;;  %v1092_v63 = vld [vmem:[#allocation2 + $0x158] sm:$0x1]  ;;  %v1727_v47 = vshrl.u32 %v13190_v18, 16  ;;  %v13234_v7 = vrot.slane %v1729_v51, 1 }
 0x120   :  { %2879 = vmatprep.mubr.bf16.mxu0 %v13188_v17  ;;  %v1082_v49 = vsel %vm12913_vm7, %v681_v39, %v1081_v1  ;;  %v699_v57 = vrot.slane %v695_v43, 4  ;;  %v13236_v8 = vrot.slane %v1734_v38, 1  ;;  %v1712_v13 = vrot.slane %v1710_v44, 1  ;;  %v12078_v19 = vld [vmem:[#allocation7 + $0xf0] sm:$0xff]   ;;  %19508 = vst [vmem:[#allocation58_spill] sm:$0xff] %v13635_v26 }
 0x121   :  { %v1696_v3 = vor.u32 %v1695_v12, %v1691_v35  ;;  %v686_v32 = vrot.slane %v684_v24, 7  ;;  %v1703_v12 = vshrl.u32 %v13202_v50, 16  ;;  %1083 = vst [vmem:[#allocation2 + $0x144] sm:$0xf] %v1082_v49  ;;  %v1717_v15 = vshll.u32 %v13222_v48, 16  ;;  %v13247_v24 = vld [vmem:[#allocation2 + $0xe4] sm:$0xff]   ;;  %3077 = vmatpush1.bf16.msra.mxu0 %v12078_v19 }
 0x122   :  { %v1715_v21 = vshrl.u32 %v13222_v48, 16  ;;  %v252_v1 = vld [vmem:[#allocation4 + $0xd0] sm:$0xf]  ;;  %v253_v23 = vld [vmem:[#allocation4 + $0xd4] sm:$0xf]  ;;  %3078 = vmatprep.subr.bf16.mxu0 %v19186_v0 }
 0x123   :  { %v13219_v36 = vsel %vm1533_vm2, %v1696_v3, %v1700_v61  ;;  %v689_v40 = vor.u32 %v687_v25, %v686_v32  ;;  %v691_v41 = vrot.slane %v686_v32, 4  ;;  %v698_v61 = vor.u32 %v696_v34, %v695_v43  ;;  %v12050_v25 = vld [vmem:[#allocation2 + $0xec] ss:$0 sps:$4 sm:$0x11]  }
 0x124   :  { %v1708_v51 = vor.u32 %v1707_v55, %v1703_v12  ;;  %v710_v31 = vshrl.u32 %v252_v1, 16  ;;  %v1722_v32 = vshll.u32 %v12045_v59, 16  ;;  %v12052_v6 = vld [vmem:[#allocation2 + $0xf8] ss:$0 sps:$4 sm:$0x11]   ;;  %v718_v34 = vshrl.u32 %v253_v23, 16 }
 0x125   :  { %v690_v58 = vsel %vm12907_vm6, %v682_v37, %v689_v40  ;;  %v1086_v60 = vsel %vm12920_vm8, %v691_v41, %v1085_v11  ;;  %v1089_v10 = vsel %vm12913_vm7, %v698_v61, %v1088_v54  ;;  %v13249_v11 = vld [vmem:[#allocation2 + $0xf0] sm:$0xff]   ;;  %v1719_v38 = vrot.slane %v1717_v15, 1  ;;  %v1095_v37 = vld [vmem:[#allocation2 + $0x15c] sm:$0xf] }
 0x126   :  { %1084 = vst [vmem:[#allocation2 + $0x148] sm:$0xf] %v690_v58  ;;  %1087 = vst [vmem:[#allocation2 + $0x14c] sm:$0x1] %v1086_v60  ;;  %v712_v39 = vrot.slane %v710_v31, 7  ;;  %v13253_v40 = vsel %vm1533_vm2, %v1708_v51, %v1712_v13  ;;  %v1741_v41 = vshll.u32 %v13247_v24, 16 }
 0x127   :  { %2880 = vmatmul.mubr.bf16.gmra.mrb[44].mxu0 %v13144_v46  ;;  %v251_v46 = vld [vmem:[#allocation4 + $0xcc] sm:$0xf]  ;;  %1090 = vst [vmem:[#allocation2 + $0x150] sm:$0xf] %v1089_v10  ;;  %v720_v43 = vrot.slane %v718_v34, 7  ;;  %v1753_v12 = vshll.u32 %v13249_v11, 16  ;;  %v1720_v60 = vor.u32 %v1719_v38, %v1715_v21 }
 0x128   :  { %2887 = vmatprep.mubr.bf16.mxu0 %v13207_v29  ;;  %v701_v35 = vshrl.u32 %v251_v46, 16  ;;  %v704_v52 = vshll.u32 %v251_v46, 16  ;;  %v713_v46 = vshll.u32 %v252_v1, 16  ;;  %v716_v49 = vrot.slane %v712_v39, 4  ;;  %v255_v10 = vld [vmem:[#allocation4 + $0xdc] sm:$0xf] }
 0x129   :  { %v1724_v54 = vrot.slane %v1722_v32, 1  ;;  %v1739_v55 = vshrl.u32 %v13247_v24, 16  ;;  %v1758_v59 = vshll.u32 %v12052_v6, 16  ;;  %v1102_v31 = vld [vmem:[#allocation2 + $0x168] sm:$0xf] }
 0x12a   :  { %v703_v27 = vrot.slane %v701_v35, 7  ;;  %v721_v35 = vshll.u32 %v253_v23, 16  ;;  %v715_v44 = vor.u32 %v713_v46, %v712_v39  ;;  %v735_v23 = vshrl.u32 %v255_v10, 16  ;;  %v256_v46 = vld [vmem:[#allocation4 + $0xe0] sm:$0xf] }
 0x12b   :  { %v13273_v51 = vrot.slane %v1758_v59, 1  ;;  %v13278_v32 = vsel %vm1533_vm2, %v1720_v60, %v1724_v54  ;;  %v13280_v6 = vld [vmem:[#allocation2 + $0x104] ss:$0 sps:$4 sm:$0x11]  }
 0x12c   :  { %v706_v22 = vor.u32 %v704_v52, %v703_v27  ;;  %v708_v3 = vrot.slane %v703_v27, 4  ;;  %v1746_v27 = vshll.u32 %v12050_v25, 16  ;;  %v254_v52 = vld [vmem:[#allocation4 + $0xd8] sm:$0xf]  ;;  %v723_v58 = vor.u32 %v721_v35, %v720_v43  ;;  %v257_v38 = vld [vmem:[#allocation4 + $0xe4] sm:$0xf] }
 0x12d   :  { %v1096_v61 = vsel %vm12913_vm7, %v715_v44, %v1095_v37  ;;  %v727_v13 = vshrl.u32 %v254_v52, 16  ;;  %v730_v19 = vshll.u32 %v254_v52, 16  ;;  %v738_v25 = vshll.u32 %v255_v10, 16  ;;  %v258_v52 = vld [vmem:[#allocation4 + $0xe8] sm:$0xf] }
 0x12e   :  { %v707_v16 = vsel %vm12907_vm6, %v699_v57, %v706_v22  ;;  %v13262_v57 = vrot.slane %v1741_v41, 1  ;;  %v13264_v22 = vld [vmem:[#allocation2 + $0xfc] sm:$0xff]   ;;  %1097 = vst [vmem:[#allocation2 + $0x15c] sm:$0xf] %v1096_v61  ;;  %v13268_v15 = vrot.slane %v1746_v27, 1  ;;  %v737_v37 = vrot.slane %v735_v23, 7 }
 0x12f   :  { %2888 = vmatmul.mubr.bf16.gmra.mrb[48].mxu0 %v13162_v28  ;;  %v1093_v28 = vsel %vm12920_vm8, %v708_v3, %v1092_v63  ;;  %1091 = vst [vmem:[#allocation2 + $0x154] sm:$0xf] %v707_v16  ;;  %v1099_v63 = vld [vmem:[#allocation2 + $0x164] sm:$0x1]  ;;  %v724_v3 = vsel %vm12907_vm6, %v716_v49, %v723_v58  ;;  %v1751_v16 = vshrl.u32 %v13249_v11, 16  ;;  %v729_v1 = vrot.slane %v727_v13, 7 }
 0x130   :  { %2895 = vmatprep.mubr.bf16.mxu0 %v13219_v36  ;;  %1094 = vst [vmem:[#allocation2 + $0x158] sm:$0x1] %v1093_v28  ;;  %v13271_v28 = vrot.slane %v1753_v12, 1  ;;  %1098 = vst [vmem:[#allocation2 + $0x160] sm:$0xf] %v724_v3  ;;  %v1765_v34 = vshll.u32 %v13264_v22, 16  ;;  %v740_v59 = vor.u32 %v738_v25, %v737_v37 }
 0x131   :  { %v732_v35 = vor.u32 %v730_v19, %v729_v1  ;;  %v733_v39 = vrot.slane %v729_v1, 4  ;;  %v744_v41 = vshrl.u32 %v256_v46, 16  ;;  %v1106_v12 = vld [vmem:[#allocation2 + $0x170] sm:$0x1]  ;;  %v752_v44 = vshrl.u32 %v257_v38, 16  ;;  %v12083_v25 = vld [vmem:[#allocation7 + $0xf8] sm:$0xff]  }
 0x132   :  { %v755_v49 = vshll.u32 %v257_v38, 16  ;;  %v13287_v54 = vld [vmem:[#allocation2 + $0x110] ss:$0 sps:$4 sm:$0x11]   ;;  %v742_v58 = vrot.slane %v737_v37, 4  ;;  %v764_v10 = vshll.u32 %v258_v52, 16  ;;  %3079 = vmatpush1.bf16.msra.mxu0 %v12083_v25 }
 0x133   :  { %v1103_v27 = vsel %vm12913_vm7, %v732_v35, %v1102_v31  ;;  %v746_v60 = vrot.slane %v744_v41, 7  ;;  %v1109_v61 = vld [vmem:[#allocation2 + $0x174] sm:$0xf]  ;;  %v754_v3 = vrot.slane %v752_v44, 7  ;;  %v741_v13 = vsel %vm12907_vm6, %v733_v39, %v740_v59  ;;  %v259_v23 = vld [vmem:[#allocation4 + $0xec] sm:$0xf]  ;;  %3337 = vmatprep.subr.bf16.mxu0 %v19186_v0 }
 0x134   :  { %1104 = vst [vmem:[#allocation2 + $0x168] sm:$0xf] %v1103_v27  ;;  %v1107_v19 = vsel %vm12920_vm8, %v742_v58, %v1106_v12  ;;  %v1763_v31 = vshrl.u32 %v13264_v22, 16  ;;  %1105 = vst [vmem:[#allocation2 + $0x16c] sm:$0xf] %v741_v13  ;;  %v13300_v35 = vrot.slane %v1765_v34, 1 }
 0x135   :  { %v750_v1 = vrot.slane %v746_v60, 4  ;;  %1108 = vst [vmem:[#allocation2 + $0x170] sm:$0x1] %v1107_v19  ;;  %v759_v38 = vrot.slane %v754_v3, 4  ;;  %v772_v27 = vshll.u32 %v259_v23, 16  ;;  %v1744_v19 = vor.u32 %v13262_v57, %v1739_v55 }
 0x136   :  { %v1116_v12 = vld [vmem:[#allocation2 + $0x180] sm:$0xf]  ;;  %v260_v44 = vld [vmem:[#allocation4 + $0xf0] sm:$0xf] }
 0x137   :  { %2896 = vmatmul.mubr.bf16.gmra.mrb[52].mxu0 %v13181_v2  ;;  %v725_v2 = vrot.slane %v720_v43, 4  ;;  %v747_v43 = vshll.u32 %v256_v46, 16  ;;  %v1770_v46 = vshll.u32 %v13280_v6, 16  ;;  %v769_v6 = vshrl.u32 %v259_v23, 16  ;;  %v13319_v23 = vld [vmem:[#allocation2 + $0x114] sm:$0xff]  }
 0x138   :  { %2903 = vmatprep.mubr.bf16.mxu0 %v13253_v40 }
 0x139   :  { %v1100_v21 = vsel %vm12920_vm8, %v725_v2, %v1099_v63  ;;  %v13292_v63 = vld [vmem:[#allocation2 + $0x108] sm:$0xff]   ;;  %v761_v2 = vshrl.u32 %v258_v52, 16 }
 0x13a   :  { %1101 = vst [vmem:[#allocation2 + $0x164] sm:$0x1] %v1100_v21  ;;  %v749_v21 = vor.u32 %v747_v43, %v746_v60  ;;  %v1777_v34 = vshll.u32 %v13292_v63, 16  ;;  %v771_v60 = vrot.slane %v769_v6, 7  ;;  %v1775_v55 = vshrl.u32 %v13292_v63, 16 }
 0x13b   :  { %v763_v37 = vrot.slane %v761_v2, 7  ;;  %v1120_v2 = vld [vmem:[#allocation2 + $0x188] sm:$0x1]  ;;  %v13328_v6 = vsel %vm1533_vm2, %v1744_v19, %v13268_v15  ;;  %v12067_v19 = vld [vmem:[#allocation2 + $0x140] ss:$0 sps:$4 sm:$0x11]  }
 0x13c   :  { %v1110_v39 = vsel %vm12913_vm7, %v749_v21, %v1109_v61  ;;  %v778_v61 = vshrl.u32 %v260_v44, 16  ;;  %v776_v21 = vrot.slane %v771_v60, 4  ;;  %v12062_v15 = vld [vmem:[#allocation2 + $0x128] ss:$0 sps:$4 sm:$0x11]  }
 0x13d   :  { %1111 = vst [vmem:[#allocation2 + $0x174] sm:$0xf] %v1110_v39  ;;  %v766_v59 = vor.u32 %v764_v10, %v763_v37  ;;  %v767_v58 = vrot.slane %v763_v37, 4  ;;  %v774_v10 = vor.u32 %v772_v27, %v771_v60  ;;  %v1127_v37 = vld [vmem:[#allocation2 + $0x194] sm:$0x1]  ;;  %v1779_v27 = vrot.slane %v1777_v34, 1 }
 0x13e   :  { %v13341_v34 = vld [vmem:[#allocation2 + $0x12c] sm:$0xff]   ;;  %v1756_v60 = vor.u32 %v13271_v28, %v1751_v16 }
 0x13f   :  { %2904 = vmatmul.mubr.bf16.gmra.mrb[56].mxu0 %v13202_v50  ;;  %v1732_v50 = vor.u32 %v13234_v7, %v1727_v47  ;;  %v757_v47 = vor.u32 %v755_v49, %v754_v3  ;;  %v1113_v7 = vld [vmem:[#allocation2 + $0x17c] sm:$0x1]  ;;  %v1782_v49 = vshll.u32 %v13287_v54, 16  ;;  %v1117_v3 = vsel %vm12913_vm7, %v766_v59, %v1116_v12 }
 0x140   :  { %2911 = vmatprep.mubr.bf16.mxu0 %v13278_v32  ;;  %v1114_v52 = vsel %vm12920_vm8, %v759_v38, %v1113_v7  ;;  %1118 = vst [vmem:[#allocation2 + $0x180] sm:$0xf] %v1117_v3  ;;  %v1121_v7 = vsel %vm12920_vm8, %v776_v21, %v1120_v2  ;;  %v12060_v12 = vld [vmem:[#allocation2 + $0x11c] ss:$0 sps:$4 sm:$0x11]   ;;  %v1789_v59 = vshll.u32 %v13319_v23, 16 }
 0x141   :  { %v1737_v41 = vsel %vm1533_vm2, %v1732_v50, %v13236_v8  ;;  %v758_v43 = vsel %vm12907_vm6, %v750_v1, %v757_v47  ;;  %v261_v8 = vld [vmem:[#allocation4 + $0xf4] sm:$0xf]  ;;  %1115 = vst [vmem:[#allocation2 + $0x17c] sm:$0x1] %v1114_v52  ;;  %v781_v50 = vshll.u32 %v260_v44, 16  ;;  %v775_v47 = vsel %vm12907_vm6, %v767_v58, %v774_v10  ;;  %v13338_v58 = vld [vmem:[#allocation2 + $0x120] sm:$0xff]  }
 0x142   :  { %1112 = vst [vmem:[#allocation2 + $0x178] sm:$0xf] %v758_v43  ;;  %v786_v13 = vshrl.u32 %v261_v8, 16  ;;  %v789_v54 = vshll.u32 %v261_v8, 16  ;;  %v1123_v1 = vld [vmem:[#allocation2 + $0x18c] sm:$0xf]  ;;  %v13353_v10 = vsel %vm1533_vm2, %v1756_v60, %v13273_v51  ;;  %v1768_v51 = vor.u32 %v13300_v35, %v1763_v31 }
 0x143   :  { %1119 = vst [vmem:[#allocation2 + $0x184] sm:$0xf] %v775_v47  ;;  %1122 = vst [vmem:[#allocation2 + $0x188] sm:$0x1] %v1121_v7  ;;  %v1784_v52 = vrot.slane %v1782_v49, 1  ;;  %v1791_v3 = vrot.slane %v1789_v59, 1  ;;  %v1780_v35 = vor.u32 %v1779_v27, %v1775_v55 }
 0x144   :  { %v788_v25 = vrot.slane %v786_v13, 7  ;;  %v12065_v49 = vld [vmem:[#allocation2 + $0x134] ss:$0 sps:$4 sm:$0x11]   ;;  %v13347_v2 = vld [vmem:[#allocation2 + $0x138] sm:$0xff]   ;;  %v1806_v13 = vshll.u32 %v12062_v15, 16 }
 0x145   :  { %v1799_v16 = vshrl.u32 %v13338_v58, 16  ;;  %v1825_v28 = vshll.u32 %v13347_v2, 16  ;;  %v12072_v60 = vld [vmem:[#allocation2 + $0x158] ss:$0 sps:$4 sm:$0x11]  }
 0x146   :  { %v791_v57 = vor.u32 %v789_v54, %v788_v25  ;;  %v793_v43 = vrot.slane %v788_v25, 4  ;;  %v1813_v54 = vshll.u32 %v13341_v34, 16  ;;  %v12070_v25 = vld [vmem:[#allocation2 + $0x14c] ss:$0 sps:$4 sm:$0x11]   ;;  %v1808_v7 = vrot.slane %v1806_v13, 1 }
 0x147   :  { %2912 = vmatmul.mubr.bf16.gmra.mrb[60].mxu0 %v13222_v48  ;;  %v780_v48 = vrot.slane %v778_v61, 7  ;;  %v1787_v61 = vshrl.u32 %v13319_v23, 16  ;;  %v12074_v13 = vld [vmem:[#allocation2 + $0x15c] sm:$0xff]  }
 0x148   :  { %2919 = vmatprep.mubr.bf16.mxu0 %v1737_v41  ;;  %v1772_v41 = vrot.slane %v1770_v46, 1  ;;  %v1128_v8 = vsel %vm12920_vm8, %v793_v43, %v1127_v37  ;;  %v1827_v43 = vrot.slane %v1825_v28, 1  ;;  %v12075_v28 = vld [vmem:[#allocation2 + $0x164] ss:$0 sps:$4 sm:$0x11]  }
 0x149   :  { %v783_v38 = vor.u32 %v781_v50, %v780_v48  ;;  %v784_v39 = vrot.slane %v780_v48, 4  ;;  %1129 = vst [vmem:[#allocation2 + $0x194] sm:$0x1] %v1128_v8  ;;  %v1794_v50 = vshll.u32 %v12060_v12, 16  ;;  %v1818_v48 = vshll.u32 %v12065_v49, 16  ;;  %v12071_v49 = vld [vmem:[#allocation2 + $0x150] sm:$0xff]  }
 0x14a   :  { %v1830_v12 = vshll.u32 %v12067_v19, 16  ;;  %v13368_v59 = vsel %vm1533_vm2, %v1768_v51, %v1772_v41  ;;  %v1849_v41 = vshll.u32 %v12071_v49, 16  ;;  %v1847_v19 = vshrl.u32 %v12071_v49, 16 }
 0x14b   :  { %v1124_v44 = vsel %vm12913_vm7, %v783_v38, %v1123_v1  ;;  %v792_v46 = vsel %vm12907_vm6, %v784_v39, %v791_v57  ;;  %v1796_v21 = vrot.slane %v1794_v50, 1  ;;  %v13358_v1 = vld [vmem:[#allocation2 + $0x144] sm:$0xff]   ;;  %v1811_v38 = vshrl.u32 %v13341_v34, 16 }
 0x14c   :  { %1125 = vst [vmem:[#allocation2 + $0x18c] sm:$0xf] %v1124_v44  ;;  %1126 = vst [vmem:[#allocation2 + $0x190] sm:$0xf] %v792_v46  ;;  %v1815_v39 = vrot.slane %v1813_v54, 1  ;;  %v1820_v37 = vrot.slane %v1818_v48, 1  ;;  %v13374_v50 = vsel %vm1533_vm2, %v1780_v35, %v1784_v52 }
 0x14d   :  { %v1823_v57 = vshrl.u32 %v13347_v2, 16  ;;  %v1842_v44 = vshll.u32 %v12070_v25, 16  ;;  %v1832_v46 = vrot.slane %v1830_v12, 1  ;;  %v1835_v8 = vshrl.u32 %v13358_v1, 16  ;;  %v13388_v25 = vld [vmem:[#allocation2 + $0x168] sm:$0xff]  }
 0x14e   :  { %v1851_v55 = vrot.slane %v1849_v41, 1  ;;  %v1859_v52 = vshrl.u32 %v12074_v13, 16  ;;  %v13397_v12 = vld [vmem:[#allocation2 + $0x170] ss:$0 sps:$4 sm:$0x11]  }
 0x14f   :  { %2920 = vmatmul.mubr.bf16.gmra.mrb[64].mxu0 %v13190_v18  ;;  %v1801_v18 = vshll.u32 %v13338_v58, 16  ;;  %v1844_v31 = vrot.slane %v1842_v44, 1  ;;  %v13407_v44 = vld [vmem:[#allocation2 + $0x17c] ss:$0 sps:$4 sm:$0x11]  }
 0x150   :  { %2927 = vmatprep.mubr.bf16.mxu0 %v13328_v6 }
 0x151   :  { %v1803_v47 = vrot.slane %v1801_v18, 1  ;;  %v1854_v18 = vshll.u32 %v12072_v60, 16  ;;  %v1852_v60 = vor.u32 %v1851_v55, %v1847_v19 }
 0x153   :  { %v1856_v27 = vrot.slane %v1854_v18, 1  ;;  %v1804_v48 = vor.u32 %v1803_v47, %v1799_v16  ;;  %v1871_v47 = vshrl.u32 %v13388_v25, 16  ;;  %v13425_v18 = vld [vmem:[#allocation2 + $0x188] ss:$0 sps:$4 sm:$0x11]  }
 0x157   :  { %2928 = vmatmul.mubr.bf16.gmra.mrb[68].mxu0 %v13247_v24  ;;  %v1837_v24 = vshll.u32 %v13358_v1, 16 }
 0x158   :  { %2935 = vmatprep.mubr.bf16.mxu0 %v13353_v10 }
 0x159   :  { %v1839_v15 = vrot.slane %v1837_v24, 1  ;;  %v13405_v24 = vld [vmem:[#allocation2 + $0x174] sm:$0xff]  }
 0x15f   :  { %2936 = vmatmul.mubr.bf16.gmra.mrb[72].mxu0 %v13249_v11  ;;  %v1792_v11 = vor.u32 %v1791_v3, %v1787_v61  ;;  %v1861_v61 = vshll.u32 %v12074_v13, 16  ;;  %v1866_v3 = vshll.u32 %v12075_v28, 16  ;;  %v13433_v28 = vld [vmem:[#allocation2 + $0x18c] sm:$0xff]  }
 0x160   :  { %2943 = vmatprep.mubr.bf16.mxu0 %v13368_v59 }
 0x161   :  { %v13379_v54 = vsel %vm1533_vm2, %v1792_v11, %v1796_v21  ;;  %v1816_v21 = vor.u32 %v1815_v39, %v1811_v38  ;;  %v1863_v51 = vrot.slane %v1861_v61, 1  ;;  %v1868_v16 = vrot.slane %v1866_v3, 1  ;;  %v13435_v61 = vld [vmem:[#allocation2 + $0x194] ss:$0 sps:$4 sm:$0x11]  }
 0x162   :  { %v1914_v3 = vshll.u32 %v13435_v61, 16 }
 0x163   :  { %v1864_v41 = vor.u32 %v1863_v51, %v1859_v52 }
 0x165   :  { %v13428_v11 = vsel %vm1533_vm2, %v1864_v41, %v1868_v16 }
 0x166   :  { %19474 = vst [vmem:[#allocation25_spill] sm:$0xff] %v13428_v11 }
 0x167   :  { %2944 = vmatmul.mubr.bf16.gmra.mrb[76].mxu0 %v13264_v22  ;;  %v13384_v22 = vsel %vm1533_vm2, %v1804_v48, %v1808_v7  ;;  %v1828_v7 = vor.u32 %v1827_v43, %v1823_v57  ;;  %v1883_v43 = vshrl.u32 %v13405_v24, 16 }
 0x168   :  { %2951 = vmatprep.mubr.bf16.mxu0 %v13374_v50  ;;  %19469 = vst [vmem:[#allocation20_spill] sm:$0xff] %v13384_v22 }
 0x169   :  { %v13400_v38 = vsel %vm1533_vm2, %v1828_v7, %v1832_v46  ;;  %v1890_v46 = vshll.u32 %v13407_v44, 16  ;;  %v1916_v7 = vrot.slane %v1914_v3, 1 }
 0x16a   :  { %19471 = vst [vmem:[#allocation22_spill] sm:$0xff] %v13400_v38 }
 0x16b   :  { %v1892_v19 = vrot.slane %v1890_v46, 1 }
 0x16f   :  { %2952 = vmatmul.mubr.bf16.gmra.mrb[80].mxu0 %v13292_v63  ;;  %v13391_v63 = vsel %vm1533_vm2, %v1816_v21, %v1820_v37  ;;  %v1840_v37 = vor.u32 %v1839_v15, %v1835_v8  ;;  %v13417_v8 = vld [vmem:[#allocation2 + $0x180] sm:$0xff]   ;;  %v13420_v15 = vsel %vm1533_vm2, %v1852_v60, %v1856_v27  ;;  %v12325_v60 = vld [vmem:[#allocation2 + $0xb0] ss:$0 sps:$4 sm:$0x11]  }
 0x170   :  { %2959 = vmatprep.mubr.bf16.mxu0 %v13379_v54  ;;  %19470 = vst [vmem:[#allocation21_spill] sm:$0xff] %v13391_v63  ;;  %19473 = vst [vmem:[#allocation24_spill] sm:$0xff] %v13420_v15  ;;  %v1895_v55 = vshrl.u32 %v13417_v8, 16 }
 0x171   :  { %v13410_v35 = vsel %vm1533_vm2, %v1840_v37, %v1844_v31  ;;  %v1897_v31 = vshll.u32 %v13417_v8, 16  ;;  %v231_v37 = vld [vmem:[#allocation4 + $0x7c] sm:$0xf] }
 0x172   :  { %19472 = vst [vmem:[#allocation23_spill] sm:$0xff] %v13410_v35 }
 0x173   :  { %v1899_v27 = vrot.slane %v1897_v31, 1 }
 0x177   :  { %2960 = vmatmul.mubr.bf16.gmra.mrb[84].mxu0 %v13319_v23  ;;  %v1873_v23 = vshll.u32 %v13388_v25, 16 }
 0x178   :  { %2967 = vmatprep.mubr.bf16.mxu0 %v13384_v22 }
 0x179   :  { %v1875_v39 = vrot.slane %v1873_v23, 1 }
 0x17b   :  { %v1876_v48 = vor.u32 %v1875_v39, %v1871_v47  ;;  %v1907_v47 = vshrl.u32 %v13433_v28, 16 }
 0x17f   :  { %2968 = vmatmul.mubr.bf16.gmra.mrb[88].mxu0 %v13338_v58  ;;  %v1878_v58 = vshll.u32 %v13397_v12, 16 }
 0x180   :  { %2975 = vmatprep.mubr.bf16.mxu0 %v13391_v63 }
 0x181   :  { %v1880_v57 = vrot.slane %v1878_v58, 1  ;;  %v230_v58 = vld [vmem:[#allocation4 + $0x78] sm:$0xf] }
 0x182   :  { %v526_v41 = vshll.u32 %v230_v58, 16 }
 0x183   :  { %v13438_v52 = vsel %vm1533_vm2, %v1876_v48, %v1880_v57  ;;  %v523_v57 = vshrl.u32 %v230_v58, 16 }
 0x184   :  { %19475 = vst [vmem:[#allocation26_spill] sm:$0xff] %v13438_v52 }
 0x185   :  { %v525_v31 = vrot.slane %v523_v57, 7  ;;  %v12328_v57 = vld [vmem:[#allocation2] sm:$0xff]  }
 0x187   :  { %2976 = vmatmul.mubr.bf16.gmra.mrb[92].mxu0 %v13341_v34  ;;  %v1885_v34 = vshll.u32 %v13405_v24, 16  ;;  %v528_v48 = vor.u32 %v526_v41, %v525_v31 }
 0x188   :  { %2983 = vmatprep.mubr.bf16.mxu0 %v13400_v38 }
 0x18f   :  { %2984 = vmatmul.mubr.bf16.gmra.mrb[96].mxu0 %v13347_v2  ;;  %v1887_v2 = vrot.slane %v1885_v34, 1  ;;  %v13454_v34 = vld [vmem:[#allocation2 + $0xa8] sm:$0xff]  }
 0x190   :  { %2991 = vmatprep.mubr.bf16.mxu0 %v13410_v35  ;;  %v1993_v46 = vrot.slane %v13454_v34, 1 }
 0x191   :  { %v1888_v21 = vor.u32 %v1887_v2, %v1883_v43  ;;  %v531_v43 = vshrl.u32 %v231_v37, 16  ;;  %v1994_v2 = vrot.slane %v12325_v60, 1  ;;  %v13475_v60 = vld [vmem:[#allocation2 + $0x18] sm:$0xff]  }
 0x192   :  { %19479 = vst [vmem:[#allocation30_spill] sm:$0xff] %v13475_v60 }
 0x193   :  { %v13444_v51 = vsel %vm1533_vm2, %v1888_v21, %v1892_v19  ;;  %v1018_v21 = vld [vmem:[#allocation2 + $0xc0] sm:$0xf] }
 0x194   :  { %19476 = vst [vmem:[#allocation27_spill] sm:$0xff] %v13444_v51 }
 0x197   :  { %2992 = vmatmul.mubr.bf16.gmra.mrb[100].mxu0 %v13358_v1  ;;  %v1902_v1 = vshll.u32 %v13425_v18, 16 }
 0x198   :  { %2999 = vmatprep.mubr.bf16.mxu0 %v13420_v15 }
 0x199   :  { %v1904_v16 = vrot.slane %v1902_v1, 1  ;;  %v13460_v1 = vsel %vm1950_vm9, %v1993_v46, %v1994_v2  ;;  %v12086_v46 = vld [vmem:[#allocation7 + $0x100] sm:$0xff]  }
 0x19a   :  { %10996 = vmatprep.mubr.bf16.mxu1 %v13460_v1 }
 0x19f   :  { %3000 = vmatmul.mubr.bf16.gmra.mrb[104].mxu0 %v12071_v49  ;;  %v1909_v49 = vshll.u32 %v13433_v28, 16 }
 0x1a0   :  { %3007 = vmatprep.mubr.bf16.mxu0 %v13428_v11 }
 0x1a1   :  { %v1911_v23 = vrot.slane %v1909_v49, 1  ;;  %v529_v49 = vrot.slane %v525_v31, 4  ;;  %v12330_v31 = vld [vmem:[#allocation2 + $0x14] ss:$0 sps:$4 sm:$0x11]  }
 0x1a2   :  { %v1955_v41 = vrot.slane %v12330_v31, 1  ;;  %v12092_v31 = vld [vmem:[#allocation7 + $0x130] sm:$0xff]  }
 0x1a3   :  { %v1912_v19 = vor.u32 %v1911_v23, %v1907_v47  ;;  %v12326_v23 = vld [vmem:[#allocation2 + $0x8] ss:$0 sps:$4 sm:$0x11]  }
 0x1a4   :  { %v1952_v58 = vrot.slane %v12326_v23, 1 }
 0x1a7   :  { %3008 = vmatmul.mubr.bf16.gmra.mrb[108].mxu0 %v12074_v13  ;;  %v1900_v13 = vor.u32 %v1899_v27, %v1895_v55  ;;  %v13457_v55 = vrot.slane %v531_v43, 7  ;;  %v534_v27 = vshll.u32 %v231_v37, 16  ;;  %v12327_v37 = vld [vmem:[#allocation2 + $0xc] sm:$0xff]   ;;  %v1951_v43 = vrot.slane %v12328_v57, 1 }
 0x1a8   :  { %3015 = vmatprep.mubr.bf16.mxu0 %v13438_v52  ;;  %v1954_v2 = vrot.slane %v12327_v37, 1 }
 0x1a9   :  { %v13450_v39 = vsel %vm1533_vm2, %v1900_v13, %v1904_v16  ;;  %v536_v3 = vor.u32 %v534_v27, %v13457_v55  ;;  %v1019_v16 = vsel %vm12913_vm7, %v528_v48, %v1018_v21  ;;  %v13467_v13 = vsel %vm1533_vm2, %v1912_v19, %v1916_v7  ;;  %v12087_v19 = vld [vmem:[#allocation7 + $0x108] sm:$0xff]   ;;  %v12088_v48 = vld [vmem:[#allocation7 + $0x110] sm:$0xff]   ;;  %v12332_v21 = vld [vmem:[#allocation2 + $0x20] ss:$0 sps:$4 sm:$0x11]  }
 0x1aa   :  { %19477 = vst [vmem:[#allocation28_spill] sm:$0xff] %v13450_v39  ;;  %19478 = vst [vmem:[#allocation29_spill] sm:$0xff] %v13467_v13  ;;  %v1953_v7 = vsel %vm1950_vm9, %v1951_v43, %v1952_v58  ;;  %v13480_v27 = vsel %vm1950_vm9, %v1954_v2, %v1955_v41  ;;  %v12090_v58 = vld [vmem:[#allocation7 + $0x120] sm:$0xff]   ;;  %v12334_v43 = vld [vmem:[#allocation2 + $0x2c] ss:$0 sps:$4 sm:$0x11]  }
 0x1ab   :  { %v537_v47 = vsel %vm12907_vm6, %v529_v49, %v536_v3  ;;  %1020 = vst [vmem:[#allocation2 + $0xc0] sm:$0xf] %v1019_v16  ;;  %v13484_v49 = vld [vmem:[#allocation2 + $0x24] sm:$0xff]   ;;  %v1957_v3 = vrot.slane %v13475_v60, 1  ;;  %v1958_v16 = vrot.slane %v12332_v21, 1  ;;  %v13504_v41 = vld [vmem:[#allocation2 + $0x3c] sm:$0xff]  }
 0x1ac   :  { %1021 = vst [vmem:[#allocation2 + $0xc4] sm:$0xf] %v537_v47  ;;  %19480 = vst [vmem:[#allocation31_spill] sm:$0xff] %v13484_v49  ;;  %v12089_v47 = vld [vmem:[#allocation7 + $0x118] sm:$0xff]   ;;  %v1960_v57 = vrot.slane %v13484_v49, 1 }
 0x1ad   :  { %v13490_v23 = vsel %vm1950_vm9, %v1957_v3, %v1958_v16  ;;  %19484 = vst [vmem:[#allocation35_spill] sm:$0xff] %v13504_v41  ;;  %v12093_v21 = vld [vmem:[#allocation7 + $0x138] sm:$0xff]  }
 0x1ae   :  { %19481 = vst [vmem:[#allocation32_spill] sm:$0xff] %v13490_v23 }
 0x1af   :  { %3016 = vmatmul.mubr.bf16.gmra.mrb[112].mxu0 %v13388_v25 }
 0x1b0   :  { %3023 = vmatprep.mubr.bf16.mxu0 %v13444_v51 }
 0x1b3   :  { %v13597_v35 = vld [vmem:[#allocation2 + $0xc0] sm:$0xff]  }
 0x1b7   :  { %3024 = vmatmul.mubr.bf16.gmra.mrb[116].mxu0 %v13405_v24 }
 0x1b8   :  { %3031 = vmatprep.mubr.bf16.mxu0 %v13450_v39 }
 0x1bf   :  { %3032 = vmatmul.mubr.bf16.gmra.mrb[120].mxu0 %v13417_v8 }
 0x1c0   :  { %3039 = vmatprep.mubr.bf16.mxu0 %v13467_v13 }
 0x1c7   :  { %3040 = vmatmul.mubr.bf16.gmra.mrb[124].mxu0 %v13433_v28 }
 0x1c8   :  { %3080 = vmatprep.mubr.bf16.mxu0 %v12327_v37  ;;  %v13494_v37 = vld [vmem:[#allocation2 + $0x30] sm:$0xff]  }
 0x1c9   :  { %19482 = vst [vmem:[#allocation33_spill] sm:$0xff] %v13494_v37 }
 0x1cf   :  { %3081 = vmatmul.mubr.bf16.vlgmr.msra.gmra.mrb[0].mxu0 %v1953_v7  ;;  %v1961_v7 = vrot.slane %v12334_v43, 1  ;;  %v12338_v43 = vld [vmem:[#allocation2 + $0x44] ss:$0 sps:$4 sm:$0x11]  }
 0x1d0   :  { %3338 = vmatpush1.bf16.msra.mxu0 %v12086_v46  ;;  %3088 = vmatprep.mubr.bf16.mxu0 %v13475_v60  ;;  %v12091_v46 = vld [vmem:[#allocation7 + $0x128] sm:$0xff]  }
 0x1d1   :  { %3339 = vmatprep.subr.bf16.mxu0 %v19186_v0  ;;  %v13500_v2 = vsel %vm1950_vm9, %v1960_v57, %v1961_v7  ;;  %v1966_v57 = vrot.slane %v13504_v41, 1  ;;  %v1967_v7 = vrot.slane %v12338_v43, 1  ;;  %v12098_v43 = vld [vmem:[#allocation7 + $0x158] sm:$0xff]  }
 0x1d2   :  { %19483 = vst [vmem:[#allocation34_spill] sm:$0xff] %v13500_v2 }
 0x1d4   :  { %3340 = vmatpush1.bf16.msra.mxu0 %v12087_v19  ;;  %v1963_v19 = vrot.slane %v13494_v37, 1 }
 0x1d5   :  { %3341 = vmatprep.subr.bf16.mxu0 %v19186_v0 }
 0x1d7   :  { %3089 = vmatmul.mubr.bf16.gmra.mrb[4].mxu0 %v13480_v27 }
 0x1d8   :  { %3096 = vmatprep.mubr.bf16.mxu0 %v13484_v49  ;;  %3342 = vmatpush1.bf16.msra.mxu0 %v12088_v48  ;;  %v12336_v48 = vld [vmem:[#allocation2 + $0x38] ss:$0 sps:$4 sm:$0x11]   ;;  %v19495_v49 = vmov 0  }
 0x1d9   :  { %3343 = vmatprep.subr.bf16.mxu0 %v19186_v0  ;;  %v1964_v3 = vrot.slane %v12336_v48, 1  ;;  %v13524_v48 = vld [vmem:[#allocation2 + $0x54] sm:$0xff]  }
 0x1da   :  { %19488 = vst [vmem:[#allocation39_spill] sm:$0xff] %v13524_v48 }
 0x1db   :  { %v13510_v16 = vsel %vm1950_vm9, %v1963_v19, %v1964_v3  ;;  %v12097_v19 = vld [vmem:[#allocation7 + $0x150] sm:$0xff]  }
 0x1dc   :  { %3344 = vmatpush1.bf16.msra.mxu0 %v12089_v47  ;;  %19485 = vst [vmem:[#allocation36_spill] sm:$0xff] %v13510_v16  ;;  %v12095_v47 = vld [vmem:[#allocation7 + $0x140] sm:$0xff]  }
 0x1dd   :  { %3345 = vmatprep.subr.bf16.mxu0 %v19186_v0 }
 0x1df   :  { %3097 = vmatmul.mubr.bf16.gmra.mrb[8].mxu0 %v13490_v23 }
 0x1e0   :  { %3104 = vmatprep.mubr.bf16.mxu0 %v13494_v37  ;;  %3346 = vmatpush1.bf16.msra.mxu0 %v12090_v58  ;;  %v13514_v58 = vld [vmem:[#allocation2 + $0x48] sm:$0xff]  }
 0x1e1   :  { %3347 = vmatprep.subr.bf16.mxu0 %v19186_v0  ;;  %19486 = vst [vmem:[#allocation37_spill] sm:$0xff] %v13514_v58  ;;  %v1969_v3 = vrot.slane %v13514_v58, 1 }
 0x1e4   :  { %3348 = vmatpush1.bf16.msra.mxu0 %v12091_v46  ;;  %v12096_v46 = vld [vmem:[#allocation7 + $0x148] sm:$0xff]  }
 0x1e5   :  { %3349 = vmatprep.subr.bf16.mxu0 %v19186_v0 }
 0x1e7   :  { %3105 = vmatmul.mubr.bf16.gmra.mrb[12].mxu0 %v13500_v2 }
 0x1e8   :  { %3112 = vmatprep.mubr.bf16.mxu0 %v13504_v41  ;;  %3350 = vmatpush1.bf16.msra.mxu0 %v12092_v31  ;;  %v13520_v31 = vsel %vm1950_vm9, %v1966_v57, %v1967_v7  ;;  %v13533_v7 = vld [vmem:[#allocation2 + $0x60] sm:$0xff]   ;;  %v12342_v41 = vld [vmem:[#allocation2 + $0x5c] ss:$0 sps:$4 sm:$0x11]  }
 0x1e9   :  { %3351 = vmatprep.subr.bf16.mxu0 %v19186_v0  ;;  %19487 = vst [vmem:[#allocation38_spill] sm:$0xff] %v13520_v31  ;;  %19490 = vst [vmem:[#allocation41_spill] sm:$0xff] %v13533_v7  ;;  %v1973_v37 = vrot.slane %v12342_v41, 1  ;;  %v12099_v41 = vld [vmem:[#allocation7 + $0x160] sm:$0xff]  }
 0x1ec   :  { %3352 = vmatpush1.bf16.msra.mxu0 %v12093_v21  ;;  %v12340_v21 = vld [vmem:[#allocation2 + $0x50] ss:$0 sps:$4 sm:$0x11]  }
 0x1ed   :  { %3353 = vmatprep.subr.bf16.mxu0 %v19186_v0 }
 0x1ef   :  { %3113 = vmatmul.mubr.bf16.gmra.mrb[16].mxu0 %v13510_v16 }
 0x1f0   :  { %3120 = vmatprep.mubr.bf16.mxu0 %v13514_v58  ;;  %3354 = vmatpush1.bf16.msra.mxu0 %v12095_v47  ;;  %v1970_v47 = vrot.slane %v12340_v21, 1  ;;  %v1975_v21 = vrot.slane %v13533_v7, 1 }
 0x1f1   :  { %3355 = vmatprep.subr.bf16.mxu0 %v19186_v0 }
 0x1f2   :  { %v13530_v57 = vsel %vm1950_vm9, %v1969_v3, %v1970_v47  ;;  %v13542_v3 = vld [vmem:[#allocation2 + $0x6c] sm:$0xff]   ;;  %v12344_v47 = vld [vmem:[#allocation2 + $0x68] ss:$0 sps:$4 sm:$0x11]  }
 0x1f3   :  { %19489 = vst [vmem:[#allocation40_spill] sm:$0xff] %v13530_v57  ;;  %19492 = vst [vmem:[#allocation43_spill] sm:$0xff] %v13542_v3  ;;  %v1976_v58 = vrot.slane %v12344_v47, 1  ;;  %v12348_v47 = vld [vmem:[#allocation2 + $0x80] ss:$0 sps:$4 sm:$0x11]  }
 0x1f4   :  { %3356 = vmatpush1.bf16.msra.mxu0 %v12096_v46  ;;  %v1972_v46 = vrot.slane %v13524_v48, 1  ;;  %v1982_v60 = vrot.slane %v12348_v47, 1  ;;  %v12352_v47 = vld [vmem:[#allocation2 + $0x98] ss:$0 sps:$4 sm:$0x11]  }
 0x1f5   :  { %3357 = vmatprep.subr.bf16.mxu0 %v19186_v0  ;;  %v1988_v39 = vrot.slane %v12352_v47, 1  ;;  %v263_v47 = vld [vmem:[#allocation4 + $0xfc] sm:$0xf] }
 0x1f7   :  { %3121 = vmatmul.mubr.bf16.gmra.mrb[20].mxu0 %v13520_v31 }
 0x1f8   :  { %3128 = vmatprep.mubr.bf16.mxu0 %v13524_v48  ;;  %3358 = vmatpush1.bf16.msra.mxu0 %v12097_v19  ;;  %v13539_v19 = vsel %vm1950_vm9, %v1972_v46, %v1973_v37  ;;  %v13547_v48 = vsel %vm1950_vm9, %v1975_v21, %v1976_v58  ;;  %v1978_v37 = vrot.slane %v13542_v3, 1  ;;  %v12346_v46 = vld [vmem:[#allocation2 + $0x74] ss:$0 sps:$4 sm:$0x11]   ;;  %v13559_v58 = vld [vmem:[#allocation2 + $0x84] sm:$0xff]  }
 0x1f9   :  { %3359 = vmatprep.subr.bf16.mxu0 %v19186_v0  ;;  %19491 = vst [vmem:[#allocation42_spill] sm:$0xff] %v13539_v19  ;;  %19493 = vst [vmem:[#allocation44_spill] sm:$0xff] %v13547_v48 }
 0x1fa   :  { %19497 = vst [vmem:[#allocation47_spill] sm:$0xff] %v13559_v58 }
 0x1fc   :  { %3360 = vmatpush1.bf16.msra.mxu0 %v12098_v43  ;;  %v13550_v43 = vld [vmem:[#allocation2 + $0x78] sm:$0xff]  }
 0x1fd   :  { %3361 = vmatprep.subr.bf16.mxu0 %v19186_v0  ;;  %19494 = vst [vmem:[#allocation45_spill] sm:$0xff] %v13550_v43  ;;  %v1979_v0 = vrot.slane %v12346_v46, 1  ;;  %v1981_v21 = vrot.slane %v13550_v43, 1  ;;  %v13567_v46 = vld [vmem:[#allocation2 + $0x90] sm:$0xff]  }
 0x1fe   :  { %19499 = vst [vmem:[#allocation49_spill] sm:$0xff] %v13567_v46 }
 0x1ff   :  { %3129 = vmatmul.mubr.bf16.gmra.mrb[24].mxu0 %v13530_v57 }
 0x200   :  { %3136 = vmatprep.mubr.bf16.mxu0 %v13533_v7  ;;  %3362 = vmatpush1.bf16.msra.mxu0 %v12099_v41  ;;  %v13556_v7 = vsel %vm1950_vm9, %v1978_v37, %v1979_v0  ;;  %v12100_v41 = vld [vmem:[#allocation7 + $0x168] sm:$0xff]   ;;  %v1984_v0 = vrot.slane %v13559_v58, 1 }
 0x201   :  { %3363 = vmatprep.subr.bf16.mxu0 %v19495_v49  ;;  %19496 = vst [vmem:[#allocation46_spill] sm:$0xff] %v13556_v7  ;;  %v12350_v37 = vld [vmem:[#allocation2 + $0x8c] ss:$0 sps:$4 sm:$0x11]  }
 0x202   :  { %v1985_v13 = vrot.slane %v12350_v37, 1 }
 0x204   :  { %3364 = vmatpush1.bf16.msra.mxu0 %v12100_v41  ;;  %v12101_v41 = vld [vmem:[#allocation7 + $0x170] sm:$0xff]  }
 0x205   :  { %3365 = vmatprep.subr.bf16.mxu0 %v19495_v49 }
 0x207   :  { %3137 = vmatmul.mubr.bf16.gmra.mrb[28].mxu0 %v13539_v19 }
 0x208   :  { %3144 = vmatprep.mubr.bf16.mxu0 %v13542_v3  ;;  %v13564_v3 = vsel %vm1950_vm9, %v1981_v21, %v1982_v60  ;;  %v13576_v60 = vld [vmem:[#allocation2 + $0x9c] sm:$0xff]   ;;  %v1987_v21 = vrot.slane %v13567_v46, 1  ;;  %3366 = vmatpush1.bf16.msra.mxu0 %v12101_v41  ;;  %v806_v41 = vshll.u32 %v263_v47, 16 }
 0x209   :  { %19498 = vst [vmem:[#allocation48_spill] sm:$0xff] %v13564_v3  ;;  %19501 = vst [vmem:[#allocation51_spill] sm:$0xff] %v13576_v60  ;;  %3367 = vmatprep.subr.bf16.mxu0 %v19495_v49 }
 0x20f   :  { %3145 = vmatmul.mubr.bf16.gmra.mrb[32].mxu0 %v13547_v48 }
 0x210   :  { %3152 = vmatprep.mubr.bf16.mxu0 %v13550_v43  ;;  %v13573_v43 = vsel %vm1950_vm9, %v1984_v0, %v1985_v13  ;;  %v1990_v13 = vrot.slane %v13576_v60, 1  ;;  %v12353_v0 = vld [vmem:[#allocation2 + $0xa4] ss:$0 sps:$4 sm:$0x11]  }
 0x211   :  { %19500 = vst [vmem:[#allocation50_spill] sm:$0xff] %v13573_v43  ;;  %v1991_v37 = vrot.slane %v12353_v0, 1 }
 0x213   :  { %v13588_v51 = vsel %vm1950_vm9, %v1990_v13, %v1991_v37  ;;  %v1130_v37 = vld [vmem:[#allocation2 + $0x198] sm:$0xf] }
 0x214   :  { %19503 = vst [vmem:[#allocation53_spill] sm:$0xff] %v13588_v51 }
 0x217   :  { %3153 = vmatmul.mubr.bf16.gmra.mrb[36].mxu0 %v13556_v7 }
 0x218   :  { %3160 = vmatprep.mubr.bf16.mxu0 %v13559_v58  ;;  %v13581_v58 = vsel %vm1950_vm9, %v1987_v21, %v1988_v39  ;;  %v803_v39 = vshrl.u32 %v263_v47, 16  ;;  %v13591_v21 = vld [vmem:[#allocation2 + $0xb4] sm:$0xff]  }
 0x219   :  { %19502 = vst [vmem:[#allocation52_spill] sm:$0xff] %v13581_v58  ;;  %19504 = vst [vmem:[#allocation54_spill] sm:$0xff] %v13591_v21 }
 0x21a   :  { %v13594_v11 = vrot.slane %v803_v39, 7 }
 0x21c   :  { %v808_v13 = vor.u32 %v806_v41, %v13594_v11 }
 0x21f   :  { %3161 = vmatmul.mubr.bf16.gmra.mrb[40].mxu0 %v13564_v3 }
 0x220   :  { %3168 = vmatprep.mubr.bf16.mxu0 %v13567_v46  ;;  %v262_v46 = vld [vmem:[#allocation4 + $0xf8] sm:$0xf] }
 0x221   :  { %v795_v52 = vshrl.u32 %v262_v46, 16 }
 0x227   :  { %3169 = vmatmul.mubr.bf16.gmra.mrb[44].mxu0 %v13573_v43 }
 0x228   :  { %3176 = vmatprep.mubr.bf16.mxu0 %v13576_v60  ;;  %v798_v60 = vshll.u32 %v262_v46, 16  ;;  %v1996_v46 = vrot.slane %v13591_v21, 1 }
 0x22f   :  { %3177 = vmatmul.mubr.bf16.gmra.mrb[48].mxu0 %v13581_v58 }
 0x230   :  { %3184 = vmatprep.mubr.bf16.mxu0 %v13454_v34  ;;  %v797_v34 = vrot.slane %v795_v52, 7  ;;  %v12102_v52 = vld [vmem:[#allocation7 + $0x178] sm:$0xff]  }
 0x231   :  { %3368 = vmatpush1.bf16.msra.mxu0 %v12102_v52  ;;  %v12360_v52 = vld [vmem:[#allocation2 + $0xec] ss:$0 sps:$4 sm:$0x11]  }
 0x232   :  { %v800_v0 = vor.u32 %v798_v60, %v797_v34  ;;  %v801_v15 = vrot.slane %v797_v34, 4  ;;  %v12355_v60 = vld [vmem:[#allocation2 + $0xbc] ss:$0 sps:$4 sm:$0x11]   ;;  %3626 = vmatprep.subr.bf16.mxu0 %v19495_v49 }
 0x233   :  { %v1997_v47 = vrot.slane %v12355_v60, 1  ;;  %v12358_v34 = vld [vmem:[#allocation2 + $0xe0] ss:$0 sps:$4 sm:$0x11]   ;;  %v2003_v60 = vrot.slane %v12360_v52, 1 }
 0x234   :  { %v1131_v38 = vsel %vm12913_vm7, %v800_v0, %v1130_v37  ;;  %v809_v63 = vsel %vm12907_vm6, %v801_v15, %v808_v13  ;;  %v12356_v15 = vld [vmem:[#allocation2 + $0xe4] sm:$0xff]   ;;  %v2000_v41 = vrot.slane %v12358_v34, 1  ;;  %v13612_v13 = vld [vmem:[#allocation2 + $0xf0] sm:$0xff]  }
 0x235   :  { %1132 = vst [vmem:[#allocation2 + $0x198] sm:$0xf] %v1131_v38  ;;  %1133 = vst [vmem:[#allocation2 + $0x19c] sm:$0xf] %v809_v63  ;;  %v13608_v39 = vsel %vm1950_vm9, %v1996_v46, %v1997_v47  ;;  %v12357_v63 = vld [vmem:[#allocation2 + $0xd8] sm:$0xff]   ;;  %v2002_v37 = vrot.slane %v12356_v15, 1 }
 0x236   :  { %v1999_v38 = vrot.slane %v12357_v63, 1  ;;  %19505 = vst [vmem:[#allocation55_spill] sm:$0xff] %v13612_v13  ;;  %v13619_v47 = vld [vmem:[#allocation2 + $0xfc] sm:$0xff]   ;;  %v2005_v63 = vrot.slane %v13612_v13, 1 }
 0x237   :  { %3185 = vmatmul.mubr.bf16.gmra.mrb[52].mxu0 %v13588_v51  ;;  %v13616_v46 = vsel %vm1950_vm9, %v2002_v37, %v2003_v60  ;;  %19506 = vst [vmem:[#allocation56_spill] sm:$0xff] %v13619_v47  ;;  %v12364_v37 = vld [vmem:[#allocation2 + $0x104] ss:$0 sps:$4 sm:$0x11]  }
 0x238   :  { %3192 = vmatprep.mubr.bf16.mxu0 %v13591_v21  ;;  %v2001_v0 = vsel %vm1950_vm9, %v1999_v38, %v2000_v41  ;;  %v12362_v38 = vld [vmem:[#allocation2 + $0xf8] ss:$0 sps:$4 sm:$0x11]   ;;  %v2009_v52 = vrot.slane %v12364_v37, 1 }
 0x239   :  { %v2006_v34 = vrot.slane %v12362_v38, 1  ;;  %v12366_v38 = vld [vmem:[#allocation2 + $0x110] ss:$0 sps:$4 sm:$0x11]  }
 0x23a   :  { %v12368_v37 = vld [vmem:[#allocation2 + $0x11c] ss:$0 sps:$4 sm:$0x11]  }
 0x23b   :  { %v13624_v41 = vsel %vm1950_vm9, %v2005_v63, %v2006_v34  ;;  %v2012_v34 = vrot.slane %v12366_v38, 1  ;;  %v12370_v38 = vld [vmem:[#allocation2 + $0x128] ss:$0 sps:$4 sm:$0x11]  }
 0x23f   :  { %3193 = vmatmul.mubr.bf16.gmra.mrb[56].mxu0 %v13460_v1 }
 0x240   :  { %3200 = vmatprep.mubr.bf16.mxu0 %v13597_v35 }
 0x247   :  { %3201 = vmatmul.mubr.bf16.gmra.mrb[60].mxu0 %v13608_v39 }
 0x248   :  { %3208 = vmatprep.mubr.bf16.mxu0 %v12356_v15  ;;  %v13627_v15 = vld [vmem:[#allocation2 + $0x108] sm:$0xff]  }
 0x249   :  { %19507 = vst [vmem:[#allocation57_spill] sm:$0xff] %v13627_v15  ;;  %v2011_v63 = vrot.slane %v13627_v15, 1 }
 0x24b   :  { %v13640_v20 = vsel %vm1950_vm9, %v2011_v63, %v2012_v34  ;;  %v2018_v34 = vrot.slane %v12370_v38, 1  ;;  %v12374_v38 = vld [vmem:[#allocation2 + $0x140] ss:$0 sps:$4 sm:$0x11]  }
 0x24f   :  { %3209 = vmatmul.mubr.bf16.gmra.mrb[64].mxu0 %v2001_v0  ;;  %v2008_v0 = vrot.slane %v13619_v47, 1 }
 0x250   :  { %3216 = vmatprep.mubr.bf16.mxu0 %v13612_v13 }
 0x251   :  { %v13632_v60 = vsel %vm1950_vm9, %v2008_v0, %v2009_v52  ;;  %v2014_v0 = vrot.slane %v13635_v26, 1  ;;  %v2015_v52 = vrot.slane %v12368_v37, 1  ;;  %v12372_v37 = vld [vmem:[#allocation2 + $0x134] ss:$0 sps:$4 sm:$0x11]  }
 0x253   :  { %v13648_v13 = vsel %vm1950_vm9, %v2014_v0, %v2015_v52  ;;  %v2021_v52 = vrot.slane %v12372_v37, 1  ;;  %v12376_v37 = vld [vmem:[#allocation2 + $0x14c] ss:$0 sps:$4 sm:$0x11]  }
 0x257   :  { %3217 = vmatmul.mubr.bf16.gmra.mrb[68].mxu0 %v13616_v46 }
 0x258   :  { %3224 = vmatprep.mubr.bf16.mxu0 %v13619_v47  ;;  %v13643_v47 = vld [vmem:[#allocation2 + $0x120] sm:$0xff]  }
 0x259   :  { %19509 = vst [vmem:[#allocation59_spill] sm:$0xff] %v13643_v47  ;;  %v2017_v63 = vrot.slane %v13643_v47, 1 }
 0x25b   :  { %v13656_v21 = vsel %vm1950_vm9, %v2017_v63, %v2018_v34  ;;  %v2024_v34 = vrot.slane %v12374_v38, 1  ;;  %v12378_v38 = vld [vmem:[#allocation2 + $0x158] ss:$0 sps:$4 sm:$0x11]  }
 0x25c   :  { %19511 = vst [vmem:[#allocation61_spill] sm:$0xff] %v13656_v21 }
 0x25f   :  { %3225 = vmatmul.mubr.bf16.gmra.mrb[72].mxu0 %v13624_v41 }
 0x260   :  { %3232 = vmatprep.mubr.bf16.mxu0 %v13627_v15  ;;  %v13651_v15 = vld [vmem:[#allocation2 + $0x12c] sm:$0xff]  }
 0x261   :  { %19510 = vst [vmem:[#allocation60_spill] sm:$0xff] %v13651_v15  ;;  %v2020_v0 = vrot.slane %v13651_v15, 1 }
 0x263   :  { %v13664_v22 = vsel %vm1950_vm9, %v2020_v0, %v2021_v52  ;;  %v2027_v52 = vrot.slane %v12376_v37, 1  ;;  %v12379_v37 = vld [vmem:[#allocation2 + $0x164] ss:$0 sps:$4 sm:$0x11]  }
 0x264   :  { %19513 = vst [vmem:[#allocation63_spill] sm:$0xff] %v13664_v22 }
 0x267   :  { %3233 = vmatmul.mubr.bf16.gmra.mrb[76].mxu0 %v13632_v60 }
 0x268   :  { %3240 = vmatprep.mubr.bf16.mxu0 %v13635_v26  ;;  %v13659_v26 = vld [vmem:[#allocation2 + $0x138] sm:$0xff]  }
 0x269   :  { %19512 = vst [vmem:[#allocation62_spill] sm:$0xff] %v13659_v26  ;;  %v2023_v63 = vrot.slane %v13659_v26, 1 }
 0x26f   :  { %3241 = vmatmul.mubr.bf16.gmra.mrb[80].mxu0 %v13640_v20 }
 0x270   :  { %3248 = vmatprep.mubr.bf16.mxu0 %v13643_v47  ;;  %v13667_v47 = vld [vmem:[#allocation2 + $0x144] sm:$0xff]  }
 0x271   :  { %19514 = vst [vmem:[#allocation64_spill] sm:$0xff] %v13667_v47  ;;  %v2026_v0 = vrot.slane %v13667_v47, 1 }
 0x277   :  { %3249 = vmatmul.mubr.bf16.gmra.mrb[84].mxu0 %v13648_v13 }
 0x278   :  { %3256 = vmatprep.mubr.bf16.mxu0 %v13651_v15  ;;  %v13675_v15 = vld [vmem:[#allocation2 + $0x150] sm:$0xff]  }
 0x279   :  { %19516 = vst [vmem:[#allocation66_spill] sm:$0xff] %v13675_v15 }
 0x27f   :  { %3257 = vmatmul.mubr.bf16.gmra.mrb[88].mxu0 %v13656_v21  ;;  %v13672_v21 = vsel %vm1950_vm9, %v2023_v63, %v2024_v34  ;;  %v2029_v63 = vrot.slane %v13675_v15, 1  ;;  %v2030_v34 = vrot.slane %v12378_v38, 1  ;;  %v2036_v38 = vrot.slane %v13397_v12, 1 }
 0x280   :  { %3264 = vmatprep.mubr.bf16.mxu0 %v13659_v26  ;;  %19515 = vst [vmem:[#allocation65_spill] sm:$0xff] %v13672_v21  ;;  %v13683_v26 = vld [vmem:[#allocation2 + $0x15c] sm:$0xff]   ;;  %v2041_v12 = vrot.slane %v13417_v8, 1 }
 0x281   :  { %19517 = vst [vmem:[#allocation67_spill] sm:$0xff] %v13683_v26 }
 0x287   :  { %3265 = vmatmul.mubr.bf16.gmra.mrb[92].mxu0 %v13664_v22  ;;  %v13680_v22 = vsel %vm1950_vm9, %v2026_v0, %v2027_v52  ;;  %v2032_v0 = vrot.slane %v13683_v26, 1  ;;  %v2033_v52 = vrot.slane %v12379_v37, 1 }
 0x288   :  { %3272 = vmatprep.mubr.bf16.mxu0 %v13667_v47 }
 0x289   :  { %v13694_v47 = vsel %vm1950_vm9, %v2032_v0, %v2033_v52  ;;  %v2039_v0 = vrot.slane %v13407_v44, 1  ;;  %v538_v52 = vrot.slane %v13457_v55, 4  ;;  %v13722_v44 = vld [vmem:[#allocation2 + $0x198] sm:$0xff]   ;;  %v2044_v55 = vrot.slane %v13433_v28, 1 }
 0x28f   :  { %3273 = vmatmul.mubr.bf16.gmra.mrb[96].mxu0 %v13672_v21  ;;  %v13688_v21 = vsel %vm1950_vm9, %v2029_v63, %v2030_v34 }
 0x290   :  { %3280 = vmatprep.mubr.bf16.mxu0 %v13675_v15  ;;  %v13698_v15 = vld [vmem:[#allocation2 + $0x168] sm:$0xff]  }
 0x291   :  { %19518 = vst [vmem:[#allocation68_spill] sm:$0xff] %v13698_v15  ;;  %v2035_v63 = vrot.slane %v13698_v15, 1  ;;  %v1022_v15 = vld [vmem:[#allocation2 + $0xc8] sm:$0x1] }
 0x293   :  { %v13703_v34 = vsel %vm1950_vm9, %v2035_v63, %v2036_v38  ;;  %v2042_v63 = vrot.slane %v13425_v18, 1  ;;  %v1023_v38 = vsel %vm12920_vm8, %v538_v52, %v1022_v15  ;;  %v12104_v18 = vld [vmem:[#allocation7 + $0x180] sm:$0xff]   ;;  %v12105_v15 = vld [vmem:[#allocation7 + $0x188] sm:$0xff]   ;;  %v12111_v52 = vld [vmem:[#allocation7 + $0x1b8] sm:$0xff]  }
 0x294   :  { %1024 = vst [vmem:[#allocation2 + $0xc8] sm:$0x1] %v1023_v38  ;;  %v12115_v38 = vld [vmem:[#allocation7 + $0x1d0] sm:$0xff]  }
 0x297   :  { %3281 = vmatmul.mubr.bf16.gmra.mrb[100].mxu0 %v13680_v22 }
 0x298   :  { %3288 = vmatprep.mubr.bf16.mxu0 %v13683_v26 }
 0x29f   :  { %3289 = vmatmul.mubr.bf16.gmra.mrb[104].mxu0 %v13688_v21 }
 0x2a0   :  { %3296 = vmatprep.mubr.bf16.mxu0 %v13388_v25  ;;  %v2038_v25 = vrot.slane %v13405_v24, 1 }
 0x2a2   :  { %v13710_v37 = vsel %vm1950_vm9, %v2038_v25, %v2039_v0  ;;  %v2045_v25 = vrot.slane %v13435_v61, 1  ;;  %v12107_v61 = vld [vmem:[#allocation7 + $0x198] sm:$0xff]   ;;  %v12110_v0 = vld [vmem:[#allocation7 + $0x1b0] sm:$0xff]  }
 0x2a7   :  { %3297 = vmatmul.mubr.bf16.gmra.mrb[108].mxu0 %v13694_v47 }
 0x2a8   :  { %3304 = vmatprep.mubr.bf16.mxu0 %v13405_v24  ;;  %v13720_v24 = vsel %vm1950_vm9, %v2041_v12, %v2042_v63  ;;  %v12113_v12 = vld [vmem:[#allocation7 + $0x1c0] sm:$0xff]   ;;  %v12114_v63 = vld [vmem:[#allocation7 + $0x1c8] sm:$0xff]  }
 0x2af   :  { %3305 = vmatmul.mubr.bf16.gmra.mrb[112].mxu0 %v13703_v34 }
 0x2b0   :  { %3312 = vmatprep.mubr.bf16.mxu0 %v13417_v8  ;;  %v13729_v8 = vsel %vm1950_vm9, %v2044_v55, %v2045_v25  ;;  %v12116_v55 = vld [vmem:[#allocation7 + $0x1d8] sm:$0xff]   ;;  %v12117_v25 = vld [vmem:[#allocation7 + $0x1e0] sm:$0xff]  }
 0x2b7   :  { %3313 = vmatmul.mubr.bf16.gmra.mrb[116].mxu0 %v13710_v37 }
 0x2b8   :  { %3320 = vmatprep.mubr.bf16.mxu0 %v13433_v28  ;;  %v12106_v28 = vld [vmem:[#allocation7 + $0x190] sm:$0xff]  }
 0x2bf   :  { %3321 = vmatmul.mubr.bf16.gmra.mrb[120].mxu0 %v13720_v24 }
 0x2c0   :  { %3328 = vmatprep.mubr.bf16.mxu0 %v13722_v44 }
 0x2c7   :  { %3329 = vmatmul.mubr.bf16.gmra.mrb[124].mxu0 %v13729_v8 }
 0x2c8   :  { %3369 = vmatprep.mubr.bf16.mxu0 %v13480_v27  ;;  %v12109_v27 = vld [vmem:[#allocation7 + $0x1a8] sm:$0xff]  }
 0x2cf   :  { %3370 = vmatmul.mubr.bf16.vlgmr.msra.gmra.mrb[0].mxu0 %v12997_v9  ;;  %v12108_v9 = vld [vmem:[#allocation7 + $0x1a0] sm:$0xff]  }
 0x2d0   :  { %3627 = vmatpush1.bf16.msra.mxu0 %v12104_v18  ;;  %3377 = vmatprep.mubr.bf16.mxu0 %v13490_v23  ;;  %v12118_v18 = vld [vmem:[#allocation7 + $0x1e8] sm:$0xff]  }
 0x2d1   :  { %3628 = vmatprep.subr.bf16.mxu0 %v19495_v49 }
 0x2d4   :  { %3629 = vmatpush1.bf16.msra.mxu0 %v12105_v15  ;;  %v12119_v15 = vld [vmem:[#allocation7 + $0x1f0] sm:$0xff]  }
 0x2d5   :  { %3630 = vmatprep.subr.bf16.mxu0 %v19495_v49 }
 0x2d7   :  { %3378 = vmatmul.mubr.bf16.gmra.mrb[4].mxu0 %v13017_v45 }
 0x2d8   :  { %3385 = vmatprep.mubr.bf16.mxu0 %v13500_v2  ;;  %3631 = vmatpush1.bf16.msra.mxu0 %v12106_v28  ;;  %v12112_v28 = vld [vmem:[#allocation2 + $0xc8] ss:$0 sps:$4 sm:$0x11]  }
 0x2d9   :  { %3632 = vmatprep.subr.bf16.mxu0 %v19495_v49 }
 0x2dc   :  { %3633 = vmatpush1.bf16.msra.mxu0 %v12107_v61  ;;  %v810_v61 = vrot.slane %v13594_v11, 4 }
 0x2dd   :  { %3634 = vmatprep.subr.bf16.mxu0 %v19495_v49 }
 0x2df   :  { %3386 = vmatmul.mubr.bf16.gmra.mrb[8].mxu0 %v13029_v4 }
 0x2e0   :  { %3393 = vmatprep.mubr.bf16.mxu0 %v13510_v16  ;;  %3635 = vmatpush1.bf16.msra.mxu0 %v12108_v9  ;;  %v1134_v9 = vld [vmem:[#allocation2 + $0x1a0] sm:$0x1]  ;;  %v2110_v16 = vshrl.u32 %v13722_v44, 16 }
 0x2e1   :  { %3636 = vmatprep.subr.bf16.mxu0 %v19495_v49 }
 0x2e4   :  { %3637 = vmatpush1.bf16.msra.mxu0 %v12109_v27  ;;  %v2100_v27 = vshll.u32 %v13597_v35, 16 }
 0x2e5   :  { %3638 = vmatprep.subr.bf16.mxu0 %v19495_v49 }
 0x2e7   :  { %3394 = vmatmul.mubr.bf16.gmra.mrb[12].mxu0 %v13056_v53 }
 0x2e8   :  { %3401 = vmatprep.mubr.bf16.mxu0 %v13520_v31  ;;  %3639 = vmatpush1.bf16.msra.mxu0 %v12110_v0  ;;  %v1135_v0 = vsel %vm12920_vm8, %v810_v61, %v1134_v9  ;;  %v13790_v61 = vld [vmem:[#allocation7 + $0x200] sm:$0xff]   ;;  %v19521_v9 = vld [vmem:[#allocation63_spill] sm:$0xff] }
 0x2e9   :  { %3640 = vmatprep.subr.bf16.mxu0 %v19495_v49  ;;  %1136 = vst [vmem:[#allocation2 + $0x1a0] sm:$0x1] %v1135_v0  ;;  %11196 = vmatprep.subr.bf16.mxu1 %v13790_v61  ;;  %v19523_v0 = vld [vmem:[#allocation65_spill] sm:$0xff] }
 0x2ea   :  { %11204 = vmatpush3.bf16.msra.mxu1 %v13790_v61 }
 0x2ec   :  { %3641 = vmatpush1.bf16.msra.mxu0 %v12111_v52  ;;  %v2123_v52 = vrot.slane %v13597_v35, 1 }
 0x2ed   :  { %3642 = vmatprep.subr.bf16.mxu0 %v19495_v49 }
 0x2ef   :  { %3402 = vmatmul.mubr.bf16.gmra.mrb[16].mxu0 %v13079_v33 }
 0x2f0   :  { %3409 = vmatprep.mubr.bf16.mxu0 %v13530_v57  ;;  %3643 = vmatpush1.bf16.msra.mxu0 %v12113_v12  ;;  %v2124_v12 = vrot.slane %v12112_v28, 1  ;;  %v13855_v57 = vld [vmem:[#allocation2 + $0xd4] ss:$0 sps:$4 sm:$0x11]  }
 0x2f1   :  { %3644 = vmatprep.subr.bf16.mxu0 %v19495_v49 }
 0x2f2   :  { %v2125_v11 = vsel %vm1950_vm9, %v2123_v52, %v2124_v12  ;;  %v19524_v52 = vld [vmem:[#allocation22_spill] sm:$0xff]  ;;  %v19525_v12 = vld [vmem:[#allocation23_spill] sm:$0xff] }
 0x2f4   :  { %3645 = vmatpush1.bf16.msra.mxu0 %v12114_v63  ;;  %v2102_v63 = vrot.slane %v2100_v27, 1  ;;  %v19522_v27 = vld [vmem:[#allocation21_spill] sm:$0xff] }
 0x2f5   :  { %3646 = vmatprep.subr.bf16.mxu0 %v19495_v49 }
 0x2f7   :  { %3410 = vmatmul.mubr.bf16.gmra.mrb[20].mxu0 %v13096_v5 }
 0x2f8   :  { %3417 = vmatprep.mubr.bf16.mxu0 %v13539_v19  ;;  %3647 = vmatpush1.bf16.msra.mxu0 %v12115_v38  ;;  %v2105_v38 = vshll.u32 %v12112_v28, 16  ;;  %v19520_v28 = vld [vmem:[#allocation20_spill] sm:$0xff]  ;;  %v13853_v19 = vld [vmem:[#allocation2 + $0xcc] sm:$0xff]  }
 0x2f9   :  { %3648 = vmatprep.subr.bf16.mxu0 %v19495_v49 }
 0x2fc   :  { %3649 = vmatpush1.bf16.msra.mxu0 %v12116_v55  ;;  %v12120_v55 = vld [vmem:[#allocation7 + $0x1f8] sm:$0xff]  }
 0x2fd   :  { %3650 = vmatprep.subr.bf16.mxu0 %v19495_v49 }
 0x2ff   :  { %3418 = vmatmul.mubr.bf16.gmra.mrb[24].mxu0 %v13111_v14 }
 0x300   :  { %3425 = vmatprep.mubr.bf16.mxu0 %v13547_v48  ;;  %3651 = vmatpush1.bf16.msra.mxu0 %v12117_v25  ;;  %v2112_v48 = vshll.u32 %v13722_v44, 16 }
 0x301   :  { %3652 = vmatprep.subr.bf16.mxu0 %v19495_v49 }
 0x302   :  { %v2114_v2 = vrot.slane %v2112_v48, 1 }
 0x304   :  { %3653 = vmatpush1.bf16.msra.mxu0 %v12118_v18  ;;  %v2107_v18 = vrot.slane %v2105_v38, 1  ;;  %v13821_v38 = vld [vmem:[#allocation7 + $0x218] sm:$0xff]   ;;  %v2115_v26 = vor.u32 %v2114_v2, %v2110_v16  ;;  %v2157_v2 = vshll.u32 %v13855_v57, 16 }
 0x305   :  { %3654 = vmatprep.subr.bf16.mxu0 %v19495_v49 }
 0x306   :  { %v2159_v16 = vrot.slane %v2157_v2, 1 }
 0x307   :  { %3426 = vmatmul.mubr.bf16.gmra.mrb[28].mxu0 %v13131_v62 }
 0x308   :  { %3433 = vmatprep.mubr.bf16.mxu0 %v13556_v7  ;;  %3655 = vmatpush1.bf16.msra.mxu0 %v12119_v15  ;;  %v19530_v7 = vld [vmem:[#allocation28_spill] sm:$0xff] }
 0x309   :  { %3656 = vmatprep.subr.bf16.mxu0 %v19495_v49 }
 0x30c   :  { %3657 = vmatpush1.bf16.msra.mxu0 %v12120_v55  ;;  %v13824_v55 = vld [vmem:[#allocation7 + $0x220] sm:$0xff]  }
 0x30d   :  { %10956 = vmatprep.subr.bf16.mxu0 %v13790_v61 }
 0x30f   :  { %3434 = vmatmul.mubr.bf16.gmra.mrb[32].mxu0 %v13151_v56 }
 0x310   :  { %3441 = vmatprep.mubr.bf16.mxu0 %v13564_v3  ;;  %v12121_v3 = vld [vmem:[#allocation2 + $0x1a0] ss:$0 sps:$4 sm:$0x11]  }
 0x311   :  { %v2127_v31 = vrot.slane %v12121_v3, 1  ;;  %v2117_v23 = vshll.u32 %v12121_v3, 16 }
 0x317   :  { %3442 = vmatmul.mubr.bf16.gmra.mrb[36].mxu0 %v13171_v42 }
 0x318   :  { %3449 = vmatprep.mubr.bf16.mxu0 %v13573_v43  ;;  %v19529_v43 = vld [vmem:[#allocation27_spill] sm:$0xff] }
 0x31f   :  { %3450 = vmatmul.mubr.bf16.gmra.mrb[40].mxu0 %v13188_v17 }
 0x320   :  { %3457 = vmatprep.mubr.bf16.mxu0 %v13581_v58  ;;  %v13841_v58 = vld [vmem:[#allocation7 + $0x238] sm:$0xff]  }
 0x327   :  { %3458 = vmatmul.mubr.bf16.gmra.mrb[44].mxu0 %v13207_v29 }
 0x328   :  { %3465 = vmatprep.mubr.bf16.mxu0 %v13588_v51  ;;  %v19528_v51 = vld [vmem:[#allocation26_spill] sm:$0xff] }
 0x32f   :  { %3466 = vmatmul.mubr.bf16.gmra.mrb[48].mxu0 %v13219_v36 }
 0x330   :  { %3473 = vmatprep.mubr.bf16.mxu0 %v13460_v1  ;;  %v2098_v1 = vshrl.u32 %v13597_v35, 16 }
 0x332   :  { %v2103_v25 = vor.u32 %v2102_v63, %v2098_v1  ;;  %v13815_v1 = vld [vmem:[#allocation7 + $0x210] sm:$0xff]   ;;  %v19526_v63 = vld [vmem:[#allocation24_spill] sm:$0xff] }
 0x334   :  { %v13785_v15 = vsel %vm1533_vm2, %v2103_v25, %v2107_v18  ;;  %v19527_v25 = vld [vmem:[#allocation25_spill] sm:$0xff]  ;;  %v13831_v18 = vld [vmem:[#allocation7 + $0x228] sm:$0xff]  }
 0x337   :  { %3474 = vmatmul.mubr.bf16.gmra.mrb[52].mxu0 %v13253_v40 }
 0x338   :  { %3481 = vmatprep.mubr.bf16.mxu0 %v13608_v39 }
 0x33f   :  { %3482 = vmatmul.mubr.bf16.gmra.mrb[56].mxu0 %v13278_v32 }
 0x340   :  { %3489 = vmatprep.mubr.bf16.mxu0 %v2125_v11 }
 0x347   :  { %3490 = vmatmul.mubr.bf16.gmra.mrb[60].mxu0 %v13785_v15 }
 0x348   :  { %3497 = vmatprep.mubr.bf16.mxu0 %v13616_v46  ;;  %v19519_v46 = vld [vmem:[#allocation61_spill] sm:$0xff] }
 0x34f   :  { %3498 = vmatmul.mubr.bf16.gmra.mrb[64].mxu0 %v13328_v6  ;;  %v13803_v6 = vld [vmem:[#allocation7 + $0x208] sm:$0xff]  }
 0x350   :  { %3505 = vmatprep.mubr.bf16.mxu0 %v13624_v41  ;;  %11197 = vmatprep.subr.bf16.mxu1 %v13803_v6 }
 0x351   :  { %11205 = vmatpush3.bf16.msra.mxu1 %v13803_v6 }
 0x352   :  { %11198 = vmatprep.subr.bf16.mxu1 %v13815_v1 }
 0x355   :  { %11206 = vmatpush3.bf16.msra.mxu1 %v13815_v1 }
 0x356   :  { %11199 = vmatprep.subr.bf16.mxu1 %v13821_v38 }
 0x357   :  { %3506 = vmatmul.mubr.bf16.gmra.mrb[68].mxu0 %v13353_v10 }
 0x358   :  { %3513 = vmatprep.mubr.bf16.mxu0 %v13632_v60 }
 0x359   :  { %11207 = vmatpush3.bf16.msra.mxu1 %v13821_v38 }
 0x35a   :  { %11200 = vmatprep.subr.bf16.mxu1 %v13824_v55 }
 0x35d   :  { %11208 = vmatpush3.bf16.msra.mxu1 %v13824_v55 }
 0x35e   :  { %11201 = vmatprep.subr.bf16.mxu1 %v13831_v18 }
 0x35f   :  { %3514 = vmatmul.mubr.bf16.gmra.mrb[72].mxu0 %v13368_v59 }
 0x360   :  { %3521 = vmatprep.mubr.bf16.mxu0 %v13640_v20 }
 0x361   :  { %11209 = vmatpush3.bf16.msra.mxu1 %v13831_v18 }
 0x362   :  { %11202 = vmatprep.subr.bf16.mxu1 %v13834_v30 }
 0x365   :  { %11210 = vmatpush3.bf16.msra.mxu1 %v13834_v30 }
 0x366   :  { %11203 = vmatprep.subr.bf16.mxu1 %v13841_v58 }
 0x367   :  { %3522 = vmatmul.mubr.bf16.gmra.mrb[76].mxu0 %v13374_v50 }
 0x368   :  { %3529 = vmatprep.mubr.bf16.mxu0 %v13648_v13 }
 0x369   :  { %11211 = vmatpush3.bf16.msra.mxu1 %v13841_v58 }
 0x36a   :  { %7407 = vmatprep.subr.bf16.mxu1 %v19495_v49  ;;  %v2126_v49 = vrot.slane %v13722_v44, 1 }
 0x36c   :  { %10997 = vmatmul.mubr.bf16.vlgmr.msra.gmra.mrb[0].mxu1 %v13608_v39  ;;  %v2175_v39 = vrot.slane %v13853_v19, 1 }
 0x36d   :  { %11000 = vmatprep.mubr.bf16.mxu1 %v2125_v11  ;;  %v2176_v11 = vrot.slane %v13855_v57, 1  ;;  %v19545_v57 = vld [vmem:[#allocation55_spill] sm:$0xff] }
 0x36f   :  { %3530 = vmatmul.mubr.bf16.gmra.mrb[80].mxu0 %v13379_v54 }
 0x370   :  { %3537 = vmatprep.mubr.bf16.mxu0 %v19519_v46 }
 0x377   :  { %3538 = vmatmul.mubr.bf16.gmra.mrb[84].mxu0 %v19520_v28 }
 0x378   :  { %3545 = vmatprep.mubr.bf16.mxu0 %v19521_v9 }
 0x37f   :  { %3546 = vmatmul.mubr.bf16.gmra.mrb[88].mxu0 %v19522_v27 }
 0x380   :  { %3553 = vmatprep.mubr.bf16.mxu0 %v19523_v0 }
 0x387   :  { %3554 = vmatmul.mubr.bf16.gmra.mrb[92].mxu0 %v19524_v52 }
 0x388   :  { %3561 = vmatprep.mubr.bf16.mxu0 %v13680_v22 }
 0x38f   :  { %3562 = vmatmul.mubr.bf16.gmra.mrb[96].mxu0 %v19525_v12 }
 0x390   :  { %3569 = vmatprep.mubr.bf16.mxu0 %v13688_v21 }
 0x397   :  { %3570 = vmatmul.mubr.bf16.gmra.mrb[100].mxu0 %v19526_v63 }
 0x398   :  { %3577 = vmatprep.mubr.bf16.mxu0 %v13694_v47 }
 0x39f   :  { %3578 = vmatmul.mubr.bf16.gmra.mrb[104].mxu0 %v19527_v25  ;;  %v2119_v25 = vrot.slane %v2117_v23, 1 }
 0x3a0   :  { %3585 = vmatprep.mubr.bf16.mxu0 %v13703_v34 }
 0x3a1   :  { %v13866_v63 = vsel %vm1533_vm2, %v2115_v26, %v2119_v25  ;;  %v19534_v26 = vld [vmem:[#allocation33_spill] sm:$0xff]  ;;  %v12382_v25 = vld [vmem:[#allocation2 + $0x174] sm:$0xff]  }
 0x3a7   :  { %3586 = vmatmul.mubr.bf16.gmra.mrb[108].mxu0 %v19528_v51  ;;  %v19531_v51 = vld [vmem:[#allocation29_spill] sm:$0xff] }
 0x3a8   :  { %3593 = vmatprep.mubr.bf16.mxu0 %v13710_v37 }
 0x3af   :  { %3594 = vmatmul.mubr.bf16.gmra.mrb[112].mxu0 %v19529_v43  ;;  %v2128_v43 = vsel %vm1950_vm9, %v2126_v49, %v2127_v31  ;;  %v19532_v49 = vld [vmem:[#allocation30_spill] sm:$0xff] }
 0x3b0   :  { %3601 = vmatprep.mubr.bf16.mxu0 %v13720_v24  ;;  %v13928_v31 = vld [vmem:[#allocation2 + $0x1a4] sm:$0xff]  }
 0x3b1   :  { %v2178_v48 = vrot.slane %v13928_v31, 1 }
 0x3b7   :  { %3602 = vmatmul.mubr.bf16.gmra.mrb[116].mxu0 %v19530_v7  ;;  %v2177_v7 = vsel %vm1950_vm9, %v2175_v39, %v2176_v11 }
 0x3b8   :  { %3609 = vmatprep.mubr.bf16.mxu0 %v13729_v8  ;;  %11001 = vmatmul.mubr.bf16.gmra.mrb[4].mxu1 %v2177_v7 }
 0x3b9   :  { %11004 = vmatprep.mubr.bf16.mxu1 %v13624_v41  ;;  %v19553_v41 = vld [vmem:[#allocation24_spill] sm:$0xff] }
 0x3bf   :  { %3610 = vmatmul.mubr.bf16.gmra.mrb[120].mxu0 %v19531_v51 }
 0x3c0   :  { %3617 = vmatprep.mubr.bf16.mxu0 %v2128_v43  ;;  %11005 = vmatmul.mubr.bf16.gmra.mrb[8].mxu1 %v13632_v60  ;;  %v19554_v60 = vld [vmem:[#allocation66_spill] sm:$0xff] }
 0x3c1   :  { %11008 = vmatprep.mubr.bf16.mxu1 %v13640_v20  ;;  %v19533_v20 = vld [vmem:[#allocation31_spill] sm:$0xff] }
 0x3c7   :  { %3618 = vmatmul.mubr.bf16.gmra.mrb[124].mxu0 %v13866_v63 }
 0x3c8   :  { %3658 = vmatprep.mubr.bf16.mxu0 %v13017_v45  ;;  %11009 = vmatmul.mubr.bf16.gmra.mrb[12].mxu1 %v13648_v13  ;;  %v19535_v45 = vld [vmem:[#allocation35_spill] sm:$0xff] }
 0x3c9   :  { %11012 = vmatprep.mubr.bf16.mxu1 %v19519_v46  ;;  %v19558_v46 = vld [vmem:[#allocation68_spill] sm:$0xff] }
 0x3cf   :  { %3659 = vmatmul.mubr.bf16.vlgmr.msra.gmra.mrb[0].mxu0 %v19532_v49 }
 0x3d0   :  { %10957 = vmatpush3.bf16.msra.mxu0 %v13790_v61  ;;  %3666 = vmatprep.mubr.bf16.mxu0 %v13029_v4  ;;  %v19536_v4 = vld [vmem:[#allocation37_spill] sm:$0xff]  ;;  %v19556_v61 = vld [vmem:[#allocation67_spill] sm:$0xff] }
 0x3d1   :  { %10958 = vmatprep.subr.bf16.mxu0 %v13803_v6  ;;  %11013 = vmatmul.mubr.bf16.gmra.mrb[16].mxu1 %v19521_v9  ;;  %v19559_v9 = vld [vmem:[#allocation27_spill] sm:$0xff] }
 0x3d2   :  { %11016 = vmatprep.mubr.bf16.mxu1 %v19523_v0 }
 0x3d4   :  { %10959 = vmatpush3.bf16.msra.mxu0 %v13803_v6  ;;  %v19557_v6 = vld [vmem:[#allocation26_spill] sm:$0xff] }
 0x3d5   :  { %10960 = vmatprep.subr.bf16.mxu0 %v13815_v1 }
 0x3d7   :  { %3667 = vmatmul.mubr.bf16.gmra.mrb[4].mxu0 %v19533_v20 }
 0x3d8   :  { %3674 = vmatprep.mubr.bf16.mxu0 %v13056_v53  ;;  %10961 = vmatpush3.bf16.msra.mxu0 %v13815_v1  ;;  %v19537_v53 = vld [vmem:[#allocation39_spill] sm:$0xff] }
 0x3d9   :  { %10962 = vmatprep.subr.bf16.mxu0 %v13821_v38  ;;  %11017 = vmatmul.mubr.bf16.gmra.mrb[20].mxu1 %v13680_v22  ;;  %v19542_v22 = vld [vmem:[#allocation49_spill] sm:$0xff] }
 0x3da   :  { %11020 = vmatprep.mubr.bf16.mxu1 %v13688_v21  ;;  %v19548_v21 = vld [vmem:[#allocation58_spill] sm:$0xff] }
 0x3dc   :  { %10963 = vmatpush3.bf16.msra.mxu0 %v13821_v38 }
 0x3dd   :  { %10964 = vmatprep.subr.bf16.mxu0 %v13824_v55 }
 0x3df   :  { %3675 = vmatmul.mubr.bf16.gmra.mrb[8].mxu0 %v19534_v26  ;;  %v12383_v26 = vld [vmem:[#allocation2 + $0x180] sm:$0xff]  }
 0x3e0   :  { %3682 = vmatprep.mubr.bf16.mxu0 %v13079_v33  ;;  %10965 = vmatpush3.bf16.msra.mxu0 %v13824_v55  ;;  %v19539_v33 = vld [vmem:[#allocation43_spill] sm:$0xff] }
 0x3e1   :  { %10966 = vmatprep.subr.bf16.mxu0 %v13831_v18  ;;  %11021 = vmatmul.mubr.bf16.gmra.mrb[24].mxu1 %v13694_v47  ;;  %v19552_v47 = vld [vmem:[#allocation64_spill] sm:$0xff] }
 0x3e2   :  { %11024 = vmatprep.mubr.bf16.mxu1 %v13703_v34  ;;  %v19555_v34 = vld [vmem:[#allocation25_spill] sm:$0xff] }
 0x3e4   :  { %10967 = vmatpush3.bf16.msra.mxu0 %v13831_v18  ;;  %v19560_v18 = vld [vmem:[#allocation28_spill] sm:$0xff] }
 0x3e5   :  { %10968 = vmatprep.subr.bf16.mxu0 %v13834_v30 }
 0x3e7   :  { %3683 = vmatmul.mubr.bf16.gmra.mrb[12].mxu0 %v19535_v45 }
 0x3e8   :  { %3690 = vmatprep.mubr.bf16.mxu0 %v13096_v5  ;;  %10969 = vmatpush3.bf16.msra.mxu0 %v13834_v30  ;;  %v19538_v30 = vld [vmem:[#allocation41_spill] sm:$0xff] }
 0x3e9   :  { %10970 = vmatprep.subr.bf16.mxu0 %v13841_v58  ;;  %11025 = vmatmul.mubr.bf16.gmra.mrb[28].mxu1 %v13710_v37  ;;  %v19540_v5 = vld [vmem:[#allocation45_spill] sm:$0xff] }
 0x3ea   :  { %11028 = vmatprep.mubr.bf16.mxu1 %v13720_v24 }
 0x3ec   :  { %10971 = vmatpush3.bf16.msra.mxu0 %v13841_v58  ;;  %v19547_v58 = vld [vmem:[#allocation57_spill] sm:$0xff] }
 0x3ef   :  { %3691 = vmatmul.mubr.bf16.gmra.mrb[16].mxu0 %v19536_v4  ;;  %v2164_v4 = vshll.u32 %v13928_v31, 16 }
 0x3f0   :  { %3698 = vmatprep.mubr.bf16.mxu0 %v13111_v14  ;;  %v19541_v14 = vld [vmem:[#allocation47_spill] sm:$0xff] }
 0x3f1   :  { %11029 = vmatmul.mubr.bf16.gmra.mrb[32].mxu1 %v13729_v8 }
 0x3f2   :  { %11032 = vmatprep.mubr.bf16.mxu1 %v2128_v43  ;;  %v19546_v43 = vld [vmem:[#allocation56_spill] sm:$0xff] }
 0x3f7   :  { %3699 = vmatmul.mubr.bf16.gmra.mrb[20].mxu0 %v19537_v53 }
 0x3f8   :  { %3706 = vmatprep.mubr.bf16.mxu0 %v13131_v62  ;;  %v19543_v62 = vld [vmem:[#allocation51_spill] sm:$0xff] }
 0x3ff   :  { %3707 = vmatmul.mubr.bf16.gmra.mrb[24].mxu0 %v19538_v30 }
 0x400   :  { %3714 = vmatprep.mubr.bf16.mxu0 %v13151_v56  ;;  %v12381_v56 = vld [vmem:[#allocation2 + $0xa8] sm:$0xff]  }
 0x407   :  { %3715 = vmatmul.mubr.bf16.gmra.mrb[28].mxu0 %v19539_v33 }
 0x408   :  { %3722 = vmatprep.mubr.bf16.mxu0 %v13171_v42  ;;  %v2152_v42 = vshll.u32 %v13853_v19, 16 }
 0x40a   :  { %v2154_v23 = vrot.slane %v2152_v42, 1  ;;  %v2166_v42 = vrot.slane %v2164_v4, 1 }
 0x40f   :  { %3723 = vmatmul.mubr.bf16.gmra.mrb[32].mxu0 %v19540_v5 }
 0x410   :  { %3730 = vmatprep.mubr.bf16.mxu0 %v13188_v17  ;;  %v2150_v17 = vshrl.u32 %v13853_v19, 16 }
 0x417   :  { %3731 = vmatmul.mubr.bf16.gmra.mrb[36].mxu0 %v19541_v14 }
 0x418   :  { %3738 = vmatprep.mubr.bf16.mxu0 %v13207_v29  ;;  %v19544_v29 = vld [vmem:[#allocation54_spill] sm:$0xff] }
 0x41f   :  { %3739 = vmatmul.mubr.bf16.gmra.mrb[40].mxu0 %v19542_v22 }
 0x420   :  { %3746 = vmatprep.mubr.bf16.mxu0 %v13219_v36  ;;  %v2155_v36 = vor.u32 %v2154_v23, %v2150_v17 }
 0x422   :  { %v2160_v7 = vsel %vm1533_vm2, %v2155_v36, %v2159_v16 }
 0x427   :  { %3747 = vmatmul.mubr.bf16.gmra.mrb[44].mxu0 %v19543_v62 }
 0x428   :  { %3754 = vmatprep.mubr.bf16.mxu0 %v13253_v40  ;;  %v13930_v40 = vld [vmem:[#allocation2 + $0x1ac] ss:$0 sps:$4 sm:$0x11]  }
 0x429   :  { %v2169_v17 = vshll.u32 %v13930_v40, 16 }
 0x42b   :  { %v2171_v2 = vrot.slane %v2169_v17, 1 }
 0x42f   :  { %3755 = vmatmul.mubr.bf16.gmra.mrb[48].mxu0 %v12381_v56  ;;  %v2162_v56 = vshrl.u32 %v13928_v31, 16 }
 0x430   :  { %3762 = vmatprep.mubr.bf16.mxu0 %v13278_v32  ;;  %v2179_v32 = vrot.slane %v13930_v40, 1 }
 0x431   :  { %v2167_v23 = vor.u32 %v2166_v42, %v2162_v56  ;;  %v19567_v56 = vld [vmem:[#allocation44_spill] sm:$0xff] }
 0x432   :  { %v2180_v3 = vsel %vm1950_vm9, %v2178_v48, %v2179_v32 }
 0x433   :  { %11033 = vmatmul.mubr.bf16.gmra.mrb[36].mxu1 %v2180_v3  ;;  %v2172_v32 = vsel %vm1533_vm2, %v2167_v23, %v2171_v2 }
 0x437   :  { %3763 = vmatmul.mubr.bf16.gmra.mrb[52].mxu0 %v19544_v29 }
 0x438   :  { %3770 = vmatprep.mubr.bf16.mxu0 %v13785_v15 }
 0x43f   :  { %3771 = vmatmul.mubr.bf16.gmra.mrb[56].mxu0 %v13597_v35  ;;  %v19549_v35 = vld [vmem:[#allocation59_spill] sm:$0xff] }
 0x440   :  { %3778 = vmatprep.mubr.bf16.mxu0 %v2160_v7 }
 0x447   :  { %3779 = vmatmul.mubr.bf16.gmra.mrb[60].mxu0 %v13853_v19 }
 0x448   :  { %3786 = vmatprep.mubr.bf16.mxu0 %v13353_v10  ;;  %v19550_v10 = vld [vmem:[#allocation60_spill] sm:$0xff] }
 0x44f   :  { %3787 = vmatmul.mubr.bf16.gmra.mrb[64].mxu0 %v19545_v57 }
 0x450   :  { %3794 = vmatprep.mubr.bf16.mxu0 %v13368_v59  ;;  %v19551_v59 = vld [vmem:[#allocation62_spill] sm:$0xff] }
 0x457   :  { %3795 = vmatmul.mubr.bf16.gmra.mrb[68].mxu0 %v19546_v43 }
 0x458   :  { %3802 = vmatprep.mubr.bf16.mxu0 %v13374_v50  ;;  %v13953_v50 = vpop.f32.mrb[0].mxu1 }
 0x459   :  { %v13955_v19 = vpop.f32.mrb[1].mxu1 }
 0x45f   :  { %3803 = vmatmul.mubr.bf16.gmra.mrb[72].mxu0 %v19547_v58 }
 0x460   :  { %3810 = vmatprep.mubr.bf16.mxu0 %v13379_v54  ;;  %v13957_v54 = vpop.f32.mrb[2].mxu1 }
 0x461   :  { %v13959_v13 = vpop.f32.mrb[3].mxu1 }
 0x467   :  { %3811 = vmatmul.mubr.bf16.gmra.mrb[76].mxu0 %v19548_v21 }
 0x468   :  { %3818 = vmatprep.mubr.bf16.mxu0 %v19520_v28 }
 0x46f   :  { %3819 = vmatmul.mubr.bf16.gmra.mrb[80].mxu0 %v19549_v35  ;;  %v19561_v35 = vld [vmem:[#allocation32_spill] sm:$0xff] }
 0x470   :  { %3826 = vmatprep.mubr.bf16.mxu0 %v19522_v27 }
 0x477   :  { %3827 = vmatmul.mubr.bf16.gmra.mrb[84].mxu0 %v19550_v10 }
 0x478   :  { %3834 = vmatprep.mubr.bf16.mxu0 %v19524_v52 }
 0x47f   :  { %3835 = vmatmul.mubr.bf16.gmra.mrb[88].mxu0 %v19551_v59 }
 0x480   :  { %3842 = vmatprep.mubr.bf16.mxu0 %v19525_v12 }
 0x487   :  { %3843 = vmatmul.mubr.bf16.gmra.mrb[92].mxu0 %v19552_v47 }
 0x488   :  { %3850 = vmatprep.mubr.bf16.mxu0 %v19553_v41  ;;  %v19562_v41 = vld [vmem:[#allocation34_spill] sm:$0xff] }
 0x48b   :  { %v13965_v37 = vpop.f32.mrb[4].mxu1 }
 0x48c   :  { %v13967_v24 = vpop.f32.mrb[5].mxu1 }
 0x48d   :  { %v13969_v8 = vpop.f32.mrb[6].mxu1 }
 0x48e   :  { %v13971_v15 = vpop.f32.mrb[7].mxu1 }
 0x48f   :  { %3851 = vmatmul.mubr.bf16.gmra.mrb[96].mxu0 %v19554_v60 }
 0x490   :  { %3858 = vmatprep.mubr.bf16.mxu0 %v19555_v34  ;;  %v19563_v34 = vld [vmem:[#allocation36_spill] sm:$0xff] }
 0x493   :  { %v13976_v28 = vpop.f32.mrb[8].mxu1 }
 0x494   :  { %v13981_v0 = vpop.f32.mrb[9].mxu1 }
 0x495   :  { %v13983_v12 = vpop.f32.mrb[10].mxu1 }
 0x496   :  { %v13987_v38 = vpop.f32.mrb[11].mxu1 }
 0x497   :  { %3859 = vmatmul.mubr.bf16.gmra.mrb[100].mxu0 %v19556_v61 }
 0x498   :  { %3866 = vmatprep.mubr.bf16.mxu0 %v19557_v6 }
 0x49b   :  { %v13994_v45 = vpop.f32.mrb[12].mxu1 }
 0x49c   :  { %v14000_v30 = vpop.f32.mrb[13].mxu1 }
 0x49d   :  { %v14002_v5 = vpop.f32.mrb[14].mxu1 }
 0x49e   :  { %v14006_v22 = vpop.f32.mrb[15].mxu1 }
 0x49f   :  { %3867 = vmatmul.mubr.bf16.gmra.mrb[104].mxu0 %v19558_v46 }
 0x4a0   :  { %3874 = vmatprep.mubr.bf16.mxu0 %v19559_v9 }
 0x4a2   :  { %v13979_v27 = vpop.f32.mrb[0].mxu0 }
 0x4a3   :  { %v3662_v52 = vpop.f32.mrb[1].mxu0 }
 0x4a4   :  { %v13985_v1 = vpop.f32.mrb[2].mxu0  ;;  %v14017_v7 = vpop.f32.mrb[16].mxu1 }
 0x4a5   :  { %v3665_v55 = vpop.f32.mrb[3].mxu0  ;;  %v14021_v3 = vpop.f32.mrb[17].mxu1 }
 0x4a6   :  { %v14023_v57 = vpop.f32.mrb[18].mxu1 }
 0x4a7   :  { %3875 = vmatmul.mubr.bf16.gmra.mrb[108].mxu0 %v12382_v25  ;;  %v14027_v58 = vpop.f32.mrb[19].mxu1  ;;  %v19564_v25 = vld [vmem:[#allocation38_spill] sm:$0xff] }
 0x4a8   :  { %3882 = vmatprep.mubr.bf16.mxu0 %v19560_v18  ;;  %v19565_v18 = vld [vmem:[#allocation40_spill] sm:$0xff] }
 0x4aa   :  { %v13990_v39 = vpop.f32.mrb[4].mxu0 }
 0x4ab   :  { %v3670_v11 = vpop.f32.mrb[5].mxu0 }
 0x4ac   :  { %v13992_v49 = vpop.f32.mrb[6].mxu0  ;;  %v14036_v60 = vpop.f32.mrb[20].mxu1 }
 0x4ad   :  { %v3673_v20 = vpop.f32.mrb[7].mxu0  ;;  %v14041_v6 = vpop.f32.mrb[21].mxu1 }
 0x4af   :  { %3883 = vmatmul.mubr.bf16.gmra.mrb[112].mxu0 %v12383_v26 }
 0x4b0   :  { %3890 = vmatprep.mubr.bf16.mxu0 %v19531_v51  ;;  %v12384_v51 = vld [vmem:[#allocation2 + $0x18c] sm:$0xff]  }
 0x4b2   :  { %v13998_v53 = vpop.f32.mrb[8].mxu0 }
 0x4b3   :  { %v3678_v33 = vpop.f32.mrb[9].mxu0 }
 0x4b4   :  { %v14004_v14 = vpop.f32.mrb[10].mxu0  ;;  %v19566_v33 = vld [vmem:[#allocation42_spill] sm:$0xff] }
 0x4b5   :  { %v3681_v62 = vpop.f32.mrb[11].mxu0 }
 0x4b7   :  { %3891 = vmatmul.mubr.bf16.gmra.mrb[116].mxu0 %v12384_v51 }
 0x4b8   :  { %3898 = vmatprep.mubr.bf16.mxu0 %v13866_v63 }
 0x4ba   :  { %v14011_v29 = vpop.f32.mrb[12].mxu0 }
 0x4bb   :  { %v3686_v36 = vpop.f32.mrb[13].mxu0 }
 0x4bc   :  { %v14013_v16 = vpop.f32.mrb[14].mxu0 }
 0x4bd   :  { %v3689_v48 = vpop.f32.mrb[15].mxu0 }
 0x4bf   :  { %3899 = vmatmul.mubr.bf16.gmra.mrb[120].mxu0 %v13722_v44 }
 0x4c0   :  { %3906 = vmatprep.mubr.bf16.mxu0 %v2172_v32  ;;  %v19570_v32 = vld [vmem:[#allocation46_spill] sm:$0xff] }
 0x4c2   :  { %v14019_v40 = vpop.f32.mrb[16].mxu0 }
 0x4c3   :  { %v3694_v63 = vpop.f32.mrb[17].mxu0 }
 0x4c4   :  { %v14025_v43 = vpop.f32.mrb[18].mxu0  ;;  %v19571_v63 = vld [vmem:[#allocation48_spill] sm:$0xff] }
 0x4c5   :  { %v3697_v21 = vpop.f32.mrb[19].mxu0 }
 0x4c7   :  { %3907 = vmatmul.mubr.bf16.gmra.mrb[124].mxu0 %v13928_v31  ;;  %v14043_v31 = vpop.f32.mrb[22].mxu1 }
 0x4c8   :  { %10972 = vmatprep.mubr.bf16.mxu0 %v19561_v35  ;;  %v14047_v52 = vpop.f32.mrb[23].mxu1 }
 0x4c9   :  { %v14056_v62 = vpop.f32.mrb[24].mxu1 }
 0x4ca   :  { %v14031_v44 = vpop.f32.mrb[20].mxu0  ;;  %v14061_v17 = vpop.f32.mrb[25].mxu1 }
 0x4cb   :  { %v3702_v10 = vpop.f32.mrb[21].mxu0  ;;  %v14063_v23 = vpop.f32.mrb[26].mxu1 }
 0x4cc   :  { %v14033_v59 = vpop.f32.mrb[22].mxu0  ;;  %v14067_v36 = vpop.f32.mrb[27].mxu1 }
 0x4cd   :  { %v3705_v47 = vpop.f32.mrb[23].mxu0 }
 0x4cf   :  { %10973 = vmatmul.mubr.bf16.vlgmr.msra.gmra.mrb[128].mxu0 %v19562_v41  ;;  %v19574_v41 = vld [vmem:[#allocation50_spill] sm:$0xff] }
 0x4d0   :  { %10976 = vmatprep.mubr.bf16.mxu0 %v19563_v34  ;;  %v14076_v34 = vpop.f32.mrb[28].mxu1 }
 0x4d2   :  { %v14039_v61 = vpop.f32.mrb[24].mxu0 }
 0x4d3   :  { %v3710_v46 = vpop.f32.mrb[25].mxu0 }
 0x4d4   :  { %v14045_v9 = vpop.f32.mrb[26].mxu0  ;;  %v19575_v46 = vld [vmem:[#allocation52_spill] sm:$0xff] }
 0x4d5   :  { %v3713_v55 = vpop.f32.mrb[27].mxu0 }
 0x4d7   :  { %10977 = vmatmul.mubr.bf16.gmra.mrb[132].mxu0 %v19564_v25  ;;  %v14081_v25 = vpop.f32.mrb[29].mxu1 }
 0x4d8   :  { %10980 = vmatprep.mubr.bf16.mxu0 %v19565_v18 }
 0x4da   :  { %v14051_v11 = vpop.f32.mrb[28].mxu0 }
 0x4db   :  { %v3718_v20 = vpop.f32.mrb[29].mxu0 }
 0x4dc   :  { %v14053_v26 = vpop.f32.mrb[30].mxu0  ;;  %v14083_v20 = vpop.f32.mrb[30].mxu1 }
 0x4dd   :  { %v3721_v4 = vpop.f32.mrb[31].mxu0 }
 0x4df   :  { %10981 = vmatmul.mubr.bf16.gmra.mrb[136].mxu0 %v19566_v33  ;;  %v14087_v33 = vpop.f32.mrb[31].mxu1 }
 0x4e0   :  { %10984 = vmatprep.mubr.bf16.mxu0 %v19567_v56 }
 0x4e2   :  { %v14059_v42 = vpop.f32.mrb[32].mxu0 }
 0x4e3   :  { %19568 = vst [vmem:[#allocation61_spill] sm:$0xff] %v14059_v42  ;;  %v3726_v51 = vpop.f32.mrb[33].mxu0 }
 0x4e4   :  { %v14065_v2 = vpop.f32.mrb[34].mxu0  ;;  %v19578_v51 = vld [vmem:[#allocation53_spill] sm:$0xff] }
 0x4e5   :  { %19569 = vst [vmem:[#allocation20_spill] sm:$0xff] %v14065_v2  ;;  %v3729_v48 = vpop.f32.mrb[35].mxu0 }
 0x4e7   :  { %10985 = vmatmul.mubr.bf16.gmra.mrb[140].mxu0 %v19570_v32 }
 0x4e8   :  { %10988 = vmatprep.mubr.bf16.mxu0 %v19571_v63 }
 0x4ea   :  { %v14071_v21 = vpop.f32.mrb[36].mxu0 }
 0x4eb   :  { %19572 = vst [vmem:[#allocation63_spill] sm:$0xff] %v14071_v21  ;;  %v3734_v35 = vpop.f32.mrb[37].mxu0 }
 0x4ec   :  { %v14073_v10 = vpop.f32.mrb[38].mxu0 }
 0x4ed   :  { %19573 = vst [vmem:[#allocation21_spill] sm:$0xff] %v14073_v10  ;;  %v3737_v47 = vpop.f32.mrb[39].mxu0 }
 0x4ee   :  { %v14094_v47 = vpop.f32.mrb[32].mxu1 }
 0x4ef   :  { %10989 = vmatmul.mubr.bf16.gmra.mrb[144].mxu0 %v19574_v41 }
 0x4f0   :  { %10992 = vmatprep.mubr.bf16.mxu0 %v19575_v46  ;;  %v14096_v46 = vpop.f32.mrb[33].mxu1 }
 0x4f2   :  { %v14079_v55 = vpop.f32.mrb[40].mxu0 }
 0x4f3   :  { %19576 = vst [vmem:[#allocation65_spill] sm:$0xff] %v14079_v55  ;;  %v3742_v18 = vpop.f32.mrb[41].mxu0  ;;  %v14101_v55 = vpop.f32.mrb[34].mxu1 }
 0x4f4   :  { %v14085_v4 = vpop.f32.mrb[42].mxu0  ;;  %v14103_v2 = vpop.f32.mrb[35].mxu1 }
 0x4f5   :  { %19577 = vst [vmem:[#allocation22_spill] sm:$0xff] %v14085_v4  ;;  %v3745_v56 = vpop.f32.mrb[43].mxu0 }
 0x4f7   :  { %10993 = vmatmul.mubr.bf16.gmra.mrb[148].mxu0 %v19578_v51 }
 0x4fa   :  { %v14090_v48 = vpop.f32.mrb[44].mxu0 }
 0x4fb   :  { %19579 = vst [vmem:[#allocation23_spill] sm:$0xff] %v14090_v48  ;;  %v3750_v32 = vpop.f32.mrb[45].mxu0 }
 0x4fc   :  { %v14092_v63 = vpop.f32.mrb[46].mxu0 }
 0x4fd   :  { %19580 = vst [vmem:[#allocation29_spill] sm:$0xff] %v14092_v63  ;;  %v3753_v35 = vpop.f32.mrb[47].mxu0 }
 0x502   :  { %v3756_v41 = vpop.f32.mrb[48].mxu0 }
 0x503   :  { %v14099_v18 = vadd.f32 %v13955_v19, %v3756_v41  ;;  %v3758_v4 = vpop.f32.mrb[49].mxu0 }
 0x504   :  { %v3759_v56 = vpop.f32.mrb[50].mxu0 }
 0x505   :  { %19581 = vst [vmem:[#allocation30_spill] sm:$0xff] %v14099_v18  ;;  %v14106_v51 = vadd.f32 %v13959_v13, %v3759_v56  ;;  %v3761_v32 = vpop.f32.mrb[51].mxu0 }
 0x506   :  { %v14114_v4 = vpop.f32.mrb[36].mxu1 }
 0x507   :  { %19582 = vst [vmem:[#allocation31_spill] sm:$0xff] %v14106_v51  ;;  %v14116_v18 = vpop.f32.mrb[37].mxu1 }
 0x508   :  { %v14121_v56 = vpop.f32.mrb[38].mxu1 }
 0x50a   :  { %v3764_v63 = vpop.f32.mrb[52].mxu0 }
 0x50b   :  { %v14109_v35 = vadd.f32 %v13953_v50, %v3764_v63  ;;  %v3766_v48 = vpop.f32.mrb[53].mxu0  ;;  %v14123_v50 = vpop.f32.mrb[39].mxu1 }
 0x50c   :  { %v3767_v10 = vpop.f32.mrb[54].mxu0 }
 0x50d   :  { %19583 = vst [vmem:[#allocation33_spill] sm:$0xff] %v14109_v35  ;;  %v14112_v42 = vadd.f32 %v13957_v54, %v3767_v10  ;;  %v3769_v19 = vpop.f32.mrb[55].mxu0 }
 0x50f   :  { %19584 = vst [vmem:[#allocation35_spill] sm:$0xff] %v14112_v42 }
 0x512   :  { %v3772_v41 = vpop.f32.mrb[56].mxu0 }
 0x513   :  { %v14119_v21 = vadd.f32 %v13967_v24, %v3772_v41  ;;  %v3774_v13 = vpop.f32.mrb[57].mxu0 }
 0x514   :  { %v3775_v32 = vpop.f32.mrb[58].mxu0 }
 0x515   :  { %19585 = vst [vmem:[#allocation37_spill] sm:$0xff] %v14119_v21  ;;  %v14126_v48 = vadd.f32 %v13971_v15, %v3775_v32  ;;  %v3777_v54 = vpop.f32.mrb[59].mxu0 }
 0x51a   :  { %v3780_v10 = vpop.f32.mrb[60].mxu0 }
 0x51b   :  { %v14129_v63 = vadd.f32 %v13965_v37, %v3780_v10  ;;  %v3782_v19 = vpop.f32.mrb[61].mxu0 }
 0x51c   :  { %v3783_v42 = vpop.f32.mrb[62].mxu0 }
 0x51d   :  { %v14132_v35 = vadd.f32 %v13969_v8, %v3783_v42  ;;  %v3785_v24 = vpop.f32.mrb[63].mxu0 }
 0x522   :  { %v3788_v41 = vpop.f32.mrb[64].mxu0 }
 0x523   :  { %v14135_v13 = vadd.f32 %v13981_v0, %v3788_v41  ;;  %v3790_v21 = vpop.f32.mrb[65].mxu0 }
 0x524   :  { %v3791_v51 = vpop.f32.mrb[66].mxu0 }
 0x525   :  { %v14138_v15 = vadd.f32 %v13987_v38, %v3791_v51  ;;  %v3793_v32 = vpop.f32.mrb[67].mxu0 }
 0x52a   :  { %v3796_v54 = vpop.f32.mrb[68].mxu0 }
 0x52b   :  { %v14141_v37 = vadd.f32 %v13976_v28, %v3796_v54  ;;  %v3798_v10 = vpop.f32.mrb[69].mxu0 }
 0x52c   :  { %v3799_v19 = vpop.f32.mrb[70].mxu0 }
 0x52d   :  { %v14144_v8 = vadd.f32 %v13983_v12, %v3799_v19  ;;  %v3801_v42 = vpop.f32.mrb[71].mxu0 }
 0x532   :  { %v3804_v24 = vpop.f32.mrb[72].mxu0 }
 0x533   :  { %v14147_v0 = vadd.f32 %v14000_v30, %v3804_v24  ;;  %v3806_v21 = vpop.f32.mrb[73].mxu0 }
 0x534   :  { %v3807_v41 = vpop.f32.mrb[74].mxu0 }
 0x535   :  { %v14150_v38 = vadd.f32 %v14006_v22, %v3807_v41  ;;  %v3809_v51 = vpop.f32.mrb[75].mxu0 }
 0x53a   :  { %v3812_v32 = vpop.f32.mrb[76].mxu0 }
 0x53b   :  { %v14153_v28 = vadd.f32 %v13994_v45, %v3812_v32  ;;  %v3814_v54 = vpop.f32.mrb[77].mxu0 }
 0x53c   :  { %v3815_v10 = vpop.f32.mrb[78].mxu0 }
 0x53d   :  { %v14156_v12 = vadd.f32 %v14002_v5, %v3815_v10  ;;  %v3817_v19 = vpop.f32.mrb[79].mxu0 }
 0x542   :  { %v3820_v42 = vpop.f32.mrb[80].mxu0 }
 0x543   :  { %v14159_v30 = vadd.f32 %v14021_v3, %v3820_v42  ;;  %v3822_v24 = vpop.f32.mrb[81].mxu0 }
 0x544   :  { %v3823_v21 = vpop.f32.mrb[82].mxu0 }
 0x545   :  { %v14162_v22 = vadd.f32 %v14027_v58, %v3823_v21  ;;  %v3825_v41 = vpop.f32.mrb[83].mxu0 }
 0x54a   :  { %v3828_v51 = vpop.f32.mrb[84].mxu0 }
 0x54b   :  { %v14165_v45 = vadd.f32 %v14017_v7, %v3828_v51  ;;  %v3830_v32 = vpop.f32.mrb[85].mxu0 }
 0x54c   :  { %v3831_v54 = vpop.f32.mrb[86].mxu0 }
 0x54d   :  { %v14168_v5 = vadd.f32 %v14023_v57, %v3831_v54  ;;  %v3833_v10 = vpop.f32.mrb[87].mxu0 }
 0x552   :  { %v3836_v19 = vpop.f32.mrb[88].mxu0 }
 0x553   :  { %v14171_v3 = vadd.f32 %v14041_v6, %v3836_v19  ;;  %v3838_v42 = vpop.f32.mrb[89].mxu0 }
 0x554   :  { %v3839_v24 = vpop.f32.mrb[90].mxu0 }
 0x555   :  { %v14174_v58 = vadd.f32 %v14047_v52, %v3839_v24  ;;  %v3841_v21 = vpop.f32.mrb[91].mxu0 }
 0x55a   :  { %v3844_v41 = vpop.f32.mrb[92].mxu0 }
 0x55b   :  { %v14177_v7 = vadd.f32 %v14036_v60, %v3844_v41  ;;  %v3846_v51 = vpop.f32.mrb[93].mxu0 }
 0x55c   :  { %v3847_v32 = vpop.f32.mrb[94].mxu0 }
 0x55d   :  { %v14180_v57 = vadd.f32 %v14043_v31, %v3847_v32  ;;  %v3849_v54 = vpop.f32.mrb[95].mxu0 }
 0x562   :  { %v3852_v10 = vpop.f32.mrb[96].mxu0 }
 0x563   :  { %v14183_v6 = vadd.f32 %v14061_v17, %v3852_v10  ;;  %v3854_v19 = vpop.f32.mrb[97].mxu0 }
 0x564   :  { %v3855_v42 = vpop.f32.mrb[98].mxu0 }
 0x565   :  { %v14186_v52 = vadd.f32 %v14067_v36, %v3855_v42  ;;  %v3857_v24 = vpop.f32.mrb[99].mxu0 }
 0x56a   :  { %v3860_v21 = vpop.f32.mrb[100].mxu0 }
 0x56b   :  { %v14189_v60 = vadd.f32 %v14056_v62, %v3860_v21  ;;  %v3862_v41 = vpop.f32.mrb[101].mxu0 }
 0x56c   :  { %v3863_v51 = vpop.f32.mrb[102].mxu0 }
 0x56d   :  { %v14192_v31 = vadd.f32 %v14063_v23, %v3863_v51  ;;  %v3865_v32 = vpop.f32.mrb[103].mxu0 }
 0x572   :  { %v3868_v54 = vpop.f32.mrb[104].mxu0 }
 0x573   :  { %v14195_v17 = vadd.f32 %v14081_v25, %v3868_v54  ;;  %v3870_v10 = vpop.f32.mrb[105].mxu0 }
 0x574   :  { %v3871_v19 = vpop.f32.mrb[106].mxu0 }
 0x575   :  { %v14198_v36 = vadd.f32 %v14087_v33, %v3871_v19  ;;  %v3873_v42 = vpop.f32.mrb[107].mxu0 }
 0x57a   :  { %v3876_v24 = vpop.f32.mrb[108].mxu0 }
 0x57b   :  { %v14201_v62 = vadd.f32 %v14076_v34, %v3876_v24  ;;  %v3878_v21 = vpop.f32.mrb[109].mxu0 }
 0x57c   :  { %v3879_v41 = vpop.f32.mrb[110].mxu0 }
 0x57d   :  { %19586 = vst [vmem:[#allocation39_spill] sm:$0xff] %v14201_v62  ;;  %v14204_v23 = vadd.f32 %v14083_v20, %v3879_v41  ;;  %v3881_v51 = vpop.f32.mrb[111].mxu0 }
 0x57f   :  { %19587 = vst [vmem:[#allocation41_spill] sm:$0xff] %v14204_v23 }
 0x582   :  { %v3884_v32 = vpop.f32.mrb[112].mxu0 }
 0x583   :  { %v14207_v25 = vadd.f32 %v14096_v46, %v3884_v32  ;;  %v3886_v54 = vpop.f32.mrb[113].mxu0 }
 0x584   :  { %v3887_v10 = vpop.f32.mrb[114].mxu0 }
 0x585   :  { %19588 = vst [vmem:[#allocation43_spill] sm:$0xff] %v14207_v25  ;;  %v14210_v33 = vadd.f32 %v14103_v2, %v3887_v10  ;;  %v3889_v19 = vpop.f32.mrb[115].mxu0 }
 0x587   :  { %19589 = vst [vmem:[#allocation45_spill] sm:$0xff] %v14210_v33 }
 0x58a   :  { %v3892_v42 = vpop.f32.mrb[116].mxu0 }
 0x58b   :  { %v14213_v34 = vadd.f32 %v14094_v47, %v3892_v42  ;;  %v3894_v24 = vpop.f32.mrb[117].mxu0 }
 0x58c   :  { %v3895_v21 = vpop.f32.mrb[118].mxu0 }
 0x58d   :  { %19590 = vst [vmem:[#allocation47_spill] sm:$0xff] %v14213_v34  ;;  %v14216_v20 = vadd.f32 %v14101_v55, %v3895_v21  ;;  %v3897_v41 = vpop.f32.mrb[119].mxu0 }
 0x58f   :  { %19591 = vst [vmem:[#allocation49_spill] sm:$0xff] %v14216_v20 }
 0x592   :  { %v3900_v51 = vpop.f32.mrb[120].mxu0 }
 0x593   :  { %v14219_v46 = vadd.f32 %v14116_v18, %v3900_v51  ;;  %v3902_v32 = vpop.f32.mrb[121].mxu0 }
 0x594   :  { %v3903_v54 = vpop.f32.mrb[122].mxu0 }
 0x595   :  { %19592 = vst [vmem:[#allocation51_spill] sm:$0xff] %v14219_v46  ;;  %v14222_v2 = vadd.f32 %v14123_v50, %v3903_v54  ;;  %v3905_v10 = vpop.f32.mrb[123].mxu0 }
 0x597   :  { %19593 = vst [vmem:[#allocation54_spill] sm:$0xff] %v14222_v2 }
 0x59a   :  { %v3908_v19 = vpop.f32.mrb[124].mxu0 }
 0x59b   :  { %v14225_v47 = vadd.f32 %v14114_v4, %v3908_v19  ;;  %v3910_v42 = vpop.f32.mrb[125].mxu0 }
 0x59c   :  { %v3911_v24 = vpop.f32.mrb[126].mxu0 }
 0x59d   :  { %19594 = vst [vmem:[#allocation55_spill] sm:$0xff] %v14225_v47  ;;  %v14228_v55 = vadd.f32 %v14121_v56, %v3911_v24  ;;  %v3913_v21 = vpop.f32.mrb[127].mxu0 }
 0x5a2   :  { %v10974_v41 = vpop.f32.mrb[128].mxu0 }
 0x5a3   :  { %v14231_v18 = vadd.f32 %v10974_v41, %v13990_v39  ;;  %v3949_v51 = vpop.f32.mrb[129].mxu0 }
 0x5a4   :  { %v14234_v32 = vadd.f32 %v3949_v51, %v13979_v27  ;;  %v10975_v50 = vpop.f32.mrb[130].mxu0 }
 0x5a5   :  { %v14237_v54 = vadd.f32 %v10975_v50, %v13992_v49  ;;  %v3952_v4 = vpop.f32.mrb[131].mxu0  ;;  %v4277_v27 = vmul.f32 %v14231_v18, %v14231_v18 }
 0x5a6   :  { %19595 = vst [vmem:[#allocation56_spill] sm:$0xff] %v14234_v32  ;;  %v14240_v10 = vadd.f32 %v3952_v4, %v13985_v1  ;;  %v4275_v56 = vmul.f32 %v14234_v32, %v14234_v32 }
 0x5a7   :  { %v4278_v41 = vmul.f32 %v14237_v54, %v14237_v54 }
 0x5a8   :  { %19596 = vst [vmem:[#allocation57_spill] sm:$0xff] %v14240_v10  ;;  %v4206_v19 = vadd.f32 %v14240_v10, %v14234_v32  ;;  %v4276_v39 = vmul.f32 %v14240_v10, %v14240_v10 }
 0x5aa   :  { %v4207_v42 = vadd.f32 %v4206_v19, %v14231_v18  ;;  %v4339_v49 = vadd.f32 %v4276_v39, %v4275_v56  ;;  %v10978_v24 = vpop.f32.mrb[132].mxu0 }
 0x5ab   :  { %v14252_v21 = vadd.f32 %v10978_v24, %v14011_v29  ;;  %v3965_v1 = vpop.f32.mrb[133].mxu0 }
 0x5ac   :  { %v4340_v51 = vadd.f32 %v4339_v49, %v4277_v27  ;;  %v14257_v50 = vadd.f32 %v3965_v1, %v13998_v53  ;;  %v4208_v4 = vadd.f32 %v4207_v42, %v14237_v54  ;;  %v10979_v10 = vpop.f32.mrb[134].mxu0 }
 0x5ad   :  { %v14261_v32 = vadd.f32 %v10979_v10, %v14013_v16  ;;  %v3968_v19 = vpop.f32.mrb[135].mxu0  ;;  %v4281_v16 = vmul.f32 %v14252_v21, %v14252_v21 }
 0x5ae   :  { %v4209_v56 = vadd.f32 %v4208_v4, %v14257_v50  ;;  %v4279_v29 = vmul.f32 %v14257_v50, %v14257_v50  ;;  %v4341_v39 = vadd.f32 %v4340_v51, %v4278_v41  ;;  %v14267_v24 = vadd.f32 %v3968_v19, %v14004_v14 }
 0x5af   :  { %v4282_v14 = vmul.f32 %v14261_v32, %v14261_v32 }
 0x5b0   :  { %v4342_v27 = vadd.f32 %v4341_v39, %v4279_v29  ;;  %v4210_v53 = vadd.f32 %v4209_v56, %v14267_v24  ;;  %v4280_v42 = vmul.f32 %v14267_v24, %v14267_v24 }
 0x5b2   :  { %v4211_v10 = vadd.f32 %v4210_v53, %v14252_v21  ;;  %v4343_v49 = vadd.f32 %v4342_v27, %v4280_v42  ;;  %v10982_v1 = vpop.f32.mrb[136].mxu0 }
 0x5b3   :  { %v14276_v4 = vadd.f32 %v10982_v1, %v14031_v44  ;;  %v3981_v41 = vpop.f32.mrb[137].mxu0 }
 0x5b4   :  { %v4344_v51 = vadd.f32 %v4343_v49, %v4281_v16  ;;  %v14281_v19 = vadd.f32 %v3981_v41, %v14019_v40  ;;  %v4212_v56 = vadd.f32 %v4211_v10, %v14261_v32  ;;  %v10983_v29 = vpop.f32.mrb[138].mxu0 }
 0x5b5   :  { %19597 = vst [vmem:[#allocation58_spill] sm:$0xff] %v14276_v4  ;;  %v14285_v39 = vadd.f32 %v10983_v29, %v14033_v59  ;;  %v3984_v53 = vpop.f32.mrb[139].mxu0  ;;  %v4285_v59 = vmul.f32 %v14276_v4, %v14276_v4 }
 0x5b6   :  { %v4213_v27 = vadd.f32 %v4212_v56, %v14281_v19  ;;  %v4283_v44 = vmul.f32 %v14281_v19, %v14281_v19  ;;  %v4345_v42 = vadd.f32 %v4344_v51, %v4282_v14  ;;  %v14291_v1 = vadd.f32 %v3984_v53, %v14025_v43 }
 0x5b7   :  { %19598 = vst [vmem:[#allocation59_spill] sm:$0xff] %v14285_v39  ;;  %v4286_v43 = vmul.f32 %v14285_v39, %v14285_v39 }
 0x5b8   :  { %v4346_v16 = vadd.f32 %v4345_v42, %v4283_v44  ;;  %v4214_v40 = vadd.f32 %v4213_v27, %v14291_v1  ;;  %v4284_v10 = vmul.f32 %v14291_v1, %v14291_v1 }
 0x5ba   :  { %v4215_v49 = vadd.f32 %v4214_v40, %v14276_v4  ;;  %v4347_v41 = vadd.f32 %v4346_v16, %v4284_v10  ;;  %v10986_v56 = vpop.f32.mrb[140].mxu0 }
 0x5bb   :  { %v14300_v29 = vadd.f32 %v10986_v56, %v14051_v11  ;;  %v3997_v14 = vpop.f32.mrb[141].mxu0 }
 0x5bc   :  { %v4348_v51 = vadd.f32 %v4347_v41, %v4285_v59  ;;  %v14305_v53 = vadd.f32 %v3997_v14, %v14039_v61  ;;  %v4216_v27 = vadd.f32 %v4215_v49, %v14285_v39  ;;  %v10987_v44 = vpop.f32.mrb[142].mxu0 }
 0x5bd   :  { %19599 = vst [vmem:[#allocation60_spill] sm:$0xff] %v14300_v29  ;;  %v14309_v42 = vadd.f32 %v10987_v44, %v14053_v26  ;;  %v4000_v40 = vpop.f32.mrb[143].mxu0  ;;  %v4289_v26 = vmul.f32 %v14300_v29, %v14300_v29  ;;  %v19603_v44 = vld [vmem:[#allocation63_spill] sm:$0xff] }
 0x5be   :  { %19600 = vst [vmem:[#allocation62_spill] sm:$0xff] %v14305_v53  ;;  %v4217_v16 = vadd.f32 %v4216_v27, %v14305_v53  ;;  %v4287_v11 = vmul.f32 %v14305_v53, %v14305_v53  ;;  %v4349_v10 = vadd.f32 %v4348_v51, %v4286_v43  ;;  %v14315_v56 = vadd.f32 %v4000_v40, %v14045_v9  ;;  %v19605_v40 = vld [vmem:[#allocation61_spill] sm:$0xff] }
 0x5bf   :  { %19601 = vst [vmem:[#allocation64_spill] sm:$0xff] %v14309_v42  ;;  %v4290_v9 = vmul.f32 %v14309_v42, %v14309_v42 }
 0x5c0   :  { %19602 = vst [vmem:[#allocation24_spill] sm:$0xff] %v14315_v56  ;;  %v4350_v59 = vadd.f32 %v4349_v10, %v4287_v11  ;;  %v4218_v61 = vadd.f32 %v4217_v16, %v14315_v56  ;;  %v4288_v49 = vmul.f32 %v14315_v56, %v14315_v56  ;;  %v19607_v56 = vld [vmem:[#allocation21_spill] sm:$0xff] }
 0x5c2   :  { %v4219_v41 = vadd.f32 %v4218_v61, %v14300_v29  ;;  %v4351_v14 = vadd.f32 %v4350_v59, %v4288_v49  ;;  %v10990_v27 = vpop.f32.mrb[144].mxu0 }
 0x5c3   :  { %v14324_v39 = vadd.f32 %v10990_v27, %v19603_v44  ;;  %v4013_v43 = vpop.f32.mrb[145].mxu0  ;;  %v19609_v44 = vld [vmem:[#allocation20_spill] sm:$0xff] }
 0x5c4   :  { %v4352_v51 = vadd.f32 %v4351_v14, %v4289_v26  ;;  %v14329_v16 = vadd.f32 %v4013_v43, %v19605_v40  ;;  %v4220_v11 = vadd.f32 %v4219_v41, %v14309_v42  ;;  %v10991_v10 = vpop.f32.mrb[146].mxu0 }
 0x5c5   :  { %19604 = vst [vmem:[#allocation66_spill] sm:$0xff] %v14324_v39  ;;  %v14333_v53 = vadd.f32 %v10991_v10, %v19607_v56  ;;  %v4016_v61 = vpop.f32.mrb[147].mxu0  ;;  %v4293_v56 = vmul.f32 %v14324_v39, %v14324_v39  ;;  %v19611_v10 = vld [vmem:[#allocation23_spill] sm:$0xff] }
 0x5c6   :  { %19606 = vst [vmem:[#allocation25_spill] sm:$0xff] %v14329_v16  ;;  %v4221_v59 = vadd.f32 %v4220_v11, %v14329_v16  ;;  %v4291_v49 = vmul.f32 %v14329_v16, %v14329_v16  ;;  %v4353_v27 = vadd.f32 %v4352_v51, %v4290_v9  ;;  %v14339_v29 = vadd.f32 %v4016_v61, %v19609_v44 }
 0x5c7   :  { %19608 = vst [vmem:[#allocation67_spill] sm:$0xff] %v14333_v53  ;;  %v4294_v51 = vmul.f32 %v14333_v53, %v14333_v53 }
 0x5c8   :  { %19610 = vst [vmem:[#allocation26_spill] sm:$0xff] %v14339_v29  ;;  %v4354_v26 = vadd.f32 %v4353_v27, %v4291_v49  ;;  %v4222_v14 = vadd.f32 %v4221_v59, %v14339_v29  ;;  %v4292_v41 = vmul.f32 %v14339_v29, %v14339_v29  ;;  %v19613_v49 = vld [vmem:[#allocation65_spill] sm:$0xff] }
 0x5c9   :  { %v19614_v29 = vld [vmem:[#allocation29_spill] sm:$0xff] }
 0x5ca   :  { %v4223_v43 = vadd.f32 %v4222_v14, %v14324_v39  ;;  %v4355_v40 = vadd.f32 %v4354_v26, %v4292_v41  ;;  %v10994_v11 = vpop.f32.mrb[148].mxu0 }
 0x5cb   :  { %v14348_v42 = vadd.f32 %v10994_v11, %v19611_v10  ;;  %v4029_v9 = vpop.f32.mrb[149].mxu0  ;;  %v19616_v10 = vld [vmem:[#allocation22_spill] sm:$0xff] }
 0x5cc   :  { %v4356_v61 = vadd.f32 %v4355_v40, %v4293_v56  ;;  %v14353_v59 = vadd.f32 %v4029_v9, %v19613_v49  ;;  %v4224_v27 = vadd.f32 %v4223_v43, %v14333_v53  ;;  %v10995_v44 = vpop.f32.mrb[150].mxu0 }
 0x5cd   :  { %19612 = vst [vmem:[#allocation68_spill] sm:$0xff] %v14348_v42  ;;  %v14357_v16 = vadd.f32 %v10995_v44, %v19614_v29  ;;  %v4032_v14 = vpop.f32.mrb[151].mxu0  ;;  %v4297_v29 = vmul.f32 %v14348_v42, %v14348_v42  ;;  %v19617_v44 = vld [vmem:[#allocation30_spill] sm:$0xff] }
 0x5ce   :  { %v4225_v26 = vadd.f32 %v4224_v27, %v14353_v59  ;;  %v4295_v41 = vmul.f32 %v14353_v59, %v14353_v59  ;;  %v4357_v11 = vadd.f32 %v4356_v61, %v4294_v51  ;;  %v14363_v39 = vadd.f32 %v4032_v14, %v19616_v10 }
 0x5cf   :  { %19615 = vst [vmem:[#allocation27_spill] sm:$0xff] %v14357_v16  ;;  %v4298_v27 = vmul.f32 %v14357_v16, %v14357_v16  ;;  %v4299_v14 = vmul.f32 %v19617_v44, %v19617_v44 }
 0x5d0   :  { %v4358_v56 = vadd.f32 %v4357_v11, %v4295_v41  ;;  %v4226_v40 = vadd.f32 %v4225_v26, %v14363_v39  ;;  %v4296_v43 = vmul.f32 %v14363_v39, %v14363_v39  ;;  %v19618_v11 = vld [vmem:[#allocation31_spill] sm:$0xff] }
 0x5d1   :  { %v4300_v10 = vmul.f32 %v19618_v11, %v19618_v11 }
 0x5d2   :  { %v4227_v9 = vadd.f32 %v4226_v40, %v14348_v42  ;;  %v4359_v49 = vadd.f32 %v4358_v56, %v4296_v43  ;;  %v19619_v40 = vld [vmem:[#allocation33_spill] sm:$0xff] }
 0x5d3   :  { %v4301_v56 = vmul.f32 %v19619_v40, %v19619_v40 }
 0x5d4   :  { %v4228_v51 = vadd.f32 %v4227_v9, %v14357_v16  ;;  %v4360_v61 = vadd.f32 %v4359_v49, %v4297_v29  ;;  %v19620_v9 = vld [vmem:[#allocation35_spill] sm:$0xff] }
 0x5d5   :  { %v4302_v29 = vmul.f32 %v19620_v9, %v19620_v9 }
 0x5d6   :  { %v4229_v26 = vadd.f32 %v4228_v51, %v19617_v44  ;;  %v4361_v41 = vadd.f32 %v4360_v61, %v4298_v27  ;;  %v19621_v51 = vld [vmem:[#allocation37_spill] sm:$0xff] }
 0x5d7   :  { %v4303_v27 = vmul.f32 %v19621_v51, %v19621_v51 }
 0x5d8   :  { %v4230_v53 = vadd.f32 %v4229_v26, %v19618_v11  ;;  %v4362_v4 = vadd.f32 %v4361_v41, %v4299_v14  ;;  %v4304_v14 = vmul.f32 %v14126_v48, %v14126_v48 }
 0x5da   :  { %v4231_v43 = vadd.f32 %v4230_v53, %v19619_v40  ;;  %v4363_v42 = vadd.f32 %v4362_v4, %v4300_v10  ;;  %v4305_v4 = vmul.f32 %v14129_v63, %v14129_v63 }
 0x5dc   :  { %v4232_v49 = vadd.f32 %v4231_v43, %v19620_v9  ;;  %v4364_v16 = vadd.f32 %v4363_v42, %v4301_v56  ;;  %v4306_v42 = vmul.f32 %v14132_v35, %v14132_v35 }
 0x5de   :  { %v4233_v61 = vadd.f32 %v4232_v49, %v19621_v51  ;;  %v4365_v44 = vadd.f32 %v4364_v16, %v4302_v29  ;;  %v4307_v16 = vmul.f32 %v14135_v13, %v14135_v13 }
 0x5e0   :  { %v4234_v26 = vadd.f32 %v4233_v61, %v14126_v48  ;;  %v4366_v41 = vadd.f32 %v4365_v44, %v4303_v27  ;;  %v4308_v44 = vmul.f32 %v14138_v15, %v14138_v15 }
 0x5e2   :  { %v4235_v53 = vadd.f32 %v4234_v26, %v14129_v63  ;;  %v4367_v10 = vadd.f32 %v4366_v41, %v4304_v14  ;;  %v4309_v14 = vmul.f32 %v14141_v37, %v14141_v37 }
 0x5e4   :  { %v4236_v56 = vadd.f32 %v4235_v53, %v14132_v35  ;;  %v4368_v43 = vadd.f32 %v4367_v10, %v4305_v4  ;;  %v4310_v4 = vmul.f32 %v14144_v8, %v14144_v8 }
 0x5e6   :  { %v4237_v29 = vadd.f32 %v4236_v56, %v14135_v13  ;;  %v4369_v49 = vadd.f32 %v4368_v43, %v4306_v42  ;;  %v4311_v42 = vmul.f32 %v14147_v0, %v14147_v0 }
 0x5e8   :  { %v4238_v27 = vadd.f32 %v4237_v29, %v14138_v15  ;;  %v4370_v61 = vadd.f32 %v4369_v49, %v4307_v16  ;;  %v4312_v16 = vmul.f32 %v14150_v38, %v14150_v38 }
 0x5ea   :  { %v4239_v26 = vadd.f32 %v4238_v27, %v14141_v37  ;;  %v4371_v41 = vadd.f32 %v4370_v61, %v4308_v44  ;;  %v4313_v44 = vmul.f32 %v14153_v28, %v14153_v28 }
 0x5ec   :  { %v4240_v53 = vadd.f32 %v4239_v26, %v14144_v8  ;;  %v4372_v10 = vadd.f32 %v4371_v41, %v4309_v14  ;;  %v4314_v14 = vmul.f32 %v14156_v12, %v14156_v12 }
 0x5ee   :  { %v4241_v56 = vadd.f32 %v4240_v53, %v14147_v0  ;;  %v4373_v43 = vadd.f32 %v4372_v10, %v4310_v4  ;;  %v4315_v4 = vmul.f32 %v14159_v30, %v14159_v30 }
 0x5f0   :  { %v4242_v29 = vadd.f32 %v4241_v56, %v14150_v38  ;;  %v4374_v49 = vadd.f32 %v4373_v43, %v4311_v42  ;;  %v4316_v42 = vmul.f32 %v14162_v22, %v14162_v22 }
 0x5f2   :  { %v4243_v27 = vadd.f32 %v4242_v29, %v14153_v28  ;;  %v4375_v61 = vadd.f32 %v4374_v49, %v4312_v16  ;;  %v4317_v16 = vmul.f32 %v14165_v45, %v14165_v45 }
 0x5f4   :  { %v4244_v26 = vadd.f32 %v4243_v27, %v14156_v12  ;;  %v4376_v41 = vadd.f32 %v4375_v61, %v4313_v44  ;;  %v4318_v44 = vmul.f32 %v14168_v5, %v14168_v5 }
 0x5f6   :  { %v4245_v53 = vadd.f32 %v4244_v26, %v14159_v30  ;;  %v4377_v10 = vadd.f32 %v4376_v41, %v4314_v14  ;;  %v4319_v14 = vmul.f32 %v14171_v3, %v14171_v3 }
 0x5f8   :  { %v4246_v56 = vadd.f32 %v4245_v53, %v14162_v22  ;;  %v4378_v43 = vadd.f32 %v4377_v10, %v4315_v4  ;;  %v4320_v4 = vmul.f32 %v14174_v58, %v14174_v58 }
 0x5fa   :  { %v4247_v29 = vadd.f32 %v4246_v56, %v14165_v45  ;;  %v4379_v49 = vadd.f32 %v4378_v43, %v4316_v42  ;;  %v4321_v42 = vmul.f32 %v14177_v7, %v14177_v7 }
 0x5fc   :  { %v4248_v27 = vadd.f32 %v4247_v29, %v14168_v5  ;;  %v4380_v61 = vadd.f32 %v4379_v49, %v4317_v16  ;;  %v4322_v16 = vmul.f32 %v14180_v57, %v14180_v57 }
 0x5fe   :  { %v4249_v26 = vadd.f32 %v4248_v27, %v14171_v3  ;;  %v4381_v41 = vadd.f32 %v4380_v61, %v4318_v44  ;;  %v4323_v44 = vmul.f32 %v14183_v6, %v14183_v6 }
 0x600   :  { %v4250_v53 = vadd.f32 %v4249_v26, %v14174_v58  ;;  %v4382_v10 = vadd.f32 %v4381_v41, %v4319_v14  ;;  %v4324_v14 = vmul.f32 %v14186_v52, %v14186_v52 }
 0x602   :  { %v4251_v56 = vadd.f32 %v4250_v53, %v14177_v7  ;;  %v4383_v43 = vadd.f32 %v4382_v10, %v4320_v4  ;;  %v4325_v4 = vmul.f32 %v14189_v60, %v14189_v60 }
 0x604   :  { %v4252_v29 = vadd.f32 %v4251_v56, %v14180_v57  ;;  %v4384_v49 = vadd.f32 %v4383_v43, %v4321_v42  ;;  %v4326_v42 = vmul.f32 %v14192_v31, %v14192_v31 }
 0x606   :  { %v4253_v27 = vadd.f32 %v4252_v29, %v14183_v6  ;;  %v4385_v61 = vadd.f32 %v4384_v49, %v4322_v16  ;;  %v4327_v16 = vmul.f32 %v14195_v17, %v14195_v17 }
 0x608   :  { %v4254_v26 = vadd.f32 %v4253_v27, %v14186_v52  ;;  %v4386_v41 = vadd.f32 %v4385_v61, %v4323_v44  ;;  %v4328_v44 = vmul.f32 %v14198_v36, %v14198_v36 }
 0x60a   :  { %v4255_v53 = vadd.f32 %v4254_v26, %v14189_v60  ;;  %v4387_v10 = vadd.f32 %v4386_v41, %v4324_v14  ;;  %v4329_v14 = vmul.f32 %v14201_v62, %v14201_v62 }
 0x60c   :  { %v4256_v56 = vadd.f32 %v4255_v53, %v14192_v31  ;;  %v4388_v43 = vadd.f32 %v4387_v10, %v4325_v4  ;;  %v4330_v4 = vmul.f32 %v14204_v23, %v14204_v23 }
 0x60e   :  { %v4257_v29 = vadd.f32 %v4256_v56, %v14195_v17  ;;  %v4389_v49 = vadd.f32 %v4388_v43, %v4326_v42  ;;  %v4331_v42 = vmul.f32 %v14207_v25, %v14207_v25 }
 0x610   :  { %v4258_v27 = vadd.f32 %v4257_v29, %v14198_v36  ;;  %v4390_v61 = vadd.f32 %v4389_v49, %v4327_v16  ;;  %v4332_v16 = vmul.f32 %v14210_v33, %v14210_v33 }
 0x612   :  { %v4259_v26 = vadd.f32 %v4258_v27, %v14201_v62  ;;  %v4391_v41 = vadd.f32 %v4390_v61, %v4328_v44  ;;  %v4333_v44 = vmul.f32 %v14213_v34, %v14213_v34 }
 0x614   :  { %v4260_v53 = vadd.f32 %v4259_v26, %v14204_v23  ;;  %v4392_v10 = vadd.f32 %v4391_v41, %v4329_v14  ;;  %v4334_v14 = vmul.f32 %v14216_v20, %v14216_v20 }
 0x616   :  { %v4261_v56 = vadd.f32 %v4260_v53, %v14207_v25  ;;  %v4393_v43 = vadd.f32 %v4392_v10, %v4330_v4  ;;  %v4335_v4 = vmul.f32 %v14219_v46, %v14219_v46 }
 0x618   :  { %v4262_v29 = vadd.f32 %v4261_v56, %v14210_v33  ;;  %v4394_v49 = vadd.f32 %v4393_v43, %v4331_v42  ;;  %v4336_v42 = vmul.f32 %v14222_v2, %v14222_v2 }
 0x61a   :  { %v4263_v27 = vadd.f32 %v4262_v29, %v14213_v34  ;;  %v4395_v61 = vadd.f32 %v4394_v49, %v4332_v16  ;;  %v4337_v16 = vmul.f32 %v14225_v47, %v14225_v47 }
 0x61c   :  { %v4264_v26 = vadd.f32 %v4263_v27, %v14216_v20  ;;  %v4396_v41 = vadd.f32 %v4395_v61, %v4333_v44  ;;  %v4338_v44 = vmul.f32 %v14228_v55, %v14228_v55 }
 0x61e   :  { %v4265_v53 = vadd.f32 %v4264_v26, %v14219_v46  ;;  %v4397_v10 = vadd.f32 %v4396_v41, %v4334_v14 }
 0x620   :  { %v4266_v56 = vadd.f32 %v4265_v53, %v14222_v2  ;;  %v4398_v43 = vadd.f32 %v4397_v10, %v4335_v4 }
 0x622   :  { %v4267_v29 = vadd.f32 %v4266_v56, %v14225_v47  ;;  %v4399_v49 = vadd.f32 %v4398_v43, %v4336_v42 }
 0x624   :  { %v4268_v27 = vadd.f32 %v4267_v29, %v14228_v55  ;;  %v4400_v61 = vadd.f32 %v4399_v49, %v4337_v16  ;;  %v12134_v16 = vld [vmem:[#allocation9] sm:$0xff]   ;;  %v4419_v49 = vlaneseq }
 0x625   :  { %7408 = vmatpush1.bf16.msra.mxu1 %v12134_v16 }
 0x626   :  { %v4269_v26 = vrot.slane %v4268_v27, 4  ;;  %v4401_v14 = vadd.f32 %v4400_v61, %v4338_v44  ;;  %v19622_v44 = vmov 0  }
 0x627   :  { %7409 = vmatprep.subr.bf16.mxu1 %v19622_v44 }
 0x628   :  { %v4270_v41 = vadd.f32 %v4269_v26, %v4268_v27  ;;  %v4402_v46 = vrot.slane %v4401_v14, 4 }
 0x62a   :  { %v4271_v20 = vrot.slane %v4270_v41, 2  ;;  %v4403_v34 = vadd.f32 %v4402_v46, %v4401_v14  ;;  %v12135_v46 = vld [vmem:[#allocation9 + $0x8] sm:$0xff]  }
 0x62b   :  { %7410 = vmatpush1.bf16.msra.mxu1 %v12135_v46  ;;  %v19626_v46 = vld [vmem:[#allocation58_spill] sm:$0xff] }
 0x62c   :  { %v4272_v53 = vadd.f32 %v4271_v20, %v4270_v41  ;;  %v4404_v4 = vrot.slane %v4403_v34, 2  ;;  %v4420_v20 = vshrl.u32 %v4419_v49, 7  ;;  %7411 = vmatprep.subr.bf16.mxu1 %v19622_v44 }
 0x62e   :  { %v4273_v10 = vrot.slane %v4272_v53, 1  ;;  %v4405_v2 = vadd.f32 %v4404_v4, %v4403_v34  ;;  %v14499_v34 = vsub.s32 0, %v4420_v20  ;;  %v19627_v20 = vld [vmem:[#allocation59_spill] sm:$0xff] }
 0x630   :  { %v4274_v33 = vadd.f32 %v4273_v10, %v4272_v53  ;;  %v4406_v25 = vrot.slane %v4405_v2, 1  ;;  %19623 = vst [vmem:[#allocation28_spill] sm:$0xff] %v14499_v34  ;;  %v19624_v53 = vld [vmem:[#allocation56_spill] sm:$0xff]  ;;  %v19625_v10 = vld [vmem:[#allocation57_spill] sm:$0xff] }
 0x632   :  { %v4407_v56 = vadd.f32 %v4406_v25, %v4405_v2  ;;  %v4408_v42 = vmul.f32 0.001953125, %v4274_v33  ;;  %v4204_v25 = vld [vmem:[%s19173_s2] sm:$0x1]  ;;  %v12136_v33 = vld [vmem:[#allocation9 + $0x10] sm:$0xff]  }
 0x633   :  { %7412 = vmatpush1.bf16.msra.mxu1 %v12136_v33  ;;  %v4205_v2 = vld [vmem:[%s19174_s3] sm:$0x1]  ;;  %v19628_v33 = vld [vmem:[#allocation62_spill] sm:$0xff] }
 0x634   :  { %v4409_v43 = vmul.f32 0.001953125, %v4407_v56  ;;  %v4410_v47 = vmul.f32 %v4408_v42, %v4408_v42  ;;  %7413 = vmatprep.subr.bf16.mxu1 %v19622_v44 }
 0x636   :  { %v4411_v23 = vsub.f32 %v4409_v43, %v4410_v47  ;;  %v12137_v47 = vld [vmem:[#allocation9 + $0x18] sm:$0xff]   ;;  %v12138_v43 = vld [vmem:[#allocation9 + $0x20] sm:$0xff]  }
 0x637   :  { %7414 = vmatpush1.bf16.msra.mxu1 %v12137_v47  ;;  %v19631_v47 = vld [vmem:[#allocation64_spill] sm:$0xff] }
 0x638   :  { %v4412_v62 = vmax.f32 %v4411_v23, 0.0  ;;  %7415 = vmatprep.subr.bf16.mxu1 %v19622_v44 }
 0x63a   :  { %v4413_v29 = vadd.f32 1e-05, %v4412_v62 }
 0x63b   :  { %7416 = vmatpush1.bf16.msra.mxu1 %v12138_v43 }
 0x63c   :  { %12318 = vrsqrt.f32 %v4413_v29  ;;  %7417 = vmatprep.subr.bf16.mxu1 %v19622_v44 }
 0x646   :  { %v12319_v23 = vpop.eup %12318 }
 0x647   :  { %v4415_v62 = vmul.f32 %v12319_v23, %v4204_v25  ;;  %v19629_v23 = vld [vmem:[#allocation24_spill] sm:$0xff] }
 0x649   :  { %v4416_v27 = vmul.f32 %v4415_v62, %v4408_v42  ;;  %v14506_v61 = vrot.slane %v4415_v62, %v14499_v34  ;;  %v19630_v62 = vld [vmem:[#allocation60_spill] sm:$0xff] }
 0x64b   :  { %v4417_v26 = vsub.f32 %v4205_v2, %v4416_v27  ;;  %v4444_v14 = vmul.f32 %v14506_v61, %v14353_v59  ;;  %v4445_v41 = vmul.f32 %v14506_v61, %v14363_v39  ;;  %v14514_v4 = vmul.f32 %v14506_v61, %v19624_v53 }
 0x64c   :  { %v14519_v56 = vmul.f32 %v14506_v61, %v19625_v10  ;;  %v14523_v42 = vmul.f32 %v14506_v61, %v14231_v18  ;;  %v14527_v59 = vmul.f32 %v14506_v61, %v14237_v54  ;;  %v14531_v39 = vmul.f32 %v14506_v61, %v14257_v50  ;;  %v12139_v10 = vld [vmem:[#allocation9 + $0x28] sm:$0xff]  }
 0x64d   :  { %v14534_v29 = vrot.slane %v4417_v26, %v14499_v34  ;;  %v14538_v16 = vmul.f32 %v14506_v61, %v14267_v24  ;;  %v14542_v18 = vmul.f32 %v14506_v61, %v14252_v21  ;;  %v14546_v54 = vmul.f32 %v14506_v61, %v14261_v32  ;;  %v19632_v26 = vld [vmem:[#allocation25_spill] sm:$0xff]  ;;  %7418 = vmatpush1.bf16.msra.mxu1 %v12139_v10 }
 0x64e   :  { %v14550_v50 = vmul.f32 %v14506_v61, %v14281_v19  ;;  %v14554_v49 = vmul.f32 %v14506_v61, %v14291_v1  ;;  %v14558_v24 = vmul.f32 %v14506_v61, %v19626_v46  ;;  %v14562_v21 = vmul.f32 %v14506_v61, %v19627_v20  ;;  %v19635_v20 = vld [vmem:[#allocation66_spill] sm:$0xff]  ;;  %7419 = vmatprep.subr.bf16.mxu1 %v19622_v44 }
 0x64f   :  { %v4514_v32 = vadd.f32 %v14534_v29, %v4444_v14  ;;  %v4515_v25 = vadd.f32 %v14534_v29, %v4445_v41  ;;  %v14568_v19 = vmul.f32 %v14506_v61, %v19628_v33  ;;  %v14572_v1 = vmul.f32 %v14506_v61, %v19629_v23  ;;  %v19634_v41 = vld [vmem:[#allocation26_spill] sm:$0xff]  ;;  %v19636_v23 = vld [vmem:[#allocation67_spill] sm:$0xff] }
 0x650   :  { %v14577_v2 = vmul.f32 %v14506_v61, %v19630_v62  ;;  %v14581_v27 = vmul.f32 %v14506_v61, %v19631_v47  ;;  %v14585_v14 = vmul.f32 %v14506_v61, %v19632_v26  ;;  %v14589_v53 = vmul.f32 %v14506_v61, %v19634_v41  ;;  %v19637_v47 = vld [vmem:[#allocation68_spill] sm:$0xff]  ;;  %v19638_v26 = vld [vmem:[#allocation27_spill] sm:$0xff]  ;;  %v19639_v41 = vld [vmem:[#allocation30_spill] sm:$0xff] }
 0x651   :  { %v4578_v43 = vmax.f32 %v4514_v32, 0.0  ;;  %v4579_v46 = vmax.f32 %v4515_v25, 0.0  ;;  %v14593_v33 = vmul.f32 %v14506_v61, %v19635_v20  ;;  %v14597_v62 = vmul.f32 %v14506_v61, %v19636_v23 }
 0x652   :  { %19633 = vst [vmem:[#allocation32_spill] sm:$0xff] %v14585_v14  ;;  %v14601_v34 = vmul.f32 %v14506_v61, %v19637_v47  ;;  %v14605_v14 = vmul.f32 %v14506_v61, %v19638_v26  ;;  %v14609_v32 = vmul.f32 %v14506_v61, %v19639_v41  ;;  %v14613_v25 = vmul.f32 %v14506_v61, %v19618_v11 }
 0x653   :  { %v14615_v20 = vpack.c.bf16 %v4578_v43, %v4578_v43  ;;  %v10793_v23 = vpack.c.bf16 %v4579_v46, %v4579_v46  ;;  %v14619_v47 = vmul.f32 %v14506_v61, %v19619_v40  ;;  %v14623_v26 = vmul.f32 %v14506_v61, %v19620_v9  ;;  %v12140_v9 = vld [vmem:[#allocation9 + $0x30] sm:$0xff]  }
 0x654   :  { %v14628_v41 = vmul.f32 %v14506_v61, %v19621_v51  ;;  %v14632_v11 = vmul.f32 %v14506_v61, %v14126_v48  ;;  %v14636_v10 = vmul.f32 %v14506_v61, %v14129_v63  ;;  %v14640_v40 = vmul.f32 %v14506_v61, %v14132_v35  ;;  %7420 = vmatpush1.bf16.msra.mxu1 %v12140_v9 }
 0x655   :  { %19640 = vst [vmem:[#allocation34_spill] sm:$0xff] %v14615_v20  ;;  %19641 = vst [vmem:[#allocation36_spill] sm:$0xff] %v14623_v26  ;;  %v5093_v43 = vshrl.u32 %v14615_v20, 16  ;;  %v5101_v46 = vshrl.u32 %v10793_v23, 16  ;;  %v5104_v26 = vshll.u32 %v10793_v23, 16  ;;  %v14645_v51 = vmul.f32 %v14506_v61, %v14135_v13  ;;  %7421 = vmatprep.subr.bf16.mxu1 %v19622_v44 }
 0x656   :  { %19642 = vst [vmem:[#allocation38_spill] sm:$0xff] %v14640_v40  ;;  %v14649_v48 = vmul.f32 %v14506_v61, %v14138_v15  ;;  %v14653_v63 = vmul.f32 %v14506_v61, %v14141_v37  ;;  %v14657_v35 = vmul.f32 %v14506_v61, %v14144_v8  ;;  %v14661_v40 = vmul.f32 %v14506_v61, %v14147_v0  ;;  %v5637_v8 = vld [vmem:[#allocation3 + $0x8c] sm:$0x1] }
 0x657   :  { %v14663_v23 = vrot.slane %v5093_v43, 7  ;;  %v5103_v13 = vrot.slane %v5101_v46, 7  ;;  %v14667_v15 = vmul.f32 %v14506_v61, %v14150_v38  ;;  %v14671_v37 = vmul.f32 %v14506_v61, %v14153_v28  ;;  %v12141_v28 = vld [vmem:[#allocation9 + $0x38] sm:$0xff]  }
 0x658   :  { %19643 = vst [vmem:[#allocation40_spill] sm:$0xff] %v14657_v35  ;;  %v14676_v35 = vmul.f32 %v14506_v61, %v14156_v12  ;;  %v14680_v0 = vmul.f32 %v14506_v61, %v14159_v30  ;;  %v14684_v9 = vmul.f32 %v14506_v61, %v14162_v22  ;;  %v14688_v38 = vmul.f32 %v14506_v61, %v14165_v45 }
 0x659   :  { %19644 = vst [vmem:[#allocation42_spill] sm:$0xff] %v14663_v23  ;;  %19645 = vst [vmem:[#allocation44_spill] sm:$0xff] %v14671_v37  ;;  %v5099_v43 = vrot.slane %v14663_v23, 4  ;;  %v5106_v46 = vor.u32 %v5104_v26, %v5103_v13  ;;  %v5108_v37 = vrot.slane %v5103_v13, 4  ;;  %v14693_v12 = vmul.f32 %v14506_v61, %v14168_v5  ;;  %7422 = vmatpush1.bf16.msra.mxu1 %v12141_v28  ;;  %v19656_v23 = vld [vmem:[#allocation49_spill] sm:$0xff]  ;;  %v19658_v13 = vld [vmem:[#allocation51_spill] sm:$0xff] }
 0x65a   :  { %v14697_v30 = vmul.f32 %v14506_v61, %v14171_v3  ;;  %v14701_v22 = vmul.f32 %v14506_v61, %v14174_v58  ;;  %v14705_v45 = vmul.f32 %v14506_v61, %v14177_v7  ;;  %v14709_v26 = vmul.f32 %v14506_v61, %v14180_v57  ;;  %7423 = vmatprep.subr.bf16.mxu1 %v19622_v44 }
 0x65b   :  { %v5107_v5 = vsel %vm12907_vm6, %v5099_v43, %v5106_v46  ;;  %v5638_v3 = vsel %vm12920_vm8, %v5108_v37, %v5637_v8  ;;  %v14721_v58 = vmul.f32 %v14506_v61, %v14186_v52  ;;  %v14726_v7 = vmul.f32 %v14506_v61, %v14189_v60  ;;  %v12142_v37 = vld [vmem:[#allocation9 + $0x40] sm:$0xff]   ;;  %v19649_v8 = vld [vmem:[#allocation39_spill] sm:$0xff] }
 0x65c   :  { %19646 = vst [vmem:[#allocation46_spill] sm:$0xff] %v14697_v30  ;;  %v14717_v30 = vmul.f32 %v14506_v61, %v14183_v6  ;;  %5636 = vst [vmem:[#allocation3 + $0x88] sm:$0xf] %v5107_v5  ;;  %v14730_v57 = vmul.f32 %v14506_v61, %v14192_v31  ;;  %v14734_v6 = vmul.f32 %v14506_v61, %v14195_v17  ;;  %v19650_v43 = vld [vmem:[#allocation41_spill] sm:$0xff]  ;;  %v19652_v46 = vld [vmem:[#allocation43_spill] sm:$0xff] }
 0x65d   :  { %5639 = vst [vmem:[#allocation3 + $0x8c] sm:$0x1] %v5638_v3  ;;  %v14738_v52 = vmul.f32 %v14506_v61, %v14198_v36  ;;  %v14742_v28 = vmul.f32 %v14506_v61, %v19649_v8  ;;  %v14746_v60 = vmul.f32 %v14506_v61, %v19650_v43  ;;  %v14750_v31 = vmul.f32 %v14506_v61, %v19652_v46  ;;  %v19654_v5 = vld [vmem:[#allocation45_spill] sm:$0xff]  ;;  %v19655_v3 = vld [vmem:[#allocation47_spill] sm:$0xff] }
 0x65e   :  { %v14754_v17 = vmul.f32 %v14506_v61, %v19654_v5  ;;  %v14758_v36 = vmul.f32 %v14506_v61, %v19655_v3  ;;  %v14762_v8 = vmul.f32 %v14506_v61, %v19656_v23  ;;  %v14766_v43 = vmul.f32 %v14506_v61, %v19658_v13  ;;  %7424 = vmatpush1.bf16.msra.mxu1 %v12142_v37  ;;  %v12145_v13 = vld [vmem:[#allocation9 + $0x200] sm:$0xff]   ;;  %v19662_v23 = vld [vmem:[#allocation32_spill] sm:$0xff] }
 0x65f   :  { %19651 = vst [vmem:[#allocation48_spill] sm:$0xff] %v14746_v60  ;;  %19653 = vst [vmem:[#allocation50_spill] sm:$0xff] %v14750_v31  ;;  %v19659_v60 = vld [vmem:[#allocation54_spill] sm:$0xff]  ;;  %v19660_v31 = vld [vmem:[#allocation55_spill] sm:$0xff]  ;;  %v14778_v3 = vmul.f32 %v14506_v61, %v14228_v55  ;;  %7425 = vmatprep.subr.bf16.mxu1 %v19622_v44  ;;  %v14788_v37 = vadd.f32 %v14534_v29, %v14519_v56  ;;  %v14796_v55 = vadd.f32 %v14534_v29, %v14527_v59 }
 0x660   :  { %19657 = vst [vmem:[#allocation52_spill] sm:$0xff] %v14762_v8  ;;  %v14770_v46 = vmul.f32 %v14506_v61, %v19659_v60  ;;  %v14774_v5 = vmul.f32 %v14506_v61, %v19660_v31  ;;  %v14783_v8 = vadd.f32 %v14534_v29, %v14514_v4  ;;  %v14792_v60 = vadd.f32 %v14534_v29, %v14523_v42  ;;  %v12143_v4 = vld [vmem:[#allocation9 + $0x48] sm:$0xff]  }
 0x661   :  { %v14800_v61 = vadd.f32 %v14534_v29, %v14531_v39  ;;  %v14804_v31 = vadd.f32 %v14534_v29, %v14538_v16  ;;  %v14808_v56 = vadd.f32 %v14534_v29, %v14542_v18  ;;  %v14812_v42 = vadd.f32 %v14534_v29, %v14546_v54  ;;  %11036 = vmatprep.subr.bf16.mxu0 %v12145_v13 }
 0x662   :  { %19661 = vst [vmem:[#allocation53_spill] sm:$0xff] %v14792_v60  ;;  %v14816_v59 = vadd.f32 %v14534_v29, %v14550_v50  ;;  %v14820_v39 = vadd.f32 %v14534_v29, %v14554_v49  ;;  %v14824_v16 = vadd.f32 %v14534_v29, %v14558_v24  ;;  %v14828_v18 = vadd.f32 %v14534_v29, %v14562_v21 }
 0x663   :  { %v14832_v54 = vadd.f32 %v14534_v29, %v14568_v19  ;;  %7426 = vmatpush1.bf16.msra.mxu1 %v12143_v4  ;;  %v14836_v50 = vadd.f32 %v14534_v29, %v14572_v1  ;;  %v14840_v49 = vadd.f32 %v14534_v29, %v14577_v2  ;;  %v14844_v24 = vadd.f32 %v14534_v29, %v14581_v27  ;;  %v12147_v19 = vld [vmem:[#allocation9 + $0x208] sm:$0xff]  }
 0x664   :  { %v14848_v21 = vadd.f32 %v14534_v29, %v19662_v23  ;;  %7427 = vmatprep.subr.bf16.mxu1 %v19622_v44  ;;  %v14853_v4 = vadd.f32 %v14534_v29, %v14589_v53  ;;  %v14857_v1 = vadd.f32 %v14534_v29, %v14593_v33  ;;  %v14861_v2 = vadd.f32 %v14534_v29, %v14597_v62  ;;  %v12144_v23 = vld [vmem:[#allocation9 + $0x50] sm:$0xff]  }
 0x665   :  { %v14865_v27 = vadd.f32 %v14534_v29, %v14601_v34  ;;  %11037 = vmatpush3.bf16.msra.mxu0 %v12145_v13  ;;  %v14869_v20 = vadd.f32 %v14534_v29, %v14605_v14  ;;  %v14873_v53 = vadd.f32 %v14534_v29, %v14609_v32  ;;  %v14877_v33 = vadd.f32 %v14534_v29, %v14613_v25  ;;  %v19668_v34 = vld [vmem:[#allocation36_spill] sm:$0xff] }
 0x666   :  { %19663 = vst [vmem:[#allocation63_spill] sm:$0xff] %v14857_v1  ;;  %19664 = vst [vmem:[#allocation61_spill] sm:$0xff] %v14861_v2  ;;  %v14881_v62 = vadd.f32 %v14534_v29, %v14619_v47  ;;  %11038 = vmatprep.subr.bf16.mxu0 %v12147_v19  ;;  %v14885_v13 = vadd.f32 %v14534_v29, %v19668_v34  ;;  %v14889_v14 = vadd.f32 %v14534_v29, %v14628_v41  ;;  %v19670_v47 = vld [vmem:[#allocation38_spill] sm:$0xff]  ;;  %v12156_v1 = vld [vmem:[#allocation9 + $0x230] sm:$0xff]  }
 0x667   :  { %19665 = vst [vmem:[#allocation21_spill] sm:$0xff] %v14873_v53  ;;  %19666 = vst [vmem:[#allocation20_spill] sm:$0xff] %v14877_v33  ;;  %v14893_v32 = vadd.f32 %v14534_v29, %v14632_v11  ;;  %v14897_v25 = vadd.f32 %v14534_v29, %v14636_v10  ;;  %7428 = vmatpush1.bf16.msra.mxu1 %v12144_v23  ;;  %v14905_v34 = vadd.f32 %v14534_v29, %v14645_v51  ;;  %v12148_v10 = vld [vmem:[#allocation9 + $0x210] sm:$0xff]   ;;  %v19673_v23 = vld [vmem:[#allocation40_spill] sm:$0xff] }
 0x668   :  { %19667 = vst [vmem:[#allocation23_spill] sm:$0xff] %v14881_v62  ;;  %v14901_v62 = vadd.f32 %v14534_v29, %v19670_v47  ;;  %v14909_v41 = vadd.f32 %v14534_v29, %v14649_v48  ;;  %v14913_v11 = vadd.f32 %v14534_v29, %v14653_v63  ;;  %7429 = vmatprep.subr.bf16.mxu1 %v19622_v44  ;;  %v19674_v48 = vld [vmem:[#allocation44_spill] sm:$0xff] }
 0x669   :  { %19669 = vst [vmem:[#allocation65_spill] sm:$0xff] %v14897_v25  ;;  %v14918_v25 = vadd.f32 %v14534_v29, %v19673_v23  ;;  %v14922_v47 = vadd.f32 %v14534_v29, %v14661_v40  ;;  %v14926_v51 = vadd.f32 %v14534_v29, %v14667_v15  ;;  %v12146_v63 = vld [vmem:[#allocation9 + $0x58] sm:$0xff]   ;;  %11039 = vmatpush3.bf16.msra.mxu0 %v12147_v19 }
 0x66a   :  { %19671 = vst [vmem:[#allocation29_spill] sm:$0xff] %v14909_v41  ;;  %19672 = vst [vmem:[#allocation22_spill] sm:$0xff] %v14913_v11  ;;  %v14930_v41 = vadd.f32 %v14534_v29, %v19674_v48  ;;  %v14934_v11 = vadd.f32 %v14534_v29, %v14676_v35  ;;  %v14938_v23 = vadd.f32 %v14534_v29, %v14680_v0  ;;  %11040 = vmatprep.subr.bf16.mxu0 %v12148_v10  ;;  %v19677_v48 = vld [vmem:[#allocation46_spill] sm:$0xff] }
 0x66b   :  { %v14942_v40 = vadd.f32 %v14534_v29, %v14684_v9  ;;  %v14946_v15 = vadd.f32 %v14534_v29, %v14688_v38  ;;  %v14950_v19 = vadd.f32 %v14534_v29, %v14693_v12  ;;  %v14954_v35 = vadd.f32 %v14534_v29, %v19677_v48  ;;  %7430 = vmatpush1.bf16.msra.mxu1 %v12146_v63 }
 0x66c   :  { %19675 = vst [vmem:[#allocation31_spill] sm:$0xff] %v14938_v23  ;;  %v14958_v0 = vadd.f32 %v14534_v29, %v14701_v22  ;;  %v14962_v9 = vadd.f32 %v14534_v29, %v14705_v45  ;;  %v14966_v38 = vadd.f32 %v14534_v29, %v14709_v26  ;;  %v14970_v12 = vadd.f32 %v14534_v29, %v14717_v30  ;;  %v12150_v45 = vld [vmem:[#allocation9 + $0x218] sm:$0xff]  }
 0x66d   :  { %19676 = vst [vmem:[#allocation33_spill] sm:$0xff] %v14942_v40  ;;  %v14974_v48 = vadd.f32 %v14534_v29, %v14721_v58  ;;  %v14978_v22 = vadd.f32 %v14534_v29, %v14726_v7  ;;  %7431 = vmatprep.subr.bf16.mxu1 %v19622_v44  ;;  %v14983_v63 = vadd.f32 %v14534_v29, %v14730_v57  ;;  %v12149_v7 = vld [vmem:[#allocation9 + $0x60] sm:$0xff]   ;;  %v19683_v57 = vld [vmem:[#allocation50_spill] sm:$0xff] }
 0x66e   :  { %v14987_v26 = vadd.f32 %v14534_v29, %v14734_v6  ;;  %v14991_v30 = vadd.f32 %v14534_v29, %v14738_v52  ;;  %v14995_v58 = vadd.f32 %v14534_v29, %v14742_v28  ;;  %11041 = vmatpush3.bf16.msra.mxu0 %v12148_v10  ;;  %v15007_v6 = vadd.f32 %v14534_v29, %v14754_v17  ;;  %v19684_v28 = vld [vmem:[#allocation52_spill] sm:$0xff] }
 0x66f   :  { %19678 = vst [vmem:[#allocation35_spill] sm:$0xff] %v14974_v48  ;;  %19679 = vst [vmem:[#allocation37_spill] sm:$0xff] %v14978_v22  ;;  %v19682_v22 = vld [vmem:[#allocation48_spill] sm:$0xff]  ;;  %v15011_v52 = vadd.f32 %v14534_v29, %v14758_v36  ;;  %11042 = vmatprep.subr.bf16.mxu0 %v12150_v45  ;;  %v15015_v10 = vadd.f32 %v14534_v29, %v19684_v28  ;;  %v15027_v17 = vadd.f32 %v14534_v29, %v14774_v5 }
 0x670   :  { %19680 = vst [vmem:[#allocation56_spill] sm:$0xff] %v14983_v63  ;;  %19681 = vst [vmem:[#allocation57_spill] sm:$0xff] %v14987_v26  ;;  %v14999_v48 = vadd.f32 %v14534_v29, %v19682_v22  ;;  %v15003_v63 = vadd.f32 %v14534_v29, %v19683_v57  ;;  %v15019_v22 = vadd.f32 %v14534_v29, %v14766_v43  ;;  %7432 = vmatpush1.bf16.msra.mxu1 %v12149_v7  ;;  %v12154_v43 = vld [vmem:[#allocation9 + $0x228] sm:$0xff]   ;;  %v19689_v2 = vld [vmem:[#allocation65_spill] sm:$0xff] }
 0x671   :  { %19685 = vst [vmem:[#allocation58_spill] sm:$0xff] %v15015_v10  ;;  %v15023_v57 = vadd.f32 %v14534_v29, %v14770_v46  ;;  %v15031_v36 = vadd.f32 %v14534_v29, %v14778_v3  ;;  %7433 = vmatprep.subr.bf16.mxu1 %v19622_v44  ;;  %v12151_v29 = vld [vmem:[#allocation9 + $0x68] sm:$0xff]   ;;  %v19688_v3 = vld [vmem:[#allocation23_spill] sm:$0xff]  ;;  %v19690_v53 = vld [vmem:[#allocation29_spill] sm:$0xff]  ;;  %v19698_v46 = vmax.f32 %v14783_v8, 0.0  ;;  %v19702_v26 = vmax.f32 %v14796_v55, 0.0 }
 0x672   :  { %19686 = vst [vmem:[#allocation59_spill] sm:$0xff] %v15019_v22  ;;  %v12152_v22 = vld [vmem:[#allocation9 + $0x220] sm:$0xff]   ;;  %11043 = vmatpush3.bf16.msra.mxu0 %v12150_v45  ;;  %v19691_v33 = vld [vmem:[#allocation22_spill] sm:$0xff]  ;;  %v12159_v28 = vld [vmem:[#allocation9 + $0x238] sm:$0xff]   ;;  %v19700_v45 = vmov %v14792_v60  ;;  %v19703_v8 = vmax.f32 %v14800_v61, 0.0  ;;  %v19706_v55 = vmax.f32 %v14812_v42, 0.0 }
 0x673   :  { %19687 = vst [vmem:[#allocation62_spill] sm:$0xff] %v15023_v57  ;;  %11044 = vmatprep.subr.bf16.mxu0 %v12152_v22  ;;  %v19707_v61 = vmax.f32 %v14816_v59, 0.0  ;;  %v19710_v42 = vmax.f32 %v14828_v18, 0.0  ;;  %v19711_v59 = vmax.f32 %v14832_v54, 0.0  ;;  %v19714_v18 = vmax.f32 %v14844_v24, 0.0  ;;  %v19721_v60 = vld [vmem:[#allocation61_spill] sm:$0xff] }
 0x674   :  { %7434 = vmatpush1.bf16.msra.mxu1 %v12151_v29  ;;  %v12153_v29 = vld [vmem:[#allocation9 + $0x70] sm:$0xff]   ;;  %v19715_v54 = vmax.f32 %v14848_v21, 0.0  ;;  %v19722_v24 = vmax.f32 %v19721_v60, 0.0  ;;  %v19723_v21 = vmax.f32 %v14865_v27, 0.0  ;;  %v19729_v27 = vmax.f32 %v19688_v3, 0.0 }
 0x675   :  { %7435 = vmatprep.subr.bf16.mxu1 %v19622_v44  ;;  %v19733_v3 = vmax.f32 %v19689_v2, 0.0  ;;  %v19737_v2 = vmax.f32 %v19691_v33, 0.0  ;;  %v19743_v33 = vmax.f32 %v14930_v41, 0.0  ;;  %v19749_v41 = vmax.f32 %v14946_v15, 0.0 }
 0x676   :  { %11045 = vmatpush3.bf16.msra.mxu0 %v12152_v22  ;;  %v12155_v22 = vld [vmem:[#allocation9 + $0x78] sm:$0xff]   ;;  %v19692_v5 = vld [vmem:[#allocation35_spill] sm:$0xff]  ;;  %v19693_v23 = vld [vmem:[#allocation37_spill] sm:$0xff]  ;;  %v19753_v15 = vmax.f32 %v14962_v9, 0.0 }
 0x677   :  { %11046 = vmatprep.subr.bf16.mxu0 %v12154_v43  ;;  %v19759_v9 = vmax.f32 %v19693_v23, 0.0  ;;  %v19765_v23 = vmax.f32 %v14995_v58, 0.0  ;;  %v19773_v58 = vmax.f32 %v15011_v52, 0.0  ;;  %v19781_v52 = vmax.f32 %v15027_v17, 0.0 }
 0x678   :  { %7436 = vmatpush1.bf16.msra.mxu1 %v12153_v29 }
 0x679   :  { %7437 = vmatprep.subr.bf16.mxu1 %v19622_v44  ;;  %v19696_v40 = vld [vmem:[#allocation59_spill] sm:$0xff] }
 0x67a   :  { %11047 = vmatpush3.bf16.msra.mxu0 %v12154_v43  ;;  %v19695_v43 = vmov %v15015_v10  ;;  %v15117_v10 = vpack.c.bf16 %v19702_v26, %v19702_v26  ;;  %v15137_v26 = vpack.c.bf16 %v19706_v55, %v19706_v55  ;;  %v15157_v55 = vpack.c.bf16 %v19710_v42, %v19710_v42 }
 0x67b   :  { %11048 = vmatprep.subr.bf16.mxu0 %v12156_v1  ;;  %v15182_v42 = vpack.c.bf16 %v19715_v54, %v19715_v54  ;;  %v15202_v54 = vpack.c.bf16 %v19723_v21, %v19723_v21  ;;  %v15222_v21 = vpack.c.bf16 %v19729_v27, %v19729_v27  ;;  %v15242_v27 = vpack.c.bf16 %v19733_v3, %v19733_v3 }
 0x67c   :  { %7438 = vmatpush1.bf16.msra.mxu1 %v12155_v22  ;;  %v19701_v22 = vmax.f32 %v19700_v45, 0.0  ;;  %v19705_v45 = vmax.f32 %v14808_v56, 0.0  ;;  %v19709_v56 = vmax.f32 %v14824_v16, 0.0  ;;  %v19713_v16 = vmax.f32 %v14840_v49, 0.0 }
 0x67d   :  { %7696 = vmatprep.subr.bf16.mxu1 %v19622_v44  ;;  %v19697_v44 = vmov %v15023_v57  ;;  %v15102_v57 = vpack.c.bf16 %v19698_v46, %v19698_v46  ;;  %v15122_v46 = vpack.c.bf16 %v19703_v8, %v19703_v8  ;;  %v15142_v8 = vpack.c.bf16 %v19707_v61, %v19707_v61 }
 0x67e   :  { %11049 = vmatpush3.bf16.msra.mxu0 %v12156_v1  ;;  %v19699_v1 = vmax.f32 %v14788_v37, 0.0  ;;  %v15112_v7 = vpack.c.bf16 %v19701_v22, %v19701_v22  ;;  %v19704_v37 = vmax.f32 %v14804_v31, 0.0  ;;  %v15132_v22 = vpack.c.bf16 %v19705_v45, %v19705_v45 }
 0x67f   :  { %11050 = vmatprep.subr.bf16.mxu0 %v12159_v28  ;;  %v19708_v31 = vmax.f32 %v14820_v39, 0.0  ;;  %v15152_v45 = vpack.c.bf16 %v19709_v56, %v19709_v56  ;;  %v15162_v61 = vpack.c.bf16 %v19711_v59, %v19711_v59  ;;  %v19712_v39 = vmax.f32 %v14836_v50, 0.0 }
 0x680   :  { %v15107_v29 = vpack.c.bf16 %v19699_v1, %v19699_v1  ;;  %v15127_v1 = vpack.c.bf16 %v19704_v37, %v19704_v37  ;;  %v15177_v56 = vpack.c.bf16 %v19714_v18, %v19714_v18  ;;  %v19716_v50 = vmax.f32 %v14853_v4, 0.0 }
 0x681   :  { %v15147_v37 = vpack.c.bf16 %v19708_v31, %v19708_v31  ;;  %v15172_v31 = vpack.c.bf16 %v19713_v16, %v19713_v16  ;;  %v15197_v18 = vpack.c.bf16 %v19722_v24, %v19722_v24  ;;  %v19724_v4 = vmax.f32 %v14869_v20, 0.0 }
 0x682   :  { %11051 = vmatpush3.bf16.msra.mxu0 %v12159_v28  ;;  %v15167_v28 = vpack.c.bf16 %v19712_v39, %v19712_v39  ;;  %v15187_v59 = vpack.c.bf16 %v19716_v50, %v19716_v50  ;;  %v19718_v39 = vld [vmem:[#allocation63_spill] sm:$0xff]  ;;  %v19730_v20 = vmax.f32 %v14885_v13, 0.0  ;;  %v19734_v13 = vmax.f32 %v14901_v62, 0.0 }
 0x683   :  { %v19719_v49 = vmax.f32 %v19718_v39, 0.0  ;;  %v15207_v50 = vpack.c.bf16 %v19724_v4, %v19724_v4  ;;  %v15262_v3 = vpack.c.bf16 %v19737_v2, %v19737_v2  ;;  %v19738_v62 = vmax.f32 %v14918_v25, 0.0 }
 0x684   :  { %19717 = vst [vmem:[#allocation24_spill] sm:$0xff] %v15187_v59  ;;  %v19725_v59 = vld [vmem:[#allocation21_spill] sm:$0xff]  ;;  %v15227_v4 = vpack.c.bf16 %v19730_v20, %v19730_v20  ;;  %v15247_v20 = vpack.c.bf16 %v19734_v13, %v19734_v13  ;;  %v15282_v2 = vpack.c.bf16 %v19743_v33, %v19743_v33  ;;  %v19744_v25 = vmax.f32 %v14934_v11, 0.0 }
 0x685   :  { %v15192_v16 = vpack.c.bf16 %v19719_v49, %v19719_v49  ;;  %v19726_v39 = vmax.f32 %v19725_v59, 0.0  ;;  %v19731_v59 = vmax.f32 %v14889_v14, 0.0  ;;  %v19735_v14 = vmax.f32 %v14905_v34, 0.0 }
 0x686   :  { %v15267_v13 = vpack.c.bf16 %v19738_v62, %v19738_v62  ;;  %v19740_v34 = vmax.f32 %v14922_v47, 0.0  ;;  %v15287_v62 = vpack.c.bf16 %v19744_v25, %v19744_v25  ;;  %v15302_v33 = vpack.c.bf16 %v19749_v41, %v19749_v41 }
 0x687   :  { %19720 = vst [vmem:[#allocation60_spill] sm:$0xff] %v15192_v16  ;;  %v15212_v49 = vpack.c.bf16 %v19726_v39, %v19726_v39  ;;  %v19727_v16 = vld [vmem:[#allocation20_spill] sm:$0xff]  ;;  %v15232_v39 = vpack.c.bf16 %v19731_v59, %v19731_v59  ;;  %v15252_v59 = vpack.c.bf16 %v19735_v14, %v19735_v14  ;;  %v19750_v11 = vmax.f32 %v14950_v19, 0.0 }
 0x688   :  { %v19728_v60 = vmax.f32 %v19727_v16, 0.0  ;;  %v19732_v16 = vmax.f32 %v14893_v32, 0.0  ;;  %v19736_v32 = vmax.f32 %v19690_v53, 0.0  ;;  %19739 = vst [vmem:[#allocation64_spill] sm:$0xff] %v15267_v13  ;;  %v15272_v14 = vpack.c.bf16 %v19740_v34, %v19740_v34  ;;  %v19745_v13 = vld [vmem:[#allocation31_spill] sm:$0xff] }
 0x689   :  { %v19742_v53 = vmax.f32 %v14926_v51, 0.0  ;;  %v19746_v47 = vmax.f32 %v19745_v13, 0.0  ;;  %v15307_v25 = vpack.c.bf16 %v19750_v11, %v19750_v11  ;;  %v19751_v13 = vmax.f32 %v14954_v35, 0.0 }
 0x68a   :  { %v15217_v24 = vpack.c.bf16 %v19728_v60, %v19728_v60  ;;  %v15237_v60 = vpack.c.bf16 %v19732_v16, %v19732_v16  ;;  %v15257_v16 = vpack.c.bf16 %v19736_v32, %v19736_v32  ;;  %19741 = vst [vmem:[#allocation25_spill] sm:$0xff] %v15272_v14  ;;  %v19747_v14 = vld [vmem:[#allocation33_spill] sm:$0xff]  ;;  %v15322_v41 = vpack.c.bf16 %v19753_v15, %v19753_v15 }
 0x68b   :  { %v15277_v32 = vpack.c.bf16 %v19742_v53, %v19742_v53  ;;  %v15292_v34 = vpack.c.bf16 %v19746_v47, %v19746_v47  ;;  %v19748_v51 = vmax.f32 %v19747_v14, 0.0  ;;  %v15312_v47 = vpack.c.bf16 %v19751_v13, %v19751_v13 }
 0x68c   :  { %v19752_v14 = vmax.f32 %v14958_v0, 0.0  ;;  %19754 = vst [vmem:[#allocation26_spill] sm:$0xff] %v15322_v41  ;;  %v19755_v19 = vmax.f32 %v14966_v38, 0.0  ;;  %v19757_v35 = vmax.f32 %v14970_v12, 0.0  ;;  %v19758_v0 = vmax.f32 %v19692_v5, 0.0  ;;  %v19760_v41 = vld [vmem:[#allocation56_spill] sm:$0xff] }
 0x68d   :  { %v15297_v53 = vpack.c.bf16 %v19748_v51, %v19748_v51  ;;  %v15342_v15 = vpack.c.bf16 %v19759_v9, %v19759_v9  ;;  %v19761_v38 = vmax.f32 %v19760_v41, 0.0  ;;  %v19764_v5 = vmax.f32 %v14991_v30, 0.0 }
 0x68e   :  { %v15317_v51 = vpack.c.bf16 %v19752_v14, %v19752_v14  ;;  %v15327_v11 = vpack.c.bf16 %v19755_v19, %v19755_v19  ;;  %v15332_v13 = vpack.c.bf16 %v19757_v35, %v19757_v35  ;;  %v15337_v14 = vpack.c.bf16 %v19758_v0, %v19758_v0 }
 0x68f   :  { %v15347_v19 = vpack.c.bf16 %v19761_v38, %v19761_v38  ;;  %v15357_v0 = vpack.c.bf16 %v19764_v5, %v19764_v5  ;;  %v15362_v9 = vpack.c.bf16 %v19765_v23, %v19765_v23  ;;  %v19767_v41 = vmax.f32 %v14999_v48, 0.0 }
 0x690   :  { %19756 = vst [vmem:[#allocation66_spill] sm:$0xff] %v15327_v11  ;;  %v19762_v11 = vld [vmem:[#allocation57_spill] sm:$0xff]  ;;  %v19771_v30 = vmax.f32 %v15007_v6, 0.0  ;;  %v15382_v23 = vpack.c.bf16 %v19773_v58, %v19773_v58  ;;  %v19775_v48 = vmax.f32 %v19695_v43, 0.0  ;;  %v19779_v6 = vmax.f32 %v19697_v44, 0.0 }
 0x691   :  { %v19763_v12 = vmax.f32 %v19762_v11, 0.0  ;;  %19766 = vst [vmem:[#allocation67_spill] sm:$0xff] %v15362_v9  ;;  %v15367_v38 = vpack.c.bf16 %v19767_v41, %v19767_v41  ;;  %v19769_v11 = vmax.f32 %v15003_v63, 0.0  ;;  %v19777_v63 = vmax.f32 %v19696_v40, 0.0 }
 0x692   :  { %v15377_v5 = vpack.c.bf16 %v19771_v30, %v19771_v30  ;;  %19774 = vst [vmem:[#allocation39_spill] sm:$0xff] %v15382_v23  ;;  %v15387_v41 = vpack.c.bf16 %v19775_v48, %v19775_v48  ;;  %v15397_v30 = vpack.c.bf16 %v19779_v6, %v19779_v6  ;;  %v15402_v58 = vpack.c.bf16 %v19781_v52, %v19781_v52 }
 0x693   :  { %v15352_v35 = vpack.c.bf16 %v19763_v12, %v19763_v12  ;;  %19768 = vst [vmem:[#allocation68_spill] sm:$0xff] %v15367_v38  ;;  %v15372_v12 = vpack.c.bf16 %v19769_v11, %v19769_v11  ;;  %v15392_v11 = vpack.c.bf16 %v19777_v63, %v19777_v63  ;;  %v19783_v43 = vmax.f32 %v15031_v36, 0.0 }
 0x694   :  { %19772 = vst [vmem:[#allocation30_spill] sm:$0xff] %v15377_v5  ;;  %19776 = vst [vmem:[#allocation41_spill] sm:$0xff] %v15387_v41  ;;  %v4923_v40 = vshrl.u32 %v15102_v57, 16  ;;  %v4926_v63 = vshll.u32 %v15102_v57, 16  ;;  %v4934_v44 = vshll.u32 %v15107_v29, 16  ;;  %v4940_v6 = vshrl.u32 %v15112_v7, 16 }
 0x695   :  { %19770 = vst [vmem:[#allocation27_spill] sm:$0xff] %v15372_v12  ;;  %19778 = vst [vmem:[#allocation43_spill] sm:$0xff] %v15392_v11  ;;  %v15407_v48 = vpack.c.bf16 %v19783_v43, %v19783_v43  ;;  %v4931_v11 = vshrl.u32 %v15107_v29, 16  ;;  %v4943_v17 = vshll.u32 %v15112_v7, 16  ;;  %v4948_v52 = vshrl.u32 %v15117_v10, 16 }
 0x696   :  { %19780 = vst [vmem:[#allocation45_spill] sm:$0xff] %v15397_v30  ;;  %19782 = vst [vmem:[#allocation47_spill] sm:$0xff] %v15402_v58  ;;  %v4925_v58 = vrot.slane %v4923_v40, 7  ;;  %v4951_v36 = vshll.u32 %v15117_v10, 16  ;;  %v4957_v43 = vshrl.u32 %v15122_v46, 16  ;;  %v4960_v57 = vshll.u32 %v15122_v46, 16 }
 0x697   :  { %19784 = vst [vmem:[#allocation49_spill] sm:$0xff] %v15407_v48  ;;  %v15416_v30 = vrot.slane %v4931_v11, 7  ;;  %v4942_v48 = vrot.slane %v4940_v6, 7  ;;  %v15420_v41 = vrot.slane %v4948_v52, 7  ;;  %v4965_v29 = vshrl.u32 %v15127_v1, 16 }
 0x698   :  { %v15424_v23 = vor.u32 %v4926_v63, %v4925_v58  ;;  %v4929_v5 = vrot.slane %v4925_v58, 4  ;;  %v4959_v46 = vrot.slane %v4957_v43, 7  ;;  %v4968_v63 = vshll.u32 %v15127_v1, 16  ;;  %v15858_v52 = vld [vmem:[#allocation3 + $0xf0] sm:$0xf] }
 0x699   :  { %v4936_v7 = vor.u32 %v4934_v44, %v15416_v30  ;;  %v15428_v11 = vor.u32 %v4943_v17, %v4942_v48  ;;  %v4946_v12 = vrot.slane %v4942_v48, 4  ;;  %v4953_v10 = vor.u32 %v4951_v36, %v15420_v41 }
 0x69a   :  { %v15434_v9 = vrot.slane %v4965_v29, 7  ;;  %v4974_v44 = vshrl.u32 %v15132_v22, 16  ;;  %v4977_v17 = vshll.u32 %v15132_v22, 16  ;;  %v4982_v48 = vshrl.u32 %v15137_v26, 16 }
 0x69b   :  { %v4937_v38 = vsel %vm12907_vm6, %v4929_v5, %v4936_v7  ;;  %v4954_v58 = vsel %vm12907_vm6, %v4946_v12, %v4953_v10  ;;  %v15442_v36 = vor.u32 %v4960_v57, %v4959_v46  ;;  %v4963_v6 = vrot.slane %v4959_v46, 4 }
 0x69c   :  { %5566 = vst [vmem:[#allocation3 + $0x10] sm:$0xf] %v4937_v38  ;;  %v4970_v5 = vor.u32 %v4968_v63, %v15434_v9  ;;  %5573 = vst [vmem:[#allocation3 + $0x1c] sm:$0xf] %v4954_v58  ;;  %v4976_v29 = vrot.slane %v4974_v44, 7  ;;  %v15446_v1 = vrot.slane %v4982_v48, 7 }
 0x69d   :  { %v4985_v12 = vshll.u32 %v15137_v26, 16  ;;  %v4991_v7 = vshrl.u32 %v15142_v8, 16  ;;  %v4994_v38 = vshll.u32 %v15142_v8, 16  ;;  %v4999_v57 = vshrl.u32 %v15147_v37, 16 }
 0x69e   :  { %v4971_v22 = vsel %vm12907_vm6, %v4963_v6, %v4970_v5  ;;  %v5002_v10 = vshll.u32 %v15147_v37, 16  ;;  %v15455_v46 = vor.u32 %v4977_v17, %v4976_v29  ;;  %v4980_v63 = vrot.slane %v4976_v29, 4 }
 0x69f   :  { %v4987_v58 = vor.u32 %v4985_v12, %v15446_v1  ;;  %5580 = vst [vmem:[#allocation3 + $0x28] sm:$0xf] %v4971_v22  ;;  %v4993_v26 = vrot.slane %v4991_v7, 7  ;;  %v15459_v48 = vrot.slane %v4999_v57, 7  ;;  %v5008_v43 = vshrl.u32 %v15152_v45, 16  ;;  %v19789_v22 = vld [vmem:[#allocation60_spill] sm:$0xff] }
 0x6a0   :  { %v5011_v6 = vshll.u32 %v15152_v45, 16  ;;  %v5016_v37 = vshrl.u32 %v15157_v55, 16  ;;  %v5019_v17 = vshll.u32 %v15157_v55, 16  ;;  %v5025_v5 = vshrl.u32 %v15162_v61, 16 }
 0x6a1   :  { %v4988_v8 = vsel %vm12907_vm6, %v4980_v63, %v4987_v58  ;;  %v15468_v29 = vor.u32 %v4994_v38, %v4993_v26  ;;  %v4997_v12 = vrot.slane %v4993_v26, 4  ;;  %v5004_v7 = vor.u32 %v5002_v10, %v15459_v48 }
 0x6a2   :  { %5587 = vst [vmem:[#allocation3 + $0x34] sm:$0xf] %v4988_v8  ;;  %v5010_v57 = vrot.slane %v5008_v43, 7  ;;  %v15472_v44 = vrot.slane %v5016_v37, 7  ;;  %v5027_v45 = vrot.slane %v5025_v5, 7  ;;  %v5028_v63 = vshll.u32 %v15162_v61, 16 }
 0x6a3   :  { %v5005_v58 = vsel %vm12907_vm6, %v4997_v12, %v5004_v7  ;;  %v5033_v55 = vshrl.u32 %v15167_v28, 16  ;;  %v5036_v38 = vshll.u32 %v15167_v28, 16  ;;  %v5042_v26 = vshrl.u32 %v15172_v31, 16 }
 0x6a4   :  { %v15480_v40 = vor.u32 %v5011_v6, %v5010_v57  ;;  %v5014_v10 = vrot.slane %v5010_v57, 4  ;;  %v5021_v8 = vor.u32 %v5019_v17, %v15472_v44  ;;  %5594 = vst [vmem:[#allocation3 + $0x40] sm:$0xf] %v5005_v58  ;;  %v15484_v37 = vor.u32 %v5028_v63, %v5027_v45 }
 0x6a5   :  { %v5031_v61 = vrot.slane %v5027_v45, 4  ;;  %v15486_v5 = vrot.slane %v5033_v55, 7  ;;  %v5044_v12 = vrot.slane %v5042_v26, 7  ;;  %v5045_v28 = vshll.u32 %v15172_v31, 16 }
 0x6a6   :  { %v5022_v7 = vsel %vm12907_vm6, %v5014_v10, %v5021_v8  ;;  %v5050_v6 = vshrl.u32 %v15177_v56, 16  ;;  %v5053_v57 = vshll.u32 %v15177_v56, 16  ;;  %v5059_v63 = vshrl.u32 %v15182_v42, 16  ;;  %v19788_v10 = vld [vmem:[#allocation24_spill] sm:$0xff] }
 0x6a7   :  { %19786 = vst [vmem:[#allocation51_spill] sm:$0xff] %v15486_v5  ;;  %v5038_v17 = vor.u32 %v5036_v38, %v15486_v5  ;;  %v5048_v58 = vrot.slane %v5044_v12, 4  ;;  %5601 = vst [vmem:[#allocation3 + $0x4c] sm:$0xf] %v5022_v7  ;;  %v15496_v45 = vor.u32 %v5045_v28, %v5044_v12  ;;  %v5062_v26 = vshll.u32 %v15182_v42, 16 }
 0x6a8   :  { %v15498_v55 = vrot.slane %v5050_v6, 7  ;;  %v5067_v31 = vshrl.u32 %v19788_v10, 16  ;;  %v5061_v56 = vrot.slane %v5059_v63, 7  ;;  %v5070_v38 = vshll.u32 %v19788_v10, 16 }
 0x6a9   :  { %19787 = vst [vmem:[#allocation54_spill] sm:$0xff] %v15496_v45  ;;  %v5039_v8 = vsel %vm12907_vm6, %v5031_v61, %v5038_v17  ;;  %v5076_v43 = vshrl.u32 %v19789_v22, 16  ;;  %v5079_v28 = vshll.u32 %v19789_v22, 16  ;;  %v5084_v61 = vshrl.u32 %v15197_v18, 16 }
 0x6aa   :  { %v5055_v5 = vor.u32 %v5053_v57, %v15498_v55  ;;  %v15508_v12 = vrot.slane %v5067_v31, 7  ;;  %5608 = vst [vmem:[#allocation3 + $0x58] sm:$0xf] %v5039_v8  ;;  %v15511_v42 = vor.u32 %v5062_v26, %v5061_v56  ;;  %v5065_v6 = vrot.slane %v5061_v56, 4  ;;  %v19791_v26 = vld [vmem:[#allocation42_spill] sm:$0xff] }
 0x6ab   :  { %v5078_v45 = vrot.slane %v5076_v43, 7  ;;  %v5087_v10 = vshll.u32 %v15197_v18, 16  ;;  %v15521_v22 = vrot.slane %v5084_v61, 7  ;;  %v19792_v8 = vld [vmem:[#allocation34_spill] sm:$0xff]  ;;  %v5118_v18 = vshrl.u32 %v15207_v50, 16 }
 0x6ac   :  { %v5056_v17 = vsel %vm12907_vm6, %v5048_v58, %v5055_v5  ;;  %v5072_v63 = vor.u32 %v5070_v38, %v15508_v12  ;;  %v19793_v56 = vshll.u32 %v19792_v8, 16  ;;  %v5110_v58 = vshrl.u32 %v15202_v54, 16 }
 0x6ad   :  { %v15519_v31 = vor.u32 %v5079_v28, %v5078_v45  ;;  %v5082_v7 = vrot.slane %v5078_v45, 4  ;;  %19790 = vst [vmem:[#allocation55_spill] sm:$0xff] %v15521_v22  ;;  %5615 = vst [vmem:[#allocation3 + $0x64] sm:$0xf] %v5056_v17  ;;  %v5113_v38 = vshll.u32 %v15202_v54, 16  ;;  %v5089_v28 = vor.u32 %v5087_v10, %v15521_v22 }
 0x6ae   :  { %v15526_v43 = vor.u32 %v19793_v56, %v19791_v26  ;;  %v5073_v5 = vsel %vm12907_vm6, %v5065_v6, %v5072_v63  ;;  %v5121_v61 = vshll.u32 %v15207_v50, 16  ;;  %v5127_v8 = vshrl.u32 %v15212_v49, 16 }
 0x6af   :  { %5622 = vst [vmem:[#allocation3 + $0x70] sm:$0xf] %v5073_v5  ;;  %v5112_v26 = vrot.slane %v5110_v58, 7  ;;  %v15537_v17 = vrot.slane %v5118_v18, 7  ;;  %v5130_v6 = vshll.u32 %v15212_v49, 16  ;;  %v5135_v63 = vshrl.u32 %v15217_v24, 16 }
 0x6b0   :  { %19794 = vst [vmem:[#allocation32_spill] sm:$0xff] %v15526_v43  ;;  %v5090_v54 = vsel %vm12907_vm6, %v5082_v7, %v5089_v28  ;;  %v5129_v56 = vrot.slane %v5127_v8, 7  ;;  %v5138_v10 = vshll.u32 %v15217_v24, 16  ;;  %v5144_v45 = vshrl.u32 %v15222_v21, 16 }
 0x6b1   :  { %v15545_v57 = vor.u32 %v5113_v38, %v5112_v26  ;;  %v5116_v50 = vrot.slane %v5112_v26, 4  ;;  %v5123_v5 = vor.u32 %v5121_v61, %v15537_v17  ;;  %5629 = vst [vmem:[#allocation3 + $0x7c] sm:$0xf] %v5090_v54  ;;  %v15551_v43 = vrot.slane %v5135_v63, 7 }
 0x6b2   :  { %v15549_v18 = vor.u32 %v5130_v6, %v5129_v56  ;;  %v5133_v49 = vrot.slane %v5129_v56, 4  ;;  %v5146_v22 = vrot.slane %v5144_v45, 7  ;;  %v5147_v24 = vshll.u32 %v15222_v21, 16 }
 0x6b3   :  { %v5124_v7 = vsel %vm12907_vm6, %v5116_v50, %v5123_v5  ;;  %v5152_v38 = vshrl.u32 %v15227_v4, 16  ;;  %v5155_v28 = vshll.u32 %v15227_v4, 16  ;;  %v5140_v61 = vor.u32 %v5138_v10, %v15551_v43 }
 0x6b4   :  { %v5150_v26 = vrot.slane %v5146_v22, 4  ;;  %v5161_v6 = vshrl.u32 %v15232_v39, 16  ;;  %5643 = vst [vmem:[#allocation3 + $0x94] sm:$0xf] %v5124_v7  ;;  %v15561_v63 = vor.u32 %v5147_v24, %v5146_v22  ;;  %v5164_v54 = vshll.u32 %v15232_v39, 16 }
 0x6b5   :  { %v15563_v45 = vrot.slane %v5152_v38, 7  ;;  %v5169_v21 = vshrl.u32 %v15237_v60, 16  ;;  %v5141_v56 = vsel %vm12907_vm6, %v5133_v49, %v5140_v61  ;;  %v5172_v10 = vshll.u32 %v15237_v60, 16 }
 0x6b6   :  { %v5163_v4 = vrot.slane %v5161_v6, 7  ;;  %v5178_v50 = vshrl.u32 %v15242_v27, 16  ;;  %v5181_v24 = vshll.u32 %v15242_v27, 16  ;;  %5650 = vst [vmem:[#allocation3 + $0xa0] sm:$0xf] %v5141_v56  ;;  %v5186_v49 = vshrl.u32 %v15247_v20, 16 }
 0x6b7   :  { %v5157_v5 = vor.u32 %v5155_v28, %v15563_v45  ;;  %v15573_v22 = vrot.slane %v5169_v21, 7  ;;  %v5189_v6 = vshll.u32 %v15247_v20, 16  ;;  %v5288_v20 = vshrl.u32 %v15307_v25, 16 }
 0x6b8   :  { %v15576_v39 = vor.u32 %v5164_v54, %v5163_v4  ;;  %v5167_v38 = vrot.slane %v5163_v4, 4  ;;  %v5180_v8 = vrot.slane %v5178_v50, 7  ;;  %v15586_v27 = vrot.slane %v5186_v49, 7 }
 0x6b9   :  { %v5158_v60 = vsel %vm12907_vm6, %v5150_v26, %v5157_v5  ;;  %v5174_v61 = vor.u32 %v5172_v10, %v15573_v22  ;;  %v5195_v54 = vshrl.u32 %v15252_v59, 16  ;;  %v5198_v4 = vshll.u32 %v15252_v59, 16 }
 0x6ba   :  { %v15584_v21 = vor.u32 %v5181_v24, %v5180_v8  ;;  %v5184_v7 = vrot.slane %v5180_v8, 4  ;;  %19795 = vst [vmem:[#allocation36_spill] sm:$0xff] %v15586_v27  ;;  %5657 = vst [vmem:[#allocation3 + $0xac] sm:$0xf] %v5158_v60  ;;  %v5203_v26 = vshrl.u32 %v15257_v16, 16  ;;  %v5206_v10 = vshll.u32 %v15257_v16, 16 }
 0x6bb   :  { %v5175_v56 = vsel %vm12907_vm6, %v5167_v38, %v5174_v61  ;;  %v5191_v50 = vor.u32 %v5189_v6, %v15586_v27  ;;  %v5197_v5 = vrot.slane %v5195_v54, 7  ;;  %v5212_v8 = vshrl.u32 %v15262_v3, 16  ;;  %v19796_v60 = vld [vmem:[#allocation64_spill] sm:$0xff] }
 0x6bc   :  { %5664 = vst [vmem:[#allocation3 + $0xb8] sm:$0xf] %v5175_v56  ;;  %v15597_v24 = vrot.slane %v5203_v26, 7  ;;  %v5215_v49 = vshll.u32 %v15262_v3, 16  ;;  %v5220_v38 = vshrl.u32 %v19796_v60, 16  ;;  %v5223_v59 = vshll.u32 %v19796_v60, 16 }
 0x6bd   :  { %v5192_v61 = vsel %vm12907_vm6, %v5184_v7, %v5191_v50  ;;  %v15604_v16 = vor.u32 %v5198_v4, %v5197_v5  ;;  %v5201_v6 = vrot.slane %v5197_v5, 4  ;;  %v5214_v28 = vrot.slane %v5212_v8, 7  ;;  %v19797_v26 = vld [vmem:[#allocation25_spill] sm:$0xff] }
 0x6be   :  { %v5208_v54 = vor.u32 %v5206_v10, %v15597_v24  ;;  %v15608_v56 = vrot.slane %v5220_v38, 7  ;;  %v5229_v58 = vshrl.u32 %v19797_v26, 16  ;;  %5671 = vst [vmem:[#allocation3 + $0xc4] sm:$0xf] %v5192_v61  ;;  %v5232_v60 = vshll.u32 %v19797_v26, 16 }
 0x6bf   :  { %v15611_v3 = vor.u32 %v5215_v49, %v5214_v28  ;;  %v5218_v27 = vrot.slane %v5214_v28, 4  ;;  %v5237_v7 = vshrl.u32 %v15277_v32, 16  ;;  %v5240_v38 = vshll.u32 %v15277_v32, 16 }
 0x6c0   :  { %v5209_v4 = vsel %vm12907_vm6, %v5201_v6, %v5208_v54  ;;  %v5225_v50 = vor.u32 %v5223_v59, %v15608_v56  ;;  %v5231_v5 = vrot.slane %v5229_v58, 7  ;;  %v5246_v49 = vshrl.u32 %v15282_v2, 16 }
 0x6c1   :  { %v15619_v8 = vrot.slane %v5237_v7, 7  ;;  %v5249_v28 = vshll.u32 %v15282_v2, 16  ;;  %5678 = vst [vmem:[#allocation3 + $0xe8] sm:$0xf] %v5209_v4  ;;  %v5254_v59 = vshrl.u32 %v15287_v62, 16  ;;  %v5257_v32 = vshll.u32 %v15287_v62, 16 }
 0x6c2   :  { %v5226_v61 = vsel %vm12907_vm6, %v5218_v27, %v5225_v50  ;;  %v15626_v26 = vor.u32 %v5232_v60, %v5231_v5  ;;  %v5235_v6 = vrot.slane %v5231_v5, 4  ;;  %v5248_v7 = vrot.slane %v5246_v49, 7 }
 0x6c3   :  { %19798 = vst [vmem:[#allocation38_spill] sm:$0xff] %v15619_v8  ;;  %v5242_v54 = vor.u32 %v5240_v38, %v15619_v8  ;;  %5685 = vst [vmem:[#allocation3 + $0xf4] sm:$0xf] %v5226_v61  ;;  %v15632_v10 = vrot.slane %v5254_v59, 7  ;;  %v5263_v2 = vshrl.u32 %v15292_v34, 16  ;;  %v5266_v4 = vshll.u32 %v15292_v34, 16 }
 0x6c4   :  { %v5271_v27 = vshrl.u32 %v15297_v53, 16  ;;  %v15639_v50 = vor.u32 %v5249_v28, %v5248_v7  ;;  %v5252_v5 = vrot.slane %v5248_v7, 4  ;;  %v5274_v38 = vshll.u32 %v15297_v53, 16 }
 0x6c5   :  { %19799 = vst [vmem:[#allocation40_spill] sm:$0xff] %v15632_v10  ;;  %v5243_v60 = vsel %vm12907_vm6, %v5235_v6, %v5242_v54  ;;  %v5259_v49 = vor.u32 %v5257_v32, %v15632_v10  ;;  %v5265_v61 = vrot.slane %v5263_v2, 7  ;;  %v5280_v34 = vshrl.u32 %v15302_v33, 16  ;;  %v15778_v10 = vld [vmem:[#allocation3 + $0x60] sm:$0xf] }
 0x6c6   :  { %19800 = vst [vmem:[#allocation44_spill] sm:$0xff] %v15639_v50  ;;  %v15644_v59 = vrot.slane %v5271_v27, 7  ;;  %5692 = vst [vmem:[#allocation3 + $0x100] sm:$0xf] %v5243_v60  ;;  %v5283_v58 = vshll.u32 %v15302_v33, 16  ;;  %v5291_v28 = vshll.u32 %v15307_v25, 16 }
 0x6c7   :  { %v5260_v6 = vsel %vm12907_vm6, %v5252_v5, %v5259_v49  ;;  %v15652_v53 = vor.u32 %v5266_v4, %v5265_v61  ;;  %v5269_v54 = vrot.slane %v5265_v61, 4  ;;  %v5282_v2 = vrot.slane %v5280_v34, 7 }
 0x6c8   :  { %19801 = vst [vmem:[#allocation46_spill] sm:$0xff] %v15644_v59  ;;  %v5276_v7 = vor.u32 %v5274_v38, %v15644_v59  ;;  %v15656_v27 = vrot.slane %v5288_v20, 7  ;;  %v5297_v60 = vshrl.u32 %v15312_v47, 16  ;;  %5699 = vst [vmem:[#allocation3 + $0x10c] sm:$0xf] %v5260_v6  ;;  %v5300_v25 = vshll.u32 %v15312_v47, 16 }
 0x6c9   :  { %19802 = vst [vmem:[#allocation48_spill] sm:$0xff] %v15652_v53  ;;  %v5305_v5 = vshrl.u32 %v15317_v51, 16  ;;  %v5308_v4 = vshll.u32 %v15317_v51, 16  ;;  %v15664_v49 = vor.u32 %v5283_v58, %v5282_v2  ;;  %v5286_v38 = vrot.slane %v5282_v2, 4  ;;  %v19806_v6 = vld [vmem:[#allocation26_spill] sm:$0xff] }
 0x6ca   :  { %19803 = vst [vmem:[#allocation50_spill] sm:$0xff] %v15656_v27  ;;  %v5277_v33 = vsel %vm12907_vm6, %v5269_v54, %v5276_v7  ;;  %v5293_v61 = vor.u32 %v5291_v28, %v15656_v27  ;;  %v5299_v34 = vrot.slane %v5297_v60, 7  ;;  %v5314_v62 = vshrl.u32 %v19806_v6, 16  ;;  %v19807_v7 = vld [vmem:[#allocation66_spill] sm:$0xff] }
 0x6cb   :  { %19804 = vst [vmem:[#allocation52_spill] sm:$0xff] %v15664_v49  ;;  %5706 = vst [vmem:[#allocation3 + $0x118] sm:$0xf] %v5277_v33  ;;  %v15668_v32 = vrot.slane %v5305_v5, 7  ;;  %v5317_v54 = vshll.u32 %v19806_v6, 16  ;;  %v5322_v51 = vshrl.u32 %v19807_v7, 16 }
 0x6cc   :  { %v5294_v47 = vsel %vm12907_vm6, %v5286_v38, %v5293_v61  ;;  %v5325_v58 = vshll.u32 %v19807_v7, 16  ;;  %v5331_v2 = vshrl.u32 %v15332_v13, 16  ;;  %v15677_v28 = vor.u32 %v5300_v25, %v5299_v34  ;;  %v5591_v49 = vld [vmem:[#allocation3 + $0x3c] sm:$0xf] }
 0x6cd   :  { %19805 = vst [vmem:[#allocation23_spill] sm:$0xff] %v15668_v32  ;;  %v5303_v20 = vrot.slane %v5299_v34, 4  ;;  %v5310_v60 = vor.u32 %v5308_v4, %v15668_v32  ;;  %5713 = vst [vmem:[#allocation3 + $0x124] sm:$0xf] %v5294_v47  ;;  %v5316_v5 = vrot.slane %v5314_v62, 7  ;;  %v15681_v27 = vrot.slane %v5322_v51, 7 }
 0x6ce   :  { %19808 = vst [vmem:[#allocation65_spill] sm:$0xff] %v15677_v28  ;;  %v5333_v6 = vrot.slane %v5331_v2, 7  ;;  %v5334_v38 = vshll.u32 %v15332_v13, 16  ;;  %v5339_v7 = vshrl.u32 %v15337_v14, 16  ;;  %v5342_v25 = vshll.u32 %v15337_v14, 16 }
 0x6cf   :  { %19809 = vst [vmem:[#allocation29_spill] sm:$0xff] %v15681_v27  ;;  %v5311_v61 = vsel %vm12907_vm6, %v5303_v20, %v5310_v60  ;;  %v5348_v34 = vshrl.u32 %v15342_v15, 16  ;;  %v15689_v28 = vor.u32 %v5317_v54, %v5316_v5  ;;  %v5320_v4 = vrot.slane %v5316_v5, 4  ;;  %v5588_v32 = vld [vmem:[#allocation3 + $0x38] sm:$0x1] }
 0x6d0   :  { %v5327_v47 = vor.u32 %v5325_v58, %v15681_v27  ;;  %5720 = vst [vmem:[#allocation3 + $0x130] sm:$0xf] %v5311_v61  ;;  %v15693_v51 = vor.u32 %v5334_v38, %v5333_v6  ;;  %v5337_v13 = vrot.slane %v5333_v6, 4  ;;  %v15695_v2 = vrot.slane %v5339_v7, 7 }
 0x6d1   :  { %19810 = vst [vmem:[#allocation22_spill] sm:$0xff] %v15689_v28  ;;  %v5350_v20 = vrot.slane %v5348_v34, 7  ;;  %v5351_v14 = vshll.u32 %v15342_v15, 16  ;;  %v5356_v54 = vshrl.u32 %v15347_v19, 16  ;;  %v5359_v5 = vshll.u32 %v15347_v19, 16 }
 0x6d2   :  { %19811 = vst [vmem:[#allocation35_spill] sm:$0xff] %v15693_v51  ;;  %19812 = vst [vmem:[#allocation37_spill] sm:$0xff] %v15695_v2  ;;  %v5328_v60 = vsel %vm12907_vm6, %v5320_v4, %v5327_v47  ;;  %v5344_v58 = vor.u32 %v5342_v25, %v15695_v2  ;;  %v5365_v38 = vshrl.u32 %v15352_v35, 16  ;;  %v5368_v34 = vshll.u32 %v15352_v35, 16  ;;  %v19815_v47 = vld [vmem:[#allocation67_spill] sm:$0xff]  ;;  %v19818_v2 = vld [vmem:[#allocation68_spill] sm:$0xff] }
 0x6d3   :  { %v5354_v61 = vrot.slane %v5350_v20, 4  ;;  %5727 = vst [vmem:[#allocation3 + $0x13c] sm:$0xf] %v5328_v60  ;;  %v15705_v6 = vor.u32 %v5351_v14, %v5350_v20  ;;  %v15707_v7 = vrot.slane %v5356_v54, 7  ;;  %v5373_v15 = vshrl.u32 %v15357_v0, 16 }
 0x6d4   :  { %v5345_v4 = vsel %vm12907_vm6, %v5337_v13, %v5344_v58  ;;  %v5367_v19 = vrot.slane %v5365_v38, 7  ;;  %v5376_v25 = vshll.u32 %v15357_v0, 16  ;;  %v5382_v62 = vshrl.u32 %v19815_v47, 16  ;;  %v5584_v28 = vld [vmem:[#allocation3 + $0x30] sm:$0xf] }
 0x6d5   :  { %19813 = vst [vmem:[#allocation58_spill] sm:$0xff] %v15705_v6  ;;  %19814 = vst [vmem:[#allocation59_spill] sm:$0xff] %v15707_v7  ;;  %v5361_v33 = vor.u32 %v5359_v5, %v15707_v7  ;;  %v15717_v20 = vrot.slane %v5373_v15, 7  ;;  %v5385_v14 = vshll.u32 %v19815_v47, 16  ;;  %v5390_v13 = vshrl.u32 %v19818_v2, 16 }
 0x6d6   :  { %5734 = vst [vmem:[#allocation3 + $0x148] sm:$0xf] %v5345_v4  ;;  %v15720_v35 = vor.u32 %v5368_v34, %v5367_v19  ;;  %v5371_v54 = vrot.slane %v5367_v19, 4  ;;  %v5384_v6 = vrot.slane %v5382_v62, 7  ;;  %v5393_v38 = vshll.u32 %v19818_v2, 16  ;;  %v19821_v34 = vld [vmem:[#allocation27_spill] sm:$0xff] }
 0x6d7   :  { %19816 = vst [vmem:[#allocation62_spill] sm:$0xff] %v15717_v20  ;;  %v5362_v0 = vsel %vm12907_vm6, %v5354_v61, %v5361_v33  ;;  %v5378_v58 = vor.u32 %v5376_v25, %v15717_v20  ;;  %v15730_v47 = vrot.slane %v5390_v13, 7  ;;  %v5399_v4 = vshrl.u32 %v19821_v34, 16  ;;  %v19822_v33 = vld [vmem:[#allocation30_spill] sm:$0xff]  ;;  %v19825_v20 = vld [vmem:[#allocation41_spill] sm:$0xff] }
 0x6d8   :  { %19817 = vst [vmem:[#allocation53_spill] sm:$0xff] %v15720_v35  ;;  %v15728_v15 = vor.u32 %v5385_v14, %v5384_v6  ;;  %v5388_v60 = vrot.slane %v5384_v6, 4  ;;  %5741 = vst [vmem:[#allocation3 + $0x154] sm:$0xf] %v5362_v0  ;;  %v5402_v19 = vshll.u32 %v19821_v34, 16  ;;  %v5407_v61 = vshrl.u32 %v19822_v33, 16 }
 0x6d9   :  { %19820 = vst [vmem:[#allocation61_spill] sm:$0xff] %v15730_v47  ;;  %v5379_v62 = vsel %vm12907_vm6, %v5371_v54, %v5378_v58  ;;  %v5410_v25 = vshll.u32 %v19822_v33, 16  ;;  %v5395_v5 = vor.u32 %v5393_v38, %v15730_v47  ;;  %v5401_v14 = vrot.slane %v5399_v4, 7  ;;  %v19823_v6 = vld [vmem:[#allocation39_spill] sm:$0xff]  ;;  %v5563_v7 = vld [vmem:[#allocation3 + $0xc] sm:$0xf] }
 0x6da   :  { %19819 = vst [vmem:[#allocation63_spill] sm:$0xff] %v15728_v15  ;;  %v5416_v13 = vshrl.u32 %v19823_v6, 16  ;;  %5748 = vst [vmem:[#allocation3 + $0x160] sm:$0xf] %v5379_v62  ;;  %v15741_v15 = vrot.slane %v5407_v61, 7  ;;  %v5419_v0 = vshll.u32 %v19823_v6, 16 }
 0x6db   :  { %v5424_v54 = vshrl.u32 %v19825_v20, 16  ;;  %v5427_v58 = vshll.u32 %v19825_v20, 16  ;;  %v5396_v34 = vsel %vm12907_vm6, %v5388_v60, %v5395_v5  ;;  %v15748_v33 = vor.u32 %v5402_v19, %v5401_v14  ;;  %v19828_v61 = vld [vmem:[#allocation43_spill] sm:$0xff]  ;;  %v5570_v6 = vld [vmem:[#allocation3 + $0x18] sm:$0xf]  ;;  %v19830_v5 = vld [vmem:[#allocation45_spill] sm:$0xff] }
 0x6dc   :  { %19824 = vst [vmem:[#allocation21_spill] sm:$0xff] %v15741_v15  ;;  %v5405_v38 = vrot.slane %v5401_v14, 4  ;;  %v5418_v35 = vrot.slane %v5416_v13, 7  ;;  %v5412_v4 = vor.u32 %v5410_v25, %v15741_v15  ;;  %v5433_v47 = vshrl.u32 %v19828_v61, 16  ;;  %5755 = vst [vmem:[#allocation3 + $0x16c] sm:$0xf] %v5396_v34 }
 0x6dd   :  { %19826 = vst [vmem:[#allocation20_spill] sm:$0xff] %v15748_v33  ;;  %v15752_v62 = vrot.slane %v5424_v54, 7  ;;  %v5436_v60 = vshll.u32 %v19828_v61, 16  ;;  %v5441_v19 = vshrl.u32 %v19830_v5, 16  ;;  %v5574_v14 = vld [vmem:[#allocation3 + $0x20] sm:$0x1] }
 0x6de   :  { %v15755_v51 = vor.u32 %v5419_v0, %v5418_v35  ;;  %v5422_v20 = vrot.slane %v5418_v35, 4  ;;  %v5567_v13 = vld [vmem:[#allocation3 + $0x14] sm:$0x1]  ;;  %v5413_v25 = vsel %vm12907_vm6, %v5405_v38, %v5412_v4  ;;  %v5435_v15 = vrot.slane %v5433_v47, 7  ;;  %v5577_v34 = vld [vmem:[#allocation3 + $0x24] sm:$0xf] }
 0x6df   :  { %19827 = vst [vmem:[#allocation31_spill] sm:$0xff] %v15752_v62  ;;  %v5429_v54 = vor.u32 %v5427_v58, %v15752_v62  ;;  %v5581_v33 = vld [vmem:[#allocation3 + $0x2c] sm:$0x1]  ;;  %v15763_v27 = vrot.slane %v5441_v19, 7  ;;  %v5444_v35 = vshll.u32 %v19830_v5, 16  ;;  %v19831_v0 = vld [vmem:[#allocation47_spill] sm:$0xff] }
 0x6e0   :  { %19829 = vst [vmem:[#allocation33_spill] sm:$0xff] %v15755_v51  ;;  %v5450_v61 = vshrl.u32 %v19831_v0, 16  ;;  %v5453_v51 = vshll.u32 %v19831_v0, 16  ;;  %5762 = vst [vmem:[#allocation3 + $0x178] sm:$0xf] %v5413_v25  ;;  %v15770_v38 = vor.u32 %v5436_v60, %v5435_v15  ;;  %v5439_v47 = vrot.slane %v5435_v15, 4 }
 0x6e1   :  { %v5430_v58 = vsel %vm12907_vm6, %v5422_v20, %v5429_v54  ;;  %v19833_v4 = vld [vmem:[#allocation49_spill] sm:$0xff]  ;;  %v15773_v19 = vld [vmem:[#allocation3 + $0x48] sm:$0xf]  ;;  %v5595_v5 = vld [vmem:[#allocation3 + $0x44] sm:$0x1]  ;;  %v5446_v59 = vor.u32 %v5444_v35, %v15763_v27  ;;  %v19835_v50 = vrot.slane %v15416_v30, 4 }
 0x6e2   :  { %19832 = vst [vmem:[#allocation56_spill] sm:$0xff] %v15770_v38  ;;  %v5458_v2 = vshrl.u32 %v19833_v4, 16  ;;  %v5602_v62 = vld [vmem:[#allocation3 + $0x50] sm:$0x1]  ;;  %v5452_v25 = vrot.slane %v5450_v61, 7  ;;  %v5461_v53 = vshll.u32 %v19833_v4, 16  ;;  %v5564_v38 = vsel %vm12913_vm7, %v15424_v23, %v5563_v7 }
 0x6e3   :  { %5769 = vst [vmem:[#allocation3 + $0x184] sm:$0xf] %v5430_v58  ;;  %v5605_v20 = vld [vmem:[#allocation3 + $0x54] sm:$0xf]  ;;  %v5616_v60 = vld [vmem:[#allocation3 + $0x68] sm:$0x1]  ;;  %v5568_v35 = vsel %vm12920_vm8, %v19835_v50, %v5567_v13  ;;  %v5571_v61 = vsel %vm12913_vm7, %v15428_v11, %v5570_v6  ;;  %v5447_v4 = vsel %vm12907_vm6, %v5439_v47, %v5446_v59  ;;  %v5578_v13 = vsel %vm12913_vm7, %v15442_v36, %v5577_v34 }
 0x6e4   :  { %v15780_v54 = vrot.slane %v5458_v2, 7  ;;  %v5609_v58 = vld [vmem:[#allocation3 + $0x5c] sm:$0x1]  ;;  %v15794_v0 = vor.u32 %v5453_v51, %v5452_v25  ;;  %v5456_v2 = vrot.slane %v5452_v25, 4  ;;  %5565 = vst [vmem:[#allocation3 + $0xc] sm:$0xf] %v5564_v38  ;;  %v5592_v34 = vsel %vm12913_vm7, %v15468_v29, %v5591_v49 }
 0x6e5   :  { %5569 = vst [vmem:[#allocation3 + $0x14] sm:$0x1] %v5568_v35  ;;  %5572 = vst [vmem:[#allocation3 + $0x18] sm:$0xf] %v5571_v61  ;;  %v19837_v23 = vrot.slane %v15420_v41, 4  ;;  %v19838_v41 = vrot.slane %v15434_v9, 4  ;;  %v5585_v9 = vsel %vm12913_vm7, %v15455_v46, %v5584_v28 }
 0x6e6   :  { %v15800_v50 = vld [vmem:[#allocation3 + $0x9c] sm:$0xf]  ;;  %v15802_v7 = vld [vmem:[#allocation3 + $0xa4] sm:$0x1]  ;;  %v15804_v11 = vld [vmem:[#allocation3 + $0x78] sm:$0xf]  ;;  %v5463_v59 = vor.u32 %v5461_v53, %v15780_v54 }
 0x6e7   :  { %v5575_v30 = vsel %vm12920_vm8, %v19837_v23, %v5574_v14  ;;  %v5619_v6 = vld [vmem:[#allocation3 + $0x6c] sm:$0xf]  ;;  %v5465_v51 = vrot.slane %v15780_v54, 4  ;;  %v5582_v14 = vsel %vm12920_vm8, %v19838_v41, %v5581_v33  ;;  %5776 = vst [vmem:[#allocation3 + $0x190] sm:$0xf] %v5447_v4  ;;  %v19839_v36 = vrot.slane %v15446_v1, 4 }
 0x6e8   :  { %5576 = vst [vmem:[#allocation3 + $0x20] sm:$0x1] %v5575_v30  ;;  %v15815_v38 = vld [vmem:[#allocation3 + $0xa8] sm:$0xf]  ;;  %v15817_v47 = vld [vmem:[#allocation3 + $0xb0] sm:$0x1] }
 0x6e9   :  { %v15819_v25 = vld [vmem:[#allocation3 + $0xb4] sm:$0xf]  ;;  %v15821_v53 = vld [vmem:[#allocation3 + $0xbc] sm:$0x1]  ;;  %v5630_v35 = vld [vmem:[#allocation3 + $0x80] sm:$0x1]  ;;  %v5589_v33 = vsel %vm12920_vm8, %v19839_v36, %v5588_v32  ;;  %v5464_v32 = vsel %vm12907_vm6, %v5456_v2, %v5463_v59 }
 0x6ea   :  { %v5623_v61 = vld [vmem:[#allocation3 + $0x74] sm:$0x1]  ;;  %v5633_v23 = vld [vmem:[#allocation3 + $0x84] sm:$0xf]  ;;  %5579 = vst [vmem:[#allocation3 + $0x24] sm:$0xf] %v5578_v13 }
 0x6eb   :  { %5583 = vst [vmem:[#allocation3 + $0x2c] sm:$0x1] %v5582_v14  ;;  %v19840_v4 = vrot.slane %v15459_v48, 4  ;;  %v15837_v13 = vld [vmem:[#allocation3 + $0xc0] sm:$0xf]  ;;  %v5599_v48 = vsel %vm12913_vm7, %v15480_v40, %v15773_v19  ;;  %v19841_v29 = vrot.slane %v15472_v44, 4 }
 0x6ec   :  { %v15839_v41 = vld [vmem:[#allocation3 + $0xc8] sm:$0x1]  ;;  %v15841_v14 = vld [vmem:[#allocation3 + $0xe4] sm:$0xf]  ;;  %v15843_v46 = vld [vmem:[#allocation3 + $0xec] sm:$0x1] }
 0x6ed   :  { %v5596_v30 = vsel %vm12920_vm8, %v19840_v4, %v5595_v5  ;;  %v5640_v1 = vld [vmem:[#allocation3 + $0x90] sm:$0xf]  ;;  %v5644_v28 = vld [vmem:[#allocation3 + $0x98] sm:$0x1]  ;;  %5586 = vst [vmem:[#allocation3 + $0x30] sm:$0xf] %v5585_v9  ;;  %v5603_v49 = vsel %vm12920_vm8, %v19841_v29, %v5602_v62  ;;  %v5606_v5 = vsel %vm12913_vm7, %v15484_v37, %v5605_v20 }
 0x6ee   :  { %5590 = vst [vmem:[#allocation3 + $0x38] sm:$0x1] %v5589_v33  ;;  %5593 = vst [vmem:[#allocation3 + $0x3c] sm:$0xf] %v5592_v34  ;;  %v15860_v2 = vld [vmem:[#allocation3 + $0xf8] sm:$0x1]  ;;  %v5620_v33 = vsel %vm12913_vm7, %v15511_v42, %v5619_v6  ;;  %v5627_v42 = vsel %vm12913_vm7, %v15519_v31, %v15804_v11  ;;  %v5641_v31 = vsel %vm12913_vm7, %v15545_v57, %v5640_v1 }
 0x6ef   :  { %5597 = vst [vmem:[#allocation3 + $0x44] sm:$0x1] %v5596_v30  ;;  %v15862_v59 = vld [vmem:[#allocation3 + $0xfc] sm:$0xf]  ;;  %v15864_v9 = vld [vmem:[#allocation3 + $0x104] sm:$0x1] }
 0x6f0   :  { %5600 = vst [vmem:[#allocation3 + $0x48] sm:$0xf] %v5599_v48  ;;  %5604 = vst [vmem:[#allocation3 + $0x50] sm:$0x1] %v5603_v49  ;;  %v19842_v40 = vld [vmem:[#allocation51_spill] sm:$0xff]  ;;  %v19844_v19 = vld [vmem:[#allocation54_spill] sm:$0xff] }
 0x6f1   :  { %5607 = vst [vmem:[#allocation3 + $0x54] sm:$0xf] %v5606_v5  ;;  %v19843_v44 = vrot.slane %v19842_v40, 4  ;;  %v5613_v37 = vsel %vm12913_vm7, %v19844_v19, %v15778_v10  ;;  %v19845_v20 = vrot.slane %v15498_v55, 4  ;;  %5783 = vst [vmem:[#allocation3 + $0x19c] sm:$0xf] %v5464_v32 }
 0x6f2   :  { %v15881_v34 = vld [vmem:[#allocation3 + $0x108] sm:$0xf]  ;;  %v15883_v4 = vld [vmem:[#allocation3 + $0x110] sm:$0x1]  ;;  %v15887_v30 = vld [vmem:[#allocation3 + $0x11c] sm:$0x1] }
 0x6f3   :  { %v5610_v62 = vsel %vm12920_vm8, %v19843_v44, %v5609_v58  ;;  %v5617_v36 = vsel %vm12920_vm8, %v19845_v20, %v5616_v60  ;;  %v15885_v58 = vld [vmem:[#allocation3 + $0x114] sm:$0xf]  ;;  %5614 = vst [vmem:[#allocation3 + $0x60] sm:$0xf] %v5613_v37  ;;  %5621 = vst [vmem:[#allocation3 + $0x6c] sm:$0xf] %v5620_v33 }
 0x6f4   :  { %5611 = vst [vmem:[#allocation3 + $0x5c] sm:$0x1] %v5610_v62  ;;  %5618 = vst [vmem:[#allocation3 + $0x68] sm:$0x1] %v5617_v36  ;;  %v19846_v55 = vrot.slane %v15508_v12, 4  ;;  %v19847_v60 = vld [vmem:[#allocation55_spill] sm:$0xff] }
 0x6f5   :  { %v19848_v6 = vrot.slane %v19847_v60, 4  ;;  %v19849_v48 = vld [vmem:[#allocation32_spill] sm:$0xff]  ;;  %v15904_v49 = vld [vmem:[#allocation3 + $0x120] sm:$0xf]  ;;  %5628 = vst [vmem:[#allocation3 + $0x78] sm:$0xf] %v5627_v42 }
 0x6f6   :  { %v5624_v10 = vsel %vm12920_vm8, %v19846_v55, %v5623_v61  ;;  %v5634_v29 = vsel %vm12913_vm7, %v19849_v48, %v5633_v23  ;;  %v15906_v12 = vld [vmem:[#allocation3 + $0x128] sm:$0x1]  ;;  %v15908_v5 = vld [vmem:[#allocation3 + $0x12c] sm:$0xf]  ;;  %v15910_v61 = vld [vmem:[#allocation3 + $0x134] sm:$0x1]  ;;  %v5648_v23 = vsel %vm12913_vm7, %v15549_v18, %v15800_v50 }
 0x6f7   :  { %v5631_v32 = vsel %vm12920_vm8, %v19848_v6, %v5630_v35  ;;  %5625 = vst [vmem:[#allocation3 + $0x74] sm:$0x1] %v5624_v10  ;;  %5635 = vst [vmem:[#allocation3 + $0x84] sm:$0xf] %v5634_v29  ;;  %v19850_v11 = vrot.slane %v15537_v17, 4  ;;  %v19851_v40 = vrot.slane %v15551_v43, 4  ;;  %v5655_v43 = vsel %vm12913_vm7, %v15561_v63, %v15815_v38 }
 0x6f8   :  { %5632 = vst [vmem:[#allocation3 + $0x80] sm:$0x1] %v5631_v32  ;;  %v15928_v62 = vld [vmem:[#allocation3 + $0x138] sm:$0xf]  ;;  %v15930_v19 = vld [vmem:[#allocation3 + $0x140] sm:$0x1] }
 0x6f9   :  { %v5645_v35 = vsel %vm12920_vm8, %v19850_v11, %v5644_v28  ;;  %v5652_v44 = vsel %vm12920_vm8, %v19851_v40, %v15802_v7  ;;  %v15932_v57 = vld [vmem:[#allocation3 + $0x144] sm:$0xf]  ;;  %v15934_v17 = vld [vmem:[#allocation3 + $0x14c] sm:$0x1]  ;;  %5642 = vst [vmem:[#allocation3 + $0x90] sm:$0xf] %v5641_v31  ;;  %v5662_v7 = vsel %vm12913_vm7, %v15576_v39, %v15819_v25 }
 0x6fa   :  { %5646 = vst [vmem:[#allocation3 + $0x98] sm:$0x1] %v5645_v35  ;;  %5649 = vst [vmem:[#allocation3 + $0x9c] sm:$0xf] %v5648_v23  ;;  %v19852_v18 = vrot.slane %v15563_v45, 4  ;;  %v19853_v1 = vrot.slane %v15573_v22, 4  ;;  %v5669_v22 = vsel %vm12913_vm7, %v15584_v21, %v15837_v13 }
 0x6fb   :  { %5653 = vst [vmem:[#allocation3 + $0xa4] sm:$0x1] %v5652_v44  ;;  %v15954_v37 = vld [vmem:[#allocation3 + $0x150] sm:$0xf]  ;;  %v15956_v63 = vld [vmem:[#allocation3 + $0x158] sm:$0x1] }
 0x6fc   :  { %v5659_v50 = vsel %vm12920_vm8, %v19852_v18, %v15817_v47  ;;  %v5666_v28 = vsel %vm12920_vm8, %v19853_v1, %v15821_v53  ;;  %v15958_v38 = vld [vmem:[#allocation3 + $0x15c] sm:$0xf]  ;;  %v15960_v45 = vld [vmem:[#allocation3 + $0x164] sm:$0x1]  ;;  %5656 = vst [vmem:[#allocation3 + $0xa8] sm:$0xf] %v5655_v43  ;;  %v5676_v53 = vsel %vm12913_vm7, %v15604_v16, %v15841_v14  ;;  %v5683_v16 = vsel %vm12913_vm7, %v15611_v3, %v15858_v52 }
 0x6fd   :  { %5660 = vst [vmem:[#allocation3 + $0xb0] sm:$0x1] %v5659_v50  ;;  %5663 = vst [vmem:[#allocation3 + $0xb4] sm:$0xf] %v5662_v7  ;;  %v19854_v39 = vld [vmem:[#allocation36_spill] sm:$0xff]  ;;  %v19856_v20 = vrot.slane %v15597_v24, 4  ;;  %v5690_v14 = vsel %vm12913_vm7, %v15626_v26, %v15862_v59 }
 0x6fe   :  { %5667 = vst [vmem:[#allocation3 + $0xbc] sm:$0x1] %v5666_v28  ;;  %v19855_v47 = vrot.slane %v19854_v39, 4  ;;  %v15980_v33 = vld [vmem:[#allocation3 + $0x168] sm:$0xf]  ;;  %v19857_v24 = vrot.slane %v15608_v56, 4 }
 0x6ff   :  { %v5680_v36 = vsel %vm12920_vm8, %v19856_v20, %v15843_v46  ;;  %v5756_v21 = vld [vmem:[#allocation3 + $0x170] sm:$0x1]  ;;  %v15982_v13 = vld [vmem:[#allocation3 + $0x174] sm:$0xf]  ;;  %v5763_v55 = vld [vmem:[#allocation3 + $0x17c] sm:$0x1] }
 0x700   :  { %v5673_v25 = vsel %vm12920_vm8, %v19855_v47, %v15839_v41  ;;  %5670 = vst [vmem:[#allocation3 + $0xc0] sm:$0xf] %v5669_v22  ;;  %5677 = vst [vmem:[#allocation3 + $0xe4] sm:$0xf] %v5676_v53  ;;  %v5687_v41 = vsel %vm12920_vm8, %v19857_v24, %v15860_v2  ;;  %v19858_v46 = vld [vmem:[#allocation38_spill] sm:$0xff]  ;;  %v19860_v2 = vld [vmem:[#allocation44_spill] sm:$0xff] }
 0x701   :  { %5674 = vst [vmem:[#allocation3 + $0xc8] sm:$0x1] %v5673_v25  ;;  %5681 = vst [vmem:[#allocation3 + $0xec] sm:$0x1] %v5680_v36  ;;  %v19859_v10 = vrot.slane %v19858_v46, 4  ;;  %v5697_v26 = vsel %vm12913_vm7, %v19860_v2, %v15881_v34  ;;  %v19861_v59 = vld [vmem:[#allocation40_spill] sm:$0xff] }
 0x702   :  { %v16002_v60 = vld [vmem:[#allocation3 + $0x180] sm:$0xf]  ;;  %v5770_v3 = vld [vmem:[#allocation3 + $0x188] sm:$0x1]  ;;  %v16004_v52 = vld [vmem:[#allocation3 + $0x18c] sm:$0xf] }
 0x703   :  { %v5694_v42 = vsel %vm12920_vm8, %v19859_v10, %v15864_v9  ;;  %v5777_v56 = vld [vmem:[#allocation3 + $0x194] sm:$0x1]  ;;  %5684 = vst [vmem:[#allocation3 + $0xf0] sm:$0xf] %v5683_v16  ;;  %5688 = vst [vmem:[#allocation3 + $0xf8] sm:$0x1] %v5687_v41 }
 0x704   :  { %5691 = vst [vmem:[#allocation3 + $0xfc] sm:$0xf] %v5690_v14  ;;  %5695 = vst [vmem:[#allocation3 + $0x104] sm:$0x1] %v5694_v42  ;;  %v19862_v6 = vrot.slane %v19861_v59, 4  ;;  %v19863_v32 = vld [vmem:[#allocation48_spill] sm:$0xff] }
 0x705   :  { %v5704_v48 = vsel %vm12913_vm7, %v19863_v32, %v15885_v58  ;;  %v19864_v29 = vld [vmem:[#allocation46_spill] sm:$0xff]  ;;  %v16024_v35 = vld [vmem:[#allocation3] sm:$0xff]   ;;  %5698 = vst [vmem:[#allocation3 + $0x108] sm:$0xf] %v5697_v26  ;;  %v19873_v39 = vld [vmem:[#allocation29_spill] sm:$0xff] }
 0x706   :  { %v5701_v9 = vsel %vm12920_vm8, %v19862_v6, %v15883_v4  ;;  %v19865_v31 = vrot.slane %v19864_v29, 4  ;;  %v5780_v34 = vld [vmem:[#allocation3 + $0x198] sm:$0xf]  ;;  %v5784_v23 = vld [vmem:[#allocation3 + $0x1a0] sm:$0x1]  ;;  %v19866_v4 = vld [vmem:[#allocation52_spill] sm:$0xff] }
 0x707   :  { %5702 = vst [vmem:[#allocation3 + $0x110] sm:$0x1] %v5701_v9  ;;  %5705 = vst [vmem:[#allocation3 + $0x114] sm:$0xf] %v5704_v48  ;;  %v5711_v40 = vsel %vm12913_vm7, %v19866_v4, %v15904_v49  ;;  %v19867_v58 = vld [vmem:[#allocation50_spill] sm:$0xff]  ;;  %v19870_v50 = vld [vmem:[#allocation23_spill] sm:$0xff] }
 0x708   :  { %v5708_v11 = vsel %vm12920_vm8, %v19865_v31, %v15887_v30  ;;  %v19868_v44 = vrot.slane %v19867_v58, 4  ;;  %v19869_v30 = vld [vmem:[#allocation65_spill] sm:$0xff]  ;;  %v19871_v7 = vrot.slane %v19870_v50, 4  ;;  %v12158_v28 = vld [vmem:[#allocation3 + $0x8] ss:$0 sps:$4 sm:$0x11]  }
 0x709   :  { %5709 = vst [vmem:[#allocation3 + $0x11c] sm:$0x1] %v5708_v11  ;;  %v5718_v18 = vsel %vm12913_vm7, %v19869_v30, %v15908_v5  ;;  %v16044_v22 = vld [vmem:[#allocation3 + $0x18] sm:$0xff]   ;;  %v16046_v49 = vld [vmem:[#allocation3 + $0x20] ss:$0 sps:$4 sm:$0x11]  }
 0x70a   :  { %v5715_v43 = vsel %vm12920_vm8, %v19868_v44, %v15906_v12  ;;  %v5722_v1 = vsel %vm12920_vm8, %v19871_v7, %v15910_v61  ;;  %5712 = vst [vmem:[#allocation3 + $0x120] sm:$0xf] %v5711_v40  ;;  %5719 = vst [vmem:[#allocation3 + $0x12c] sm:$0xf] %v5718_v18  ;;  %v19872_v12 = vld [vmem:[#allocation22_spill] sm:$0xff]  ;;  %v19874_v47 = vrot.slane %v19873_v39, 4 }
 0x70b   :  { %5716 = vst [vmem:[#allocation3 + $0x128] sm:$0x1] %v5715_v43  ;;  %5723 = vst [vmem:[#allocation3 + $0x134] sm:$0x1] %v5722_v1  ;;  %v5725_v5 = vsel %vm12913_vm7, %v19872_v12, %v15928_v62  ;;  %v19875_v25 = vld [vmem:[#allocation35_spill] sm:$0xff]  ;;  %v19876_v20 = vld [vmem:[#allocation37_spill] sm:$0xff] }
 0x70c   :  { %v5729_v61 = vsel %vm12920_vm8, %v19874_v47, %v15930_v19  ;;  %v5732_v53 = vsel %vm12913_vm7, %v19875_v25, %v15932_v57  ;;  %v19877_v36 = vrot.slane %v19876_v20, 4  ;;  %v16066_v24 = vld [vmem:[#allocation3 + $0x24] sm:$0xff]   ;;  %v16068_v62 = vld [vmem:[#allocation3 + $0x2c] ss:$0 sps:$4 sm:$0x11]   ;;  %v19878_v19 = vld [vmem:[#allocation58_spill] sm:$0xff] }
 0x70d   :  { %5726 = vst [vmem:[#allocation3 + $0x138] sm:$0xf] %v5725_v5  ;;  %5730 = vst [vmem:[#allocation3 + $0x140] sm:$0x1] %v5729_v61  ;;  %v5739_v41 = vsel %vm12913_vm7, %v19878_v19, %v15954_v37  ;;  %v19879_v57 = vld [vmem:[#allocation59_spill] sm:$0xff]  ;;  %v19882_v42 = vld [vmem:[#allocation62_spill] sm:$0xff] }
 0x70e   :  { %v5736_v16 = vsel %vm12920_vm8, %v19877_v36, %v15934_v17  ;;  %5733 = vst [vmem:[#allocation3 + $0x144] sm:$0xf] %v5732_v53  ;;  %v19880_v14 = vrot.slane %v19879_v57, 4  ;;  %v19881_v17 = vld [vmem:[#allocation53_spill] sm:$0xff]  ;;  %v19883_v2 = vrot.slane %v19882_v42, 4  ;;  %v19884_v37 = vld [vmem:[#allocation63_spill] sm:$0xff] }
 0x70f   :  { %5737 = vst [vmem:[#allocation3 + $0x14c] sm:$0x1] %v5736_v16  ;;  %v5746_v10 = vsel %vm12913_vm7, %v19881_v17, %v15958_v38  ;;  %5740 = vst [vmem:[#allocation3 + $0x150] sm:$0xf] %v5739_v41  ;;  %v19885_v59 = vld [vmem:[#allocation61_spill] sm:$0xff]  ;;  %v19887_v9 = vld [vmem:[#allocation20_spill] sm:$0xff] }
 0x710   :  { %v5743_v46 = vsel %vm12920_vm8, %v19880_v14, %v15956_v63  ;;  %v5750_v26 = vsel %vm12920_vm8, %v19883_v2, %v15960_v45  ;;  %5747 = vst [vmem:[#allocation3 + $0x15c] sm:$0xf] %v5746_v10  ;;  %v5753_v63 = vsel %vm12913_vm7, %v19884_v37, %v15980_v33  ;;  %v19886_v6 = vrot.slane %v19885_v59, 4  ;;  %v19888_v45 = vld [vmem:[#allocation21_spill] sm:$0xff]  ;;  %v19891_v4 = vld [vmem:[#allocation31_spill] sm:$0xff]  ;;  %v16147_v5 = vld [vmem:[#allocation3 + $0x48] sm:$0xff]  }
 0x711   :  { %5744 = vst [vmem:[#allocation3 + $0x158] sm:$0x1] %v5743_v46  ;;  %5751 = vst [vmem:[#allocation3 + $0x164] sm:$0x1] %v5750_v26  ;;  %v5760_v32 = vsel %vm12913_vm7, %v19887_v9, %v15982_v13  ;;  %v19889_v48 = vrot.slane %v19888_v45, 4  ;;  %v16104_v31 = vld [vmem:[#allocation3 + $0x30] sm:$0xff]  }
 0x712   :  { %v5757_v38 = vsel %vm12920_vm8, %v19886_v6, %v5756_v21  ;;  %v16106_v11 = vld [vmem:[#allocation3 + $0x38] ss:$0 sps:$4 sm:$0x11]   ;;  %5754 = vst [vmem:[#allocation3 + $0x168] sm:$0xf] %v5753_v63  ;;  %v19890_v33 = vld [vmem:[#allocation33_spill] sm:$0xff] }
 0x713   :  { %v5764_v29 = vsel %vm12920_vm8, %v19889_v48, %v5763_v55  ;;  %5758 = vst [vmem:[#allocation3 + $0x170] sm:$0x1] %v5757_v38  ;;  %5761 = vst [vmem:[#allocation3 + $0x174] sm:$0xf] %v5760_v32  ;;  %v5767_v21 = vsel %vm12913_vm7, %v19890_v33, %v16002_v60  ;;  %v19892_v13 = vrot.slane %v19891_v4, 4  ;;  %v19893_v55 = vld [vmem:[#allocation56_spill] sm:$0xff]  ;;  %v5781_v60 = vsel %vm12913_vm7, %v15794_v0, %v5780_v34 }
 0x714   :  { %5765 = vst [vmem:[#allocation3 + $0x17c] sm:$0x1] %v5764_v29  ;;  %v5774_v58 = vsel %vm12913_vm7, %v19893_v55, %v16004_v52  ;;  %v19894_v44 = vrot.slane %v15763_v27, 4  ;;  %v16124_v30 = vld [vmem:[#allocation3 + $0xc] sm:$0xff]   ;;  %5768 = vst [vmem:[#allocation3 + $0x180] sm:$0xf] %v5767_v21 }
 0x715   :  { %v5771_v40 = vsel %vm12920_vm8, %v19892_v13, %v5770_v3  ;;  %v12168_v18 = vld [vmem:[#allocation3 + $0x14] ss:$0 sps:$4 sm:$0x11]   ;;  %5775 = vst [vmem:[#allocation3 + $0x18c] sm:$0xf] %v5774_v58  ;;  %v5785_v3 = vsel %vm12920_vm8, %v5465_v51, %v5784_v23  ;;  %v6184_v27 = vshrl.u32 %v16024_v35, 16 }
 0x716   :  { %v5778_v43 = vsel %vm12920_vm8, %v19894_v44, %v5777_v56  ;;  %5772 = vst [vmem:[#allocation3 + $0x188] sm:$0x1] %v5771_v40  ;;  %v6186_v52 = vshll.u32 %v16024_v35, 16  ;;  %5782 = vst [vmem:[#allocation3 + $0x198] sm:$0xf] %v5781_v60  ;;  %v6191_v56 = vshll.u32 %v12158_v28, 16 }
 0x717   :  { %5779 = vst [vmem:[#allocation3 + $0x194] sm:$0x1] %v5778_v43  ;;  %5786 = vst [vmem:[#allocation3 + $0x1a0] sm:$0x1] %v5785_v3  ;;  %v6605_v50 = vrot.slane %v16044_v22, 1  ;;  %v6606_v7 = vrot.slane %v16046_v49, 1 }
 0x718   :  { %v6608_v1 = vrot.slane %v16066_v24, 1  ;;  %v6188_v15 = vrot.slane %v6186_v52, 1  ;;  %v6609_v0 = vrot.slane %v16068_v62, 1  ;;  %v6611_v54 = vrot.slane %v16104_v31, 1  ;;  %v12160_v34 = vld [vmem:[#allocation9 + $0x80] sm:$0xff]   ;;  %v16145_v12 = vld [vmem:[#allocation3 + $0x3c] sm:$0xff]  }
 0x719   :  { %v6612_v8 = vrot.slane %v16106_v11, 1  ;;  %v6193_v51 = vrot.slane %v6191_v56, 1  ;;  %v16142_v23 = vsel %vm1950_vm9, %v6605_v50, %v6606_v7  ;;  %v6198_v28 = vshll.u32 %v16124_v30, 16  ;;  %v16153_v25 = vld [vmem:[#allocation3 + $0x44] ss:$0 sps:$4 sm:$0x11]  }
 0x71a   :  { %v6189_v39 = vor.u32 %v6188_v15, %v6184_v27  ;;  %11052 = vmatprep.mubr.bf16.mxu0 %v16142_v23  ;;  %v16151_v47 = vsel %vm1950_vm9, %v6608_v1, %v6609_v0  ;;  %v6203_v61 = vshll.u32 %v12168_v18, 16  ;;  %v6196_v20 = vshrl.u32 %v16124_v30, 16  ;;  %v16161_v19 = vld [vmem:[#allocation3 + $0x50] ss:$0 sps:$4 sm:$0x11]   ;;  %v12173_v37 = vld [vmem:[#allocation9 + $0x88] sm:$0xff]  }
 0x71b   :  { %11053 = vmatmul.mubr.bf16.vlgmr.msra.gmra.mrb[152].mxu0 %v16151_v47  ;;  %v16157_v53 = vsel %vm1950_vm9, %v6611_v54, %v6612_v8  ;;  %v6200_v36 = vrot.slane %v6198_v28, 1  ;;  %v6210_v16 = vshll.u32 %v16044_v22, 16  ;;  %v6614_v17 = vrot.slane %v16145_v12, 1  ;;  %v16177_v6 = vld [vmem:[#allocation3 + $0x54] sm:$0xff]   ;;  %v16189_v29 = vld [vmem:[#allocation3 + $0x60] sm:$0xff]   ;;  %v12191_v43 = vld [vmem:[#allocation9 + $0x98] sm:$0xff]  }
 0x71c   :  { %v6194_v41 = vsel %vm1533_vm2, %v6189_v39, %v6193_v51  ;;  %11056 = vmatprep.mubr.bf16.mxu0 %v16157_v53  ;;  %v6205_v14 = vrot.slane %v6203_v61, 1  ;;  %v6615_v10 = vrot.slane %v16153_v25, 1  ;;  %v6617_v2 = vrot.slane %v16147_v5, 1  ;;  %v16179_v38 = vld [vmem:[#allocation3 + $0x5c] ss:$0 sps:$4 sm:$0x11]  }
 0x71d   :  { %7439 = vmatprep.mubr.bf16.mxu1 %v6194_v41  ;;  %v6201_v57 = vor.u32 %v6200_v36, %v6196_v20  ;;  %v6212_v46 = vrot.slane %v6210_v16, 1  ;;  %v6618_v26 = vrot.slane %v16161_v19, 1  ;;  %v6208_v63 = vshrl.u32 %v16044_v22, 16  ;;  %v12182_v33 = vld [vmem:[#allocation9 + $0x90] sm:$0xff]   ;;  %v16219_v7 = vld [vmem:[#allocation3 + $0x78] sm:$0xff]   ;;  %v12200_v1 = vld [vmem:[#allocation9 + $0xa0] sm:$0xff]  }
 0x71e   :  { %7440 = vmatmul.mubr.bf16.vlgmr.msra.gmra.mrb[40].mxu1 %v16024_v35  ;;  %v6215_v35 = vshll.u32 %v16046_v49, 16  ;;  %v19896_v59 = vmov 0   ;;  %v16182_v32 = vsel %vm1950_vm9, %v6614_v17, %v6615_v10  ;;  %v6222_v45 = vshll.u32 %v16066_v24, 16  ;;  %v16191_v49 = vld [vmem:[#allocation3 + $0x68] ss:$0 sps:$4 sm:$0x11]  }
 0x71f   :  { %7697 = vmatpush1.bf16.msra.mxu1 %v12160_v34  ;;  %v16169_v42 = vsel %vm1533_vm2, %v6201_v57, %v6205_v14  ;;  %v6213_v9 = vor.u32 %v6212_v46, %v6208_v63  ;;  %v16187_v48 = vsel %vm1950_vm9, %v6617_v2, %v6618_v26  ;;  %v6620_v4 = vrot.slane %v16177_v6, 1  ;;  %v16213_v56 = vld [vmem:[#allocation3 + $0x74] ss:$0 sps:$4 sm:$0x11]   ;;  %v12209_v34 = vld [vmem:[#allocation9 + $0xa8] sm:$0xff]   ;;  %v16243_v57 = vld [vmem:[#allocation3 + $0x84] sm:$0xff]  }
 0x720   :  { %19895 = vst [vmem:[#allocation57_spill] sm:$0xff] %v16169_v42  ;;  %7447 = vmatprep.mubr.bf16.mxu1 %v16169_v42  ;;  %7698 = vmatprep.subr.bf16.mxu1 %v19896_v59  ;;  %v6217_v21 = vrot.slane %v6215_v35, 1  ;;  %v6224_v40 = vrot.slane %v6222_v45, 1  ;;  %v6621_v55 = vrot.slane %v16179_v38, 1  ;;  %v6623_v58 = vrot.slane %v16189_v29, 1  ;;  %v16249_v46 = vld [vmem:[#allocation3 + $0x90] sm:$0xff]  }
 0x721   :  { %v6624_v44 = vrot.slane %v16191_v49, 1  ;;  %v6220_v18 = vshrl.u32 %v16066_v24, 16  ;;  %v6227_v60 = vshll.u32 %v16068_v62, 16  ;;  %v6234_v52 = vshll.u32 %v16104_v31, 16  ;;  %v12218_v17 = vld [vmem:[#allocation9 + $0xb0] sm:$0xff]   ;;  %v16467_v42 = vld [vmem:[#allocation3 + $0x168] sm:$0xff]  }
 0x722   :  { %v16198_v13 = vsel %vm1533_vm2, %v6213_v9, %v6217_v21  ;;  %v16210_v27 = vsel %vm1950_vm9, %v6620_v4, %v6621_v55  ;;  %v16221_v62 = vld [vmem:[#allocation3 + $0x80] ss:$0 sps:$4 sm:$0x11]   ;;  %v6627_v51 = vrot.slane %v16213_v56, 1  ;;  %v6629_v28 = vrot.slane %v16219_v7, 1 }
 0x723   :  { %11057 = vmatmul.mubr.bf16.gmra.mrb[156].mxu0 %v16182_v32  ;;  %7699 = vmatpush1.bf16.msra.mxu1 %v12173_v37  ;;  %19897 = vst [vmem:[#allocation17_spill] sm:$0xff] %v16198_v13  ;;  %v6225_v3 = vor.u32 %v6224_v40, %v6220_v18  ;;  %v16217_v50 = vsel %vm1950_vm9, %v6623_v58, %v6624_v44  ;;  %v6229_v15 = vrot.slane %v6227_v60, 1  ;;  %v6236_v54 = vrot.slane %v6234_v52, 1  ;;  %v16237_v20 = vld [vmem:[#allocation3 + $0x8c] ss:$0 sps:$4 sm:$0x11]  }
 0x724   :  { %11060 = vmatprep.mubr.bf16.mxu0 %v16187_v48  ;;  %7700 = vmatprep.subr.bf16.mxu1 %v19896_v59  ;;  %v6630_v39 = vrot.slane %v16221_v62, 1  ;;  %v6232_v61 = vshrl.u32 %v16104_v31, 16  ;;  %v6246_v41 = vshll.u32 %v16145_v12, 16  ;;  %v6632_v37 = vrot.slane %v16243_v57, 1  ;;  %v16273_v55 = vld [vmem:[#allocation3 + $0x9c] sm:$0xff]  }
 0x725   :  { %v16227_v0 = vsel %vm1533_vm2, %v6225_v3, %v6229_v15  ;;  %v6633_v63 = vrot.slane %v16237_v20, 1  ;;  %v6635_v35 = vrot.slane %v16249_v46, 1  ;;  %v6244_v45 = vshrl.u32 %v16145_v12, 16  ;;  %v16275_v58 = vld [vmem:[#allocation3 + $0xb0] ss:$0 sps:$4 sm:$0x11]  }
 0x726   :  { %7448 = vmatmul.mubr.bf16.gmra.mrb[44].mxu1 %v16124_v30  ;;  %v16207_v30 = vld [vmem:[#allocation3 + $0x6c] sm:$0xff]   ;;  %19898 = vst [vmem:[#allocation24_spill] sm:$0xff] %v16227_v0  ;;  %v6237_v36 = vor.u32 %v6236_v54, %v6232_v61  ;;  %v16247_v14 = vsel %vm1950_vm9, %v6629_v28, %v6630_v39  ;;  %v6248_v26 = vrot.slane %v6246_v41, 1  ;;  %v6258_v40 = vshll.u32 %v16147_v5, 16 }
 0x727   :  { %7455 = vmatprep.mubr.bf16.mxu1 %v16198_v13  ;;  %7701 = vmatpush1.bf16.msra.mxu1 %v12182_v33  ;;  %v6626_v8 = vrot.slane %v16207_v30, 1  ;;  %v6251_v33 = vshll.u32 %v16153_v25, 16  ;;  %v16270_v4 = vsel %vm1950_vm9, %v6632_v37, %v6633_v63  ;;  %v16281_v25 = vld [vmem:[#allocation3 + $0xa8] sm:$0xff]   ;;  %v6638_v3 = vrot.slane %v16273_v55, 1 }
 0x728   :  { %7702 = vmatprep.subr.bf16.mxu1 %v19896_v59  ;;  %v6249_v21 = vor.u32 %v6248_v26, %v6244_v45  ;;  %v6260_v60 = vrot.slane %v6258_v40, 1  ;;  %v6642_v15 = vrot.slane %v16275_v58, 1  ;;  %v6256_v54 = vshrl.u32 %v16147_v5, 16  ;;  %v16301_v39 = vld [vmem:[#allocation3 + $0xbc] ss:$0 sps:$4 sm:$0x11]  }
 0x729   :  { %v16240_v16 = vsel %vm1950_vm9, %v6626_v8, %v6627_v51  ;;  %v6263_v8 = vshll.u32 %v16161_v19, 16  ;;  %v16295_v51 = vld [vmem:[#allocation3 + $0xb4] sm:$0xff]   ;;  %v6270_v28 = vshll.u32 %v16177_v6, 16  ;;  %v6645_v26 = vrot.slane %v16301_v39, 1 }
 0x72a   :  { %v6275_v37 = vshll.u32 %v16179_v38, 16  ;;  %v6268_v45 = vshrl.u32 %v16177_v6, 16  ;;  %v16325_v38 = vld [vmem:[#allocation3 + $0xf0] sm:$0xff]   ;;  %v16460_v13 = vld [vmem:[#allocation3 + $0x164] ss:$0 sps:$4 sm:$0x11]  }
 0x72b   :  { %11061 = vmatmul.mubr.bf16.gmra.mrb[160].mxu0 %v16210_v27  ;;  %7703 = vmatpush1.bf16.msra.mxu1 %v12191_v43  ;;  %v6253_v43 = vrot.slane %v6251_v33, 1  ;;  %v6265_v41 = vrot.slane %v6263_v8, 1  ;;  %v12197_v33 = vld [vmem:[#allocation3 + $0xd4] ss:$0 sps:$4 sm:$0x11]  }
 0x72c   :  { %11064 = vmatprep.mubr.bf16.mxu0 %v16217_v50  ;;  %7704 = vmatprep.subr.bf16.mxu1 %v19896_v59 }
 0x72d   :  { %v16286_v18 = vsel %vm1533_vm2, %v6249_v21, %v6253_v43  ;;  %v12227_v21 = vld [vmem:[#allocation9 + $0xb8] sm:$0xff]   ;;  %v6282_v43 = vshll.u32 %v16189_v29, 16 }
 0x72e   :  { %7456 = vmatmul.mubr.bf16.gmra.mrb[48].mxu1 %v16044_v22  ;;  %v6239_v22 = vshll.u32 %v16106_v11, 16  ;;  %v16251_v11 = vld [vmem:[#allocation3 + $0x98] ss:$0 sps:$4 sm:$0x11]   ;;  %19900 = vst [vmem:[#allocation42_spill] sm:$0xff] %v16286_v18 }
 0x72f   :  { %7463 = vmatprep.mubr.bf16.mxu1 %v16227_v0  ;;  %7705 = vmatpush1.bf16.msra.mxu1 %v12200_v1  ;;  %v6636_v9 = vrot.slane %v16251_v11, 1  ;;  %v6641_v1 = vrot.slane %v16281_v25, 1  ;;  %v6284_v8 = vrot.slane %v6282_v43, 1  ;;  %v6335_v0 = vshll.u32 %v16251_v11, 16 }
 0x730   :  { %7706 = vmatprep.subr.bf16.mxu1 %v19896_v59  ;;  %v6241_v10 = vrot.slane %v6239_v22, 1  ;;  %v12194_v22 = vld [vmem:[#allocation3 + $0xc0] sm:$0xff]   ;;  %v16469_v11 = vld [vmem:[#allocation3 + $0x170] ss:$0 sps:$4 sm:$0x11]  }
 0x731   :  { %v16279_v44 = vsel %vm1950_vm9, %v6635_v35, %v6636_v9  ;;  %v16305_v61 = vsel %vm1950_vm9, %v6641_v1, %v6642_v15  ;;  %v6771_v63 = vrot.slane %v12194_v22, 1  ;;  %v12196_v9 = vld [vmem:[#allocation3 + $0xcc] sm:$0xff]   ;;  %v6824_v15 = vrot.slane %v12197_v33, 1 }
 0x732   :  { %v16257_v2 = vsel %vm1533_vm2, %v6237_v36, %v6241_v10  ;;  %v12195_v36 = vld [vmem:[#allocation3 + $0xc8] ss:$0 sps:$4 sm:$0x11]   ;;  %v6644_v10 = vrot.slane %v16295_v51, 1  ;;  %v6823_v1 = vrot.slane %v12196_v9, 1  ;;  %v6280_v22 = vshrl.u32 %v16189_v29, 16 }
 0x733   :  { %11065 = vmatmul.mubr.bf16.gmra.mrb[164].mxu0 %v16240_v16  ;;  %7707 = vmatpush1.bf16.msra.mxu1 %v12209_v34  ;;  %19899 = vst [vmem:[#allocation60_spill] sm:$0xff] %v16257_v2  ;;  %v6772_v35 = vrot.slane %v12195_v36, 1  ;;  %v6287_v36 = vshll.u32 %v16191_v49, 16  ;;  %v16351_v9 = vld [vmem:[#allocation3 + $0x110] ss:$0 sps:$4 sm:$0x11]  }
 0x734   :  { %11068 = vmatprep.mubr.bf16.mxu0 %v16247_v14  ;;  %7708 = vmatprep.subr.bf16.mxu1 %v19896_v59  ;;  %v16318_v40 = vsel %vm1950_vm9, %v6644_v10, %v6645_v26  ;;  %v6285_v10 = vor.u32 %v6284_v8, %v6280_v22  ;;  %v16342_v26 = vld [vmem:[#allocation3 + $0xfc] sm:$0xff]   ;;  %v6292_v8 = vshrl.u32 %v16207_v30, 16  ;;  %v6306_v22 = vshll.u32 %v16219_v7, 16 }
 0x735   :  { %v12237_v49 = vld [vmem:[#allocation9 + $0xc8] sm:$0xff]  }
 0x736   :  { %7464 = vmatmul.mubr.bf16.gmra.mrb[52].mxu1 %v16066_v24  ;;  %v16267_v24 = vld [vmem:[#allocation3 + $0xa4] ss:$0 sps:$4 sm:$0x11]  }
 0x737   :  { %7471 = vmatprep.mubr.bf16.mxu1 %v16257_v2  ;;  %7709 = vmatpush1.bf16.msra.mxu1 %v12218_v17  ;;  %v6639_v52 = vrot.slane %v16267_v24, 1  ;;  %v6272_v17 = vrot.slane %v6270_v28, 1  ;;  %v12241_v2 = vld [vmem:[#allocation9 + $0xe8] sm:$0xff]  }
 0x738   :  { %7710 = vmatprep.subr.bf16.mxu1 %v19896_v59 }
 0x739   :  { %v16298_v34 = vsel %vm1950_vm9, %v6638_v3, %v6639_v52  ;;  %v16323_v3 = vsel %vm1950_vm9, %v6771_v63, %v6772_v35  ;;  %v16327_v52 = vld [vmem:[#allocation3 + $0xf8] ss:$0 sps:$4 sm:$0x11]   ;;  %v16349_v35 = vld [vmem:[#allocation3 + $0x108] sm:$0xff]  }
 0x73a   :  { %19902 = vst [vmem:[#allocation64_spill] sm:$0xff] %v16323_v3  ;;  %v6654_v28 = vrot.slane %v16327_v52, 1 }
 0x73b   :  { %11069 = vmatmul.mubr.bf16.gmra.mrb[168].mxu0 %v16270_v4  ;;  %7711 = vmatpush1.bf16.msra.mxu1 %v12227_v21 }
 0x73c   :  { %11072 = vmatprep.mubr.bf16.mxu0 %v16279_v44  ;;  %7712 = vmatprep.subr.bf16.mxu1 %v19896_v59 }
 0x73e   :  { %7472 = vmatmul.mubr.bf16.gmra.mrb[56].mxu1 %v16104_v31  ;;  %v6261_v31 = vor.u32 %v6260_v60, %v6256_v54  ;;  %v6277_v60 = vrot.slane %v6275_v37, 1  ;;  %v16344_v37 = vld [vmem:[#allocation3 + $0x104] ss:$0 sps:$4 sm:$0x11]  }
 0x73f   :  { %7479 = vmatprep.mubr.bf16.mxu1 %v16286_v18  ;;  %v6657_v43 = vrot.slane %v16344_v37, 1  ;;  %v16440_v18 = vld [vmem:[#allocation3 + $0x158] ss:$0 sps:$4 sm:$0x11]  }
 0x740   :  { %v16310_v19 = vsel %vm1533_vm2, %v6261_v31, %v6265_v41  ;;  %v6653_v31 = vrot.slane %v16325_v38, 1  ;;  %v6825_v41 = vsel %vm1950_vm9, %v6823_v1, %v6824_v15  ;;  %v6660_v1 = vrot.slane %v16351_v9, 1  ;;  %v12238_v15 = vld [vmem:[#allocation9 + $0xd0] sm:$0xff]  }
 0x741   :  { %19901 = vst [vmem:[#allocation34_spill] sm:$0xff] %v16310_v19 }
 0x742   :  { %v16347_v63 = vsel %vm1950_vm9, %v6653_v31, %v6654_v28 }
 0x743   :  { %11073 = vmatmul.mubr.bf16.gmra.mrb[172].mxu0 %v16298_v34 }
 0x744   :  { %11076 = vmatprep.mubr.bf16.mxu0 %v16305_v61 }
 0x746   :  { %7480 = vmatmul.mubr.bf16.gmra.mrb[60].mxu1 %v16145_v12  ;;  %v6273_v12 = vor.u32 %v6272_v17, %v6268_v45  ;;  %v12236_v17 = vld [vmem:[#allocation9 + $0xc0] sm:$0xff]   ;;  %v6289_v45 = vrot.slane %v6287_v36, 1 }
 0x747   :  { %7487 = vmatprep.mubr.bf16.mxu1 %v16310_v19  ;;  %7713 = vmatpush1.bf16.msra.mxu1 %v12236_v17  ;;  %v16371_v36 = vld [vmem:[#allocation3 + $0x114] sm:$0xff]  }
 0x748   :  { %v16333_v54 = vsel %vm1533_vm2, %v6273_v12, %v6277_v60  ;;  %7714 = vmatprep.subr.bf16.mxu1 %v19896_v59  ;;  %v16357_v33 = vsel %vm1533_vm2, %v6285_v10, %v6289_v45  ;;  %v6656_v12 = vrot.slane %v16342_v26, 1  ;;  %v6659_v60 = vrot.slane %v16349_v35, 1  ;;  %v16379_v10 = vld [vmem:[#allocation3 + $0x120] sm:$0xff]   ;;  %v16438_v19 = vld [vmem:[#allocation3 + $0x150] sm:$0xff]  }
 0x749   :  { %19903 = vst [vmem:[#allocation25_spill] sm:$0xff] %v16333_v54  ;;  %19904 = vst [vmem:[#allocation26_spill] sm:$0xff] %v16357_v33 }
 0x74a   :  { %v16368_v28 = vsel %vm1950_vm9, %v6656_v12, %v6657_v43  ;;  %v16377_v17 = vsel %vm1950_vm9, %v6659_v60, %v6660_v1  ;;  %v6662_v12 = vrot.slane %v16371_v36, 1  ;;  %v6665_v60 = vrot.slane %v16379_v10, 1 }
 0x74b   :  { %11077 = vmatmul.mubr.bf16.gmra.mrb[176].mxu0 %v16318_v40  ;;  %7715 = vmatpush1.bf16.msra.mxu1 %v12237_v49  ;;  %19905 = vst [vmem:[#allocation66_spill] sm:$0xff] %v16377_v17 }
 0x74c   :  { %11080 = vmatprep.mubr.bf16.mxu0 %v16323_v3  ;;  %7716 = vmatprep.subr.bf16.mxu1 %v19896_v59  ;;  %v16403_v3 = vld [vmem:[#allocation3 + $0x134] ss:$0 sps:$4 sm:$0x11]  }
 0x74e   :  { %7488 = vmatmul.mubr.bf16.gmra.mrb[64].mxu1 %v16147_v5  ;;  %v6294_v5 = vshll.u32 %v16207_v30, 16 }
 0x74f   :  { %7495 = vmatprep.mubr.bf16.mxu1 %v16333_v54  ;;  %7717 = vmatpush1.bf16.msra.mxu1 %v12238_v15  ;;  %v12240_v15 = vld [vmem:[#allocation9 + $0xe0] sm:$0xff]  }
 0x750   :  { %v6296_v21 = vrot.slane %v6294_v5, 1  ;;  %v12239_v5 = vld [vmem:[#allocation9 + $0xd8] sm:$0xff]   ;;  %7718 = vmatprep.subr.bf16.mxu1 %v19896_v59 }
 0x752   :  { %v6297_v31 = vor.u32 %v6296_v21, %v6292_v8  ;;  %v6308_v21 = vrot.slane %v6306_v22, 1  ;;  %v6304_v8 = vshrl.u32 %v16219_v7, 16  ;;  %v6318_v22 = vshll.u32 %v16243_v57, 16 }
 0x753   :  { %11081 = vmatmul.mubr.bf16.gmra.mrb[180].mxu0 %v6825_v41  ;;  %v16373_v41 = vld [vmem:[#allocation3 + $0x11c] ss:$0 sps:$4 sm:$0x11]   ;;  %7719 = vmatpush1.bf16.msra.mxu1 %v12239_v5 }
 0x754   :  { %11084 = vmatprep.mubr.bf16.mxu0 %v16347_v63  ;;  %v6663_v43 = vrot.slane %v16373_v41, 1  ;;  %7720 = vmatprep.subr.bf16.mxu1 %v19896_v59 }
 0x756   :  { %7496 = vmatmul.mubr.bf16.gmra.mrb[68].mxu1 %v16177_v6  ;;  %v6299_v6 = vshll.u32 %v16213_v56, 16  ;;  %v16381_v56 = vld [vmem:[#allocation3 + $0x128] ss:$0 sps:$4 sm:$0x11]  }
 0x757   :  { %7503 = vmatprep.mubr.bf16.mxu1 %v16357_v33  ;;  %v6666_v1 = vrot.slane %v16381_v56, 1  ;;  %7721 = vmatpush1.bf16.msra.mxu1 %v12240_v15  ;;  %v6323_v33 = vshll.u32 %v16237_v20, 16 }
 0x758   :  { %v6301_v49 = vrot.slane %v6299_v6, 1  ;;  %v6309_v6 = vor.u32 %v6308_v21, %v6304_v8  ;;  %7722 = vmatprep.subr.bf16.mxu1 %v19896_v59 }
 0x759   :  { %v16407_v5 = vsel %vm1950_vm9, %v6665_v60, %v6666_v1  ;;  %v6669_v60 = vrot.slane %v16403_v3, 1  ;;  %v6325_v20 = vrot.slane %v6323_v33, 1  ;;  %v6328_v33 = vshrl.u32 %v16249_v46, 16 }
 0x75a   :  { %v16387_v45 = vsel %vm1533_vm2, %v6297_v31, %v6301_v49  ;;  %v16398_v31 = vsel %vm1950_vm9, %v6662_v12, %v6663_v43  ;;  %v16401_v49 = vld [vmem:[#allocation3 + $0x12c] sm:$0xff]   ;;  %19908 = vst [vmem:[#allocation27_spill] sm:$0xff] %v16407_v5  ;;  %v6320_v43 = vrot.slane %v6318_v22, 1  ;;  %v16430_v22 = vld [vmem:[#allocation3 + $0x144] sm:$0xff]  }
 0x75b   :  { %11085 = vmatmul.mubr.bf16.gmra.mrb[184].mxu0 %v16368_v28  ;;  %19906 = vst [vmem:[#allocation67_spill] sm:$0xff] %v16387_v45  ;;  %19907 = vst [vmem:[#allocation68_spill] sm:$0xff] %v16398_v31  ;;  %v6668_v8 = vrot.slane %v16401_v49, 1  ;;  %7723 = vmatpush1.bf16.msra.mxu1 %v12241_v2  ;;  %v6337_v2 = vrot.slane %v6335_v0, 1  ;;  %v6340_v0 = vshrl.u32 %v16273_v55, 16 }
 0x75c   :  { %11088 = vmatprep.mubr.bf16.mxu0 %v16377_v17  ;;  %7724 = vmatprep.subr.bf16.mxu1 %v19896_v59  ;;  %v16542_v17 = vld [vmem:[#allocation3 + $0xe0] ss:$0 sps:$4 sm:$0x11]  }
 0x75e   :  { %7504 = vmatmul.mubr.bf16.gmra.mrb[72].mxu1 %v16189_v29  ;;  %v6311_v29 = vshll.u32 %v16221_v62, 16  ;;  %v16411_v62 = vld [vmem:[#allocation3 + $0x140] ss:$0 sps:$4 sm:$0x11]  }
 0x75f   :  { %7511 = vmatprep.mubr.bf16.mxu1 %v16387_v45  ;;  %v16409_v45 = vld [vmem:[#allocation3 + $0x138] sm:$0xff]   ;;  %v6672_v15 = vrot.slane %v16411_v62, 1 }
 0x760   :  { %v6313_v21 = vrot.slane %v6311_v29, 1  ;;  %v6671_v1 = vrot.slane %v16409_v45, 1  ;;  %v6316_v29 = vshrl.u32 %v16243_v57, 16 }
 0x762   :  { %v16417_v12 = vsel %vm1533_vm2, %v6309_v6, %v6313_v21  ;;  %v6321_v54 = vor.u32 %v6320_v43, %v6316_v29  ;;  %v6330_v6 = vshll.u32 %v16249_v46, 16  ;;  %v16432_v21 = vld [vmem:[#allocation3 + $0x14c] ss:$0 sps:$4 sm:$0x11]  }
 0x763   :  { %11089 = vmatmul.mubr.bf16.gmra.mrb[188].mxu0 %v16398_v31  ;;  %19909 = vst [vmem:[#allocation30_spill] sm:$0xff] %v16417_v12  ;;  %v6675_v29 = vrot.slane %v16432_v21, 1  ;;  %v16524_v31 = vld [vmem:[#allocation3 + $0x198] sm:$0xff]  }
 0x764   :  { %11092 = vmatprep.mubr.bf16.mxu0 %v16407_v5  ;;  %v16445_v43 = vsel %vm1533_vm2, %v6321_v54, %v6325_v20  ;;  %v16458_v20 = vld [vmem:[#allocation3 + $0x15c] sm:$0xff]   ;;  %v16517_v5 = vld [vmem:[#allocation3 + $0x194] ss:$0 sps:$4 sm:$0x11]   ;;  %19921 = vst [vmem:[#allocation32_spill] sm:$0xff] %v16524_v31 }
 0x765   :  { %19912 = vst [vmem:[#allocation43_spill] sm:$0xff] %v16445_v43 }
 0x766   :  { %7512 = vmatmul.mubr.bf16.gmra.mrb[76].mxu1 %v16207_v30  ;;  %v16427_v30 = vsel %vm1950_vm9, %v6668_v8, %v6669_v60  ;;  %v6332_v8 = vrot.slane %v6330_v6, 1  ;;  %v6674_v60 = vrot.slane %v16430_v22, 1  ;;  %v6342_v6 = vshll.u32 %v16273_v55, 16 }
 0x767   :  { %7519 = vmatprep.mubr.bf16.mxu1 %v16417_v12  ;;  %19910 = vst [vmem:[#allocation39_spill] sm:$0xff] %v16427_v30  ;;  %v16436_v12 = vsel %vm1950_vm9, %v6671_v1, %v6672_v15  ;;  %v6677_v1 = vrot.slane %v16438_v19, 1  ;;  %v6678_v15 = vrot.slane %v16440_v18, 1 }
 0x768   :  { %19911 = vst [vmem:[#allocation41_spill] sm:$0xff] %v16436_v12  ;;  %v16455_v54 = vsel %vm1950_vm9, %v6674_v60, %v6675_v29  ;;  %v6344_v60 = vrot.slane %v6342_v6, 1  ;;  %v6680_v29 = vrot.slane %v16458_v20, 1  ;;  %v16487_v6 = vld [vmem:[#allocation3 + $0x174] sm:$0xff]  }
 0x769   :  { %19913 = vst [vmem:[#allocation45_spill] sm:$0xff] %v16455_v54 }
 0x76b   :  { %11093 = vmatmul.mubr.bf16.gmra.mrb[192].mxu0 %v16427_v30  ;;  %v16497_v30 = vld [vmem:[#allocation3 + $0x188] ss:$0 sps:$4 sm:$0x11]  }
 0x76c   :  { %11096 = vmatprep.mubr.bf16.mxu0 %v16436_v12  ;;  %v16495_v12 = vld [vmem:[#allocation3 + $0x180] sm:$0xff]  }
 0x76e   :  { %7520 = vmatmul.mubr.bf16.gmra.mrb[80].mxu1 %v16219_v7  ;;  %v6333_v7 = vor.u32 %v6332_v8, %v6328_v33  ;;  %v6681_v33 = vrot.slane %v16460_v13, 1 }
 0x76f   :  { %7527 = vmatprep.mubr.bf16.mxu1 %v16445_v43  ;;  %v16465_v43 = vsel %vm1950_vm9, %v6677_v1, %v6678_v15  ;;  %v6683_v1 = vrot.slane %v16467_v42, 1  ;;  %v6684_v15 = vrot.slane %v16469_v11, 1 }
 0x770   :  { %19914 = vst [vmem:[#allocation47_spill] sm:$0xff] %v16465_v43  ;;  %v16474_v8 = vsel %vm1533_vm2, %v6333_v7, %v6337_v2  ;;  %v6354_v7 = vshll.u32 %v16281_v25, 16  ;;  %v16489_v2 = vld [vmem:[#allocation3 + $0x17c] ss:$0 sps:$4 sm:$0x11]  }
 0x771   :  { %19915 = vst [vmem:[#allocation49_spill] sm:$0xff] %v16474_v8 }
 0x773   :  { %11097 = vmatmul.mubr.bf16.gmra.mrb[196].mxu0 %v16455_v54  ;;  %v6345_v54 = vor.u32 %v6344_v60, %v6340_v0  ;;  %v6687_v0 = vrot.slane %v16489_v2, 1 }
 0x774   :  { %11100 = vmatprep.mubr.bf16.mxu0 %v16465_v43  ;;  %v6347_v43 = vshll.u32 %v16267_v24, 16 }
 0x776   :  { %7528 = vmatmul.mubr.bf16.gmra.mrb[84].mxu1 %v16243_v57  ;;  %v16484_v57 = vsel %vm1950_vm9, %v6680_v29, %v6681_v33  ;;  %v6349_v24 = vrot.slane %v6347_v43, 1  ;;  %v6356_v29 = vrot.slane %v6354_v7, 1  ;;  %v6686_v33 = vrot.slane %v16487_v6, 1 }
 0x777   :  { %7535 = vmatprep.mubr.bf16.mxu1 %v16474_v8  ;;  %19916 = vst [vmem:[#allocation18_spill] sm:$0xff] %v16484_v57  ;;  %v16493_v8 = vsel %vm1950_vm9, %v6683_v1, %v6684_v15  ;;  %v6689_v1 = vrot.slane %v16495_v12, 1  ;;  %v6690_v15 = vrot.slane %v16497_v30, 1  ;;  %v6352_v43 = vshrl.u32 %v16281_v25, 16 }
 0x778   :  { %19917 = vst [vmem:[#allocation19_spill] sm:$0xff] %v16493_v8  ;;  %v16502_v60 = vsel %vm1533_vm2, %v6345_v54, %v6349_v24  ;;  %v16512_v54 = vsel %vm1950_vm9, %v6686_v33, %v6687_v0  ;;  %v6366_v7 = vshll.u32 %v16295_v51, 16  ;;  %v16515_v24 = vld [vmem:[#allocation3 + $0x18c] sm:$0xff]  }
 0x779   :  { %19918 = vst [vmem:[#allocation51_spill] sm:$0xff] %v16502_v60  ;;  %19919 = vst [vmem:[#allocation54_spill] sm:$0xff] %v16512_v54 }
 0x77a   :  { %v6368_v0 = vrot.slane %v6366_v7, 1 }
 0x77b   :  { %11101 = vmatmul.mubr.bf16.gmra.mrb[200].mxu0 %v16484_v57  ;;  %v12242_v57 = vld [vmem:[#allocation9 + $0xf0] sm:$0xff]  }
 0x77c   :  { %11104 = vmatprep.mubr.bf16.mxu0 %v16493_v8  ;;  %v6359_v8 = vshll.u32 %v16275_v58, 16  ;;  %7725 = vmatpush1.bf16.msra.mxu1 %v12242_v57  ;;  %v16526_v58 = vld [vmem:[#allocation3 + $0x1a0] ss:$0 sps:$4 sm:$0x11]  }
 0x77d   :  { %7726 = vmatprep.subr.bf16.mxu1 %v19896_v59  ;;  %19922 = vst [vmem:[#allocation36_spill] sm:$0xff] %v16526_v58 }
 0x77e   :  { %7536 = vmatmul.mubr.bf16.gmra.mrb[88].mxu1 %v16249_v46  ;;  %v6357_v46 = vor.u32 %v6356_v29, %v6352_v43  ;;  %v6361_v57 = vrot.slane %v6359_v8, 1  ;;  %v16529_v29 = vld [vmem:[#allocation3 + $0xd8] sm:$0xff]   ;;  %v6692_v43 = vrot.slane %v16515_v24, 1  ;;  %v6775_v8 = vrot.slane %v16526_v58, 1 }
 0x77f   :  { %7543 = vmatprep.mubr.bf16.mxu1 %v16502_v60  ;;  %v16522_v60 = vsel %vm1950_vm9, %v6689_v1, %v6690_v15  ;;  %v6693_v1 = vrot.slane %v16517_v5, 1  ;;  %v6774_v15 = vrot.slane %v16524_v31, 1  ;;  %v6376_v58 = vshrl.u32 %v16529_v29, 16 }
 0x780   :  { %19920 = vst [vmem:[#allocation55_spill] sm:$0xff] %v16522_v60  ;;  %v16533_v33 = vsel %vm1533_vm2, %v6357_v46, %v6361_v57 }
 0x781   :  { %19923 = vst [vmem:[#allocation38_spill] sm:$0xff] %v16533_v33  ;;  %v16546_v7 = vsel %vm1950_vm9, %v6692_v43, %v6693_v1  ;;  %v16550_v57 = vsel %vm1950_vm9, %v6774_v15, %v6775_v8  ;;  %v12243_v43 = vld [vmem:[#allocation9 + $0xf8] sm:$0xff]  }
 0x782   :  { %19924 = vst [vmem:[#allocation44_spill] sm:$0xff] %v16550_v57  ;;  %7727 = vmatpush1.bf16.msra.mxu1 %v12243_v43 }
 0x783   :  { %11105 = vmatmul.mubr.bf16.gmra.mrb[204].mxu0 %v16512_v54  ;;  %v6371_v54 = vshll.u32 %v16301_v39, 16  ;;  %v6383_v39 = vshll.u32 %v16542_v17, 16  ;;  %7985 = vmatprep.subr.bf16.mxu1 %v19896_v59 }
 0x784   :  { %11108 = vmatprep.mubr.bf16.mxu0 %v16522_v60  ;;  %v6364_v60 = vshrl.u32 %v16295_v51, 16 }
 0x785   :  { %v6385_v15 = vrot.slane %v6383_v39, 1 }
 0x786   :  { %7544 = vmatmul.mubr.bf16.gmra.mrb[92].mxu1 %v16273_v55  ;;  %v6378_v55 = vshll.u32 %v16529_v29, 16  ;;  %v6369_v46 = vor.u32 %v6368_v0, %v6364_v60  ;;  %v16559_v0 = vld [vmem:[#allocation3 + $0xe4] sm:$0xff]  }
 0x787   :  { %7551 = vmatprep.mubr.bf16.mxu1 %v16533_v33  ;;  %v6373_v33 = vrot.slane %v6371_v54, 1  ;;  %v6390_v54 = vshll.u32 %v16559_v0, 16 }
 0x788   :  { %v6380_v31 = vrot.slane %v6378_v55, 1  ;;  %v16565_v55 = vld [vmem:[#allocation3 + $0xec] ss:$0 sps:$4 sm:$0x11]  }
 0x789   :  { %v16557_v60 = vsel %vm1533_vm2, %v6369_v46, %v6373_v33  ;;  %v6388_v33 = vshrl.u32 %v16559_v0, 16  ;;  %v6395_v46 = vshll.u32 %v16565_v55, 16 }
 0x78a   :  { %v6381_v1 = vor.u32 %v6380_v31, %v6376_v58  ;;  %v6402_v31 = vshll.u32 %v16325_v38, 16 }
 0x78b   :  { %11109 = vmatmul.mubr.bf16.gmra.mrb[208].mxu0 %v16546_v7  ;;  %v6397_v58 = vrot.slane %v6395_v46, 1  ;;  %v6419_v46 = vshll.u32 %v16344_v37, 16 }
 0x78c   :  { %11112 = vmatprep.mubr.bf16.mxu0 %v16550_v57  ;;  %v6386_v8 = vsel %vm1533_vm2, %v6381_v1, %v6385_v15  ;;  %v6404_v43 = vrot.slane %v6402_v31, 1  ;;  %v6407_v1 = vshll.u32 %v16327_v52, 16 }
 0x78d   :  { %v6421_v52 = vrot.slane %v6419_v46, 1  ;;  %v6436_v46 = vshrl.u32 %v16371_v36, 16 }
 0x78e   :  { %7552 = vmatmul.mubr.bf16.gmra.mrb[96].mxu1 %v16281_v25  ;;  %v6392_v25 = vrot.slane %v6390_v54, 1  ;;  %v6414_v54 = vshll.u32 %v16342_v26, 16 }
 0x78f   :  { %7559 = vmatprep.mubr.bf16.mxu1 %v16557_v60 }
 0x790   :  { %v6393_v57 = vor.u32 %v6392_v25, %v6388_v33  ;;  %v6416_v33 = vrot.slane %v6414_v54, 1 }
 0x792   :  { %v16573_v39 = vsel %vm1533_vm2, %v6393_v57, %v6397_v58  ;;  %v6412_v57 = vshrl.u32 %v16342_v26, 16  ;;  %v6426_v58 = vshll.u32 %v16349_v35, 16 }
 0x794   :  { %v6417_v31 = vor.u32 %v6416_v33, %v6412_v57 }
 0x796   :  { %7560 = vmatmul.mubr.bf16.gmra.mrb[100].mxu1 %v16295_v51  ;;  %v6400_v51 = vshrl.u32 %v16325_v38, 16 }
 0x797   :  { %7567 = vmatprep.mubr.bf16.mxu1 %v6386_v8  ;;  %v6409_v8 = vrot.slane %v6407_v1, 1  ;;  %v6424_v1 = vshrl.u32 %v16349_v35, 16 }
 0x798   :  { %v6405_v15 = vor.u32 %v6404_v43, %v6400_v51  ;;  %v16589_v43 = vsel %vm1533_vm2, %v6417_v31, %v6421_v52  ;;  %v6428_v51 = vrot.slane %v6426_v58, 1  ;;  %v6443_v31 = vshll.u32 %v16373_v41, 16 }
 0x799   :  { %v6450_v52 = vshll.u32 %v16379_v10, 16 }
 0x79a   :  { %v16581_v25 = vsel %vm1533_vm2, %v6405_v15, %v6409_v8  ;;  %v6431_v15 = vshll.u32 %v16351_v9, 16  ;;  %v6429_v54 = vor.u32 %v6428_v51, %v6424_v1  ;;  %v6438_v8 = vshll.u32 %v16371_v36, 16 }
 0x79b   :  { %v6445_v9 = vrot.slane %v6443_v31, 1  ;;  %v6452_v1 = vrot.slane %v6450_v52, 1  ;;  %v6460_v31 = vshrl.u32 %v16401_v49, 16 }
 0x79c   :  { %v6433_v37 = vrot.slane %v6431_v15, 1  ;;  %v6440_v57 = vrot.slane %v6438_v8, 1  ;;  %v6448_v15 = vshrl.u32 %v16379_v10, 16 }
 0x79e   :  { %7568 = vmatmul.mubr.bf16.gmra.mrb[104].mxu1 %v16529_v29  ;;  %v16597_v33 = vsel %vm1533_vm2, %v6429_v54, %v6433_v37  ;;  %v6441_v58 = vor.u32 %v6440_v57, %v6436_v46  ;;  %v6455_v54 = vshll.u32 %v16381_v56, 16  ;;  %v6453_v8 = vor.u32 %v6452_v1, %v6448_v15 }
 0x79f   :  { %7575 = vmatprep.mubr.bf16.mxu1 %v16573_v39  ;;  %v6462_v37 = vshll.u32 %v16401_v49, 16 }
 0x7a0   :  { %v16605_v51 = vsel %vm1533_vm2, %v6441_v58, %v6445_v9  ;;  %v6457_v41 = vrot.slane %v6455_v54, 1  ;;  %v6467_v58 = vshll.u32 %v16403_v3, 16  ;;  %v6474_v9 = vshll.u32 %v16409_v45, 16 }
 0x7a1   :  { %v6464_v46 = vrot.slane %v6462_v37, 1  ;;  %v6472_v54 = vshrl.u32 %v16409_v45, 16 }
 0x7a2   :  { %v16613_v57 = vsel %vm1533_vm2, %v6453_v8, %v6457_v41  ;;  %v6469_v56 = vrot.slane %v6467_v58, 1  ;;  %v6476_v15 = vrot.slane %v6474_v9, 1  ;;  %v6479_v8 = vshll.u32 %v16411_v62, 16 }
 0x7a3   :  { %v6465_v52 = vor.u32 %v6464_v46, %v6460_v31  ;;  %v6486_v41 = vshll.u32 %v16430_v22, 16  ;;  %v6484_v58 = vshrl.u32 %v16430_v22, 16 }
 0x7a4   :  { %v6477_v37 = vor.u32 %v6476_v15, %v6472_v54  ;;  %v6481_v3 = vrot.slane %v6479_v8, 1  ;;  %v6496_v8 = vshrl.u32 %v16438_v19, 16 }
 0x7a5   :  { %v16621_v1 = vsel %vm1533_vm2, %v6465_v52, %v6469_v56  ;;  %v6488_v31 = vrot.slane %v6486_v41, 1  ;;  %v6491_v52 = vshll.u32 %v16432_v21, 16  ;;  %v6498_v56 = vshll.u32 %v16438_v19, 16 }
 0x7a6   :  { %7576 = vmatmul.mubr.bf16.gmra.mrb[108].mxu1 %v16559_v0  ;;  %v16629_v46 = vsel %vm1533_vm2, %v6477_v37, %v6481_v3  ;;  %v6503_v37 = vshll.u32 %v16440_v18, 16  ;;  %v6510_v3 = vshll.u32 %v16458_v20, 16 }
 0x7a7   :  { %7583 = vmatprep.mubr.bf16.mxu1 %v16581_v25  ;;  %v6489_v9 = vor.u32 %v6488_v31, %v6484_v58  ;;  %v6493_v62 = vrot.slane %v6491_v52, 1  ;;  %v6500_v54 = vrot.slane %v6498_v56, 1  ;;  %v6508_v52 = vshrl.u32 %v16458_v20, 16 }
 0x7a8   :  { %v6505_v21 = vrot.slane %v6503_v37, 1  ;;  %v6512_v58 = vrot.slane %v6510_v3, 1  ;;  %v6520_v3 = vshrl.u32 %v16467_v42, 16 }
 0x7a9   :  { %v16637_v15 = vsel %vm1533_vm2, %v6489_v9, %v6493_v62  ;;  %v6501_v41 = vor.u32 %v6500_v54, %v6496_v8  ;;  %v6515_v9 = vshll.u32 %v16460_v13, 16  ;;  %v6522_v62 = vshll.u32 %v16467_v42, 16 }
 0x7aa   :  { %v6513_v56 = vor.u32 %v6512_v58, %v6508_v52  ;;  %v6527_v13 = vshll.u32 %v16469_v11, 16  ;;  %v6532_v11 = vshrl.u32 %v16487_v6, 16 }
 0x7ab   :  { %v16645_v31 = vsel %vm1533_vm2, %v6501_v41, %v6505_v21  ;;  %v6517_v18 = vrot.slane %v6515_v9, 1  ;;  %v6524_v37 = vrot.slane %v6522_v62, 1  ;;  %v6534_v9 = vshll.u32 %v16487_v6, 16 }
 0x7ad   :  { %v16653_v54 = vsel %vm1533_vm2, %v6513_v56, %v6517_v18  ;;  %v6525_v52 = vor.u32 %v6524_v37, %v6520_v3  ;;  %v6529_v56 = vrot.slane %v6527_v13, 1 }
 0x7ae   :  { %7584 = vmatmul.mubr.bf16.gmra.mrb[112].mxu1 %v16325_v38 }
 0x7af   :  { %7591 = vmatprep.mubr.bf16.mxu1 %v16589_v43  ;;  %v16669_v62 = vsel %vm1533_vm2, %v6525_v52, %v6529_v56 }
 0x7b6   :  { %7592 = vmatmul.mubr.bf16.gmra.mrb[116].mxu1 %v16342_v26 }
 0x7b7   :  { %7599 = vmatprep.mubr.bf16.mxu1 %v16597_v33 }
 0x7be   :  { %7600 = vmatmul.mubr.bf16.gmra.mrb[120].mxu1 %v16349_v35 }
 0x7bf   :  { %7607 = vmatprep.mubr.bf16.mxu1 %v16605_v51 }
 0x7c6   :  { %7608 = vmatmul.mubr.bf16.gmra.mrb[124].mxu1 %v16371_v36 }
 0x7c7   :  { %7615 = vmatprep.mubr.bf16.mxu1 %v16613_v57 }
 0x7ce   :  { %7616 = vmatmul.mubr.bf16.gmra.mrb[128].mxu1 %v16379_v10 }
 0x7cf   :  { %7623 = vmatprep.mubr.bf16.mxu1 %v16621_v1 }
 0x7d6   :  { %7624 = vmatmul.mubr.bf16.gmra.mrb[132].mxu1 %v16401_v49 }
 0x7d7   :  { %7631 = vmatprep.mubr.bf16.mxu1 %v16629_v46 }
 0x7de   :  { %7632 = vmatmul.mubr.bf16.gmra.mrb[136].mxu1 %v16409_v45 }
 0x7df   :  { %7639 = vmatprep.mubr.bf16.mxu1 %v16637_v15 }
 0x7e6   :  { %7640 = vmatmul.mubr.bf16.gmra.mrb[140].mxu1 %v16430_v22 }
 0x7e7   :  { %7647 = vmatprep.mubr.bf16.mxu1 %v16645_v31 }
 0x7ee   :  { %7648 = vmatmul.mubr.bf16.gmra.mrb[144].mxu1 %v16438_v19  ;;  %v16655_v8 = vpop.f32.mrb[152].mxu0 }
 0x7ef   :  { %19925 = vst [vmem:[#allocation40_spill] sm:$0xff] %v16655_v8  ;;  %7655 = vmatprep.mubr.bf16.mxu1 %v16653_v54  ;;  %v16658_v41 = vpop.f32.mrb[153].mxu0  ;;  %v6536_v8 = vrot.slane %v6534_v9, 1 }
 0x7f0   :  { %19926 = vst [vmem:[#allocation48_spill] sm:$0xff] %v16658_v41  ;;  %v16662_v21 = vpop.f32.mrb[154].mxu0 }
 0x7f1   :  { %19927 = vst [vmem:[#allocation46_spill] sm:$0xff] %v16662_v21  ;;  %v16664_v58 = vpop.f32.mrb[155].mxu0  ;;  %v6539_v21 = vshll.u32 %v16489_v2, 16  ;;  %v6537_v13 = vor.u32 %v6536_v8, %v6532_v11  ;;  %v6544_v2 = vshrl.u32 %v16495_v12, 16 }
 0x7f2   :  { %19928 = vst [vmem:[#allocation52_spill] sm:$0xff] %v16664_v58  ;;  %v6546_v58 = vshll.u32 %v16495_v12, 16 }
 0x7f3   :  { %v6541_v52 = vrot.slane %v6539_v21, 1 }
 0x7f5   :  { %v16685_v9 = vsel %vm1533_vm2, %v6537_v13, %v6541_v52 }
 0x7f6   :  { %7656 = vmatmul.mubr.bf16.gmra.mrb[148].mxu1 %v16458_v20  ;;  %v16671_v18 = vpop.f32.mrb[156].mxu0 }
 0x7f7   :  { %19929 = vst [vmem:[#allocation50_spill] sm:$0xff] %v16671_v18  ;;  %7663 = vmatprep.mubr.bf16.mxu1 %v16669_v62  ;;  %v16674_v41 = vpop.f32.mrb[157].mxu0  ;;  %v6548_v18 = vrot.slane %v6546_v58, 1 }
 0x7f8   :  { %19930 = vst [vmem:[#allocation65_spill] sm:$0xff] %v16674_v41  ;;  %v16678_v37 = vpop.f32.mrb[158].mxu0 }
 0x7f9   :  { %19931 = vst [vmem:[#allocation23_spill] sm:$0xff] %v16678_v37  ;;  %v16680_v3 = vpop.f32.mrb[159].mxu0  ;;  %v6551_v37 = vshll.u32 %v16497_v30, 16  ;;  %v6549_v21 = vor.u32 %v6548_v18, %v6544_v2  ;;  %v6556_v30 = vshrl.u32 %v16515_v24, 16 }
 0x7fa   :  { %19932 = vst [vmem:[#allocation22_spill] sm:$0xff] %v16680_v3  ;;  %v6558_v3 = vshll.u32 %v16515_v24, 16 }
 0x7fb   :  { %v6553_v13 = vrot.slane %v6551_v37, 1 }
 0x7fd   :  { %v16701_v58 = vsel %vm1533_vm2, %v6549_v21, %v6553_v13 }
 0x7fe   :  { %7664 = vmatmul.mubr.bf16.gmra.mrb[152].mxu1 %v16467_v42  ;;  %v16687_v56 = vpop.f32.mrb[160].mxu0 }
 0x7ff   :  { %19933 = vst [vmem:[#allocation29_spill] sm:$0xff] %v16687_v56  ;;  %7671 = vmatprep.mubr.bf16.mxu1 %v16685_v9  ;;  %v16690_v41 = vpop.f32.mrb[161].mxu0  ;;  %v6560_v56 = vrot.slane %v6558_v3, 1 }
 0x800   :  { %19934 = vst [vmem:[#allocation35_spill] sm:$0xff] %v16690_v41  ;;  %v16694_v8 = vpop.f32.mrb[162].mxu0 }
 0x801   :  { %19935 = vst [vmem:[#allocation37_spill] sm:$0xff] %v16694_v8  ;;  %v16696_v11 = vpop.f32.mrb[163].mxu0  ;;  %v6563_v8 = vshll.u32 %v16517_v5, 16  ;;  %v6561_v37 = vor.u32 %v6560_v56, %v6556_v30  ;;  %v12385_v56 = vld [vmem:[#allocation3 + $0xc] sm:$0xff]  }
 0x802   :  { %19936 = vst [vmem:[#allocation58_spill] sm:$0xff] %v16696_v11 }
 0x803   :  { %v6565_v11 = vrot.slane %v6563_v8, 1  ;;  %v12386_v8 = vld [vmem:[#allocation3] sm:$0xff]  }
 0x804   :  { %v6599_v30 = vrot.slane %v12386_v8, 1 }
 0x805   :  { %v16716_v21 = vsel %vm1533_vm2, %v6561_v37, %v6565_v11  ;;  %v12387_v11 = vld [vmem:[#allocation3 + $0x8] ss:$0 sps:$4 sm:$0x11]  }
 0x806   :  { %7672 = vmatmul.mubr.bf16.gmra.mrb[156].mxu1 %v16487_v6  ;;  %v16703_v52 = vpop.f32.mrb[164].mxu0  ;;  %19941 = vst [vmem:[#allocation61_spill] sm:$0xff] %v16716_v21  ;;  %v6600_v37 = vrot.slane %v12387_v11, 1  ;;  %v12245_v11 = vld [vmem:[#allocation9 + $0x108] sm:$0xff]  }
 0x807   :  { %19937 = vst [vmem:[#allocation59_spill] sm:$0xff] %v16703_v52  ;;  %7679 = vmatprep.mubr.bf16.mxu1 %v16701_v58  ;;  %v16706_v41 = vpop.f32.mrb[165].mxu0 }
 0x808   :  { %19938 = vst [vmem:[#allocation53_spill] sm:$0xff] %v16706_v41  ;;  %v16710_v18 = vpop.f32.mrb[166].mxu0 }
 0x809   :  { %19939 = vst [vmem:[#allocation62_spill] sm:$0xff] %v16710_v18  ;;  %v16712_v2 = vpop.f32.mrb[167].mxu0 }
 0x80a   :  { %19940 = vst [vmem:[#allocation63_spill] sm:$0xff] %v16712_v2 }
 0x80e   :  { %7680 = vmatmul.mubr.bf16.gmra.mrb[160].mxu1 %v16495_v12  ;;  %v16718_v3 = vpop.f32.mrb[168].mxu0 }
 0x80f   :  { %19942 = vst [vmem:[#allocation20_spill] sm:$0xff] %v16718_v3  ;;  %7687 = vmatprep.mubr.bf16.mxu1 %v16716_v21  ;;  %v16721_v13 = vpop.f32.mrb[169].mxu0  ;;  %v16739_v21 = vld [vmem:[#allocation3 + $0x18] sm:$0xff]  }
 0x810   :  { %19943 = vst [vmem:[#allocation21_spill] sm:$0xff] %v16721_v13  ;;  %v16723_v52 = vpop.f32.mrb[170].mxu0  ;;  %v12244_v13 = vld [vmem:[#allocation9 + $0x100] sm:$0xff]  }
 0x811   :  { %19944 = vst [vmem:[#allocation33_spill] sm:$0xff] %v16723_v52  ;;  %v16725_v5 = vpop.f32.mrb[171].mxu0  ;;  %v6601_v52 = vsel %vm1950_vm9, %v6599_v30, %v6600_v37 }
 0x812   :  { %19945 = vst [vmem:[#allocation31_spill] sm:$0xff] %v16725_v5 }
 0x816   :  { %7688 = vmatmul.mubr.bf16.gmra.mrb[164].mxu1 %v16515_v24  ;;  %v16728_v18 = vpop.f32.mrb[172].mxu0 }
 0x817   :  { %19946 = vst [vmem:[#allocation56_spill] sm:$0xff] %v16728_v18  ;;  %7728 = vmatprep.mubr.bf16.mxu1 %v12385_v56  ;;  %v16730_v2 = vpop.f32.mrb[173].mxu0 }
 0x818   :  { %19947 = vst [vmem:[#allocation69_spill] sm:$0xff] %v16730_v2  ;;  %v16732_v3 = vpop.f32.mrb[174].mxu0 }
 0x819   :  { %19948 = vst [vmem:[#allocation70_spill] sm:$0xff] %v16732_v3  ;;  %v16734_v41 = vpop.f32.mrb[175].mxu0  ;;  %v6602_v3 = vrot.slane %v12385_v56, 1 }
 0x81a   :  { %19949 = vst [vmem:[#allocation71_spill] sm:$0xff] %v16734_v41  ;;  %v12389_v41 = vld [vmem:[#allocation3 + $0x14] ss:$0 sps:$4 sm:$0x11]  }
 0x81b   :  { %v6603_v2 = vrot.slane %v12389_v41, 1  ;;  %v12247_v41 = vld [vmem:[#allocation9 + $0x118] sm:$0xff]  }
 0x81d   :  { %v16751_v37 = vsel %vm1950_vm9, %v6602_v3, %v6603_v2  ;;  %v12248_v2 = vld [vmem:[#allocation9 + $0x120] sm:$0xff]  }
 0x81e   :  { %7729 = vmatmul.mubr.bf16.vlgmr.msra.gmra.mrb[40].mxu1 %v6601_v52  ;;  %v16737_v5 = vpop.f32.mrb[176].mxu0  ;;  %v12246_v52 = vld [vmem:[#allocation9 + $0x110] sm:$0xff]  }
 0x81f   :  { %19950 = vst [vmem:[#allocation72_spill] sm:$0xff] %v16737_v5  ;;  %7736 = vmatprep.mubr.bf16.mxu1 %v16739_v21  ;;  %7986 = vmatpush1.bf16.msra.mxu1 %v12244_v13  ;;  %v16742_v8 = vpop.f32.mrb[177].mxu0  ;;  %v16756_v5 = vld [vmem:[#allocation3 + $0x24] sm:$0xff]  }
 0x820   :  { %19951 = vst [vmem:[#allocation73_spill] sm:$0xff] %v16742_v8  ;;  %v16744_v18 = vpop.f32.mrb[178].mxu0  ;;  %7987 = vmatprep.subr.bf16.mxu1 %v19896_v59  ;;  %v16798_v8 = vld [vmem:[#allocation3 + $0x48] sm:$0xff]  }
 0x821   :  { %19952 = vst [vmem:[#allocation74_spill] sm:$0xff] %v16744_v18  ;;  %v16747_v30 = vpop.f32.mrb[179].mxu0  ;;  %19968 = vst [vmem:[#allocation90_spill] sm:$0xff] %v16798_v8 }
 0x822   :  { %19953 = vst [vmem:[#allocation75_spill] sm:$0xff] %v16747_v30  ;;  %v16784_v30 = vld [vmem:[#allocation3 + $0x3c] sm:$0xff]  }
 0x823   :  { %7988 = vmatpush1.bf16.msra.mxu1 %v12245_v11  ;;  %19963 = vst [vmem:[#allocation85_spill] sm:$0xff] %v16784_v30 }
 0x824   :  { %7989 = vmatprep.subr.bf16.mxu1 %v19896_v59 }
 0x826   :  { %7737 = vmatmul.mubr.bf16.gmra.mrb[44].mxu1 %v16751_v37  ;;  %v16754_v13 = vpop.f32.mrb[180].mxu0 }
 0x827   :  { %19954 = vst [vmem:[#allocation76_spill] sm:$0xff] %v16754_v13  ;;  %7744 = vmatprep.mubr.bf16.mxu1 %v16756_v5  ;;  %v16759_v56 = vpop.f32.mrb[181].mxu0  ;;  %7990 = vmatpush1.bf16.msra.mxu1 %v12246_v52  ;;  %v16770_v13 = vld [vmem:[#allocation3 + $0x30] sm:$0xff]  }
 0x828   :  { %19955 = vst [vmem:[#allocation77_spill] sm:$0xff] %v16759_v56  ;;  %v16761_v18 = vpop.f32.mrb[182].mxu0  ;;  %7991 = vmatprep.subr.bf16.mxu1 %v19896_v59 }
 0x829   :  { %19956 = vst [vmem:[#allocation78_spill] sm:$0xff] %v16761_v18  ;;  %v16764_v11 = vpop.f32.mrb[183].mxu0  ;;  %v12249_v18 = vld [vmem:[#allocation9 + $0x128] sm:$0xff]  }
 0x82a   :  { %19957 = vst [vmem:[#allocation79_spill] sm:$0xff] %v16764_v11  ;;  %v12250_v11 = vld [vmem:[#allocation9 + $0x130] sm:$0xff]  }
 0x82b   :  { %7992 = vmatpush1.bf16.msra.mxu1 %v12247_v41 }
 0x82c   :  { %7993 = vmatprep.subr.bf16.mxu1 %v19896_v59 }
 0x82e   :  { %7745 = vmatmul.mubr.bf16.gmra.mrb[48].mxu1 %v16142_v23  ;;  %v16768_v3 = vpop.f32.mrb[184].mxu0 }
 0x82f   :  { %19958 = vst [vmem:[#allocation80_spill] sm:$0xff] %v16768_v3  ;;  %7752 = vmatprep.mubr.bf16.mxu1 %v16770_v13  ;;  %v16773_v52 = vpop.f32.mrb[185].mxu0  ;;  %7994 = vmatpush1.bf16.msra.mxu1 %v12248_v2 }
 0x830   :  { %19959 = vst [vmem:[#allocation81_spill] sm:$0xff] %v16773_v52  ;;  %v16775_v56 = vpop.f32.mrb[186].mxu0  ;;  %7995 = vmatprep.subr.bf16.mxu1 %v19896_v59 }
 0x831   :  { %19960 = vst [vmem:[#allocation82_spill] sm:$0xff] %v16775_v56  ;;  %v16778_v41 = vpop.f32.mrb[187].mxu0  ;;  %v12251_v56 = vld [vmem:[#allocation9 + $0x138] sm:$0xff]  }
 0x832   :  { %19961 = vst [vmem:[#allocation83_spill] sm:$0xff] %v16778_v41  ;;  %v12252_v41 = vld [vmem:[#allocation9 + $0x140] sm:$0xff]  }
 0x833   :  { %7996 = vmatpush1.bf16.msra.mxu1 %v12249_v18 }
 0x834   :  { %7997 = vmatprep.subr.bf16.mxu1 %v19896_v59 }
 0x836   :  { %7753 = vmatmul.mubr.bf16.gmra.mrb[52].mxu1 %v16151_v47  ;;  %v16782_v3 = vpop.f32.mrb[188].mxu0 }
 0x837   :  { %19962 = vst [vmem:[#allocation84_spill] sm:$0xff] %v16782_v3  ;;  %7760 = vmatprep.mubr.bf16.mxu1 %v16784_v30  ;;  %v16787_v2 = vpop.f32.mrb[189].mxu0  ;;  %7998 = vmatpush1.bf16.msra.mxu1 %v12250_v11  ;;  %v16812_v30 = vld [vmem:[#allocation3 + $0x54] sm:$0xff]  }
 0x838   :  { %19964 = vst [vmem:[#allocation86_spill] sm:$0xff] %v16787_v2  ;;  %v16789_v52 = vpop.f32.mrb[190].mxu0  ;;  %7999 = vmatprep.subr.bf16.mxu1 %v19896_v59  ;;  %19973 = vst [vmem:[#allocation95_spill] sm:$0xff] %v16812_v30 }
 0x839   :  { %19965 = vst [vmem:[#allocation87_spill] sm:$0xff] %v16789_v52  ;;  %v16792_v18 = vpop.f32.mrb[191].mxu0  ;;  %v12253_v52 = vld [vmem:[#allocation9 + $0x148] sm:$0xff]  }
 0x83a   :  { %19966 = vst [vmem:[#allocation88_spill] sm:$0xff] %v16792_v18  ;;  %v12254_v18 = vld [vmem:[#allocation9 + $0x150] sm:$0xff]  }
 0x83b   :  { %8000 = vmatpush1.bf16.msra.mxu1 %v12251_v56 }
 0x83c   :  { %8001 = vmatprep.subr.bf16.mxu1 %v19896_v59 }
 0x83e   :  { %7761 = vmatmul.mubr.bf16.gmra.mrb[56].mxu1 %v16157_v53  ;;  %v16796_v3 = vpop.f32.mrb[192].mxu0 }
 0x83f   :  { %19967 = vst [vmem:[#allocation89_spill] sm:$0xff] %v16796_v3  ;;  %7768 = vmatprep.mubr.bf16.mxu1 %v16798_v8  ;;  %v16801_v11 = vpop.f32.mrb[193].mxu0  ;;  %8002 = vmatpush1.bf16.msra.mxu1 %v12252_v41 }
 0x840   :  { %19969 = vst [vmem:[#allocation91_spill] sm:$0xff] %v16801_v11  ;;  %v16803_v2 = vpop.f32.mrb[194].mxu0  ;;  %8003 = vmatprep.subr.bf16.mxu1 %v19896_v59  ;;  %v16825_v11 = vld [vmem:[#allocation3 + $0x60] sm:$0xff]  }
 0x841   :  { %19970 = vst [vmem:[#allocation92_spill] sm:$0xff] %v16803_v2  ;;  %v16806_v56 = vpop.f32.mrb[195].mxu0  ;;  %19978 = vst [vmem:[#allocation100_spill] sm:$0xff] %v16825_v11 }
 0x842   :  { %19971 = vst [vmem:[#allocation93_spill] sm:$0xff] %v16806_v56 }
 0x843   :  { %8004 = vmatpush1.bf16.msra.mxu1 %v12253_v52 }
 0x844   :  { %8005 = vmatprep.subr.bf16.mxu1 %v19896_v59 }
 0x846   :  { %7769 = vmatmul.mubr.bf16.gmra.mrb[60].mxu1 %v16182_v32  ;;  %v16810_v3 = vpop.f32.mrb[196].mxu0 }
 0x847   :  { %19972 = vst [vmem:[#allocation94_spill] sm:$0xff] %v16810_v3  ;;  %7776 = vmatprep.mubr.bf16.mxu1 %v16812_v30  ;;  %v16815_v41 = vpop.f32.mrb[197].mxu0  ;;  %8006 = vmatpush1.bf16.msra.mxu1 %v12254_v18  ;;  %v12255_v30 = vld [vmem:[#allocation9 + $0x158] sm:$0xff]  }
 0x848   :  { %19974 = vst [vmem:[#allocation96_spill] sm:$0xff] %v16815_v41  ;;  %v16817_v2 = vpop.f32.mrb[198].mxu0  ;;  %8007 = vmatprep.subr.bf16.mxu1 %v19896_v59 }
 0x849   :  { %19975 = vst [vmem:[#allocation97_spill] sm:$0xff] %v16817_v2  ;;  %v16820_v56 = vpop.f32.mrb[199].mxu0 }
 0x84a   :  { %19976 = vst [vmem:[#allocation98_spill] sm:$0xff] %v16820_v56  ;;  %v16838_v56 = vld [vmem:[#allocation3 + $0x6c] sm:$0xff]  }
 0x84b   :  { %8008 = vmatpush1.bf16.msra.mxu1 %v12255_v30  ;;  %19983 = vst [vmem:[#allocation105_spill] sm:$0xff] %v16838_v56  ;;  %v16850_v30 = vld [vmem:[#allocation3 + $0x78] sm:$0xff]  }
 0x84c   :  { %8009 = vmatprep.subr.bf16.mxu1 %v19896_v59 }
 0x84e   :  { %7777 = vmatmul.mubr.bf16.gmra.mrb[64].mxu1 %v16187_v48  ;;  %v16823_v52 = vpop.f32.mrb[200].mxu0 }
 0x84f   :  { %19977 = vst [vmem:[#allocation99_spill] sm:$0xff] %v16823_v52  ;;  %7784 = vmatprep.mubr.bf16.mxu1 %v16825_v11  ;;  %v16828_v3 = vpop.f32.mrb[201].mxu0 }
 0x850   :  { %19979 = vst [vmem:[#allocation101_spill] sm:$0xff] %v16828_v3  ;;  %v16830_v8 = vpop.f32.mrb[202].mxu0 }
 0x851   :  { %19980 = vst [vmem:[#allocation102_spill] sm:$0xff] %v16830_v8  ;;  %v16832_v18 = vpop.f32.mrb[203].mxu0 }
 0x852   :  { %19981 = vst [vmem:[#allocation103_spill] sm:$0xff] %v16832_v18 }
 0x856   :  { %7785 = vmatmul.mubr.bf16.gmra.mrb[68].mxu1 %v16210_v27  ;;  %v16836_v2 = vpop.f32.mrb[204].mxu0 }
 0x857   :  { %19982 = vst [vmem:[#allocation104_spill] sm:$0xff] %v16836_v2  ;;  %7792 = vmatprep.mubr.bf16.mxu1 %v16838_v56  ;;  %v16841_v52 = vpop.f32.mrb[205].mxu0  ;;  %v12256_v2 = vld [vmem:[#allocation9 + $0x160] sm:$0xff]  }
 0x858   :  { %19984 = vst [vmem:[#allocation106_spill] sm:$0xff] %v16841_v52  ;;  %v16843_v41 = vpop.f32.mrb[206].mxu0  ;;  %8010 = vmatpush1.bf16.msra.mxu1 %v12256_v2  ;;  %v16870_v2 = vld [vmem:[#allocation3 + $0x9c] sm:$0xff]   ;;  %v12259_v52 = vld [vmem:[#allocation9 + $0x178] sm:$0xff]  }
 0x859   :  { %19985 = vst [vmem:[#allocation107_spill] sm:$0xff] %v16843_v41  ;;  %v16845_v3 = vpop.f32.mrb[207].mxu0  ;;  %8011 = vmatprep.subr.bf16.mxu1 %v19896_v59  ;;  %v16861_v41 = vld [vmem:[#allocation3 + $0x84] sm:$0xff]   ;;  %19992 = vst [vmem:[#allocation114_spill] sm:$0xff] %v16870_v2 }
 0x85a   :  { %19986 = vst [vmem:[#allocation108_spill] sm:$0xff] %v16845_v3  ;;  %v16883_v3 = vld [vmem:[#allocation3 + $0xc0] sm:$0xff]  }
 0x85e   :  { %7793 = vmatmul.mubr.bf16.gmra.mrb[72].mxu1 %v16217_v50  ;;  %v16848_v8 = vpop.f32.mrb[208].mxu0 }
 0x85f   :  { %19987 = vst [vmem:[#allocation109_spill] sm:$0xff] %v16848_v8  ;;  %7800 = vmatprep.mubr.bf16.mxu1 %v16850_v30  ;;  %v16853_v18 = vpop.f32.mrb[209].mxu0  ;;  %v16865_v8 = vld [vmem:[#allocation3 + $0x90] sm:$0xff]  }
 0x860   :  { %19988 = vst [vmem:[#allocation110_spill] sm:$0xff] %v16853_v18  ;;  %v16855_v11 = vpop.f32.mrb[210].mxu0  ;;  %19991 = vst [vmem:[#allocation113_spill] sm:$0xff] %v16865_v8  ;;  %v12257_v18 = vld [vmem:[#allocation9 + $0x168] sm:$0xff]  }
 0x861   :  { %19989 = vst [vmem:[#allocation111_spill] sm:$0xff] %v16855_v11  ;;  %v16857_v56 = vpop.f32.mrb[211].mxu0  ;;  %8012 = vmatpush1.bf16.msra.mxu1 %v12257_v18  ;;  %v16874_v11 = vld [vmem:[#allocation3 + $0xa8] sm:$0xff]   ;;  %v16879_v18 = vld [vmem:[#allocation3 + $0xb4] sm:$0xff]  }
 0x862   :  { %19990 = vst [vmem:[#allocation112_spill] sm:$0xff] %v16857_v56  ;;  %8013 = vmatprep.subr.bf16.mxu1 %v19896_v59  ;;  %19993 = vst [vmem:[#allocation115_spill] sm:$0xff] %v16874_v11  ;;  %v12258_v56 = vld [vmem:[#allocation9 + $0x170] sm:$0xff]  }
 0x863   :  { %19994 = vst [vmem:[#allocation116_spill] sm:$0xff] %v16879_v18 }
 0x865   :  { %8014 = vmatpush1.bf16.msra.mxu1 %v12258_v56  ;;  %v6647_v56 = vrot.slane %v16529_v29, 1  ;;  %v19997_v29 = vld [vmem:[#allocation27_spill] sm:$0xff] }
 0x866   :  { %7801 = vmatmul.mubr.bf16.gmra.mrb[76].mxu1 %v16240_v16  ;;  %8015 = vmatprep.subr.bf16.mxu1 %v19896_v59 }
 0x867   :  { %7808 = vmatprep.mubr.bf16.mxu1 %v16861_v41 }
 0x869   :  { %8016 = vmatpush1.bf16.msra.mxu1 %v12259_v52 }
 0x86a   :  { %8274 = vmatprep.subr.bf16.mxu1 %v19896_v59 }
 0x86e   :  { %7809 = vmatmul.mubr.bf16.gmra.mrb[80].mxu1 %v16247_v14 }
 0x86f   :  { %7816 = vmatprep.mubr.bf16.mxu1 %v16865_v8  ;;  %v6651_v8 = vrot.slane %v16565_v55, 1  ;;  %v12263_v55 = vld [vmem:[#allocation9 + $0x198] sm:$0xff]  }
 0x876   :  { %7817 = vmatmul.mubr.bf16.gmra.mrb[84].mxu1 %v16270_v4 }
 0x877   :  { %7824 = vmatprep.mubr.bf16.mxu1 %v16870_v2  ;;  %v6650_v2 = vrot.slane %v16559_v0, 1 }
 0x879   :  { %v16896_v52 = vsel %vm1950_vm9, %v6650_v2, %v6651_v8  ;;  %v12264_v8 = vld [vmem:[#allocation9 + $0x1a0] sm:$0xff]   ;;  %v12267_v2 = vld [vmem:[#allocation9 + $0x1b8] sm:$0xff]  }
 0x87e   :  { %7825 = vmatmul.mubr.bf16.gmra.mrb[88].mxu1 %v16279_v44 }
 0x87f   :  { %7832 = vmatprep.mubr.bf16.mxu1 %v16874_v11  ;;  %v6648_v11 = vrot.slane %v16542_v17, 1  ;;  %v19996_v17 = vld [vmem:[#allocation68_spill] sm:$0xff] }
 0x886   :  { %7833 = vmatmul.mubr.bf16.gmra.mrb[92].mxu1 %v16298_v34 }
 0x887   :  { %7840 = vmatprep.mubr.bf16.mxu1 %v16879_v18  ;;  %v6649_v18 = vsel %vm1950_vm9, %v6647_v56, %v6648_v11  ;;  %v12266_v11 = vld [vmem:[#allocation9 + $0x1b0] sm:$0xff]   ;;  %v12269_v56 = vld [vmem:[#allocation9 + $0x1c8] sm:$0xff]  }
 0x88e   :  { %7841 = vmatmul.mubr.bf16.gmra.mrb[96].mxu1 %v16305_v61 }
 0x88f   :  { %7848 = vmatprep.mubr.bf16.mxu1 %v16883_v3 }
 0x896   :  { %7849 = vmatmul.mubr.bf16.gmra.mrb[100].mxu1 %v16318_v40 }
 0x897   :  { %7856 = vmatprep.mubr.bf16.mxu1 %v16559_v0  ;;  %v20006_v0 = vld [vmem:[#allocation32_spill] sm:$0xff] }
 0x89e   :  { %7857 = vmatmul.mubr.bf16.gmra.mrb[104].mxu1 %v6649_v18  ;;  %v12268_v18 = vld [vmem:[#allocation9 + $0x1c0] sm:$0xff]  }
 0x89f   :  { %7864 = vmatprep.mubr.bf16.mxu1 %v16325_v38  ;;  %v19995_v38 = vld [vmem:[#allocation66_spill] sm:$0xff] }
 0x8a6   :  { %7865 = vmatmul.mubr.bf16.gmra.mrb[108].mxu1 %v16896_v52 }
 0x8a7   :  { %7872 = vmatprep.mubr.bf16.mxu1 %v16342_v26  ;;  %v19998_v26 = vld [vmem:[#allocation39_spill] sm:$0xff] }
 0x8ae   :  { %7873 = vmatmul.mubr.bf16.gmra.mrb[112].mxu1 %v16347_v63 }
 0x8af   :  { %7880 = vmatprep.mubr.bf16.mxu1 %v16349_v35  ;;  %v19999_v35 = vld [vmem:[#allocation41_spill] sm:$0xff] }
 0x8b6   :  { %7881 = vmatmul.mubr.bf16.gmra.mrb[116].mxu1 %v16368_v28 }
 0x8b7   :  { %7888 = vmatprep.mubr.bf16.mxu1 %v16371_v36  ;;  %v20000_v36 = vld [vmem:[#allocation45_spill] sm:$0xff] }
 0x8be   :  { %7889 = vmatmul.mubr.bf16.gmra.mrb[120].mxu1 %v19995_v38 }
 0x8bf   :  { %7896 = vmatprep.mubr.bf16.mxu1 %v16379_v10  ;;  %v20001_v10 = vld [vmem:[#allocation47_spill] sm:$0xff] }
 0x8c6   :  { %7897 = vmatmul.mubr.bf16.gmra.mrb[124].mxu1 %v19996_v17 }
 0x8c7   :  { %7904 = vmatprep.mubr.bf16.mxu1 %v16401_v49  ;;  %v20002_v49 = vld [vmem:[#allocation18_spill] sm:$0xff] }
 0x8ce   :  { %7905 = vmatmul.mubr.bf16.gmra.mrb[128].mxu1 %v19997_v29 }
 0x8cf   :  { %7912 = vmatprep.mubr.bf16.mxu1 %v16409_v45  ;;  %v20003_v45 = vld [vmem:[#allocation19_spill] sm:$0xff] }
 0x8d6   :  { %7913 = vmatmul.mubr.bf16.gmra.mrb[132].mxu1 %v19998_v26 }
 0x8d7   :  { %7920 = vmatprep.mubr.bf16.mxu1 %v16430_v22  ;;  %v20004_v22 = vld [vmem:[#allocation54_spill] sm:$0xff] }
 0x8de   :  { %7921 = vmatmul.mubr.bf16.gmra.mrb[136].mxu1 %v19999_v35 }
 0x8df   :  { %7928 = vmatprep.mubr.bf16.mxu1 %v16438_v19  ;;  %v20005_v19 = vld [vmem:[#allocation55_spill] sm:$0xff] }
 0x8e6   :  { %7929 = vmatmul.mubr.bf16.gmra.mrb[140].mxu1 %v20000_v36 }
 0x8e7   :  { %7936 = vmatprep.mubr.bf16.mxu1 %v16458_v20  ;;  %v20007_v20 = vld [vmem:[#allocation57_spill] sm:$0xff] }
 0x8ee   :  { %7937 = vmatmul.mubr.bf16.gmra.mrb[144].mxu1 %v20001_v10 }
 0x8ef   :  { %7944 = vmatprep.mubr.bf16.mxu1 %v16467_v42  ;;  %v12260_v42 = vld [vmem:[#allocation9 + $0x180] sm:$0xff]  }
 0x8f6   :  { %7945 = vmatmul.mubr.bf16.gmra.mrb[148].mxu1 %v20002_v49 }
 0x8f7   :  { %7952 = vmatprep.mubr.bf16.mxu1 %v16487_v6  ;;  %v12261_v6 = vld [vmem:[#allocation9 + $0x188] sm:$0xff]  }
 0x8fe   :  { %7953 = vmatmul.mubr.bf16.gmra.mrb[152].mxu1 %v20003_v45 }
 0x8ff   :  { %7960 = vmatprep.mubr.bf16.mxu1 %v16495_v12  ;;  %v12262_v12 = vld [vmem:[#allocation9 + $0x190] sm:$0xff]  }
 0x906   :  { %7961 = vmatmul.mubr.bf16.gmra.mrb[156].mxu1 %v20004_v22 }
 0x907   :  { %7968 = vmatprep.mubr.bf16.mxu1 %v16515_v24  ;;  %v20008_v24 = vld [vmem:[#allocation17_spill] sm:$0xff] }
 0x90e   :  { %7969 = vmatmul.mubr.bf16.gmra.mrb[160].mxu1 %v20005_v19 }
 0x90f   :  { %7976 = vmatprep.mubr.bf16.mxu1 %v20006_v0 }
 0x916   :  { %7977 = vmatmul.mubr.bf16.gmra.mrb[164].mxu1 %v16546_v7 }
 0x917   :  { %8017 = vmatprep.mubr.bf16.mxu1 %v16751_v37  ;;  %v12265_v37 = vld [vmem:[#allocation9 + $0x1a8] sm:$0xff]  }
 0x91e   :  { %8018 = vmatmul.mubr.bf16.vlgmr.msra.gmra.mrb[40].mxu1 %v20007_v20  ;;  %v20013_v20 = vld [vmem:[#allocation25_spill] sm:$0xff] }
 0x91f   :  { %8025 = vmatprep.mubr.bf16.mxu1 %v16142_v23  ;;  %8275 = vmatpush1.bf16.msra.mxu1 %v12260_v42  ;;  %v20009_v23 = vld [vmem:[#allocation24_spill] sm:$0xff]  ;;  %v12270_v42 = vld [vmem:[#allocation9 + $0x1d0] sm:$0xff]  }
 0x920   :  { %8276 = vmatprep.subr.bf16.mxu1 %v19896_v59 }
 0x923   :  { %8277 = vmatpush1.bf16.msra.mxu1 %v12261_v6  ;;  %v20014_v6 = vld [vmem:[#allocation26_spill] sm:$0xff] }
 0x924   :  { %8278 = vmatprep.subr.bf16.mxu1 %v19896_v59 }
 0x926   :  { %8026 = vmatmul.mubr.bf16.gmra.mrb[44].mxu1 %v20008_v24 }
 0x927   :  { %8033 = vmatprep.mubr.bf16.mxu1 %v16151_v47  ;;  %8279 = vmatpush1.bf16.msra.mxu1 %v12262_v12  ;;  %v20010_v47 = vld [vmem:[#allocation60_spill] sm:$0xff]  ;;  %v20015_v12 = vld [vmem:[#allocation67_spill] sm:$0xff] }
 0x928   :  { %8280 = vmatprep.subr.bf16.mxu1 %v19896_v59 }
 0x92b   :  { %8281 = vmatpush1.bf16.msra.mxu1 %v12263_v55  ;;  %v20016_v55 = vld [vmem:[#allocation30_spill] sm:$0xff] }
 0x92c   :  { %8282 = vmatprep.subr.bf16.mxu1 %v19896_v59 }
 0x92e   :  { %8034 = vmatmul.mubr.bf16.gmra.mrb[48].mxu1 %v20009_v23 }
 0x92f   :  { %8041 = vmatprep.mubr.bf16.mxu1 %v16157_v53  ;;  %8283 = vmatpush1.bf16.msra.mxu1 %v12264_v8  ;;  %v20011_v53 = vld [vmem:[#allocation42_spill] sm:$0xff] }
 0x930   :  { %8284 = vmatprep.subr.bf16.mxu1 %v19896_v59  ;;  %v12273_v8 = vld [vmem:[#allocation9 + $0x1e8] sm:$0xff]  }
 0x933   :  { %8285 = vmatpush1.bf16.msra.mxu1 %v12265_v37  ;;  %v12274_v37 = vld [vmem:[#allocation9 + $0x1f0] sm:$0xff]  }
 0x934   :  { %8286 = vmatprep.subr.bf16.mxu1 %v19896_v59 }
 0x936   :  { %8042 = vmatmul.mubr.bf16.gmra.mrb[52].mxu1 %v20010_v47 }
 0x937   :  { %8049 = vmatprep.mubr.bf16.mxu1 %v16182_v32  ;;  %8287 = vmatpush1.bf16.msra.mxu1 %v12266_v11  ;;  %v20012_v32 = vld [vmem:[#allocation34_spill] sm:$0xff] }
 0x938   :  { %8288 = vmatprep.subr.bf16.mxu1 %v19896_v59 }
 0x93b   :  { %8289 = vmatpush1.bf16.msra.mxu1 %v12267_v2  ;;  %v20021_v2 = vld [vmem:[#allocation64_spill] sm:$0xff] }
 0x93c   :  { %8290 = vmatprep.subr.bf16.mxu1 %v19896_v59 }
 0x93e   :  { %8050 = vmatmul.mubr.bf16.gmra.mrb[56].mxu1 %v20011_v53 }
 0x93f   :  { %8057 = vmatprep.mubr.bf16.mxu1 %v16187_v48  ;;  %8291 = vmatpush1.bf16.msra.mxu1 %v12268_v18  ;;  %v12271_v48 = vld [vmem:[#allocation9 + $0x1d8] sm:$0xff]  }
 0x940   :  { %8292 = vmatprep.subr.bf16.mxu1 %v19896_v59  ;;  %v12404_v18 = vld [vmem:[#allocation3 + $0xc8] ss:$0 sps:$4 sm:$0x11]  }
 0x943   :  { %8293 = vmatpush1.bf16.msra.mxu1 %v12269_v56  ;;  %v6753_v56 = vshll.u32 %v12404_v18, 16  ;;  %v12411_v18 = vld [vmem:[#allocation3 + $0x120] sm:$0xff]  }
 0x944   :  { %8294 = vmatprep.subr.bf16.mxu1 %v19896_v59 }
 0x946   :  { %8058 = vmatmul.mubr.bf16.gmra.mrb[60].mxu1 %v20012_v32 }
 0x947   :  { %8065 = vmatprep.mubr.bf16.mxu1 %v16210_v27  ;;  %8295 = vmatpush1.bf16.msra.mxu1 %v12270_v42  ;;  %v12272_v27 = vld [vmem:[#allocation9 + $0x1e0] sm:$0xff]  }
 0x948   :  { %8296 = vmatprep.subr.bf16.mxu1 %v19896_v59 }
 0x94b   :  { %8297 = vmatpush1.bf16.msra.mxu1 %v12271_v48  ;;  %v6755_v48 = vrot.slane %v6753_v56, 1  ;;  %v20034_v56 = vld [vmem:[#allocation48_spill] sm:$0xff] }
 0x94c   :  { %8298 = vmatprep.subr.bf16.mxu1 %v19896_v59 }
 0x94e   :  { %8066 = vmatmul.mubr.bf16.gmra.mrb[64].mxu1 %v20013_v20 }
 0x94f   :  { %8073 = vmatprep.mubr.bf16.mxu1 %v16217_v50  ;;  %8299 = vmatpush1.bf16.msra.mxu1 %v12272_v27  ;;  %v20017_v50 = vld [vmem:[#allocation43_spill] sm:$0xff] }
 0x950   :  { %8300 = vmatprep.subr.bf16.mxu1 %v19896_v59 }
 0x953   :  { %8301 = vmatpush1.bf16.msra.mxu1 %v12273_v8 }
 0x954   :  { %8302 = vmatprep.subr.bf16.mxu1 %v19896_v59 }
 0x956   :  { %8074 = vmatmul.mubr.bf16.gmra.mrb[68].mxu1 %v20014_v6 }
 0x957   :  { %8081 = vmatprep.mubr.bf16.mxu1 %v16240_v16  ;;  %v20018_v16 = vld [vmem:[#allocation49_spill] sm:$0xff]  ;;  %8303 = vmatpush1.bf16.msra.mxu1 %v12274_v37 }
 0x958   :  { %8304 = vmatprep.subr.bf16.mxu1 %v19896_v59 }
 0x95e   :  { %8082 = vmatmul.mubr.bf16.gmra.mrb[72].mxu1 %v20015_v12 }
 0x95f   :  { %8089 = vmatprep.mubr.bf16.mxu1 %v16247_v14  ;;  %v20019_v14 = vld [vmem:[#allocation51_spill] sm:$0xff] }
 0x966   :  { %8090 = vmatmul.mubr.bf16.gmra.mrb[76].mxu1 %v20016_v55 }
 0x967   :  { %8097 = vmatprep.mubr.bf16.mxu1 %v16270_v4  ;;  %v20020_v4 = vld [vmem:[#allocation38_spill] sm:$0xff] }
 0x96e   :  { %8098 = vmatmul.mubr.bf16.gmra.mrb[80].mxu1 %v20017_v50 }
 0x96f   :  { %8105 = vmatprep.mubr.bf16.mxu1 %v16279_v44  ;;  %v6748_v44 = vshll.u32 %v16883_v3, 16 }
 0x971   :  { %v6750_v11 = vrot.slane %v6748_v44, 1 }
 0x976   :  { %8106 = vmatmul.mubr.bf16.gmra.mrb[84].mxu1 %v20018_v16 }
 0x977   :  { %8113 = vmatprep.mubr.bf16.mxu1 %v16298_v34  ;;  %v6746_v34 = vshrl.u32 %v16883_v3, 16 }
 0x979   :  { %v6751_v42 = vor.u32 %v6750_v11, %v6746_v34  ;;  %v12407_v11 = vld [vmem:[#allocation3 + $0xf0] sm:$0xff]  }
 0x97a   :  { %v12410_v34 = vld [vmem:[#allocation3 + $0x114] sm:$0xff]  }
 0x97b   :  { %v16976_v59 = vsel %vm1533_vm2, %v6751_v42, %v6755_v48  ;;  %v20035_v48 = vld [vmem:[#allocation52_spill] sm:$0xff] }
 0x97e   :  { %8114 = vmatmul.mubr.bf16.gmra.mrb[88].mxu1 %v20019_v14 }
 0x97f   :  { %8121 = vmatprep.mubr.bf16.mxu1 %v16305_v61  ;;  %v12275_v61 = vld [vmem:[#allocation9 + $0x1f8] sm:$0xff]  }
 0x980   :  { %8305 = vmatpush1.bf16.msra.mxu1 %v12275_v61 }
 0x986   :  { %8122 = vmatmul.mubr.bf16.gmra.mrb[92].mxu1 %v20020_v4 }
 0x987   :  { %8129 = vmatprep.mubr.bf16.mxu1 %v16318_v40  ;;  %v12276_v40 = vld [vmem:[#allocation10] sm:$0xff]  }
 0x988   :  { %11116 = vmatprep.subr.bf16.mxu1 %v12276_v40 }
 0x98e   :  { %8130 = vmatmul.mubr.bf16.gmra.mrb[96].mxu1 %v16557_v60 }
 0x98f   :  { %8137 = vmatprep.mubr.bf16.mxu1 %v20021_v2  ;;  %v12409_v2 = vld [vmem:[#allocation3 + $0x108] sm:$0xff]  }
 0x996   :  { %8138 = vmatmul.mubr.bf16.gmra.mrb[100].mxu1 %v16976_v59 }
 0x997   :  { %8145 = vmatprep.mubr.bf16.mxu1 %v16896_v52  ;;  %v20023_v52 = vld [vmem:[#allocation44_spill] sm:$0xff] }
 0x99e   :  { %8146 = vmatmul.mubr.bf16.gmra.mrb[104].mxu1 %v16573_v39  ;;  %v20022_v39 = vld [vmem:[#allocation61_spill] sm:$0xff] }
 0x99f   :  { %8153 = vmatprep.mubr.bf16.mxu1 %v16347_v63  ;;  %v6760_v63 = vshll.u32 %v20006_v0, 16 }
 0x9a6   :  { %8154 = vmatmul.mubr.bf16.gmra.mrb[108].mxu1 %v16581_v25 }
 0x9a7   :  { %8161 = vmatprep.mubr.bf16.mxu1 %v16368_v28  ;;  %v6762_v28 = vrot.slane %v6760_v63, 1 }
 0x9ae   :  { %8162 = vmatmul.mubr.bf16.gmra.mrb[112].mxu1 %v16589_v43 }
 0x9af   :  { %8169 = vmatprep.mubr.bf16.mxu1 %v19995_v38  ;;  %v6758_v38 = vshrl.u32 %v20006_v0, 16  ;;  %v20028_v0 = vld [vmem:[#allocation100_spill] sm:$0xff] }
 0x9b6   :  { %8170 = vmatmul.mubr.bf16.gmra.mrb[116].mxu1 %v16597_v33 }
 0x9b7   :  { %8177 = vmatprep.mubr.bf16.mxu1 %v19996_v17  ;;  %v20024_v17 = vld [vmem:[#allocation36_spill] sm:$0xff] }
 0x9be   :  { %8178 = vmatmul.mubr.bf16.gmra.mrb[120].mxu1 %v16605_v51 }
 0x9bf   :  { %8185 = vmatprep.mubr.bf16.mxu1 %v19997_v29  ;;  %v6765_v29 = vshll.u32 %v20024_v17, 16 }
 0x9c6   :  { %8186 = vmatmul.mubr.bf16.gmra.mrb[124].mxu1 %v16613_v57 }
 0x9c7   :  { %8193 = vmatprep.mubr.bf16.mxu1 %v19998_v26  ;;  %v6763_v26 = vor.u32 %v6762_v28, %v6758_v38 }
 0x9ce   :  { %8194 = vmatmul.mubr.bf16.gmra.mrb[128].mxu1 %v16621_v1 }
 0x9cf   :  { %8201 = vmatprep.mubr.bf16.mxu1 %v19999_v35  ;;  %v6767_v35 = vrot.slane %v6765_v29, 1  ;;  %v12419_v29 = vld [vmem:[#allocation3 + $0x180] sm:$0xff]  }
 0x9d6   :  { %8202 = vmatmul.mubr.bf16.gmra.mrb[132].mxu1 %v16629_v46 }
 0x9d7   :  { %8209 = vmatprep.mubr.bf16.mxu1 %v20000_v36  ;;  %v17014_v36 = vsel %vm1533_vm2, %v6763_v26, %v6767_v35 }
 0x9de   :  { %8210 = vmatmul.mubr.bf16.gmra.mrb[136].mxu1 %v16637_v15 }
 0x9df   :  { %8217 = vmatprep.mubr.bf16.mxu1 %v20001_v10  ;;  %v12278_v10 = vld [vmem:[#allocation10 + $0x10] sm:$0xff]  }
 0x9e6   :  { %8218 = vmatmul.mubr.bf16.gmra.mrb[140].mxu1 %v16645_v31 }
 0x9e7   :  { %8225 = vmatprep.mubr.bf16.mxu1 %v20002_v49  ;;  %v12279_v49 = vld [vmem:[#allocation10 + $0x18] sm:$0xff]  }
 0x9ee   :  { %8226 = vmatmul.mubr.bf16.gmra.mrb[144].mxu1 %v16653_v54 }
 0x9ef   :  { %8233 = vmatprep.mubr.bf16.mxu1 %v20003_v45  ;;  %v12280_v45 = vld [vmem:[#allocation10 + $0x20] sm:$0xff]  }
 0x9f6   :  { %8234 = vmatmul.mubr.bf16.gmra.mrb[148].mxu1 %v16669_v62 }
 0x9f7   :  { %8241 = vmatprep.mubr.bf16.mxu1 %v20004_v22  ;;  %v20026_v22 = vld [vmem:[#allocation90_spill] sm:$0xff] }
 0x9fe   :  { %8242 = vmatmul.mubr.bf16.gmra.mrb[152].mxu1 %v16685_v9 }
 0x9ff   :  { %8249 = vmatprep.mubr.bf16.mxu1 %v20005_v19  ;;  %v12281_v19 = vld [vmem:[#allocation10 + $0x28] sm:$0xff]  }
 0xa06   :  { %8250 = vmatmul.mubr.bf16.gmra.mrb[156].mxu1 %v16701_v58 }
 0xa07   :  { %8257 = vmatprep.mubr.bf16.mxu1 %v16546_v7  ;;  %v12277_v7 = vld [vmem:[#allocation10 + $0x8] sm:$0xff]  }
 0xa0e   :  { %8258 = vmatmul.mubr.bf16.gmra.mrb[160].mxu1 %v20022_v39 }
 0xa0f   :  { %8265 = vmatprep.mubr.bf16.mxu1 %v20023_v52  ;;  %v20037_v52 = vld [vmem:[#allocation46_spill] sm:$0xff] }
 0xa16   :  { %8266 = vmatmul.mubr.bf16.gmra.mrb[164].mxu1 %v17014_v36 }
 0xa17   :  { %8306 = vmatprep.mubr.bf16.mxu1 %v20008_v24  ;;  %v12282_v24 = vld [vmem:[#allocation10 + $0x30] sm:$0xff]  }
 0xa1e   :  { %8307 = vmatmul.mubr.bf16.vlgmr.msra.gmra.mrb[40].mxu1 %v16739_v21  ;;  %v20025_v21 = vld [vmem:[#allocation85_spill] sm:$0xff] }
 0xa1f   :  { %8314 = vmatprep.mubr.bf16.mxu1 %v20009_v23  ;;  %11117 = vmatpush3.bf16.msra.mxu1 %v12276_v40  ;;  %v20030_v23 = vld [vmem:[#allocation113_spill] sm:$0xff] }
 0xa20   :  { %11118 = vmatprep.subr.bf16.mxu1 %v12277_v7  ;;  %v12418_v40 = vld [vmem:[#allocation3 + $0x174] sm:$0xff]  }
 0xa23   :  { %11119 = vmatpush3.bf16.msra.mxu1 %v12277_v7  ;;  %v20038_v7 = vld [vmem:[#allocation65_spill] sm:$0xff] }
 0xa24   :  { %11120 = vmatprep.subr.bf16.mxu1 %v12278_v10 }
 0xa26   :  { %8315 = vmatmul.mubr.bf16.gmra.mrb[44].mxu1 %v16756_v5  ;;  %v20027_v5 = vld [vmem:[#allocation95_spill] sm:$0xff] }
 0xa27   :  { %8322 = vmatprep.mubr.bf16.mxu1 %v20010_v47  ;;  %11121 = vmatpush3.bf16.msra.mxu1 %v12278_v10  ;;  %v20031_v47 = vld [vmem:[#allocation114_spill] sm:$0xff] }
 0xa28   :  { %11122 = vmatprep.subr.bf16.mxu1 %v12279_v49 }
 0xa2b   :  { %11123 = vmatpush3.bf16.msra.mxu1 %v12279_v49 }
 0xa2c   :  { %11124 = vmatprep.subr.bf16.mxu1 %v12280_v45 }
 0xa2e   :  { %8323 = vmatmul.mubr.bf16.gmra.mrb[48].mxu1 %v16770_v13  ;;  %v20029_v13 = vld [vmem:[#allocation105_spill] sm:$0xff] }
 0xa2f   :  { %8330 = vmatprep.mubr.bf16.mxu1 %v20011_v53  ;;  %11125 = vmatpush3.bf16.msra.mxu1 %v12280_v45  ;;  %v20032_v53 = vld [vmem:[#allocation115_spill] sm:$0xff]  ;;  %v20039_v45 = vld [vmem:[#allocation22_spill] sm:$0xff] }
 0xa30   :  { %11126 = vmatprep.subr.bf16.mxu1 %v12281_v19 }
 0xa33   :  { %11127 = vmatpush3.bf16.msra.mxu1 %v12281_v19 }
 0xa34   :  { %11128 = vmatprep.subr.bf16.mxu1 %v12282_v24 }
 0xa36   :  { %8331 = vmatmul.mubr.bf16.gmra.mrb[52].mxu1 %v20025_v21 }
 0xa37   :  { %8338 = vmatprep.mubr.bf16.mxu1 %v20012_v32  ;;  %11129 = vmatpush3.bf16.msra.mxu1 %v12282_v24 }
 0xa3e   :  { %8339 = vmatmul.mubr.bf16.gmra.mrb[56].mxu1 %v20026_v22 }
 0xa3f   :  { %8346 = vmatprep.mubr.bf16.mxu1 %v20013_v20  ;;  %v12283_v20 = vld [vmem:[#allocation10 + $0x38] sm:$0xff]  }
 0xa40   :  { %11130 = vmatprep.subr.bf16.mxu1 %v12283_v20 }
 0xa41   :  { %11131 = vmatpush3.bf16.msra.mxu1 %v12283_v20  ;;  %v20041_v20 = vld [vmem:[#allocation23_spill] sm:$0xff] }
 0xa46   :  { %8347 = vmatmul.mubr.bf16.gmra.mrb[60].mxu1 %v20027_v5 }
 0xa47   :  { %8354 = vmatprep.mubr.bf16.mxu1 %v20014_v6 }
 0xa4e   :  { %8355 = vmatmul.mubr.bf16.gmra.mrb[64].mxu1 %v20028_v0 }
 0xa4f   :  { %8362 = vmatprep.mubr.bf16.mxu1 %v20015_v12  ;;  %v12406_v12 = vld [vmem:[#allocation3 + $0xd4] ss:$0 sps:$4 sm:$0x11]  }
 0xa50   :  { %v6805_v27 = vshll.u32 %v12406_v12, 16 }
 0xa52   :  { %v6807_v8 = vrot.slane %v6805_v27, 1  ;;  %v12421_v27 = vld [vmem:[#allocation3 + $0x198] sm:$0xff]  }
 0xa56   :  { %8363 = vmatmul.mubr.bf16.gmra.mrb[68].mxu1 %v20029_v13  ;;  %v12420_v13 = vld [vmem:[#allocation3 + $0x18c] sm:$0xff]  }
 0xa57   :  { %8370 = vmatprep.mubr.bf16.mxu1 %v20016_v55  ;;  %v20033_v55 = vld [vmem:[#allocation116_spill] sm:$0xff] }
 0xa5e   :  { %8371 = vmatmul.mubr.bf16.gmra.mrb[72].mxu1 %v16850_v30  ;;  %v12405_v30 = vld [vmem:[#allocation3 + $0xcc] sm:$0xff]  }
 0xa5f   :  { %8378 = vmatprep.mubr.bf16.mxu1 %v20017_v50  ;;  %v6800_v32 = vshll.u32 %v12405_v30, 16 }
 0xa61   :  { %v6802_v6 = vrot.slane %v6800_v32, 1 }
 0xa66   :  { %8379 = vmatmul.mubr.bf16.gmra.mrb[76].mxu1 %v16861_v41  ;;  %v6798_v41 = vshrl.u32 %v12405_v30, 16 }
 0xa67   :  { %8386 = vmatprep.mubr.bf16.mxu1 %v20018_v16 }
 0xa68   :  { %v6803_v50 = vor.u32 %v6802_v6, %v6798_v41 }
 0xa6a   :  { %v6808_v16 = vsel %vm1533_vm2, %v6803_v50, %v6807_v8  ;;  %v20042_v50 = vld [vmem:[#allocation35_spill] sm:$0xff] }
 0xa6e   :  { %8387 = vmatmul.mubr.bf16.gmra.mrb[80].mxu1 %v20030_v23 }
 0xa6f   :  { %8394 = vmatprep.mubr.bf16.mxu1 %v20019_v14  ;;  %v17050_v14 = vld [vmem:[#allocation3 + $0x1ac] ss:$0 sps:$4 sm:$0x11]  }
 0xa70   :  { %v6817_v0 = vshll.u32 %v17050_v14, 16 }
 0xa72   :  { %v6819_v24 = vrot.slane %v6817_v0, 1 }
 0xa76   :  { %8395 = vmatmul.mubr.bf16.gmra.mrb[84].mxu1 %v20031_v47  ;;  %v20040_v47 = vld [vmem:[#allocation50_spill] sm:$0xff] }
 0xa77   :  { %8402 = vmatprep.mubr.bf16.mxu1 %v20020_v4  ;;  %v6827_v4 = vrot.slane %v17050_v14, 1  ;;  %v12286_v14 = vld [vmem:[#allocation4] sm:$0xff]  }
 0xa7e   :  { %8403 = vmatmul.mubr.bf16.gmra.mrb[88].mxu1 %v20032_v53 }
 0xa7f   :  { %8410 = vmatprep.mubr.bf16.mxu1 %v16557_v60  ;;  %v17048_v60 = vld [vmem:[#allocation3 + $0x1a4] sm:$0xff]  }
 0xa80   :  { %v6826_v37 = vrot.slane %v17048_v60, 1  ;;  %v6812_v26 = vshll.u32 %v17048_v60, 16  ;;  %v6810_v19 = vshrl.u32 %v17048_v60, 16 }
 0xa82   :  { %v6828_v44 = vsel %vm1950_vm9, %v6826_v37, %v6827_v4  ;;  %v6814_v5 = vrot.slane %v6812_v26, 1  ;;  %v20043_v37 = vld [vmem:[#allocation58_spill] sm:$0xff]  ;;  %v12292_v26 = vld [vmem:[#allocation4 + $0x30] sm:$0xff]  }
 0xa83   :  { %11113 = vmatmul.mubr.bf16.gmra.mrb[212].mxu0 %v6828_v44 }
 0xa86   :  { %8411 = vmatmul.mubr.bf16.gmra.mrb[92].mxu1 %v20033_v55 }
 0xa87   :  { %8418 = vmatprep.mubr.bf16.mxu1 %v16976_v59 }
 0xa8e   :  { %8419 = vmatmul.mubr.bf16.gmra.mrb[96].mxu1 %v16883_v3  ;;  %v12408_v3 = vld [vmem:[#allocation3 + $0xfc] sm:$0xff]  }
 0xa8f   :  { %8426 = vmatprep.mubr.bf16.mxu1 %v6808_v16 }
 0xa96   :  { %8427 = vmatmul.mubr.bf16.gmra.mrb[100].mxu1 %v12405_v30 }
 0xa97   :  { %8434 = vmatprep.mubr.bf16.mxu1 %v16581_v25  ;;  %v12412_v25 = vld [vmem:[#allocation3 + $0x12c] sm:$0xff]  }
 0xa9e   :  { %8435 = vmatmul.mubr.bf16.gmra.mrb[104].mxu1 %v12407_v11 }
 0xa9f   :  { %8442 = vmatprep.mubr.bf16.mxu1 %v16589_v43  ;;  %v12413_v43 = vld [vmem:[#allocation3 + $0x138] sm:$0xff]  }
 0xaa6   :  { %8443 = vmatmul.mubr.bf16.gmra.mrb[108].mxu1 %v12408_v3  ;;  %v20044_v3 = vld [vmem:[#allocation29_spill] sm:$0xff] }
 0xaa7   :  { %8450 = vmatprep.mubr.bf16.mxu1 %v16597_v33  ;;  %v12414_v33 = vld [vmem:[#allocation3 + $0x144] sm:$0xff]  }
 0xaae   :  { %8451 = vmatmul.mubr.bf16.gmra.mrb[112].mxu1 %v12409_v2 }
 0xaaf   :  { %8458 = vmatprep.mubr.bf16.mxu1 %v16605_v51  ;;  %v12415_v51 = vld [vmem:[#allocation3 + $0x150] sm:$0xff]  }
 0xab6   :  { %8459 = vmatmul.mubr.bf16.gmra.mrb[116].mxu1 %v12410_v34 }
 0xab7   :  { %8466 = vmatprep.mubr.bf16.mxu1 %v16613_v57  ;;  %v12416_v57 = vld [vmem:[#allocation3 + $0x15c] sm:$0xff]  }
 0xabe   :  { %8467 = vmatmul.mubr.bf16.gmra.mrb[120].mxu1 %v12411_v18  ;;  %v12287_v18 = vld [vmem:[#allocation4 + $0x8] sm:$0xff]  }
 0xabf   :  { %8474 = vmatprep.mubr.bf16.mxu1 %v16621_v1  ;;  %v12417_v1 = vld [vmem:[#allocation3 + $0x168] sm:$0xff]  }
 0xac6   :  { %8475 = vmatmul.mubr.bf16.gmra.mrb[124].mxu1 %v12412_v25 }
 0xac7   :  { %8482 = vmatprep.mubr.bf16.mxu1 %v16629_v46 }
 0xace   :  { %8483 = vmatmul.mubr.bf16.gmra.mrb[128].mxu1 %v12413_v43  ;;  %v12288_v43 = vld [vmem:[#allocation4 + $0x10] sm:$0xff]  }
 0xacf   :  { %8490 = vmatprep.mubr.bf16.mxu1 %v16637_v15 }
 0xad6   :  { %8491 = vmatmul.mubr.bf16.gmra.mrb[132].mxu1 %v12414_v33  ;;  %v20045_v33 = vld [vmem:[#allocation37_spill] sm:$0xff] }
 0xad7   :  { %8498 = vmatprep.mubr.bf16.mxu1 %v16645_v31 }
 0xade   :  { %8499 = vmatmul.mubr.bf16.gmra.mrb[136].mxu1 %v12415_v51 }
 0xadf   :  { %8506 = vmatprep.mubr.bf16.mxu1 %v16653_v54 }
 0xae6   :  { %8507 = vmatmul.mubr.bf16.gmra.mrb[140].mxu1 %v12416_v57 }
 0xae7   :  { %8514 = vmatprep.mubr.bf16.mxu1 %v16669_v62  ;;  %v20036_v62 = vld [vmem:[#allocation40_spill] sm:$0xff] }
 0xaee   :  { %8515 = vmatmul.mubr.bf16.gmra.mrb[144].mxu1 %v12417_v1 }
 0xaef   :  { %8522 = vmatprep.mubr.bf16.mxu1 %v16685_v9 }
 0xaf1   :  { %v8308_v46 = vpop.f32.mrb[40].mxu1 }
 0xaf2   :  { %v17068_v61 = vadd.f32 %v20034_v56, %v8308_v46  ;;  %v8310_v15 = vpop.f32.mrb[41].mxu1  ;;  %v20046_v46 = vld [vmem:[#allocation53_spill] sm:$0xff] }
 0xaf3   :  { %v8311_v42 = vpop.f32.mrb[42].mxu1  ;;  %v12289_v15 = vld [vmem:[#allocation4 + $0x18] sm:$0xff]  }
 0xaf4   :  { %v17071_v31 = vadd.f32 %v20035_v48, %v8311_v42  ;;  %v8313_v59 = vpop.f32.mrb[43].mxu1  ;;  %v12290_v48 = vld [vmem:[#allocation4 + $0x20] sm:$0xff]  }
 0xaf5   :  { %v20047_v59 = vld [vmem:[#allocation63_spill] sm:$0xff] }
 0xaf6   :  { %8523 = vmatmul.mubr.bf16.gmra.mrb[148].mxu1 %v12418_v40 }
 0xaf7   :  { %8530 = vmatprep.mubr.bf16.mxu1 %v16701_v58 }
 0xaf9   :  { %v8316_v54 = vpop.f32.mrb[44].mxu1 }
 0xafa   :  { %v17075_v63 = vadd.f32 %v20036_v62, %v8316_v54  ;;  %v8318_v28 = vpop.f32.mrb[45].mxu1 }
 0xafb   :  { %v8319_v9 = vpop.f32.mrb[46].mxu1  ;;  %v20048_v28 = vld [vmem:[#allocation59_spill] sm:$0xff] }
 0xafc   :  { %v17078_v38 = vadd.f32 %v20037_v52, %v8319_v9  ;;  %v8321_v17 = vpop.f32.mrb[47].mxu1 }
 0xafd   :  { %v12291_v17 = vld [vmem:[#allocation4 + $0x28] sm:$0xff]  }
 0xafe   :  { %8531 = vmatmul.mubr.bf16.gmra.mrb[152].mxu1 %v12419_v29 }
 0xaff   :  { %8538 = vmatprep.mubr.bf16.mxu1 %v20022_v39  ;;  %v6815_v39 = vor.u32 %v6814_v5, %v6810_v19  ;;  %v12293_v5 = vld [vmem:[#allocation4 + $0x38] sm:$0xff]  }
 0xb01   :  { %v8324_v35 = vpop.f32.mrb[48].mxu1  ;;  %v6820_v12 = vsel %vm1533_vm2, %v6815_v39, %v6819_v24  ;;  %v8924_v39 = vmul.f32 %v17071_v31, %v17071_v31  ;;  %v20051_v24 = vld [vmem:[#allocation31_spill] sm:$0xff] }
 0xb02   :  { %v17083_v10 = vadd.f32 %v20038_v7, %v8324_v35  ;;  %v8326_v58 = vpop.f32.mrb[49].mxu1  ;;  %v20049_v35 = vld [vmem:[#allocation62_spill] sm:$0xff] }
 0xb03   :  { %v8327_v49 = vpop.f32.mrb[50].mxu1 }
 0xb04   :  { %v17086_v21 = vadd.f32 %v20039_v45, %v8327_v49  ;;  %v8329_v22 = vpop.f32.mrb[51].mxu1  ;;  %v20050_v45 = vld [vmem:[#allocation21_spill] sm:$0xff] }
 0xb06   :  { %8539 = vmatmul.mubr.bf16.gmra.mrb[156].mxu1 %v12420_v13  ;;  %v12294_v13 = vld [vmem:[#allocation4 + $0x40] sm:$0xff]  }
 0xb07   :  { %8546 = vmatprep.mubr.bf16.mxu1 %v17014_v36 }
 0xb09   :  { %v8332_v23 = vpop.f32.mrb[52].mxu1 }
 0xb0a   :  { %v17092_v53 = vadd.f32 %v20040_v47, %v8332_v23  ;;  %v8334_v30 = vpop.f32.mrb[53].mxu1 }
 0xb0b   :  { %v8335_v32 = vpop.f32.mrb[54].mxu1  ;;  %v8923_v30 = vmul.f32 %v17068_v61, %v17068_v61 }
 0xb0c   :  { %v17095_v41 = vadd.f32 %v20041_v20, %v8335_v32  ;;  %v8337_v6 = vpop.f32.mrb[55].mxu1  ;;  %v8854_v32 = vadd.f32 %v17071_v31, %v17068_v61  ;;  %v8925_v20 = vmul.f32 %v17075_v63, %v17075_v63 }
 0xb0d   :  { %v8987_v6 = vadd.f32 %v8924_v39, %v8923_v30 }
 0xb0e   :  { %8547 = vmatmul.mubr.bf16.gmra.mrb[160].mxu1 %v12421_v27 }
 0xb0f   :  { %8554 = vmatprep.mubr.bf16.mxu1 %v6820_v12  ;;  %v8855_v12 = vadd.f32 %v8854_v32, %v17075_v63  ;;  %v12299_v32 = vld [vmem:[#allocation4 + $0x68] sm:$0xff]  }
 0xb11   :  { %v8340_v55 = vpop.f32.mrb[56].mxu1 }
 0xb12   :  { %v17099_v36 = vadd.f32 %v20042_v50, %v8340_v55  ;;  %v8342_v8 = vpop.f32.mrb[57].mxu1  ;;  %v8988_v55 = vadd.f32 %v8987_v6, %v8925_v20  ;;  %v8926_v50 = vmul.f32 %v17078_v38, %v17078_v38  ;;  %v12300_v6 = vld [vmem:[#allocation4 + $0x70] sm:$0xff]  }
 0xb13   :  { %v8343_v16 = vpop.f32.mrb[58].mxu1  ;;  %v20052_v8 = vld [vmem:[#allocation20_spill] sm:$0xff] }
 0xb14   :  { %v17102_v4 = vadd.f32 %v20043_v37, %v8343_v16  ;;  %v8345_v44 = vpop.f32.mrb[59].mxu1  ;;  %v12295_v37 = vld [vmem:[#allocation4 + $0x48] sm:$0xff]  }
 0xb16   :  { %8555 = vmatmul.mubr.bf16.gmra.mrb[164].mxu1 %v17048_v60 }
 0xb17   :  { %11132 = vmatprep.mubr.bf16.mxu1 %v12286_v14 }
 0xb19   :  { %v8348_v11 = vpop.f32.mrb[60].mxu1 }
 0xb1a   :  { %v17106_v2 = vadd.f32 %v20044_v3, %v8348_v11  ;;  %v8350_v34 = vpop.f32.mrb[61].mxu1  ;;  %v12296_v11 = vld [vmem:[#allocation4 + $0x50] sm:$0xff]   ;;  %v8856_v3 = vadd.f32 %v8855_v12, %v17078_v38 }
 0xb1b   :  { %v8351_v25 = vpop.f32.mrb[62].mxu1  ;;  %v8927_v34 = vmul.f32 %v17083_v10, %v17083_v10 }
 0xb1c   :  { %v17109_v51 = vadd.f32 %v20045_v33, %v8351_v25  ;;  %v8353_v57 = vpop.f32.mrb[63].mxu1  ;;  %v8989_v33 = vadd.f32 %v8988_v55, %v8926_v50  ;;  %v20057_v55 = vld [vmem:[#allocation70_spill] sm:$0xff] }
 0xb1d   :  { %v8857_v57 = vadd.f32 %v8856_v3, %v17083_v10 }
 0xb1e   :  { %11133 = vmatmul.mubr.bf16.vlgmr.msra.gmra.mrb[168].mxu1 %v12287_v18  ;;  %v20053_v18 = vld [vmem:[#allocation33_spill] sm:$0xff] }
 0xb1f   :  { %11136 = vmatprep.mubr.bf16.mxu1 %v12288_v43 }
 0xb21   :  { %v8356_v1 = vpop.f32.mrb[64].mxu1 }
 0xb22   :  { %v17112_v56 = vadd.f32 %v20046_v46, %v8356_v1  ;;  %v8358_v60 = vpop.f32.mrb[65].mxu1  ;;  %v8990_v1 = vadd.f32 %v8989_v33, %v8927_v34  ;;  %v8928_v46 = vmul.f32 %v17086_v21, %v17086_v21 }
 0xb23   :  { %v8359_v42 = vpop.f32.mrb[66].mxu1 }
 0xb24   :  { %v17115_v40 = vadd.f32 %v20047_v59, %v8359_v42  ;;  %v8361_v54 = vpop.f32.mrb[67].mxu1  ;;  %v8929_v42 = vmul.f32 %v17092_v53, %v17092_v53 }
 0xb26   :  { %11137 = vmatmul.mubr.bf16.gmra.mrb[172].mxu1 %v12289_v15  ;;  %v8858_v15 = vadd.f32 %v8857_v57, %v17086_v21 }
 0xb27   :  { %11140 = vmatprep.mubr.bf16.mxu1 %v12290_v48  ;;  %v20054_v48 = vld [vmem:[#allocation69_spill] sm:$0xff] }
 0xb29   :  { %v8364_v62 = vpop.f32.mrb[68].mxu1 }
 0xb2a   :  { %v17118_v9 = vadd.f32 %v20048_v28, %v8364_v62  ;;  %v8366_v52 = vpop.f32.mrb[69].mxu1  ;;  %v12297_v62 = vld [vmem:[#allocation4 + $0x58] sm:$0xff]  }
 0xb2b   :  { %v8367_v29 = vpop.f32.mrb[70].mxu1  ;;  %v12298_v52 = vld [vmem:[#allocation4 + $0x60] sm:$0xff]  }
 0xb2c   :  { %v17121_v7 = vadd.f32 %v20049_v35, %v8367_v29  ;;  %v8369_v58 = vpop.f32.mrb[71].mxu1  ;;  %v8859_v29 = vadd.f32 %v8858_v15, %v17092_v53 }
 0xb2e   :  { %11141 = vmatmul.mubr.bf16.gmra.mrb[176].mxu1 %v12291_v17  ;;  %v8991_v17 = vadd.f32 %v8990_v1, %v8928_v46  ;;  %v12301_v1 = vld [vmem:[#allocation4 + $0x78] sm:$0xff]  }
 0xb2f   :  { %11144 = vmatprep.mubr.bf16.mxu1 %v12292_v26  ;;  %v20055_v26 = vld [vmem:[#allocation71_spill] sm:$0xff] }
 0xb31   :  { %v8372_v49 = vpop.f32.mrb[72].mxu1 }
 0xb32   :  { %v17124_v22 = vadd.f32 %v20050_v45, %v8372_v49  ;;  %v8374_v19 = vpop.f32.mrb[73].mxu1  ;;  %v8992_v49 = vadd.f32 %v8991_v17, %v8929_v42  ;;  %v8930_v45 = vmul.f32 %v17095_v41, %v17095_v41  ;;  %v8935_v42 = vmul.f32 %v17112_v56, %v17112_v56 }
 0xb33   :  { %v8375_v0 = vpop.f32.mrb[74].mxu1  ;;  %v8860_v19 = vadd.f32 %v8859_v29, %v17095_v41  ;;  %v8936_v29 = vmul.f32 %v17115_v40, %v17115_v40 }
 0xb34   :  { %v17129_v23 = vadd.f32 %v20051_v24, %v8375_v0  ;;  %v8377_v47 = vpop.f32.mrb[75].mxu1  ;;  %v20056_v24 = vld [vmem:[#allocation56_spill] sm:$0xff] }
 0xb35   :  { %v8861_v39 = vadd.f32 %v8860_v19, %v17099_v36 }
 0xb36   :  { %11145 = vmatmul.mubr.bf16.gmra.mrb[180].mxu1 %v12293_v5  ;;  %v8931_v5 = vmul.f32 %v17099_v36, %v17099_v36 }
 0xb37   :  { %11148 = vmatprep.mubr.bf16.mxu1 %v12294_v13  ;;  %v8993_v13 = vadd.f32 %v8992_v49, %v8930_v45  ;;  %v8937_v49 = vmul.f32 %v17118_v9, %v17118_v9  ;;  %v20060_v45 = vld [vmem:[#allocation72_spill] sm:$0xff] }
 0xb39   :  { %v8380_v27 = vpop.f32.mrb[76].mxu1  ;;  %v8994_v12 = vadd.f32 %v8993_v13, %v8931_v5 }
 0xb3a   :  { %v17141_v16 = vadd.f32 %v20052_v8, %v8380_v27  ;;  %v8382_v14 = vpop.f32.mrb[77].mxu1  ;;  %v8932_v27 = vmul.f32 %v17102_v4, %v17102_v4 }
 0xb3b   :  { %v8383_v44 = vpop.f32.mrb[78].mxu1  ;;  %v8862_v14 = vadd.f32 %v8861_v39, %v17102_v4  ;;  %v12304_v39 = vld [vmem:[#allocation4 + $0x90] sm:$0xff]  }
 0xb3c   :  { %v17147_v25 = vadd.f32 %v20053_v18, %v8383_v44  ;;  %v8385_v43 = vpop.f32.mrb[79].mxu1  ;;  %v8995_v44 = vadd.f32 %v8994_v12, %v8932_v27  ;;  %v8934_v18 = vmul.f32 %v17109_v51, %v17109_v51  ;;  %v8938_v27 = vmul.f32 %v17121_v7, %v17121_v7 }
 0xb3d   :  { %v20058_v43 = vld [vmem:[#allocation73_spill] sm:$0xff] }
 0xb3e   :  { %11149 = vmatmul.mubr.bf16.gmra.mrb[184].mxu1 %v12295_v37  ;;  %v8933_v37 = vmul.f32 %v17106_v2, %v17106_v2 }
 0xb3f   :  { %11152 = vmatprep.mubr.bf16.mxu1 %v12296_v11  ;;  %v8863_v11 = vadd.f32 %v8862_v14, %v17106_v2 }
 0xb40   :  { %v8996_v34 = vadd.f32 %v8995_v44, %v8933_v37 }
 0xb41   :  { %v8388_v60 = vpop.f32.mrb[80].mxu1  ;;  %v8864_v15 = vadd.f32 %v8863_v11, %v17109_v51  ;;  %v20062_v11 = vld [vmem:[#allocation77_spill] sm:$0xff] }
 0xb42   :  { %v17156_v59 = vadd.f32 %v20054_v48, %v8388_v60  ;;  %v8390_v54 = vpop.f32.mrb[81].mxu1  ;;  %v12302_v60 = vld [vmem:[#allocation4 + $0x80] sm:$0xff]   ;;  %v20059_v48 = vld [vmem:[#allocation75_spill] sm:$0xff] }
 0xb43   :  { %v8391_v28 = vpop.f32.mrb[82].mxu1 }
 0xb44   :  { %v17160_v35 = vadd.f32 %v20055_v26, %v8391_v28  ;;  %v8393_v58 = vpop.f32.mrb[83].mxu1  ;;  %v8997_v28 = vadd.f32 %v8996_v34, %v8934_v18  ;;  %v12305_v18 = vld [vmem:[#allocation4 + $0x98] sm:$0xff]  }
 0xb46   :  { %11153 = vmatmul.mubr.bf16.gmra.mrb[188].mxu1 %v12297_v62  ;;  %v8998_v17 = vadd.f32 %v8997_v28, %v8935_v42 }
 0xb47   :  { %11156 = vmatprep.mubr.bf16.mxu1 %v12298_v52  ;;  %v8865_v52 = vadd.f32 %v8864_v15, %v17112_v56 }
 0xb49   :  { %v8396_v0 = vpop.f32.mrb[84].mxu1  ;;  %v8866_v58 = vadd.f32 %v8865_v52, %v17115_v40 }
 0xb4a   :  { %v17169_v47 = vadd.f32 %v20056_v24, %v8396_v0  ;;  %v8398_v30 = vpop.f32.mrb[85].mxu1  ;;  %v12303_v0 = vld [vmem:[#allocation4 + $0x88] sm:$0xff]   ;;  %v8999_v24 = vadd.f32 %v8998_v17, %v8936_v29 }
 0xb4b   :  { %v8399_v20 = vpop.f32.mrb[86].mxu1  ;;  %v8867_v30 = vadd.f32 %v8866_v58, %v17118_v9 }
 0xb4c   :  { %v17174_v50 = vadd.f32 %v20057_v55, %v8399_v20  ;;  %v8401_v8 = vpop.f32.mrb[87].mxu1  ;;  %v9000_v12 = vadd.f32 %v8999_v24, %v8937_v49  ;;  %v8942_v49 = vmul.f32 %v17147_v25, %v17147_v25 }
 0xb4d   :  { %v8868_v55 = vadd.f32 %v8867_v30, %v17121_v7  ;;  %v8939_v8 = vmul.f32 %v17124_v22, %v17124_v22  ;;  %v12308_v30 = vld [vmem:[#allocation4 + $0xb0] sm:$0xff]  }
 0xb4e   :  { %11157 = vmatmul.mubr.bf16.gmra.mrb[192].mxu1 %v12299_v32  ;;  %v20061_v32 = vld [vmem:[#allocation74_spill] sm:$0xff]  ;;  %v9001_v37 = vadd.f32 %v9000_v12, %v8938_v27  ;;  %v8943_v12 = vmul.f32 %v17156_v59, %v17156_v59 }
 0xb4f   :  { %11160 = vmatprep.mubr.bf16.mxu1 %v12300_v6  ;;  %v8869_v44 = vadd.f32 %v8868_v55, %v17124_v22  ;;  %v20065_v27 = vld [vmem:[#allocation78_spill] sm:$0xff] }
 0xb51   :  { %v8404_v3 = vpop.f32.mrb[88].mxu1 }
 0xb52   :  { %v17183_v33 = vadd.f32 %v20058_v43, %v8404_v3  ;;  %v8406_v57 = vpop.f32.mrb[89].mxu1 }
 0xb53   :  { %v8407_v46 = vpop.f32.mrb[90].mxu1  ;;  %v12306_v57 = vld [vmem:[#allocation4 + $0xa0] sm:$0xff]  }
 0xb54   :  { %v17189_v54 = vadd.f32 %v20059_v48, %v8407_v46  ;;  %v8409_v62 = vpop.f32.mrb[91].mxu1  ;;  %v8940_v46 = vmul.f32 %v17129_v23, %v17129_v23  ;;  %v8870_v48 = vadd.f32 %v8869_v44, %v17129_v23 }
 0xb55   :  { %v8941_v62 = vmul.f32 %v17141_v16, %v17141_v16 }
 0xb56   :  { %11161 = vmatmul.mubr.bf16.gmra.mrb[196].mxu1 %v12301_v1  ;;  %v9002_v1 = vadd.f32 %v9001_v37, %v8939_v8  ;;  %v8871_v52 = vadd.f32 %v8870_v48, %v17141_v16  ;;  %v17222_v17 = vpop.f32.mrb[212].mxu0  ;;  %v12310_v48 = vld [vmem:[#allocation4 + $0xc0] sm:$0xff]  }
 0xb57   :  { %11164 = vmatprep.mubr.bf16.mxu1 %v12302_v60  ;;  %v20063_v60 = vld [vmem:[#allocation79_spill] sm:$0xff] }
 0xb58   :  { %v9003_v28 = vadd.f32 %v9002_v1, %v8940_v46 }
 0xb59   :  { %v8412_v26 = vpop.f32.mrb[92].mxu1 }
 0xb5a   :  { %v17198_v19 = vadd.f32 %v20060_v45, %v8412_v26  ;;  %v8414_v5 = vpop.f32.mrb[93].mxu1  ;;  %v17224_v26 = vpop.f32.mrb[213].mxu0  ;;  %v9004_v58 = vadd.f32 %v9003_v28, %v8941_v62  ;;  %v20064_v45 = vld [vmem:[#allocation76_spill] sm:$0xff] }
 0xb5b   :  { %v8415_v13 = vpop.f32.mrb[94].mxu1 }
 0xb5c   :  { %v17202_v20 = vadd.f32 %v20061_v32, %v8415_v13  ;;  %v8417_v6 = vpop.f32.mrb[95].mxu1  ;;  %v12307_v13 = vld [vmem:[#allocation4 + $0xa8] sm:$0xff]  }
 0xb5d   :  { %v8872_v6 = vadd.f32 %v8871_v52, %v17147_v25  ;;  %v20067_v52 = vld [vmem:[#allocation83_spill] sm:$0xff] }
 0xb5e   :  { %11165 = vmatmul.mubr.bf16.gmra.mrb[200].mxu1 %v12303_v0 }
 0xb5f   :  { %11168 = vmatprep.mubr.bf16.mxu1 %v12304_v39  ;;  %v17231_v39 = vpop.f32.mrb[214].mxu0  ;;  %v8873_v37 = vadd.f32 %v8872_v6, %v17156_v59 }
 0xb60   :  { %v17233_v32 = vpop.f32.mrb[215].mxu0 }
 0xb61   :  { %v8420_v14 = vpop.f32.mrb[96].mxu1 }
 0xb62   :  { %v17211_v3 = vadd.f32 %v20062_v11, %v8420_v14  ;;  %v8422_v34 = vpop.f32.mrb[97].mxu1  ;;  %v9005_v14 = vadd.f32 %v9004_v58, %v8942_v49  ;;  %v8944_v11 = vmul.f32 %v17160_v35, %v17160_v35 }
 0xb63   :  { %v8423_v43 = vpop.f32.mrb[98].mxu1 }
 0xb64   :  { %v17216_v15 = vadd.f32 %v20063_v60, %v8423_v43  ;;  %v8425_v42 = vpop.f32.mrb[99].mxu1  ;;  %v9006_v44 = vadd.f32 %v9005_v14, %v8943_v12  ;;  %v8945_v43 = vmul.f32 %v17169_v47, %v17169_v47  ;;  %v12309_v60 = vld [vmem:[#allocation4 + $0xb8] sm:$0xff]   ;;  %v12311_v14 = vld [vmem:[#allocation4 + $0xc8] sm:$0xff]  }
 0xb65   :  { %v20068_v12 = vld [vmem:[#allocation80_spill] sm:$0xff] }
 0xb66   :  { %11169 = vmatmul.mubr.bf16.gmra.mrb[204].mxu1 %v12305_v18  ;;  %v8874_v18 = vadd.f32 %v8873_v37, %v17160_v35  ;;  %v9007_v62 = vadd.f32 %v9006_v44, %v8944_v11  ;;  %v12312_v44 = vld [vmem:[#allocation4 + $0xd0] sm:$0xff]  }
 0xb67   :  { %11172 = vmatprep.mubr.bf16.mxu1 %v12306_v57  ;;  %v20066_v57 = vld [vmem:[#allocation81_spill] sm:$0xff] }
 0xb68   :  { %v8875_v28 = vadd.f32 %v8874_v18, %v17169_v47  ;;  %v9008_v49 = vadd.f32 %v9007_v62, %v8945_v43  ;;  %v20069_v18 = vld [vmem:[#allocation82_spill] sm:$0xff] }
 0xb69   :  { %v8428_v29 = vpop.f32.mrb[100].mxu1 }
 0xb6a   :  { %v17229_v5 = vadd.f32 %v20064_v45, %v8428_v29  ;;  %v8430_v0 = vpop.f32.mrb[101].mxu1  ;;  %v8946_v45 = vmul.f32 %v17174_v50, %v17174_v50 }
 0xb6b   :  { %v8431_v24 = vpop.f32.mrb[102].mxu1  ;;  %v8876_v0 = vadd.f32 %v8875_v28, %v17174_v50 }
 0xb6c   :  { %v17239_v55 = vadd.f32 %v20065_v27, %v8431_v24  ;;  %v8433_v8 = vpop.f32.mrb[103].mxu1 }
 0xb6d   :  { %v8877_v6 = vadd.f32 %v8876_v0, %v17183_v33  ;;  %v12313_v0 = vld [vmem:[#allocation4 + $0xd8] sm:$0xff]  }
 0xb6e   :  { %11173 = vmatmul.mubr.bf16.gmra.mrb[208].mxu1 %v12307_v13  ;;  %v8947_v13 = vmul.f32 %v17183_v33, %v17183_v33 }
 0xb6f   :  { %11176 = vmatprep.mubr.bf16.mxu1 %v12308_v30  ;;  %v9009_v30 = vadd.f32 %v9008_v49, %v8946_v45 }
 0xb71   :  { %v8436_v34 = vpop.f32.mrb[104].mxu1  ;;  %v9010_v11 = vadd.f32 %v9009_v30, %v8947_v13 }
 0xb72   :  { %v17248_v1 = vadd.f32 %v20066_v57, %v8436_v34  ;;  %v8438_v46 = vpop.f32.mrb[105].mxu1  ;;  %v8948_v34 = vmul.f32 %v17189_v54, %v17189_v54 }
 0xb73   :  { %v8439_v42 = vpop.f32.mrb[106].mxu1  ;;  %v8878_v46 = vadd.f32 %v8877_v6, %v17189_v54  ;;  %v8951_v6 = vmul.f32 %v17211_v3, %v17211_v3 }
 0xb74   :  { %v17252_v29 = vadd.f32 %v20067_v52, %v8439_v42  ;;  %v8441_v58 = vpop.f32.mrb[107].mxu1  ;;  %v9011_v42 = vadd.f32 %v9010_v11, %v8948_v34  ;;  %v8950_v52 = vmul.f32 %v17202_v20, %v17202_v20  ;;  %v8952_v34 = vmul.f32 %v17216_v15, %v17216_v15 }
 0xb75   :  { %v20071_v58 = vld [vmem:[#allocation86_spill] sm:$0xff] }
 0xb76   :  { %11177 = vmatmul.mubr.bf16.gmra.mrb[212].mxu1 %v12309_v60  ;;  %v8949_v60 = vmul.f32 %v17198_v19, %v17198_v19 }
 0xb77   :  { %11180 = vmatprep.mubr.bf16.mxu1 %v12310_v48  ;;  %v8879_v48 = vadd.f32 %v8878_v46, %v17198_v19  ;;  %v8953_v46 = vmul.f32 %v17229_v5, %v17229_v5 }
 0xb78   :  { %v9012_v28 = vadd.f32 %v9011_v42, %v8949_v60  ;;  %v20074_v60 = vld [vmem:[#allocation84_spill] sm:$0xff] }
 0xb79   :  { %v8444_v24 = vpop.f32.mrb[108].mxu1  ;;  %v8880_v30 = vadd.f32 %v8879_v48, %v17202_v20 }
 0xb7a   :  { %v17261_v27 = vadd.f32 %v20068_v12, %v8444_v24  ;;  %v8446_v8 = vpop.f32.mrb[109].mxu1  ;;  %v12314_v24 = vld [vmem:[#allocation4 + $0xe0] sm:$0xff]   ;;  %v20072_v12 = vld [vmem:[#allocation88_spill] sm:$0xff] }
 0xb7b   :  { %v8447_v37 = vpop.f32.mrb[110].mxu1 }
 0xb7c   :  { %v17266_v43 = vadd.f32 %v20069_v18, %v8447_v37  ;;  %v8449_v57 = vpop.f32.mrb[111].mxu1  ;;  %v9013_v37 = vadd.f32 %v9012_v28, %v8950_v52  ;;  %v12316_v52 = vld [vmem:[#allocation4 + $0xf0] sm:$0xff]  }
 0xb7e   :  { %20070 = vst [vmem:[#allocation66_spill] sm:$0xff] %v17266_v43  ;;  %11181 = vmatmul.mubr.bf16.gmra.mrb[216].mxu1 %v12311_v14  ;;  %v9014_v11 = vadd.f32 %v9013_v37, %v8951_v6  ;;  %v8954_v6 = vmul.f32 %v17239_v55, %v17239_v55 }
 0xb7f   :  { %11184 = vmatprep.mubr.bf16.mxu1 %v12312_v44  ;;  %v8881_v44 = vadd.f32 %v8880_v30, %v17211_v3 }
 0xb81   :  { %v8452_v62 = vpop.f32.mrb[112].mxu1  ;;  %v8882_v57 = vadd.f32 %v8881_v44, %v17216_v15 }
 0xb82   :  { %v17275_v49 = vadd.f32 %v20071_v58, %v8452_v62  ;;  %v8454_v45 = vpop.f32.mrb[113].mxu1  ;;  %v12315_v62 = vld [vmem:[#allocation4 + $0xe8] sm:$0xff]   ;;  %v9015_v58 = vadd.f32 %v9014_v11, %v8952_v34  ;;  %v20077_v34 = vld [vmem:[#allocation91_spill] sm:$0xff] }
 0xb83   :  { %v8455_v13 = vpop.f32.mrb[114].mxu1  ;;  %v8883_v45 = vadd.f32 %v8882_v57, %v17229_v5 }
 0xb84   :  { %v17281_v8 = vadd.f32 %v20072_v12, %v8455_v13  ;;  %v8457_v14 = vpop.f32.mrb[115].mxu1  ;;  %v9016_v30 = vadd.f32 %v9015_v58, %v8953_v46 }
 0xb85   :  { %v8884_v12 = vadd.f32 %v8883_v45, %v17239_v55  ;;  %v8955_v14 = vmul.f32 %v17248_v1, %v17248_v1 }
 0xb86   :  { %20073 = vst [vmem:[#allocation68_spill] sm:$0xff] %v17281_v8  ;;  %11185 = vmatmul.mubr.bf16.gmra.mrb[220].mxu1 %v12313_v0  ;;  %v20075_v0 = vld [vmem:[#allocation87_spill] sm:$0xff]  ;;  %v9017_v44 = vadd.f32 %v9016_v30, %v8954_v6 }
 0xb87   :  { %11188 = vmatprep.mubr.bf16.mxu1 %v12314_v24  ;;  %v8885_v11 = vadd.f32 %v8884_v12, %v17248_v1 }
 0xb89   :  { %v8460_v18 = vpop.f32.mrb[116].mxu1  ;;  %v8886_v45 = vadd.f32 %v8885_v11, %v17252_v29  ;;  %v8959_v11 = vmul.f32 %v17275_v49, %v17275_v49 }
 0xb8a   :  { %v17290_v42 = vadd.f32 %v20074_v60, %v8460_v18  ;;  %v8462_v48 = vpop.f32.mrb[117].mxu1  ;;  %v12317_v60 = vld [vmem:[#allocation4 + $0xf8] sm:$0xff]  }
 0xb8b   :  { %v8463_v28 = vpop.f32.mrb[118].mxu1  ;;  %v9018_v48 = vadd.f32 %v9017_v44, %v8955_v14  ;;  %v8887_v30 = vadd.f32 %v8886_v45, %v17261_v27  ;;  %v8958_v14 = vmul.f32 %v17266_v43, %v17266_v43 }
 0xb8c   :  { %v17294_v13 = vadd.f32 %v20075_v0, %v8463_v28  ;;  %v8465_v24 = vpop.f32.mrb[119].mxu1  ;;  %v20079_v28 = vld [vmem:[#allocation93_spill] sm:$0xff]  ;;  %v8957_v0 = vmul.f32 %v17261_v27, %v17261_v27 }
 0xb8e   :  { %20076 = vst [vmem:[#allocation27_spill] sm:$0xff] %v17294_v13  ;;  %11189 = vmatmul.mubr.bf16.gmra.mrb[224].mxu1 %v12315_v62  ;;  %v8956_v62 = vmul.f32 %v17252_v29, %v17252_v29 }
 0xb8f   :  { %11192 = vmatprep.mubr.bf16.mxu1 %v12316_v52 }
 0xb90   :  { %v9019_v24 = vadd.f32 %v9018_v48, %v8956_v62 }
 0xb91   :  { %v8468_v37 = vpop.f32.mrb[120].mxu1 }
 0xb92   :  { %v17303_v18 = vadd.f32 %v20077_v34, %v8468_v37  ;;  %v8470_v57 = vpop.f32.mrb[121].mxu1  ;;  %v9020_v12 = vadd.f32 %v9019_v24, %v8957_v0  ;;  %v20081_v37 = vld [vmem:[#allocation89_spill] sm:$0xff]  ;;  %v8960_v0 = vmul.f32 %v17281_v8, %v17281_v8 }
 0xb93   :  { %v8471_v46 = vpop.f32.mrb[122].mxu1 }
 0xb94   :  { %20078 = vst [vmem:[#allocation39_spill] sm:$0xff] %v17303_v18  ;;  %v17308_v52 = vadd.f32 %v20079_v28, %v8471_v46  ;;  %v8473_v58 = vpop.f32.mrb[123].mxu1  ;;  %v8888_v46 = vadd.f32 %v8887_v30, %v17266_v43  ;;  %v20083_v28 = vld [vmem:[#allocation92_spill] sm:$0xff]  ;;  %v9021_v62 = vadd.f32 %v9020_v12, %v8958_v14  ;;  %v8961_v30 = vmul.f32 %v17290_v42, %v17290_v42  ;;  %v20086_v14 = vld [vmem:[#allocation98_spill] sm:$0xff] }
 0xb96   :  { %20080 = vst [vmem:[#allocation41_spill] sm:$0xff] %v17308_v52  ;;  %11193 = vmatmul.mubr.bf16.gmra.mrb[228].mxu1 %v12317_v60  ;;  %v8889_v58 = vadd.f32 %v8888_v46, %v17275_v49  ;;  %v9022_v45 = vadd.f32 %v9021_v62, %v8959_v11  ;;  %v8962_v62 = vmul.f32 %v17294_v13, %v17294_v13 }
 0xb99   :  { %v8476_v6 = vpop.f32.mrb[124].mxu1 }
 0xb9a   :  { %v17317_v44 = vadd.f32 %v20081_v37, %v8476_v6  ;;  %v8478_v34 = vpop.f32.mrb[125].mxu1  ;;  %v8890_v6 = vadd.f32 %v8889_v58, %v17281_v8  ;;  %v20085_v37 = vld [vmem:[#allocation96_spill] sm:$0xff]  ;;  %v8963_v8 = vmul.f32 %v17303_v18, %v17303_v18 }
 0xb9b   :  { %v8479_v57 = vpop.f32.mrb[126].mxu1 }
 0xb9c   :  { %20082 = vst [vmem:[#allocation45_spill] sm:$0xff] %v17317_v44  ;;  %v17323_v60 = vadd.f32 %v20083_v28, %v8479_v57  ;;  %v8481_v48 = vpop.f32.mrb[127].mxu1  ;;  %v9023_v28 = vadd.f32 %v9022_v45, %v8960_v0  ;;  %v8891_v12 = vadd.f32 %v8890_v6, %v17290_v42  ;;  %v20088_v45 = vld [vmem:[#allocation94_spill] sm:$0xff] }
 0xb9e   :  { %20084 = vst [vmem:[#allocation47_spill] sm:$0xff] %v17323_v60  ;;  %v9024_v48 = vadd.f32 %v9023_v28, %v8961_v30  ;;  %v8892_v58 = vadd.f32 %v8891_v12, %v17294_v13  ;;  %v8964_v30 = vmul.f32 %v17308_v52, %v17308_v52  ;;  %v20089_v28 = vld [vmem:[#allocation97_spill] sm:$0xff] }
 0xba1   :  { %v8484_v24 = vpop.f32.mrb[128].mxu1 }
 0xba2   :  { %v17332_v34 = vadd.f32 %v20085_v37, %v8484_v24  ;;  %v8486_v43 = vpop.f32.mrb[129].mxu1  ;;  %v9025_v37 = vadd.f32 %v9024_v48, %v8962_v62  ;;  %v8965_v48 = vmul.f32 %v17317_v44, %v17317_v44 }
 0xba3   :  { %v8487_v57 = vpop.f32.mrb[130].mxu1  ;;  %v8893_v43 = vadd.f32 %v8892_v58, %v17303_v18 }
 0xba4   :  { %v17336_v46 = vadd.f32 %v20086_v14, %v8487_v57  ;;  %v8489_v11 = vpop.f32.mrb[131].mxu1  ;;  %v9026_v14 = vadd.f32 %v9025_v37, %v8963_v8  ;;  %v8966_v8 = vmul.f32 %v17323_v60, %v17323_v60  ;;  %v20091_v37 = vld [vmem:[#allocation101_spill] sm:$0xff] }
 0xba5   :  { %v8894_v13 = vadd.f32 %v8893_v43, %v17308_v52  ;;  %v8967_v43 = vmul.f32 %v17332_v34, %v17332_v34 }
 0xba6   :  { %20087 = vst [vmem:[#allocation18_spill] sm:$0xff] %v17336_v46  ;;  %v9027_v62 = vadd.f32 %v9026_v14, %v8964_v30 }
 0xba7   :  { %v8895_v58 = vadd.f32 %v8894_v13, %v17317_v44 }
 0xba9   :  { %v8492_v24 = vpop.f32.mrb[132].mxu1 }
 0xbaa   :  { %v17345_v0 = vadd.f32 %v20088_v45, %v8492_v24  ;;  %v8494_v6 = vpop.f32.mrb[133].mxu1  ;;  %v9028_v45 = vadd.f32 %v9027_v62, %v8965_v48  ;;  %v8968_v62 = vmul.f32 %v17336_v46, %v17336_v46 }
 0xbab   :  { %v8495_v57 = vpop.f32.mrb[134].mxu1 }
 0xbac   :  { %v17350_v11 = vadd.f32 %v20089_v28, %v8495_v57  ;;  %v8497_v12 = vpop.f32.mrb[135].mxu1  ;;  %v8896_v28 = vadd.f32 %v8895_v58, %v17323_v60  ;;  %v9029_v13 = vadd.f32 %v9028_v45, %v8966_v8  ;;  %v8969_v58 = vmul.f32 %v17345_v0, %v17345_v0  ;;  %v20097_v8 = vld [vmem:[#allocation102_spill] sm:$0xff] }
 0xbad   :  { %v20093_v12 = vld [vmem:[#allocation103_spill] sm:$0xff] }
 0xbae   :  { %20090 = vst [vmem:[#allocation19_spill] sm:$0xff] %v17350_v11  ;;  %v8897_v30 = vadd.f32 %v8896_v28, %v17332_v34  ;;  %v9030_v48 = vadd.f32 %v9029_v13, %v8967_v43  ;;  %v8970_v13 = vmul.f32 %v17350_v11, %v17350_v11 }
 0xbb1   :  { %v8500_v24 = vpop.f32.mrb[136].mxu1 }
 0xbb2   :  { %v17359_v6 = vadd.f32 %v20091_v37, %v8500_v24  ;;  %v8502_v18 = vpop.f32.mrb[137].mxu1  ;;  %v20095_v37 = vld [vmem:[#allocation99_spill] sm:$0xff] }
 0xbb3   :  { %v8503_v57 = vpop.f32.mrb[138].mxu1  ;;  %v8898_v18 = vadd.f32 %v8897_v30, %v17336_v46 }
 0xbb4   :  { %20092 = vst [vmem:[#allocation54_spill] sm:$0xff] %v17359_v6  ;;  %v17365_v52 = vadd.f32 %v20093_v12, %v8503_v57  ;;  %v8505_v14 = vpop.f32.mrb[139].mxu1  ;;  %v9031_v12 = vadd.f32 %v9030_v48, %v8968_v62  ;;  %v8971_v46 = vmul.f32 %v17359_v6, %v17359_v6  ;;  %v20099_v48 = vld [vmem:[#allocation106_spill] sm:$0xff] }
 0xbb5   :  { %v8899_v45 = vadd.f32 %v8898_v18, %v17345_v0 }
 0xbb6   :  { %20094 = vst [vmem:[#allocation55_spill] sm:$0xff] %v17365_v52  ;;  %v9032_v14 = vadd.f32 %v9031_v12, %v8969_v58  ;;  %v8972_v58 = vmul.f32 %v17365_v52, %v17365_v52  ;;  %v20100_v12 = vld [vmem:[#allocation108_spill] sm:$0xff] }
 0xbb7   :  { %v8900_v30 = vadd.f32 %v8899_v45, %v17350_v11 }
 0xbb9   :  { %v8508_v24 = vpop.f32.mrb[140].mxu1 }
 0xbba   :  { %v17374_v60 = vadd.f32 %v20095_v37, %v8508_v24  ;;  %v8510_v44 = vpop.f32.mrb[141].mxu1  ;;  %v9033_v37 = vadd.f32 %v9032_v14, %v8970_v13 }
 0xbbb   :  { %v8511_v57 = vpop.f32.mrb[142].mxu1  ;;  %v8901_v44 = vadd.f32 %v8900_v30, %v17359_v6 }
 0xbbc   :  { %20096 = vst [vmem:[#allocation32_spill] sm:$0xff] %v17374_v60  ;;  %v17378_v28 = vadd.f32 %v20097_v8, %v8511_v57  ;;  %v8513_v43 = vpop.f32.mrb[143].mxu1  ;;  %v9034_v8 = vadd.f32 %v9033_v37, %v8971_v46  ;;  %v8973_v14 = vmul.f32 %v17374_v60, %v17374_v60  ;;  %v20102_v37 = vld [vmem:[#allocation104_spill] sm:$0xff] }
 0xbbd   :  { %v8902_v11 = vadd.f32 %v8901_v44, %v17365_v52 }
 0xbbe   :  { %20098 = vst [vmem:[#allocation57_spill] sm:$0xff] %v17378_v28  ;;  %v9035_v13 = vadd.f32 %v9034_v8, %v8972_v58  ;;  %v8974_v46 = vmul.f32 %v17378_v28, %v17378_v28 }
 0xbbf   :  { %v8903_v30 = vadd.f32 %v8902_v11, %v17374_v60 }
 0xbc1   :  { %v8516_v24 = vpop.f32.mrb[144].mxu1 }
 0xbc2   :  { %v17387_v62 = vadd.f32 %v20099_v48, %v8516_v24  ;;  %v8518_v18 = vpop.f32.mrb[145].mxu1  ;;  %v9036_v48 = vadd.f32 %v9035_v13, %v8973_v14 }
 0xbc3   :  { %v8519_v57 = vpop.f32.mrb[146].mxu1 }
 0xbc4   :  { %v17392_v43 = vadd.f32 %v20100_v12, %v8519_v57  ;;  %v8521_v45 = vpop.f32.mrb[147].mxu1  ;;  %v8904_v12 = vadd.f32 %v8903_v30, %v17378_v28  ;;  %v8975_v44 = vmul.f32 %v17387_v62, %v17387_v62  ;;  %v9037_v11 = vadd.f32 %v9036_v48, %v8974_v46  ;;  %v20106_v46 = vld [vmem:[#allocation112_spill] sm:$0xff] }
 0xbc5   :  { %v20103_v45 = vld [vmem:[#allocation107_spill] sm:$0xff] }
 0xbc6   :  { %20101 = vst [vmem:[#allocation17_spill] sm:$0xff] %v17392_v43  ;;  %v8905_v58 = vadd.f32 %v8904_v12, %v17387_v62  ;;  %v9038_v14 = vadd.f32 %v9037_v11, %v8975_v44  ;;  %v8976_v13 = vmul.f32 %v17392_v43, %v17392_v43 }
 0xbc9   :  { %v8524_v24 = vpop.f32.mrb[148].mxu1 }
 0xbca   :  { %v17401_v18 = vadd.f32 %v20102_v37, %v8524_v24  ;;  %v8526_v6 = vpop.f32.mrb[149].mxu1  ;;  %v20105_v37 = vld [vmem:[#allocation110_spill] sm:$0xff] }
 0xbcb   :  { %v8527_v57 = vpop.f32.mrb[150].mxu1  ;;  %v8906_v6 = vadd.f32 %v8905_v58, %v17392_v43 }
 0xbcc   :  { %v17407_v52 = vadd.f32 %v20103_v45, %v8527_v57  ;;  %v8529_v8 = vpop.f32.mrb[151].mxu1  ;;  %v8977_v30 = vmul.f32 %v17401_v18, %v17401_v18  ;;  %v9039_v45 = vadd.f32 %v9038_v14, %v8976_v13  ;;  %v20108_v14 = vld [vmem:[#allocation109_spill] sm:$0xff] }
 0xbcd   :  { %v8907_v48 = vadd.f32 %v8906_v6, %v17401_v18 }
 0xbce   :  { %20104 = vst [vmem:[#allocation24_spill] sm:$0xff] %v17407_v52  ;;  %v9040_v8 = vadd.f32 %v9039_v45, %v8977_v30  ;;  %v8978_v11 = vmul.f32 %v17407_v52, %v17407_v52  ;;  %v20110_v45 = vld [vmem:[#allocation111_spill] sm:$0xff] }
 0xbcf   :  { %v8908_v58 = vadd.f32 %v8907_v48, %v17407_v52 }
 0xbd1   :  { %v8532_v24 = vpop.f32.mrb[152].mxu1 }
 0xbd2   :  { %v17416_v28 = vadd.f32 %v20105_v37, %v8532_v24  ;;  %v8534_v60 = vpop.f32.mrb[153].mxu1  ;;  %v9041_v37 = vadd.f32 %v9040_v8, %v8978_v11 }
 0xbd3   :  { %v8535_v57 = vpop.f32.mrb[154].mxu1 }
 0xbd4   :  { %v17420_v12 = vadd.f32 %v20106_v46, %v8535_v57  ;;  %v8537_v44 = vpop.f32.mrb[155].mxu1  ;;  %v8979_v43 = vmul.f32 %v17416_v28, %v17416_v28  ;;  %v8909_v60 = vadd.f32 %v8908_v58, %v17416_v28 }
 0xbd6   :  { %20107 = vst [vmem:[#allocation60_spill] sm:$0xff] %v17420_v12  ;;  %v9042_v46 = vadd.f32 %v9041_v37, %v8979_v43  ;;  %v8980_v30 = vmul.f32 %v17420_v12, %v17420_v12  ;;  %v8910_v52 = vadd.f32 %v8909_v60, %v17420_v12 }
 0xbd8   :  { %v9043_v11 = vadd.f32 %v9042_v46, %v8980_v30 }
 0xbd9   :  { %v8540_v24 = vpop.f32.mrb[156].mxu1 }
 0xbda   :  { %v17429_v13 = vadd.f32 %v20108_v14, %v8540_v24  ;;  %v8542_v6 = vpop.f32.mrb[157].mxu1 }
 0xbdb   :  { %v8543_v57 = vpop.f32.mrb[158].mxu1 }
 0xbdc   :  { %20109 = vst [vmem:[#allocation42_spill] sm:$0xff] %v17429_v13  ;;  %v17434_v44 = vadd.f32 %v20110_v45, %v8543_v57  ;;  %v8545_v48 = vpop.f32.mrb[159].mxu1  ;;  %v8981_v8 = vmul.f32 %v17429_v13, %v17429_v13  ;;  %v8911_v58 = vadd.f32 %v8910_v52, %v17429_v13 }
 0xbde   :  { %20111 = vst [vmem:[#allocation34_spill] sm:$0xff] %v17434_v44  ;;  %v9044_v14 = vadd.f32 %v9043_v11, %v8981_v8  ;;  %v8982_v43 = vmul.f32 %v17434_v44, %v17434_v44  ;;  %v8912_v45 = vadd.f32 %v8911_v58, %v17434_v44 }
 0xbe0   :  { %v9045_v52 = vadd.f32 %v9044_v14, %v8982_v43 }
 0xbe1   :  { %v8548_v24 = vpop.f32.mrb[160].mxu1 }
 0xbe2   :  { %v17443_v37 = vadd.f32 %v17224_v26, %v8548_v24  ;;  %v8550_v6 = vpop.f32.mrb[161].mxu1 }
 0xbe3   :  { %v8551_v57 = vpop.f32.mrb[162].mxu1 }
 0xbe4   :  { %20112 = vst [vmem:[#allocation25_spill] sm:$0xff] %v17443_v37  ;;  %v8983_v60 = vmul.f32 %v17443_v37, %v17443_v37  ;;  %v17449_v48 = vadd.f32 %v17233_v32, %v8551_v57  ;;  %v8553_v46 = vpop.f32.mrb[163].mxu1  ;;  %v8913_v30 = vadd.f32 %v8912_v45, %v17443_v37 }
 0xbe6   :  { %20113 = vst [vmem:[#allocation26_spill] sm:$0xff] %v17449_v48  ;;  %v9046_v8 = vadd.f32 %v9045_v52, %v8983_v60  ;;  %v8984_v11 = vmul.f32 %v17449_v48, %v17449_v48  ;;  %v8914_v24 = vadd.f32 %v8913_v30, %v17449_v48 }
 0xbe8   :  { %v9047_v13 = vadd.f32 %v9046_v8, %v8984_v11 }
 0xbe9   :  { %v8556_v26 = vpop.f32.mrb[164].mxu1 }
 0xbea   :  { %v17456_v6 = vadd.f32 %v17222_v17, %v8556_v26  ;;  %v8558_v58 = vpop.f32.mrb[165].mxu1 }
 0xbeb   :  { %v8559_v44 = vpop.f32.mrb[166].mxu1 }
 0xbec   :  { %20114 = vst [vmem:[#allocation67_spill] sm:$0xff] %v17456_v6  ;;  %v8915_v32 = vadd.f32 %v8914_v24, %v17456_v6  ;;  %v8985_v14 = vmul.f32 %v17456_v6, %v17456_v6  ;;  %v17462_v43 = vadd.f32 %v17231_v39, %v8559_v44  ;;  %v8561_v57 = vpop.f32.mrb[167].mxu1 }
 0xbee   :  { %v9048_v45 = vadd.f32 %v9047_v13, %v8985_v14  ;;  %v8916_v60 = vadd.f32 %v8915_v32, %v17462_v43  ;;  %v8986_v46 = vmul.f32 %v17462_v43, %v17462_v43 }
 0xbf0   :  { %v8917_v17 = vrot.slane %v8916_v60, 4  ;;  %v9049_v52 = vadd.f32 %v9048_v45, %v8986_v46 }
 0xbf1   :  { %v17467_v30 = vpop.f32.mrb[168].mxu1 }
 0xbf2   :  { %20115 = vst [vmem:[#allocation30_spill] sm:$0xff] %v17467_v30  ;;  %v8918_v8 = vadd.f32 %v8917_v17, %v8916_v60  ;;  %v9050_v11 = vrot.slane %v9049_v52, 4  ;;  %v17469_v26 = vpop.f32.mrb[169].mxu1  ;;  %v9748_v60 = vmul.f32 %v17467_v30, %v17467_v30 }
 0xbf3   :  { %20116 = vst [vmem:[#allocation43_spill] sm:$0xff] %v17469_v26  ;;  %v17471_v24 = vpop.f32.mrb[170].mxu1  ;;  %v9746_v13 = vmul.f32 %v17469_v26, %v17469_v26 }
 0xbf4   :  { %20117 = vst [vmem:[#allocation49_spill] sm:$0xff] %v17471_v24  ;;  %v8919_v58 = vrot.slane %v8918_v8, 2  ;;  %v9051_v39 = vadd.f32 %v9050_v11, %v9049_v52  ;;  %v17473_v44 = vpop.f32.mrb[171].mxu1  ;;  %v9749_v6 = vmul.f32 %v17471_v24, %v17471_v24 }
 0xbf5   :  { %20118 = vst [vmem:[#allocation51_spill] sm:$0xff] %v17473_v44  ;;  %v9677_v32 = vadd.f32 %v17473_v44, %v17469_v26  ;;  %v9747_v14 = vmul.f32 %v17473_v44, %v17473_v44 }
 0xbf6   :  { %v8920_v57 = vadd.f32 %v8919_v58, %v8918_v8  ;;  %v9052_v45 = vrot.slane %v9051_v39, 2 }
 0xbf7   :  { %v9678_v46 = vadd.f32 %v17467_v30, %v9677_v32  ;;  %v9810_v17 = vadd.f32 %v9747_v14, %v9746_v13 }
 0xbf8   :  { %v8921_v52 = vrot.slane %v8920_v57, 1  ;;  %v9053_v11 = vadd.f32 %v9052_v45, %v9051_v39 }
 0xbf9   :  { %v9811_v48 = vadd.f32 %v9810_v17, %v9748_v60  ;;  %v17486_v37 = vpop.f32.mrb[172].mxu1  ;;  %v9679_v26 = vadd.f32 %v17471_v24, %v9678_v46 }
 0xbfa   :  { %20119 = vst [vmem:[#allocation38_spill] sm:$0xff] %v17486_v37  ;;  %v8922_v12 = vadd.f32 %v8921_v52, %v8920_v57  ;;  %v9054_v44 = vrot.slane %v9053_v11, 1  ;;  %v17489_v8 = vpop.f32.mrb[173].mxu1 }
 0xbfb   :  { %20120 = vst [vmem:[#allocation64_spill] sm:$0xff] %v17489_v8  ;;  %v9680_v58 = vadd.f32 %v9679_v26, %v17489_v8  ;;  %v9750_v32 = vmul.f32 %v17489_v8, %v17489_v8  ;;  %v9812_v13 = vadd.f32 %v9811_v48, %v9749_v6  ;;  %v17494_v14 = vpop.f32.mrb[174].mxu1  ;;  %v9752_v26 = vmul.f32 %v17486_v37, %v17486_v37 }
 0xbfc   :  { %20121 = vst [vmem:[#allocation61_spill] sm:$0xff] %v17494_v14  ;;  %v9055_v39 = vadd.f32 %v9054_v44, %v9053_v11  ;;  %v9056_v45 = vmul.f32 0.001953125, %v8922_v12  ;;  %v17496_v30 = vpop.f32.mrb[175].mxu1  ;;  %v9753_v12 = vmul.f32 %v17494_v14, %v17494_v14 }
 0xbfd   :  { %20122 = vst [vmem:[#allocation44_spill] sm:$0xff] %v17496_v30  ;;  %v9813_v60 = vadd.f32 %v9812_v13, %v9750_v32  ;;  %v9681_v17 = vadd.f32 %v9680_v58, %v17496_v30  ;;  %v9751_v57 = vmul.f32 %v17496_v30, %v17496_v30 }
 0xbfe   :  { %v9057_v46 = vmul.f32 0.001953125, %v9055_v39  ;;  %v9058_v52 = vmul.f32 %v9056_v45, %v9056_v45 }
 0xbff   :  { %v9682_v8 = vadd.f32 %v17486_v37, %v9681_v17  ;;  %v9814_v48 = vadd.f32 %v9813_v60, %v9751_v57  ;;  %v20147_v37 = vld [vmem:[#allocation39_spill] sm:$0xff] }
 0xc00   :  { %v9059_v6 = vsub.f32 %v9057_v46, %v9058_v52 }
 0xc01   :  { %v9815_v44 = vadd.f32 %v9814_v48, %v9752_v26  ;;  %v17506_v11 = vpop.f32.mrb[176].mxu1  ;;  %v9683_v58 = vadd.f32 %v17494_v14, %v9682_v8  ;;  %v20133_v14 = vld [vmem:[#allocation28_spill] sm:$0xff] }
 0xc02   :  { %20123 = vst [vmem:[#allocation36_spill] sm:$0xff] %v17506_v11  ;;  %v9060_v32 = vmax.f32 %v9059_v6, 0.0  ;;  %v17509_v13 = vpop.f32.mrb[177].mxu1  ;;  %v9756_v26 = vmul.f32 %v17506_v11, %v17506_v11 }
 0xc03   :  { %20124 = vst [vmem:[#allocation85_spill] sm:$0xff] %v17509_v13  ;;  %v9684_v39 = vadd.f32 %v9683_v58, %v17509_v13  ;;  %v9754_v30 = vmul.f32 %v17509_v13, %v17509_v13  ;;  %v9816_v24 = vadd.f32 %v9815_v44, %v9753_v12  ;;  %v17514_v17 = vpop.f32.mrb[178].mxu1 }
 0xc04   :  { %20125 = vst [vmem:[#allocation90_spill] sm:$0xff] %v17514_v17  ;;  %v9061_v60 = vadd.f32 1e-05, %v9060_v32  ;;  %v17516_v57 = vpop.f32.mrb[179].mxu1  ;;  %v9757_v12 = vmul.f32 %v17514_v17, %v17514_v17 }
 0xc05   :  { %20126 = vst [vmem:[#allocation95_spill] sm:$0xff] %v17516_v57  ;;  %v9817_v46 = vadd.f32 %v9816_v24, %v9754_v30  ;;  %v9685_v52 = vadd.f32 %v9684_v39, %v17516_v57  ;;  %v9755_v8 = vmul.f32 %v17516_v57, %v17516_v57 }
 0xc06   :  { %12320 = vrsqrt.f32 %v9061_v60 }
 0xc07   :  { %v9686_v48 = vadd.f32 %v17506_v11, %v9685_v52  ;;  %v9818_v6 = vadd.f32 %v9817_v46, %v9755_v8 }
 0xc09   :  { %v9819_v44 = vadd.f32 %v9818_v6, %v9756_v26  ;;  %v17526_v58 = vpop.f32.mrb[180].mxu1  ;;  %v9687_v30 = vadd.f32 %v17514_v17, %v9686_v48  ;;  %v8852_v48 = vld [vmem:[%s19176_s5] sm:$0x1] }
 0xc0a   :  { %20127 = vst [vmem:[#allocation100_spill] sm:$0xff] %v17526_v58  ;;  %v17529_v24 = vpop.f32.mrb[181].mxu1  ;;  %v9760_v6 = vmul.f32 %v17526_v58, %v17526_v58 }
 0xc0b   :  { %20128 = vst [vmem:[#allocation105_spill] sm:$0xff] %v17529_v24  ;;  %v9688_v32 = vadd.f32 %v9687_v30, %v17529_v24  ;;  %v9758_v39 = vmul.f32 %v17529_v24, %v17529_v24  ;;  %v9820_v60 = vadd.f32 %v9819_v44, %v9757_v12  ;;  %v17534_v57 = vpop.f32.mrb[182].mxu1 }
 0xc0c   :  { %20129 = vst [vmem:[#allocation113_spill] sm:$0xff] %v17534_v57  ;;  %v17536_v52 = vpop.f32.mrb[183].mxu1 }
 0xc0d   :  { %20130 = vst [vmem:[#allocation114_spill] sm:$0xff] %v17536_v52  ;;  %v9821_v46 = vadd.f32 %v9820_v60, %v9758_v39  ;;  %v9689_v8 = vadd.f32 %v9688_v32, %v17536_v52  ;;  %v9759_v26 = vmul.f32 %v17536_v52, %v17536_v52  ;;  %v8853_v39 = vld [vmem:[%s19177_s6] sm:$0x1]  ;;  %v9761_v60 = vmul.f32 %v17534_v57, %v17534_v57 }
 0xc0f   :  { %v9690_v30 = vadd.f32 %v17526_v58, %v9689_v8  ;;  %v9822_v12 = vadd.f32 %v9821_v46, %v9759_v26  ;;  %v20146_v58 = vld [vmem:[#allocation27_spill] sm:$0xff] }
 0xc10   :  { %v12321_v44 = vpop.eup %12320 }
 0xc11   :  { %v9063_v24 = vmul.f32 %v12321_v44, %v8852_v48  ;;  %v9823_v17 = vadd.f32 %v9822_v12, %v9760_v6  ;;  %v17547_v11 = vpop.f32.mrb[184].mxu1  ;;  %v9691_v32 = vadd.f32 %v17534_v57, %v9690_v30  ;;  %v20145_v57 = vld [vmem:[#allocation68_spill] sm:$0xff] }
 0xc12   :  { %20131 = vst [vmem:[#allocation115_spill] sm:$0xff] %v17547_v11  ;;  %v17555_v52 = vpop.f32.mrb[185].mxu1 }
 0xc13   :  { %20132 = vst [vmem:[#allocation116_spill] sm:$0xff] %v17555_v52  ;;  %v9064_v13 = vmul.f32 %v9063_v24, %v9056_v45  ;;  %v17558_v8 = vrot.slane %v9063_v24, %v20133_v14  ;;  %v17561_v46 = vadd.f32 %v9691_v32, %v17555_v52  ;;  %v17563_v26 = vpop.f32.mrb[186].mxu1  ;;  %v17567_v48 = vmul.f32 %v17555_v52, %v17555_v52  ;;  %v20144_v52 = vld [vmem:[#allocation66_spill] sm:$0xff] }
 0xc14   :  { %20135 = vst [vmem:[#allocation52_spill] sm:$0xff] %v17563_v26  ;;  %v17569_v6 = vadd.f32 %v9823_v17, %v9761_v60  ;;  %v17571_v30 = vpop.f32.mrb[187].mxu1 }
 0xc15   :  { %20134 = vst [vmem:[#allocation48_spill] sm:$0xff] %v17561_v46  ;;  %20136 = vst [vmem:[#allocation40_spill] sm:$0xff] %v17567_v48  ;;  %v9065_v12 = vsub.f32 %v8853_v39, %v9064_v13  ;;  %v9958_v45 = vmul.f32 %v17558_v8, %v17462_v43  ;;  %v17577_v24 = vmul.f32 %v17558_v8, %v17068_v61 }
 0xc16   :  { %20137 = vst [vmem:[#allocation46_spill] sm:$0xff] %v17569_v6  ;;  %20138 = vst [vmem:[#allocation65_spill] sm:$0xff] %v17571_v30  ;;  %v17581_v44 = vmul.f32 %v17558_v8, %v17071_v31  ;;  %v17585_v32 = vmul.f32 %v17558_v8, %v17075_v63  ;;  %v17589_v17 = vmul.f32 %v17558_v8, %v17078_v38 }
 0xc17   :  { %v17593_v13 = vmul.f32 %v17558_v8, %v17083_v10  ;;  %v17597_v61 = vmul.f32 %v17558_v8, %v17086_v21  ;;  %v17600_v43 = vrot.slane %v9065_v12, %v20133_v14  ;;  %v17604_v31 = vmul.f32 %v17558_v8, %v17092_v53  ;;  %v20148_v14 = vld [vmem:[#allocation41_spill] sm:$0xff] }
 0xc18   :  { %v17608_v63 = vmul.f32 %v17558_v8, %v17095_v41  ;;  %v17612_v38 = vmul.f32 %v17558_v8, %v17099_v36  ;;  %v17616_v10 = vmul.f32 %v17558_v8, %v17102_v4  ;;  %v17620_v21 = vmul.f32 %v17558_v8, %v17106_v2 }
 0xc19   :  { %v17624_v53 = vmul.f32 %v17558_v8, %v17109_v51  ;;  %v17628_v41 = vmul.f32 %v17558_v8, %v17112_v56  ;;  %v17631_v39 = vadd.f32 %v17600_v43, %v9958_v45  ;;  %v17635_v36 = vmul.f32 %v17558_v8, %v17115_v40  ;;  %v17645_v51 = vpop.f32.mrb[188].mxu1 }
 0xc1a   :  { %v17639_v4 = vmul.f32 %v17558_v8, %v17118_v9  ;;  %v17643_v2 = vmul.f32 %v17558_v8, %v17121_v7  ;;  %20140 = vst [vmem:[#allocation50_spill] sm:$0xff] %v17645_v51  ;;  %v17649_v56 = vmul.f32 %v17558_v8, %v17124_v22  ;;  %v17653_v60 = vmul.f32 %v17558_v8, %v17129_v23  ;;  %v17663_v7 = vpop.f32.mrb[189].mxu1  ;;  %v20150_v51 = vld [vmem:[#allocation47_spill] sm:$0xff] }
 0xc1b   :  { %20139 = vst [vmem:[#allocation22_spill] sm:$0xff] %v17631_v39  ;;  %v17657_v40 = vmul.f32 %v17558_v8, %v17141_v16  ;;  %v17661_v9 = vmul.f32 %v17558_v8, %v17147_v25  ;;  %20141 = vst [vmem:[#allocation23_spill] sm:$0xff] %v17663_v7  ;;  %v17667_v12 = vmul.f32 %v17558_v8, %v17156_v59  ;;  %v17681_v25 = vpop.f32.mrb[190].mxu1  ;;  %v20152_v7 = vld [vmem:[#allocation19_spill] sm:$0xff] }
 0xc1c   :  { %v17671_v22 = vmul.f32 %v17558_v8, %v17160_v35  ;;  %v17675_v23 = vmul.f32 %v17558_v8, %v17169_v47  ;;  %v17679_v16 = vmul.f32 %v17558_v8, %v17174_v50  ;;  %20142 = vst [vmem:[#allocation35_spill] sm:$0xff] %v17681_v25  ;;  %v17685_v45 = vmul.f32 %v17558_v8, %v17183_v33  ;;  %v17699_v50 = vpop.f32.mrb[191].mxu1  ;;  %v20149_v25 = vld [vmem:[#allocation45_spill] sm:$0xff] }
 0xc1d   :  { %v17689_v59 = vmul.f32 %v17558_v8, %v17189_v54  ;;  %v17693_v35 = vmul.f32 %v17558_v8, %v17198_v19  ;;  %v17697_v47 = vmul.f32 %v17558_v8, %v17202_v20  ;;  %20143 = vst [vmem:[#allocation58_spill] sm:$0xff] %v17699_v50  ;;  %v17703_v39 = vmul.f32 %v17558_v8, %v17211_v3  ;;  %v20151_v50 = vld [vmem:[#allocation18_spill] sm:$0xff] }
 0xc1e   :  { %v17707_v33 = vmul.f32 %v17558_v8, %v17216_v15  ;;  %v17711_v54 = vmul.f32 %v17558_v8, %v17229_v5  ;;  %v17715_v19 = vmul.f32 %v17558_v8, %v17239_v55  ;;  %v17719_v20 = vmul.f32 %v17558_v8, %v17248_v1 }
 0xc1f   :  { %v17723_v3 = vmul.f32 %v17558_v8, %v17252_v29  ;;  %v17727_v15 = vmul.f32 %v17558_v8, %v17261_v27  ;;  %v17731_v5 = vmul.f32 %v17558_v8, %v20144_v52  ;;  %v17735_v55 = vmul.f32 %v17558_v8, %v17275_v49 }
 0xc20   :  { %v17739_v1 = vmul.f32 %v17558_v8, %v20145_v57  ;;  %v17743_v29 = vmul.f32 %v17558_v8, %v17290_v42  ;;  %v17747_v27 = vmul.f32 %v17558_v8, %v20146_v58  ;;  %v17751_v52 = vmul.f32 %v17558_v8, %v20147_v37 }
 0xc21   :  { %v17755_v49 = vmul.f32 %v17558_v8, %v20148_v14  ;;  %v17759_v57 = vmul.f32 %v17558_v8, %v20149_v25  ;;  %v17763_v42 = vmul.f32 %v17558_v8, %v20150_v51  ;;  %v17767_v58 = vmul.f32 %v17558_v8, %v17332_v34  ;;  %v17781_v26 = vpop.f32.mrb[192].mxu1  ;;  %v20154_v51 = vld [vmem:[#allocation54_spill] sm:$0xff]  ;;  %v20155_v34 = vld [vmem:[#allocation55_spill] sm:$0xff] }
 0xc22   :  { %v17771_v37 = vmul.f32 %v17558_v8, %v20151_v50  ;;  %v17775_v14 = vmul.f32 %v17558_v8, %v17345_v0  ;;  %v17779_v25 = vmul.f32 %v17558_v8, %v20152_v7  ;;  %20153 = vst [vmem:[#allocation29_spill] sm:$0xff] %v17781_v26  ;;  %v17785_v11 = vmul.f32 %v17558_v8, %v20154_v51  ;;  %v20156_v50 = vld [vmem:[#allocation32_spill] sm:$0xff]  ;;  %v20158_v0 = vld [vmem:[#allocation57_spill] sm:$0xff]  ;;  %v17799_v7 = vpop.f32.mrb[193].mxu1 }
 0xc23   :  { %v17789_v46 = vmul.f32 %v17558_v8, %v20155_v34  ;;  %v17793_v30 = vmul.f32 %v17558_v8, %v20156_v50  ;;  %v17797_v6 = vmul.f32 %v17558_v8, %v20158_v0  ;;  %20159 = vst [vmem:[#allocation53_spill] sm:$0xff] %v17799_v7  ;;  %v17803_v26 = vmul.f32 %v17558_v8, %v17387_v62  ;;  %v20161_v51 = vld [vmem:[#allocation17_spill] sm:$0xff]  ;;  %v20164_v50 = vld [vmem:[#allocation24_spill] sm:$0xff]  ;;  %v17817_v0 = vpop.f32.mrb[194].mxu1 }
 0xc24   :  { %v17807_v48 = vmul.f32 %v17558_v8, %v20161_v51  ;;  %v17811_v34 = vmul.f32 %v17558_v8, %v17401_v18  ;;  %20166 = vst [vmem:[#allocation31_spill] sm:$0xff] %v17817_v0  ;;  %v17821_v7 = vmul.f32 %v17558_v8, %v17416_v28  ;;  %v20168_v62 = vld [vmem:[#allocation60_spill] sm:$0xff]  ;;  %v20170_v51 = vld [vmem:[#allocation42_spill] sm:$0xff] }
 0xc25   :  { %20157 = vst [vmem:[#allocation37_spill] sm:$0xff] %v17793_v30  ;;  %20160 = vst [vmem:[#allocation63_spill] sm:$0xff] %v17803_v26  ;;  %v17815_v30 = vmul.f32 %v17558_v8, %v20164_v50  ;;  %v17825_v26 = vmul.f32 %v17558_v8, %v20168_v62  ;;  %v20171_v18 = vld [vmem:[#allocation34_spill] sm:$0xff]  ;;  %v17835_v50 = vpop.f32.mrb[195].mxu1  ;;  %v20174_v62 = vld [vmem:[#allocation67_spill] sm:$0xff] }
 0xc26   :  { %20162 = vst [vmem:[#allocation59_spill] sm:$0xff] %v17807_v48  ;;  %20163 = vst [vmem:[#allocation62_spill] sm:$0xff] %v17811_v34  ;;  %v17829_v48 = vmul.f32 %v17558_v8, %v20170_v51  ;;  %v17833_v34 = vmul.f32 %v17558_v8, %v20171_v18  ;;  %v20173_v28 = vld [vmem:[#allocation26_spill] sm:$0xff]  ;;  %v17851_v51 = vadd.f32 %v17600_v43, %v17577_v24 }
 0xc27   :  { %20165 = vst [vmem:[#allocation21_spill] sm:$0xff] %v17815_v30  ;;  %20167 = vst [vmem:[#allocation20_spill] sm:$0xff] %v17821_v7  ;;  %v20172_v30 = vld [vmem:[#allocation25_spill] sm:$0xff]  ;;  %v17843_v7 = vmul.f32 %v17558_v8, %v20173_v28  ;;  %v17855_v18 = vadd.f32 %v17600_v43, %v17581_v44  ;;  %v17863_v28 = vadd.f32 %v17600_v43, %v17589_v17 }
 0xc28   :  { %20169 = vst [vmem:[#allocation33_spill] sm:$0xff] %v17825_v26  ;;  %v17839_v0 = vmul.f32 %v17558_v8, %v20172_v30  ;;  %v17847_v26 = vmul.f32 %v17558_v8, %v20174_v62  ;;  %20175 = vst [vmem:[#allocation69_spill] sm:$0xff] %v17851_v51  ;;  %v17859_v30 = vadd.f32 %v17600_v43, %v17585_v32 }
 0xc29   :  { %20176 = vst [vmem:[#allocation71_spill] sm:$0xff] %v17855_v18  ;;  %20178 = vst [vmem:[#allocation70_spill] sm:$0xff] %v17863_v28  ;;  %v17867_v8 = vadd.f32 %v17600_v43, %v17593_v13  ;;  %v17871_v24 = vadd.f32 %v17600_v43, %v17597_v61  ;;  %v17875_v44 = vadd.f32 %v17600_v43, %v17604_v31  ;;  %v17917_v62 = vpop.f32.mrb[196].mxu1 }
 0xc2a   :  { %20177 = vst [vmem:[#allocation56_spill] sm:$0xff] %v17859_v30  ;;  %v17879_v32 = vadd.f32 %v17600_v43, %v17608_v63  ;;  %v17883_v17 = vadd.f32 %v17600_v43, %v17612_v38  ;;  %v17887_v13 = vadd.f32 %v17600_v43, %v17616_v10  ;;  %v17891_v61 = vadd.f32 %v17600_v43, %v17620_v21 }
 0xc2b   :  { %20179 = vst [vmem:[#allocation73_spill] sm:$0xff] %v17867_v8  ;;  %20180 = vst [vmem:[#allocation75_spill] sm:$0xff] %v17871_v24  ;;  %v17895_v31 = vadd.f32 %v17600_v43, %v17624_v53  ;;  %v17899_v63 = vadd.f32 %v17600_v43, %v17628_v41  ;;  %v17903_v38 = vadd.f32 %v17600_v43, %v17635_v36 }
 0xc2c   :  { %20181 = vst [vmem:[#allocation72_spill] sm:$0xff] %v17875_v44  ;;  %20182 = vst [vmem:[#allocation74_spill] sm:$0xff] %v17879_v32  ;;  %v17907_v10 = vadd.f32 %v17600_v43, %v17639_v4  ;;  %v17911_v21 = vadd.f32 %v17600_v43, %v17643_v2  ;;  %v17915_v53 = vadd.f32 %v17600_v43, %v17649_v56  ;;  %v17935_v56 = vpop.f32.mrb[197].mxu1 }
 0xc2d   :  { %20183 = vst [vmem:[#allocation77_spill] sm:$0xff] %v17883_v17  ;;  %20184 = vst [vmem:[#allocation79_spill] sm:$0xff] %v17887_v13  ;;  %v17921_v41 = vadd.f32 %v17600_v43, %v17653_v60  ;;  %v17925_v36 = vadd.f32 %v17600_v43, %v17657_v40  ;;  %v17929_v4 = vadd.f32 %v17600_v43, %v17661_v9 }
 0xc2e   :  { %20185 = vst [vmem:[#allocation76_spill] sm:$0xff] %v17891_v61  ;;  %20186 = vst [vmem:[#allocation78_spill] sm:$0xff] %v17895_v31  ;;  %v17933_v2 = vadd.f32 %v17600_v43, %v17667_v12  ;;  %v17943_v60 = vadd.f32 %v17600_v43, %v17675_v23  ;;  %v17947_v40 = vadd.f32 %v17600_v43, %v17679_v16  ;;  %v17953_v12 = vpop.f32.mrb[198].mxu1 }
 0xc2f   :  { %20187 = vst [vmem:[#allocation81_spill] sm:$0xff] %v17899_v63  ;;  %20188 = vst [vmem:[#allocation83_spill] sm:$0xff] %v17903_v38  ;;  %v17951_v9 = vadd.f32 %v17600_v43, %v17685_v45  ;;  %v17965_v23 = vadd.f32 %v17600_v43, %v17697_v47  ;;  %v17969_v16 = vadd.f32 %v17600_v43, %v17703_v39  ;;  %v17971_v45 = vpop.f32.mrb[199].mxu1 }
 0xc30   :  { %20189 = vst [vmem:[#allocation80_spill] sm:$0xff] %v17907_v10  ;;  %20190 = vst [vmem:[#allocation82_spill] sm:$0xff] %v17911_v21  ;;  %v17987_v47 = vadd.f32 %v17600_v43, %v17719_v20  ;;  %v17991_v39 = vadd.f32 %v17600_v43, %v17723_v3  ;;  %v18007_v20 = vadd.f32 %v17600_v43, %v17739_v1 }
 0xc31   :  { %20191 = vst [vmem:[#allocation86_spill] sm:$0xff] %v17915_v53  ;;  %20192 = vst [vmem:[#allocation88_spill] sm:$0xff] %v17921_v41  ;;  %v17939_v53 = vadd.f32 %v17600_v43, %v17671_v22  ;;  %v17961_v22 = vadd.f32 %v17600_v43, %v17693_v35  ;;  %v17983_v35 = vadd.f32 %v17600_v43, %v17715_v19 }
 0xc32   :  { %20193 = vst [vmem:[#allocation84_spill] sm:$0xff] %v17925_v36  ;;  %20194 = vst [vmem:[#allocation87_spill] sm:$0xff] %v17929_v4  ;;  %v18003_v19 = vadd.f32 %v17600_v43, %v17735_v55  ;;  %v18011_v3 = vadd.f32 %v17600_v43, %v17743_v29  ;;  %v18023_v55 = vadd.f32 %v17600_v43, %v17755_v49 }
 0xc33   :  { %20195 = vst [vmem:[#allocation91_spill] sm:$0xff] %v17933_v2  ;;  %20196 = vst [vmem:[#allocation93_spill] sm:$0xff] %v17939_v53  ;;  %v17957_v2 = vadd.f32 %v17600_v43, %v17689_v59  ;;  %v17979_v59 = vadd.f32 %v17600_v43, %v17711_v54  ;;  %v17999_v54 = vadd.f32 %v17600_v43, %v17731_v5 }
 0xc34   :  { %20197 = vst [vmem:[#allocation89_spill] sm:$0xff] %v17943_v60  ;;  %20198 = vst [vmem:[#allocation92_spill] sm:$0xff] %v17947_v40  ;;  %v18019_v5 = vadd.f32 %v17600_v43, %v17751_v52  ;;  %v18027_v1 = vadd.f32 %v17600_v43, %v17759_v57  ;;  %v18031_v29 = vadd.f32 %v17600_v43, %v17763_v42 }
 0xc35   :  { %20199 = vst [vmem:[#allocation96_spill] sm:$0xff] %v17951_v9  ;;  %20200 = vst [vmem:[#allocation98_spill] sm:$0xff] %v17957_v2  ;;  %v17975_v9 = vadd.f32 %v17600_v43, %v17707_v33  ;;  %v17995_v33 = vadd.f32 %v17600_v43, %v17727_v15  ;;  %v18015_v15 = vadd.f32 %v17600_v43, %v17747_v27 }
 0xc36   :  { %20201 = vst [vmem:[#allocation94_spill] sm:$0xff] %v17961_v22  ;;  %20202 = vst [vmem:[#allocation97_spill] sm:$0xff] %v17965_v23  ;;  %v18035_v27 = vadd.f32 %v17600_v43, %v17767_v58  ;;  %v18039_v52 = vadd.f32 %v17600_v43, %v17771_v37  ;;  %v18043_v49 = vadd.f32 %v17600_v43, %v17775_v14  ;;  %v20225_v37 = vld [vmem:[#allocation37_spill] sm:$0xff]  ;;  %v20256_v23 = vld [vmem:[#allocation31_spill] sm:$0xff] }
 0xc37   :  { %20203 = vst [vmem:[#allocation101_spill] sm:$0xff] %v17969_v16  ;;  %20204 = vst [vmem:[#allocation103_spill] sm:$0xff] %v17975_v9  ;;  %v18047_v57 = vadd.f32 %v17600_v43, %v17779_v25  ;;  %v18051_v42 = vadd.f32 %v17600_v43, %v17785_v11  ;;  %v18057_v58 = vadd.f32 %v17600_v43, %v17789_v46  ;;  %v20228_v25 = vld [vmem:[#allocation63_spill] sm:$0xff]  ;;  %v20232_v46 = vld [vmem:[#allocation62_spill] sm:$0xff] }
 0xc38   :  { %20205 = vst [vmem:[#allocation99_spill] sm:$0xff] %v17979_v59  ;;  %20206 = vst [vmem:[#allocation102_spill] sm:$0xff] %v17983_v35  ;;  %v18065_v14 = vadd.f32 %v17600_v43, %v17797_v6  ;;  %v20236_v6 = vld [vmem:[#allocation20_spill] sm:$0xff]  ;;  %v20254_v35 = vld [vmem:[#allocation53_spill] sm:$0xff]  ;;  %v9774_v22 = vmul.f32 %v17935_v56, %v17935_v56 }
 0xc39   :  { %20207 = vst [vmem:[#allocation106_spill] sm:$0xff] %v17987_v47  ;;  %20208 = vst [vmem:[#allocation108_spill] sm:$0xff] %v17991_v39  ;;  %v9770_v59 = vmul.f32 %v20254_v35, %v20254_v35 }
 0xc3a   :  { %20209 = vst [vmem:[#allocation104_spill] sm:$0xff] %v17995_v33  ;;  %20210 = vst [vmem:[#allocation107_spill] sm:$0xff] %v17999_v54 }
 0xc3b   :  { %20211 = vst [vmem:[#allocation110_spill] sm:$0xff] %v18003_v19  ;;  %20212 = vst [vmem:[#allocation112_spill] sm:$0xff] %v18007_v20  ;;  %v20251_v20 = vld [vmem:[#allocation58_spill] sm:$0xff] }
 0xc3c   :  { %20213 = vst [vmem:[#allocation109_spill] sm:$0xff] %v18011_v3  ;;  %20214 = vst [vmem:[#allocation111_spill] sm:$0xff] %v18015_v15  ;;  %v20252_v19 = vld [vmem:[#allocation50_spill] sm:$0xff] }
 0xc3d   :  { %20215 = vst [vmem:[#allocation66_spill] sm:$0xff] %v18019_v5  ;;  %20216 = vst [vmem:[#allocation68_spill] sm:$0xff] %v18023_v55  ;;  %v20250_v5 = vld [vmem:[#allocation23_spill] sm:$0xff]  ;;  %v9768_v54 = vmul.f32 %v20252_v19, %v20252_v19 }
 0xc3e   :  { %20217 = vst [vmem:[#allocation27_spill] sm:$0xff] %v18027_v1  ;;  %20218 = vst [vmem:[#allocation39_spill] sm:$0xff] %v18031_v29  ;;  %v18053_v29 = vpop.f32.mrb[200].mxu1  ;;  %v20249_v1 = vld [vmem:[#allocation52_spill] sm:$0xff] }
 0xc3f   :  { %20219 = vst [vmem:[#allocation41_spill] sm:$0xff] %v18035_v27  ;;  %20220 = vst [vmem:[#allocation45_spill] sm:$0xff] %v18039_v52  ;;  %v18061_v52 = vadd.f32 %v17600_v43, %v20225_v37  ;;  %v18071_v11 = vpop.f32.mrb[201].mxu1  ;;  %v20234_v37 = vld [vmem:[#allocation21_spill] sm:$0xff]  ;;  %v9765_v55 = vmul.f32 %v20249_v1, %v20249_v1 }
 0xc40   :  { %20221 = vst [vmem:[#allocation47_spill] sm:$0xff] %v18043_v49  ;;  %20222 = vst [vmem:[#allocation18_spill] sm:$0xff] %v18047_v57  ;;  %v18069_v57 = vadd.f32 %v17600_v43, %v20228_v25  ;;  %v18089_v25 = vpop.f32.mrb[202].mxu1  ;;  %v9778_v53 = vmul.f32 %v18071_v11, %v18071_v11 }
 0xc41   :  { %20223 = vst [vmem:[#allocation19_spill] sm:$0xff] %v18051_v42  ;;  %20224 = vst [vmem:[#allocation54_spill] sm:$0xff] %v18057_v58  ;;  %v20230_v42 = vld [vmem:[#allocation59_spill] sm:$0xff]  ;;  %v18079_v58 = vadd.f32 %v17600_v43, %v20232_v46  ;;  %v18101_v46 = vadd.f32 %v17600_v43, %v17833_v34 }
 0xc42   :  { %20226 = vst [vmem:[#allocation55_spill] sm:$0xff] %v18061_v52  ;;  %20227 = vst [vmem:[#allocation32_spill] sm:$0xff] %v18065_v14  ;;  %v18075_v49 = vadd.f32 %v17600_v43, %v20230_v42  ;;  %v18083_v52 = vadd.f32 %v17600_v43, %v20234_v37  ;;  %v18087_v14 = vadd.f32 %v17600_v43, %v20236_v6  ;;  %v18107_v6 = vpop.f32.mrb[203].mxu1 }
 0xc43   :  { %20229 = vst [vmem:[#allocation57_spill] sm:$0xff] %v18069_v57  ;;  %20233 = vst [vmem:[#allocation24_spill] sm:$0xff] %v18079_v58  ;;  %v20238_v57 = vld [vmem:[#allocation33_spill] sm:$0xff]  ;;  %v18097_v42 = vadd.f32 %v17600_v43, %v17829_v48  ;;  %v18105_v37 = vadd.f32 %v17600_v43, %v17839_v0  ;;  %v20247_v48 = vld [vmem:[#allocation48_spill] sm:$0xff] }
 0xc44   :  { %20231 = vst [vmem:[#allocation17_spill] sm:$0xff] %v18075_v49  ;;  %20235 = vst [vmem:[#allocation60_spill] sm:$0xff] %v18083_v52  ;;  %v18093_v27 = vadd.f32 %v17600_v43, %v20238_v57  ;;  %v20244_v57 = vld [vmem:[#allocation40_spill] sm:$0xff]  ;;  %v20246_v58 = vld [vmem:[#allocation65_spill] sm:$0xff] }
 0xc45   :  { %20237 = vst [vmem:[#allocation42_spill] sm:$0xff] %v18087_v14  ;;  %20240 = vst [vmem:[#allocation25_spill] sm:$0xff] %v18097_v42  ;;  %v18111_v14 = vadd.f32 %v17600_v43, %v17847_v26  ;;  %v9693_v42 = vadd.f32 %v20247_v48, %v20246_v58  ;;  %v9763_v34 = vmul.f32 %v20246_v58, %v20246_v58 }
 0xc46   :  { %20239 = vst [vmem:[#allocation34_spill] sm:$0xff] %v18093_v27  ;;  %20241 = vst [vmem:[#allocation26_spill] sm:$0xff] %v18101_v46  ;;  %v20245_v27 = vld [vmem:[#allocation46_spill] sm:$0xff]  ;;  %v20248_v46 = vld [vmem:[#allocation115_spill] sm:$0xff] }
 0xc47   :  { %20242 = vst [vmem:[#allocation67_spill] sm:$0xff] %v18105_v37  ;;  %20243 = vst [vmem:[#allocation37_spill] sm:$0xff] %v18111_v14  ;;  %v9825_v52 = vadd.f32 %v20245_v27, %v20244_v57  ;;  %v9764_v49 = vmul.f32 %v20248_v46, %v20248_v46  ;;  %v9694_v0 = vadd.f32 %v20248_v46, %v9693_v42  ;;  %v18127_v57 = vpop.f32.mrb[204].mxu1 }
 0xc48   :  { %v9766_v27 = vmul.f32 %v20250_v5, %v20250_v5  ;;  %v18129_v48 = vpop.f32.mrb[205].mxu1  ;;  %v9767_v42 = vmul.f32 %v20251_v20, %v20251_v20 }
 0xc49   :  { %v9826_v37 = vadd.f32 %v9825_v52, %v9763_v34  ;;  %v9695_v14 = vadd.f32 %v20249_v1, %v9694_v0  ;;  %v18134_v52 = vpop.f32.mrb[206].mxu1  ;;  %v9782_v21 = vmul.f32 %v18129_v48, %v18129_v48 }
 0xc4a   :  { %v18136_v34 = vpop.f32.mrb[207].mxu1 }
 0xc4b   :  { %v9827_v26 = vadd.f32 %v9826_v37, %v9764_v49  ;;  %v9696_v15 = vadd.f32 %v9695_v14, %v20250_v5  ;;  %v18140_v49 = vadd.f32 %v17600_v43, %v17843_v7  ;;  %v18151_v43 = vpop.f32.mrb[208].mxu1 }
 0xc4c   :  { %v18153_v7 = vpop.f32.mrb[209].mxu1 }
 0xc4d   :  { %v9828_v3 = vadd.f32 %v9827_v26, %v9765_v55  ;;  %v9697_v0 = vadd.f32 %v9696_v15, %v20251_v20  ;;  %v20253_v26 = vld [vmem:[#allocation35_spill] sm:$0xff]  ;;  %v9786_v31 = vmul.f32 %v18153_v7, %v18153_v7 }
 0xc4e   :  { %v9769_v33 = vmul.f32 %v20253_v26, %v20253_v26 }
 0xc4f   :  { %v9829_v37 = vadd.f32 %v9828_v3, %v9766_v27  ;;  %v9698_v14 = vadd.f32 %v20252_v19, %v9697_v0  ;;  %v9771_v27 = vmul.f32 %v17835_v50, %v17835_v50 }
 0xc51   :  { %v9830_v55 = vadd.f32 %v9829_v37, %v9767_v42  ;;  %v9699_v47 = vadd.f32 %v20253_v26, %v9698_v14  ;;  %v18158_v42 = vpop.f32.mrb[210].mxu1  ;;  %v20255_v14 = vld [vmem:[#allocation29_spill] sm:$0xff] }
 0xc52   :  { %v18160_v37 = vpop.f32.mrb[211].mxu1 }
 0xc53   :  { %v9831_v39 = vadd.f32 %v9830_v55, %v9768_v54  ;;  %v9700_v3 = vadd.f32 %v9699_v47, %v20254_v35  ;;  %v9772_v55 = vmul.f32 %v20255_v14, %v20255_v14  ;;  %v9773_v47 = vmul.f32 %v20256_v23, %v20256_v23  ;;  %v18171_v2 = vpop.f32.mrb[212].mxu1 }
 0xc55   :  { %v9832_v15 = vadd.f32 %v9831_v39, %v9769_v33  ;;  %v9701_v0 = vadd.f32 %v9700_v3, %v17835_v50 }
 0xc57   :  { %v9833_v54 = vadd.f32 %v9832_v15, %v9770_v59  ;;  %v9702_v9 = vadd.f32 %v20255_v14, %v9701_v0  ;;  %v18173_v59 = vpop.f32.mrb[213].mxu1  ;;  %v9775_v0 = vmul.f32 %v17971_v45, %v17971_v45 }
 0xc58   :  { %v9790_v32 = vmul.f32 %v18173_v59, %v18173_v59 }
 0xc59   :  { %v9834_v16 = vadd.f32 %v9833_v54, %v9771_v27  ;;  %v9703_v33 = vadd.f32 %v20256_v23, %v9702_v9  ;;  %v18178_v27 = vpop.f32.mrb[214].mxu1 }
 0xc5a   :  { %v18180_v54 = vpop.f32.mrb[215].mxu1 }
 0xc5b   :  { %v9835_v39 = vadd.f32 %v9834_v16, %v9772_v55  ;;  %v9704_v3 = vadd.f32 %v9703_v33, %v17935_v56  ;;  %v9776_v55 = vmul.f32 %v17917_v62, %v17917_v62  ;;  %v9777_v33 = vmul.f32 %v17953_v12, %v17953_v12  ;;  %v18191_v4 = vpop.f32.mrb[216].mxu1 }
 0xc5d   :  { %v9836_v15 = vadd.f32 %v9835_v39, %v9773_v47  ;;  %v9705_v9 = vadd.f32 %v9704_v3, %v17971_v45 }
 0xc5f   :  { %v9837_v16 = vadd.f32 %v9836_v15, %v9774_v22  ;;  %v9706_v40 = vadd.f32 %v17917_v62, %v9705_v9  ;;  %v18193_v22 = vpop.f32.mrb[217].mxu1  ;;  %v9779_v9 = vmul.f32 %v18107_v6, %v18107_v6 }
 0xc60   :  { %v9794_v28 = vmul.f32 %v18193_v22, %v18193_v22 }
 0xc61   :  { %v9838_v60 = vadd.f32 %v9837_v16, %v9775_v0  ;;  %v9707_v39 = vadd.f32 %v17953_v12, %v9706_v40  ;;  %v18198_v0 = vpop.f32.mrb[218].mxu1 }
 0xc62   :  { %v18200_v16 = vpop.f32.mrb[219].mxu1 }
 0xc63   :  { %v9839_v47 = vadd.f32 %v9838_v60, %v9776_v55  ;;  %v9708_v3 = vadd.f32 %v9707_v39, %v18071_v11  ;;  %v9780_v55 = vmul.f32 %v18053_v29, %v18053_v29  ;;  %v9781_v39 = vmul.f32 %v18089_v25, %v18089_v25  ;;  %v18211_v10 = vpop.f32.mrb[220].mxu1 }
 0xc64   :  { %20257 = vst [vmem:[#allocation63_spill] sm:$0xff] %v18211_v10 }
 0xc65   :  { %v9840_v15 = vadd.f32 %v9839_v47, %v9777_v33  ;;  %v9709_v40 = vadd.f32 %v9708_v3, %v18107_v6 }
 0xc67   :  { %v9841_v60 = vadd.f32 %v9840_v15, %v9778_v53  ;;  %v9710_v36 = vadd.f32 %v18053_v29, %v9709_v40  ;;  %v18213_v53 = vpop.f32.mrb[221].mxu1  ;;  %v9783_v40 = vmul.f32 %v18136_v34, %v18136_v34 }
 0xc69   :  { %v9842_v41 = vadd.f32 %v9841_v60, %v9779_v9  ;;  %v9711_v47 = vadd.f32 %v18089_v25, %v9710_v36  ;;  %v18218_v9 = vpop.f32.mrb[222].mxu1 }
 0xc6a   :  { %20258 = vst [vmem:[#allocation59_spill] sm:$0xff] %v18218_v9  ;;  %v18220_v60 = vpop.f32.mrb[223].mxu1 }
 0xc6b   :  { %v9843_v33 = vadd.f32 %v9842_v41, %v9780_v55  ;;  %v9712_v3 = vadd.f32 %v9711_v47, %v18129_v48  ;;  %v9784_v55 = vmul.f32 %v18127_v57, %v18127_v57  ;;  %v9785_v47 = vmul.f32 %v18134_v52, %v18134_v52  ;;  %v18231_v61 = vpop.f32.mrb[224].mxu1 }
 0xc6c   :  { %20259 = vst [vmem:[#allocation62_spill] sm:$0xff] %v18231_v61 }
 0xc6d   :  { %v9844_v15 = vadd.f32 %v9843_v33, %v9781_v39  ;;  %v9713_v36 = vadd.f32 %v9712_v3, %v18136_v34 }
 0xc6f   :  { %v9845_v41 = vadd.f32 %v9844_v15, %v9782_v21  ;;  %v9714_v38 = vadd.f32 %v18127_v57, %v9713_v36  ;;  %v18233_v21 = vpop.f32.mrb[225].mxu1  ;;  %v9787_v36 = vmul.f32 %v18160_v37, %v18160_v37 }
 0xc70   :  { %20260 = vst [vmem:[#allocation21_spill] sm:$0xff] %v18233_v21 }
 0xc71   :  { %v9846_v63 = vadd.f32 %v9845_v41, %v9783_v40  ;;  %v9715_v33 = vadd.f32 %v18134_v52, %v9714_v38  ;;  %v18238_v40 = vpop.f32.mrb[226].mxu1 }
 0xc72   :  { %20261 = vst [vmem:[#allocation20_spill] sm:$0xff] %v18238_v40  ;;  %v18240_v41 = vpop.f32.mrb[227].mxu1 }
 0xc73   :  { %v9847_v39 = vadd.f32 %v9846_v63, %v9784_v55  ;;  %v9716_v3 = vadd.f32 %v9715_v33, %v18153_v7  ;;  %20262 = vst [vmem:[#allocation33_spill] sm:$0xff] %v18240_v41  ;;  %v9788_v55 = vmul.f32 %v18151_v43, %v18151_v43  ;;  %v9789_v33 = vmul.f32 %v18158_v42, %v18158_v42  ;;  %v18251_v44 = vpop.f32.mrb[228].mxu1 }
 0xc74   :  { %20263 = vst [vmem:[#allocation40_spill] sm:$0xff] %v18251_v44 }
 0xc75   :  { %v9848_v15 = vadd.f32 %v9847_v39, %v9785_v47  ;;  %v9717_v38 = vadd.f32 %v9716_v3, %v18160_v37 }
 0xc77   :  { %v9849_v63 = vadd.f32 %v9848_v15, %v9786_v31  ;;  %v9718_v13 = vadd.f32 %v18151_v43, %v9717_v38  ;;  %v18253_v31 = vpop.f32.mrb[229].mxu1  ;;  %v9791_v38 = vmul.f32 %v18180_v54, %v18180_v54 }
 0xc78   :  { %20264 = vst [vmem:[#allocation46_spill] sm:$0xff] %v18253_v31 }
 0xc79   :  { %v9850_v17 = vadd.f32 %v9849_v63, %v9787_v36  ;;  %v9719_v39 = vadd.f32 %v18158_v42, %v9718_v13  ;;  %v18258_v36 = vpop.f32.mrb[230].mxu1 }
 0xc7a   :  { %v18260_v63 = vpop.f32.mrb[231].mxu1 }
 0xc7b   :  { %v9851_v47 = vadd.f32 %v9850_v17, %v9788_v55  ;;  %v9720_v3 = vadd.f32 %v9719_v39, %v18173_v59  ;;  %v9792_v55 = vmul.f32 %v18171_v2, %v18171_v2  ;;  %v9793_v39 = vmul.f32 %v18178_v27, %v18178_v27 }
 0xc7d   :  { %v9852_v15 = vadd.f32 %v9851_v47, %v9789_v33  ;;  %v9721_v13 = vadd.f32 %v9720_v3, %v18180_v54  ;;  %v9795_v3 = vmul.f32 %v18200_v16, %v18200_v16 }
 0xc7f   :  { %v9853_v17 = vadd.f32 %v9852_v15, %v9790_v32  ;;  %v9722_v24 = vadd.f32 %v18171_v2, %v9721_v13 }
 0xc81   :  { %v9854_v8 = vadd.f32 %v9853_v17, %v9791_v38  ;;  %v9723_v47 = vadd.f32 %v18178_v27, %v9722_v24  ;;  %v9796_v38 = vmul.f32 %v18191_v4, %v18191_v4  ;;  %v9797_v24 = vmul.f32 %v18198_v0, %v18198_v0 }
 0xc83   :  { %v9855_v33 = vadd.f32 %v9854_v8, %v9792_v55  ;;  %v9724_v30 = vadd.f32 %v9723_v47, %v18193_v22 }
 0xc85   :  { %v9856_v32 = vadd.f32 %v9855_v33, %v9793_v39  ;;  %v9725_v18 = vadd.f32 %v9724_v30, %v18200_v16  ;;  %v9798_v39 = vmul.f32 %v18213_v53, %v18213_v53  ;;  %v9799_v30 = vmul.f32 %v18220_v60, %v18220_v60 }
 0xc87   :  { %v9857_v15 = vadd.f32 %v9856_v32, %v9794_v28  ;;  %v9726_v17 = vadd.f32 %v18191_v4, %v9725_v18  ;;  %v9800_v18 = vmul.f32 %v18211_v10, %v18211_v10 }
 0xc89   :  { %v9858_v8 = vadd.f32 %v9857_v15, %v9795_v3  ;;  %v9727_v55 = vadd.f32 %v18198_v0, %v9726_v17 }
 0xc8b   :  { %v9859_v13 = vadd.f32 %v9858_v8, %v9796_v38  ;;  %v9728_v33 = vadd.f32 %v9727_v55, %v18213_v53  ;;  %v9801_v38 = vmul.f32 %v18218_v9, %v18218_v9 }
 0xc8d   :  { %v9860_v28 = vadd.f32 %v9859_v13, %v9797_v24  ;;  %v9729_v32 = vadd.f32 %v9728_v33, %v18220_v60  ;;  %v9802_v24 = vmul.f32 %v18233_v21, %v18233_v21 }
 0xc8f   :  { %v9861_v47 = vadd.f32 %v9860_v28, %v9798_v39  ;;  %v9730_v3 = vadd.f32 %v18211_v10, %v9729_v32  ;;  %v9803_v39 = vmul.f32 %v18240_v41, %v18240_v41 }
 0xc91   :  { %v9862_v15 = vadd.f32 %v9861_v47, %v9799_v30  ;;  %v9731_v8 = vadd.f32 %v18218_v9, %v9730_v3  ;;  %v9804_v30 = vmul.f32 %v18231_v61, %v18231_v61 }
 0xc93   :  { %v9863_v17 = vadd.f32 %v9862_v15, %v9800_v18  ;;  %v9732_v13 = vadd.f32 %v9731_v8, %v18233_v21  ;;  %v9805_v18 = vmul.f32 %v18238_v40, %v18238_v40 }
 0xc95   :  { %v9864_v55 = vadd.f32 %v9863_v17, %v9801_v38  ;;  %v9733_v28 = vadd.f32 %v9732_v13, %v18240_v41  ;;  %v9806_v38 = vmul.f32 %v18253_v31, %v18253_v31 }
 0xc97   :  { %v9865_v33 = vadd.f32 %v9864_v55, %v9802_v24  ;;  %v9734_v47 = vadd.f32 %v18231_v61, %v9733_v28  ;;  %v9807_v24 = vmul.f32 %v18260_v63, %v18260_v63 }
 0xc99   :  { %v9866_v32 = vadd.f32 %v9865_v33, %v9803_v39  ;;  %v9735_v15 = vadd.f32 %v18238_v40, %v9734_v47  ;;  %v9808_v39 = vmul.f32 %v18251_v44, %v18251_v44 }
 0xc9b   :  { %v9867_v3 = vadd.f32 %v9866_v32, %v9804_v30  ;;  %v9736_v17 = vadd.f32 %v9735_v15, %v18253_v31  ;;  %v9809_v30 = vmul.f32 %v18258_v36, %v18258_v36 }
 0xc9d   :  { %v9868_v8 = vadd.f32 %v9867_v3, %v9805_v18  ;;  %v9737_v55 = vadd.f32 %v9736_v17, %v18260_v63 }
 0xc9f   :  { %v9869_v13 = vadd.f32 %v9868_v8, %v9806_v38  ;;  %v9738_v33 = vadd.f32 %v18251_v44, %v9737_v55 }
 0xca1   :  { %v9870_v28 = vadd.f32 %v9869_v13, %v9807_v24  ;;  %v9739_v47 = vadd.f32 %v18258_v36, %v9738_v33 }
 0xca3   :  { %v9871_v32 = vadd.f32 %v9870_v28, %v9808_v39  ;;  %v9740_v15 = vrot.slane %v9739_v47, 4  ;;  %v9675_v39 = vld [vmem:[%s19179_s8] sm:$0x1]  ;;  %s12547_s8 = smov [#allocation12]  }
 0xca5   :  { %v9872_v18 = vadd.f32 %v9871_v32, %v9809_v30  ;;  %v9741_v3 = vadd.f32 %v9740_v15, %v9739_v47  ;;  %v20265_v30 = vld [vmem:[#allocation28_spill] sm:$0xff]  ;;  %v20268_v32 = vld [vmem:[#allocation30_spill] sm:$0xff] }
 0xca7   :  { %v9873_v51 = vrot.slane %v9872_v18, 4  ;;  %v9742_v31 = vrot.slane %v9741_v3, 2 }
 0xca9   :  { %v9874_v38 = vadd.f32 %v9873_v51, %v9872_v18  ;;  %v9743_v8 = vadd.f32 %v9742_v31, %v9741_v3  ;;  %v9676_v31 = vld [vmem:[%s19180_s9] sm:$0x1]  ;;  %s10366_s9 = sshll.u32 %s12547_s8, 4  ;;  %s19150_s9 = int_to_ptr.vmem [resolvable:$true] %s10366_s9 }
 0xcaa   :  { %v20269_v18 = vld [vmem:[#allocation49_spill] sm:$0xff]  ;;  %s12510_s29 = scalar_lea.vmem %s19150_s9, 8192  ;;  %p12515_p5 = scmp.lt.s32.totalorder %s19150_s9, %s19150_s9 }
 0xcab   :  { %v9875_v17 = vrot.slane %v9874_v38, 2  ;;  %v9744_v40 = vrot.slane %v9743_v8, 1  ;;  %p12511_p4 = scmp.ne.s32.totalorder %s19150_s9, %s12510_s29  ;;  %p12516_p6 = scmp.lt.s32.totalorder %s12510_s29, %s12510_s29 }
 0xcad   :  { %v9876_v61 = vadd.f32 %v9875_v17, %v9874_v38  ;;  %v9745_v41 = vadd.f32 %v9744_v40, %v9743_v8  ;;  %v20270_v38 = vld [vmem:[#allocation64_spill] sm:$0xff]  ;;  %p12517_p7 = por %p12516_p6, %p12515_p5 }
 0xcaf   :  { %v9877_v21 = vrot.slane %v9876_v61, 1  ;;  %v9879_v24 = vmul.f32 0.001953125, %v9745_v41  ;;  %v20267_v41 = vld [vmem:[#allocation51_spill] sm:$0xff]  ;;  %p12518_p8 = pnand %p12517_p7, %p12511_p4 }
 0xcb1   :  { %v9878_v55 = vadd.f32 %v9877_v21, %v9876_v61  ;;  %v9881_v44 = vmul.f32 %v9879_v24, %v9879_v24 }
 0xcb3   :  { %v9880_v13 = vmul.f32 0.001953125, %v9878_v55 }
 0xcb5   :  { %v9882_v9 = vsub.f32 %v9880_v13, %v9881_v44  ;;  %v20273_v13 = vld [vmem:[#allocation38_spill] sm:$0xff] }
 0xcb7   :  { %v9883_v10 = vmax.f32 %v9882_v9, 0.0 }
 0xcb9   :  { %v9884_v33 = vadd.f32 1e-05, %v9883_v10  ;;  %v20266_v10 = vld [vmem:[#allocation43_spill] sm:$0xff] }
 0xcbb   :  { %12322 = vrsqrt.f32 %v9884_v33 }
 0xcc5   :  { %v12323_v28 = vpop.eup %12322 }
 0xcc6   :  { %v9886_v51 = vmul.f32 %v12323_v28, %v9675_v39  ;;  %v20274_v39 = vld [vmem:[#allocation61_spill] sm:$0xff] }
 0xcc8   :  { %v9887_v40 = vmul.f32 %v9886_v51, %v9879_v24  ;;  %v18324_v61 = vrot.slane %v9886_v51, %v20265_v30  ;;  %v20275_v51 = vld [vmem:[#allocation85_spill] sm:$0xff] }
 0xcca   :  { %v9888_v21 = vsub.f32 %v9676_v31, %v9887_v40  ;;  %v10096_v44 = vmul.f32 %v18324_v61, %v18260_v63  ;;  %v18330_v9 = vmul.f32 %v18324_v61, %v20266_v10  ;;  %v18334_v47 = vmul.f32 %v18324_v61, %v20267_v41  ;;  %v20271_v63 = vld [vmem:[#allocation44_spill] sm:$0xff]  ;;  %v20276_v40 = vld [vmem:[#allocation95_spill] sm:$0xff] }
 0xccb   :  { %v18338_v15 = vmul.f32 %v20268_v32, %v18324_v61  ;;  %v18342_v3 = vmul.f32 %v20269_v18, %v18324_v61  ;;  %v18346_v8 = vmul.f32 %v18324_v61, %v20270_v38  ;;  %v18350_v17 = vmul.f32 %v18324_v61, %v20271_v63  ;;  %v20279_v32 = vld [vmem:[#allocation105_spill] sm:$0xff]  ;;  %v20280_v38 = vld [vmem:[#allocation114_spill] sm:$0xff] }
 0xccc   :  { %v10160_v55 = vadd.f32 %v10096_v44, %v18140_v49  ;;  %v18354_v24 = vrot.slane %v9888_v21, %v20265_v30  ;;  %v18358_v33 = vmul.f32 %v20273_v13, %v18324_v61  ;;  %v18362_v28 = vmul.f32 %v20274_v39, %v18324_v61  ;;  %v20277_v49 = vld [vmem:[#allocation36_spill] sm:$0xff]  ;;  %v20278_v21 = vld [vmem:[#allocation90_spill] sm:$0xff] }
 0xccd   :  { %v18366_v31 = vmul.f32 %v18324_v61, %v20275_v51  ;;  %v18370_v10 = vmul.f32 %v18324_v61, %v20276_v40  ;;  %v18374_v30 = vmul.f32 %v20277_v49, %v18324_v61  ;;  %v18378_v44 = vmul.f32 %v20278_v21, %v18324_v61  ;;  %v20281_v13 = vld [vmem:[#allocation100_spill] sm:$0xff]  ;;  %v20282_v51 = vld [vmem:[#allocation113_spill] sm:$0xff] }
 0xcce   :  { %20272 = vst [vmem:[#allocation65_spill] sm:$0xff] %v18354_v24  ;;  %v10230_v41 = vadd.f32 %v18354_v24, %v10160_v55  ;;  %v18383_v18 = vmul.f32 %v18324_v61, %v20279_v32  ;;  %v18387_v63 = vmul.f32 %v18324_v61, %v20280_v38  ;;  %v18391_v39 = vmul.f32 %v20281_v13, %v18324_v61  ;;  %v20283_v49 = vld [vmem:[#allocation116_spill] sm:$0xff]  ;;  %v20291_v24 = vld [vmem:[#allocation21_spill] sm:$0xff] }
 0xccf   :  { %v18395_v40 = vmul.f32 %v20282_v51, %v18324_v61  ;;  %v18399_v21 = vmul.f32 %v18324_v61, %v20283_v49  ;;  %v18403_v55 = vmul.f32 %v18324_v61, %v20246_v58  ;;  %v18407_v32 = vmul.f32 %v20248_v46, %v18324_v61 }
 0xcd0   :  { %v10294_v38 = vmax.f32 %v10230_v41, 0.0  ;;  %v18411_v13 = vmul.f32 %v20249_v1, %v18324_v61  ;;  %v18415_v51 = vmul.f32 %v18324_v61, %v20250_v5  ;;  %v18419_v49 = vmul.f32 %v18324_v61, %v20251_v20  ;;  %v20287_v41 = vld [vmem:[#allocation63_spill] sm:$0xff] }
 0xcd1   :  { %v18423_v58 = vmul.f32 %v20252_v19, %v18324_v61  ;;  %v18427_v46 = vmul.f32 %v20253_v26, %v18324_v61  ;;  %v18431_v1 = vmul.f32 %v18324_v61, %v20254_v35  ;;  %v18435_v5 = vmul.f32 %v18324_v61, %v17835_v50 }
 0xcd2   :  { %10358 = vst [vmem:[#allocation12 + $0x1e8] sm:$0xff] %v10294_v38  ;;  %v18439_v20 = vmul.f32 %v20255_v14, %v18324_v61  ;;  %v18443_v19 = vmul.f32 %v20256_v23, %v18324_v61  ;;  %v18447_v26 = vmul.f32 %v18324_v61, %v17935_v56  ;;  %v18451_v35 = vmul.f32 %v18324_v61, %v17971_v45  ;;  %v20289_v38 = vld [vmem:[#allocation59_spill] sm:$0xff] }
 0xcd3   :  { %v18455_v50 = vmul.f32 %v17917_v62, %v18324_v61  ;;  %v18459_v14 = vmul.f32 %v17953_v12, %v18324_v61  ;;  %v18463_v23 = vmul.f32 %v18324_v61, %v18071_v11  ;;  %v18467_v56 = vmul.f32 %v18324_v61, %v18107_v6 }
 0xcd4   :  { %v18471_v45 = vmul.f32 %v18053_v29, %v18324_v61  ;;  %v18475_v62 = vmul.f32 %v18089_v25, %v18324_v61  ;;  %v18479_v12 = vmul.f32 %v18324_v61, %v18129_v48  ;;  %v18483_v11 = vmul.f32 %v18324_v61, %v18136_v34 }
 0xcd5   :  { %v18487_v6 = vmul.f32 %v18127_v57, %v18324_v61  ;;  %v18491_v29 = vmul.f32 %v18134_v52, %v18324_v61  ;;  %v18495_v25 = vmul.f32 %v18324_v61, %v18153_v7  ;;  %v18499_v48 = vmul.f32 %v18324_v61, %v18160_v37 }
 0xcd6   :  { %v18503_v34 = vmul.f32 %v18151_v43, %v18324_v61  ;;  %v18507_v57 = vmul.f32 %v18158_v42, %v18324_v61  ;;  %v18511_v52 = vmul.f32 %v18324_v61, %v18173_v59  ;;  %v18515_v7 = vmul.f32 %v18324_v61, %v18180_v54 }
 0xcd7   :  { %v18519_v37 = vmul.f32 %v18171_v2, %v18324_v61  ;;  %v18523_v43 = vmul.f32 %v18178_v27, %v18324_v61  ;;  %v18527_v42 = vmul.f32 %v18324_v61, %v18193_v22  ;;  %v18531_v59 = vmul.f32 %v18324_v61, %v18200_v16 }
 0xcd8   :  { %v18535_v54 = vmul.f32 %v18191_v4, %v18324_v61  ;;  %v18539_v2 = vmul.f32 %v18198_v0, %v18324_v61  ;;  %v18543_v27 = vmul.f32 %v18324_v61, %v18213_v53  ;;  %v18547_v22 = vmul.f32 %v18324_v61, %v18220_v60 }
 0xcd9   :  { %v18551_v16 = vmul.f32 %v20287_v41, %v18324_v61  ;;  %v18555_v4 = vmul.f32 %v20289_v38, %v18324_v61  ;;  %v18559_v0 = vmul.f32 %v18324_v61, %v20291_v24 }
 0xcda   :  { %20284 = vst [vmem:[#allocation48_spill] sm:$0xff] %v18539_v2  ;;  %20285 = vst [vmem:[#allocation115_spill] sm:$0xff] %v18543_v27  ;;  %v20292_v2 = vld [vmem:[#allocation33_spill] sm:$0xff]  ;;  %v20294_v27 = vld [vmem:[#allocation62_spill] sm:$0xff] }
 0xcdb   :  { %20286 = vst [vmem:[#allocation52_spill] sm:$0xff] %v18547_v22  ;;  %20288 = vst [vmem:[#allocation23_spill] sm:$0xff] %v18551_v16  ;;  %v18563_v53 = vmul.f32 %v18324_v61, %v20292_v2  ;;  %v18567_v60 = vmul.f32 %v20294_v27, %v18324_v61  ;;  %v20296_v22 = vld [vmem:[#allocation20_spill] sm:$0xff]  ;;  %v20298_v16 = vld [vmem:[#allocation46_spill] sm:$0xff]  ;;  %v18583_v2 = vmul.f32 %v18258_v36, %v18324_v61 }
 0xcdc   :  { %20290 = vst [vmem:[#allocation58_spill] sm:$0xff] %v18555_v4  ;;  %v18571_v41 = vmul.f32 %v20296_v22, %v18324_v61  ;;  %v18575_v38 = vmul.f32 %v18324_v61, %v20298_v16  ;;  %v20300_v4 = vld [vmem:[#allocation40_spill] sm:$0xff] }
 0xcdd   :  { %20293 = vst [vmem:[#allocation50_spill] sm:$0xff] %v18563_v53  ;;  %20295 = vst [vmem:[#allocation35_spill] sm:$0xff] %v18567_v60  ;;  %v18579_v24 = vmul.f32 %v20300_v4, %v18324_v61  ;;  %v20302_v53 = vld [vmem:[#allocation69_spill] sm:$0xff]  ;;  %v20303_v60 = vld [vmem:[#allocation71_spill] sm:$0xff] }
 0xcde   :  { %20297 = vst [vmem:[#allocation53_spill] sm:$0xff] %v18571_v41  ;;  %20299 = vst [vmem:[#allocation29_spill] sm:$0xff] %v18575_v38  ;;  %v18587_v27 = vadd.f32 %v18330_v9, %v20302_v53  ;;  %v18591_v22 = vadd.f32 %v18334_v47, %v20303_v60  ;;  %v20304_v41 = vld [vmem:[#allocation56_spill] sm:$0xff]  ;;  %v20305_v38 = vld [vmem:[#allocation70_spill] sm:$0xff] }
 0xcdf   :  { %20301 = vst [vmem:[#allocation31_spill] sm:$0xff] %v18579_v24  ;;  %v18595_v16 = vadd.f32 %v18338_v15, %v20304_v41  ;;  %v18599_v4 = vadd.f32 %v18342_v3, %v20305_v38  ;;  %v20306_v24 = vld [vmem:[#allocation73_spill] sm:$0xff]  ;;  %v20307_v61 = vld [vmem:[#allocation75_spill] sm:$0xff]  ;;  %v20308_v53 = vld [vmem:[#allocation72_spill] sm:$0xff] }
 0xce0   :  { %v18603_v36 = vadd.f32 %v18346_v8, %v20306_v24  ;;  %v18607_v9 = vadd.f32 %v18350_v17, %v20307_v61  ;;  %v18611_v47 = vadd.f32 %v18358_v33, %v20308_v53  ;;  %v20309_v60 = vld [vmem:[#allocation74_spill] sm:$0xff]  ;;  %v20310_v41 = vld [vmem:[#allocation77_spill] sm:$0xff]  ;;  %v20311_v38 = vld [vmem:[#allocation79_spill] sm:$0xff] }
 0xce1   :  { %v18615_v15 = vadd.f32 %v18362_v28, %v20309_v60  ;;  %v18619_v3 = vadd.f32 %v18366_v31, %v20310_v41  ;;  %v18623_v8 = vadd.f32 %v18370_v10, %v20311_v38  ;;  %v20312_v24 = vld [vmem:[#allocation76_spill] sm:$0xff]  ;;  %v20313_v61 = vld [vmem:[#allocation78_spill] sm:$0xff]  ;;  %v20314_v53 = vld [vmem:[#allocation81_spill] sm:$0xff] }
 0xce2   :  { %v18627_v17 = vadd.f32 %v18374_v30, %v20312_v24  ;;  %v18631_v33 = vadd.f32 %v18378_v44, %v20313_v61  ;;  %v18635_v28 = vadd.f32 %v18383_v18, %v20314_v53  ;;  %v20315_v60 = vld [vmem:[#allocation83_spill] sm:$0xff]  ;;  %v20316_v41 = vld [vmem:[#allocation80_spill] sm:$0xff]  ;;  %v20317_v38 = vld [vmem:[#allocation82_spill] sm:$0xff] }
 0xce3   :  { %v18639_v31 = vadd.f32 %v18387_v63, %v20315_v60  ;;  %v18643_v10 = vadd.f32 %v18391_v39, %v20316_v41  ;;  %v18647_v30 = vadd.f32 %v18395_v40, %v20317_v38  ;;  %v20318_v24 = vld [vmem:[#allocation86_spill] sm:$0xff]  ;;  %v20319_v61 = vld [vmem:[#allocation88_spill] sm:$0xff]  ;;  %v20321_v60 = vld [vmem:[#allocation87_spill] sm:$0xff] }
 0xce4   :  { %v18651_v44 = vadd.f32 %v18399_v21, %v20318_v24  ;;  %v18655_v18 = vadd.f32 %v18403_v55, %v20319_v61  ;;  %v20320_v53 = vld [vmem:[#allocation84_spill] sm:$0xff]  ;;  %v18663_v39 = vadd.f32 %v18411_v13, %v20321_v60  ;;  %v20322_v41 = vld [vmem:[#allocation91_spill] sm:$0xff]  ;;  %v20323_v38 = vld [vmem:[#allocation93_spill] sm:$0xff] }
 0xce5   :  { %v18659_v63 = vadd.f32 %v18407_v32, %v20320_v53  ;;  %v18667_v40 = vadd.f32 %v18415_v51, %v20322_v41  ;;  %v18671_v21 = vadd.f32 %v18419_v49, %v20323_v38  ;;  %v20324_v24 = vld [vmem:[#allocation89_spill] sm:$0xff]  ;;  %v20325_v61 = vld [vmem:[#allocation92_spill] sm:$0xff]  ;;  %v20327_v60 = vld [vmem:[#allocation98_spill] sm:$0xff] }
 0xce6   :  { %v18675_v55 = vadd.f32 %v18423_v58, %v20324_v24  ;;  %v18679_v32 = vadd.f32 %v18427_v46, %v20325_v61  ;;  %v20326_v53 = vld [vmem:[#allocation96_spill] sm:$0xff]  ;;  %v18687_v51 = vadd.f32 %v18435_v5, %v20327_v60  ;;  %v20328_v41 = vld [vmem:[#allocation94_spill] sm:$0xff]  ;;  %v20329_v38 = vld [vmem:[#allocation97_spill] sm:$0xff] }
 0xce7   :  { %v18683_v13 = vadd.f32 %v18431_v1, %v20326_v53  ;;  %v18691_v49 = vadd.f32 %v18439_v20, %v20328_v41  ;;  %v18695_v58 = vadd.f32 %v18443_v19, %v20329_v38  ;;  %v20330_v24 = vld [vmem:[#allocation101_spill] sm:$0xff]  ;;  %v20331_v61 = vld [vmem:[#allocation103_spill] sm:$0xff]  ;;  %v20333_v60 = vld [vmem:[#allocation102_spill] sm:$0xff] }
 0xce8   :  { %v18699_v46 = vadd.f32 %v18447_v26, %v20330_v24  ;;  %v18703_v1 = vadd.f32 %v18451_v35, %v20331_v61  ;;  %v20332_v53 = vld [vmem:[#allocation99_spill] sm:$0xff]  ;;  %v18711_v20 = vadd.f32 %v18459_v14, %v20333_v60  ;;  %v20334_v41 = vld [vmem:[#allocation106_spill] sm:$0xff]  ;;  %v20335_v38 = vld [vmem:[#allocation108_spill] sm:$0xff] }
 0xce9   :  { %v18707_v5 = vadd.f32 %v18455_v50, %v20332_v53  ;;  %v18715_v19 = vadd.f32 %v18463_v23, %v20334_v41  ;;  %v18719_v26 = vadd.f32 %v18467_v56, %v20335_v38  ;;  %v20336_v24 = vld [vmem:[#allocation104_spill] sm:$0xff]  ;;  %v20337_v61 = vld [vmem:[#allocation107_spill] sm:$0xff]  ;;  %v20338_v53 = vld [vmem:[#allocation110_spill] sm:$0xff] }
 0xcea   :  { %v18723_v35 = vadd.f32 %v18471_v45, %v20336_v24  ;;  %v18727_v50 = vadd.f32 %v18475_v62, %v20337_v61  ;;  %v18731_v14 = vadd.f32 %v18479_v12, %v20338_v53  ;;  %v20339_v60 = vld [vmem:[#allocation112_spill] sm:$0xff]  ;;  %v20340_v41 = vld [vmem:[#allocation109_spill] sm:$0xff]  ;;  %v20341_v38 = vld [vmem:[#allocation111_spill] sm:$0xff] }
 0xceb   :  { %v18735_v23 = vadd.f32 %v18483_v11, %v20339_v60  ;;  %v18739_v56 = vadd.f32 %v18487_v6, %v20340_v41  ;;  %v18743_v45 = vadd.f32 %v18491_v29, %v20341_v38  ;;  %v20342_v24 = vld [vmem:[#allocation66_spill] sm:$0xff]  ;;  %v20343_v61 = vld [vmem:[#allocation68_spill] sm:$0xff]  ;;  %v20344_v53 = vld [vmem:[#allocation27_spill] sm:$0xff] }
 0xcec   :  { %v18747_v62 = vadd.f32 %v18495_v25, %v20342_v24  ;;  %v18751_v12 = vadd.f32 %v18499_v48, %v20343_v61  ;;  %v18755_v11 = vadd.f32 %v18503_v34, %v20344_v53  ;;  %v20345_v60 = vld [vmem:[#allocation39_spill] sm:$0xff]  ;;  %v20346_v41 = vld [vmem:[#allocation41_spill] sm:$0xff]  ;;  %v20351_v61 = vld [vmem:[#allocation18_spill] sm:$0xff] }
 0xced   :  { %v18759_v6 = vadd.f32 %v18507_v57, %v20345_v60  ;;  %v18763_v29 = vadd.f32 %v18511_v52, %v20346_v41  ;;  %v20347_v38 = vld [vmem:[#allocation45_spill] sm:$0xff]  ;;  %v20349_v24 = vld [vmem:[#allocation47_spill] sm:$0xff]  ;;  %v18775_v34 = vadd.f32 %v18523_v43, %v20351_v61  ;;  %v20355_v60 = vld [vmem:[#allocation54_spill] sm:$0xff] }
 0xcee   :  { %v18767_v25 = vadd.f32 %v18515_v7, %v20347_v38  ;;  %v18771_v48 = vadd.f32 %v18519_v37, %v20349_v24  ;;  %v20353_v53 = vld [vmem:[#allocation19_spill] sm:$0xff]  ;;  %v18783_v52 = vadd.f32 %v18531_v59, %v20355_v60  ;;  %v20358_v38 = vld [vmem:[#allocation32_spill] sm:$0xff]  ;;  %v20361_v24 = vld [vmem:[#allocation57_spill] sm:$0xff] }
 0xcef   :  { %20352 = vst [vmem:[#allocation51_spill] sm:$0xff] %v18775_v34  ;;  %v18779_v57 = vadd.f32 %v18527_v42, %v20353_v53  ;;  %v20357_v41 = vld [vmem:[#allocation55_spill] sm:$0xff]  ;;  %v20364_v61 = vld [vmem:[#allocation17_spill] sm:$0xff]  ;;  %v20365_v34 = vld [vmem:[#allocation52_spill] sm:$0xff] }
 0xcf0   :  { %20348 = vst [vmem:[#allocation28_spill] sm:$0xff] %v18767_v25  ;;  %20350 = vst [vmem:[#allocation43_spill] sm:$0xff] %v18771_v48  ;;  %v18787_v7 = vadd.f32 %v18535_v54, %v20357_v41  ;;  %v20359_v25 = vld [vmem:[#allocation48_spill] sm:$0xff]  ;;  %v20362_v48 = vld [vmem:[#allocation115_spill] sm:$0xff]  ;;  %v18799_v42 = vadd.f32 %v20365_v34, %v20364_v61 }
 0xcf1   :  { %20354 = vst [vmem:[#allocation30_spill] sm:$0xff] %v18779_v57  ;;  %20356 = vst [vmem:[#allocation49_spill] sm:$0xff] %v18783_v52  ;;  %v18791_v37 = vadd.f32 %v20359_v25, %v20358_v38  ;;  %v18795_v43 = vadd.f32 %v20362_v48, %v20361_v24  ;;  %v20367_v53 = vld [vmem:[#allocation24_spill] sm:$0xff]  ;;  %v20368_v57 = vld [vmem:[#allocation23_spill] sm:$0xff] }
 0xcf2   :  { %20366 = vst [vmem:[#allocation38_spill] sm:$0xff] %v18799_v42  ;;  %v18803_v59 = vadd.f32 %v20368_v57, %v20367_v53  ;;  %v20370_v60 = vld [vmem:[#allocation60_spill] sm:$0xff]  ;;  %v20371_v52 = vld [vmem:[#allocation58_spill] sm:$0xff]  ;;  %v20376_v24 = vld [vmem:[#allocation25_spill] sm:$0xff] }
 0xcf3   :  { %20360 = vst [vmem:[#allocation64_spill] sm:$0xff] %v18791_v37  ;;  %20363 = vst [vmem:[#allocation44_spill] sm:$0xff] %v18795_v43  ;;  %v18807_v54 = vadd.f32 %v20371_v52, %v20370_v60  ;;  %v20373_v41 = vld [vmem:[#allocation42_spill] sm:$0xff]  ;;  %v20377_v43 = vld [vmem:[#allocation35_spill] sm:$0xff] }
 0xcf4   :  { %20369 = vst [vmem:[#allocation61_spill] sm:$0xff] %v18803_v59  ;;  %v18811_v25 = vadd.f32 %v18559_v0, %v20373_v41  ;;  %v20374_v38 = vld [vmem:[#allocation34_spill] sm:$0xff]  ;;  %v18819_v34 = vadd.f32 %v20377_v43, %v20376_v24  ;;  %v20379_v42 = vld [vmem:[#allocation53_spill] sm:$0xff]  ;;  %v20380_v53 = vld [vmem:[#allocation67_spill] sm:$0xff] }
 0xcf5   :  { %20372 = vst [vmem:[#allocation85_spill] sm:$0xff] %v18807_v54  ;;  %v20375_v37 = vld [vmem:[#allocation50_spill] sm:$0xff]  ;;  %v20381_v59 = vld [vmem:[#allocation29_spill] sm:$0xff]  ;;  %v20383_v54 = vld [vmem:[#allocation31_spill] sm:$0xff] }
 0xcf6   :  { %v18815_v48 = vadd.f32 %v20375_v37, %v20374_v38  ;;  %v20378_v61 = vld [vmem:[#allocation26_spill] sm:$0xff]  ;;  %v18827_v52 = vadd.f32 %v20381_v59, %v20380_v53  ;;  %v20382_v60 = vld [vmem:[#allocation37_spill] sm:$0xff]  ;;  %v20390_v53 = vld [vmem:[#allocation51_spill] sm:$0xff] }
 0xcf7   :  { %v18823_v57 = vadd.f32 %v20379_v42, %v20378_v61  ;;  %v18831_v0 = vadd.f32 %v20383_v54, %v20382_v60  ;;  %v20384_v41 = vld [vmem:[#allocation22_spill] sm:$0xff]  ;;  %v20385_v38 = vld [vmem:[#allocation65_spill] sm:$0xff]  ;;  %v20386_v24 = vld [vmem:[#allocation28_spill] sm:$0xff] }
 0xcf8   :  { %v18835_v37 = vadd.f32 %v18583_v2, %v20384_v41  ;;  %v18839_v43 = vadd.f32 %v20385_v38, %v18587_v27  ;;  %v18843_v42 = vadd.f32 %v20385_v38, %v18591_v22  ;;  %v18847_v59 = vadd.f32 %v20385_v38, %v18595_v16  ;;  %v20388_v61 = vld [vmem:[#allocation43_spill] sm:$0xff]  ;;  %v20392_v60 = vld [vmem:[#allocation30_spill] sm:$0xff]  ;;  %v20394_v41 = vld [vmem:[#allocation49_spill] sm:$0xff] }
 0xcf9   :  { %v18851_v54 = vadd.f32 %v20385_v38, %v18599_v4  ;;  %v18855_v2 = vadd.f32 %v20385_v38, %v18603_v36  ;;  %v18859_v27 = vadd.f32 %v20385_v38, %v18607_v9  ;;  %v18863_v22 = vadd.f32 %v20385_v38, %v18611_v47 }
 0xcfa   :  { %v18867_v16 = vadd.f32 %v20385_v38, %v18615_v15  ;;  %v18871_v4 = vadd.f32 %v20385_v38, %v18619_v3  ;;  %v18875_v36 = vadd.f32 %v20385_v38, %v18623_v8  ;;  %v18879_v9 = vadd.f32 %v20385_v38, %v18627_v17 }
 0xcfb   :  { %v18883_v47 = vadd.f32 %v20385_v38, %v18631_v33  ;;  %v18887_v15 = vadd.f32 %v20385_v38, %v18635_v28  ;;  %v18891_v3 = vadd.f32 %v20385_v38, %v18639_v31  ;;  %v18895_v8 = vadd.f32 %v20385_v38, %v18643_v10 }
 0xcfc   :  { %v18899_v17 = vadd.f32 %v20385_v38, %v18647_v30  ;;  %v18903_v33 = vadd.f32 %v20385_v38, %v18651_v44  ;;  %v18907_v28 = vadd.f32 %v20385_v38, %v18655_v18  ;;  %v18911_v31 = vadd.f32 %v20385_v38, %v18659_v63 }
 0xcfd   :  { %v18915_v10 = vadd.f32 %v20385_v38, %v18663_v39  ;;  %v18919_v30 = vadd.f32 %v20385_v38, %v18667_v40  ;;  %v18923_v44 = vadd.f32 %v20385_v38, %v18671_v21  ;;  %v18927_v18 = vadd.f32 %v20385_v38, %v18675_v55 }
 0xcfe   :  { %v18931_v63 = vadd.f32 %v20385_v38, %v18679_v32  ;;  %v18935_v39 = vadd.f32 %v20385_v38, %v18683_v13  ;;  %v18939_v40 = vadd.f32 %v20385_v38, %v18687_v51  ;;  %v18943_v21 = vadd.f32 %v20385_v38, %v18691_v49 }
 0xcff   :  { %v18947_v55 = vadd.f32 %v20385_v38, %v18695_v58  ;;  %v18951_v32 = vadd.f32 %v20385_v38, %v18699_v46  ;;  %v18955_v13 = vadd.f32 %v20385_v38, %v18703_v1  ;;  %v18959_v51 = vadd.f32 %v20385_v38, %v18707_v5 }
 0xd00   :  { %v18963_v49 = vadd.f32 %v20385_v38, %v18711_v20  ;;  %v18967_v58 = vadd.f32 %v20385_v38, %v18715_v19  ;;  %v18971_v46 = vadd.f32 %v20385_v38, %v18719_v26  ;;  %v18975_v1 = vadd.f32 %v20385_v38, %v18723_v35 }
 0xd01   :  { %v18979_v5 = vadd.f32 %v20385_v38, %v18727_v50  ;;  %v18983_v20 = vadd.f32 %v20385_v38, %v18731_v14  ;;  %v18987_v19 = vadd.f32 %v20385_v38, %v18735_v23  ;;  %v18991_v26 = vadd.f32 %v20385_v38, %v18739_v56 }
 0xd02   :  { %v18995_v35 = vadd.f32 %v20385_v38, %v18743_v45  ;;  %v18999_v50 = vadd.f32 %v20385_v38, %v18747_v62  ;;  %v19003_v14 = vadd.f32 %v20385_v38, %v18751_v12  ;;  %v19007_v23 = vadd.f32 %v20385_v38, %v18755_v11 }
 0xd03   :  { %v19011_v56 = vadd.f32 %v20385_v38, %v18759_v6  ;;  %v19015_v45 = vadd.f32 %v20385_v38, %v18763_v29  ;;  %v19019_v62 = vadd.f32 %v20385_v38, %v20386_v24  ;;  %v19023_v12 = vadd.f32 %v20385_v38, %v20388_v61 }
 0xd04   :  { %v19027_v11 = vadd.f32 %v20385_v38, %v20390_v53  ;;  %v19031_v6 = vadd.f32 %v20385_v38, %v20392_v60  ;;  %v19035_v29 = vadd.f32 %v20385_v38, %v20394_v41  ;;  %v19039_v24 = vadd.f32 %v20385_v38, %v18787_v7 }
 0xd05   :  { %20387 = vst [vmem:[#allocation95_spill] sm:$0xff] %v19019_v62  ;;  %20389 = vst [vmem:[#allocation36_spill] sm:$0xff] %v19023_v12  ;;  %v20396_v62 = vld [vmem:[#allocation64_spill] sm:$0xff] }
 0xd06   :  { %20391 = vst [vmem:[#allocation90_spill] sm:$0xff] %v19027_v11  ;;  %20393 = vst [vmem:[#allocation105_spill] sm:$0xff] %v19031_v6  ;;  %v19043_v61 = vadd.f32 %v20385_v38, %v20396_v62  ;;  %v20397_v12 = vld [vmem:[#allocation44_spill] sm:$0xff]  ;;  %v20398_v11 = vld [vmem:[#allocation38_spill] sm:$0xff]  ;;  %v19063_v62 = vadd.f32 %v20385_v38, %v18811_v25  ;;  %v19083_v25 = vadd.f32 %v20385_v38, %v18831_v0  ;;  %v10240_v0 = vmax.f32 %v18867_v16, 0.0 }
 0xd07   :  { %20395 = vst [vmem:[#allocation114_spill] sm:$0xff] %v19035_v29  ;;  %v19047_v53 = vadd.f32 %v20385_v38, %v20397_v12  ;;  %v19051_v60 = vadd.f32 %v20385_v38, %v20398_v11  ;;  %v20399_v6 = vld [vmem:[#allocation61_spill] sm:$0xff]  ;;  %v19067_v12 = vadd.f32 %v20385_v38, %v18815_v48  ;;  %v19071_v11 = vadd.f32 %v20385_v38, %v18819_v34 }
 0xd08   :  { %v19055_v41 = vadd.f32 %v20385_v38, %v20399_v6  ;;  %v20400_v29 = vld [vmem:[#allocation85_spill] sm:$0xff]  ;;  %v19075_v6 = vadd.f32 %v20385_v38, %v18823_v57  ;;  %20405 = vst [vmem:[#allocation59_spill] sm:$0xff] %v19083_v25  ;;  %v19087_v48 = vadd.f32 %v20385_v38, %v18835_v37  ;;  %v10234_v34 = vmax.f32 %v18843_v42, 0.0  ;;  %10304 = vst [vmem:[#allocation12 + $0x38] sm:$0xff] %v10240_v0 }
 0xd09   :  { %v19059_v7 = vadd.f32 %v20385_v38, %v20400_v29  ;;  %20401 = vst [vmem:[#allocation100_spill] sm:$0xff] %v19067_v12  ;;  %20402 = vst [vmem:[#allocation113_spill] sm:$0xff] %v19071_v11  ;;  %v19079_v29 = vadd.f32 %v20385_v38, %v18827_v52  ;;  %v10233_v12 = vmax.f32 %v18839_v43, 0.0  ;;  %v10235_v11 = vmax.f32 %v18847_v59, 0.0 }
 0xd0a   :  { %20403 = vst [vmem:[#allocation116_spill] sm:$0xff] %v19075_v6  ;;  %v10236_v57 = vmax.f32 %v18851_v54, 0.0  ;;  %v10237_v6 = vmax.f32 %v18855_v2, 0.0  ;;  %v10238_v52 = vmax.f32 %v18859_v27, 0.0  ;;  %v10241_v25 = vmax.f32 %v18871_v4, 0.0  ;;  %10298 = vst [vmem:[#allocation12 + $0x8] sm:$0xff] %v10234_v34 }
 0xd0b   :  { %20404 = vst [vmem:[#allocation63_spill] sm:$0xff] %v19079_v29  ;;  %v10239_v29 = vmax.f32 %v18863_v22, 0.0  ;;  %10297 = vst [vmem:[#allocation12] sm:$0xff] %v10233_v12  ;;  %v10242_v37 = vmax.f32 %v18875_v36, 0.0  ;;  %v10243_v38 = vmax.f32 %v18879_v9, 0.0  ;;  %v10244_v43 = vmax.f32 %v18883_v47, 0.0 }
 0xd0c   :  { %v10245_v42 = vmax.f32 %v18887_v15, 0.0  ;;  %10299 = vst [vmem:[#allocation12 + $0x10] sm:$0xff] %v10235_v11  ;;  %10300 = vst [vmem:[#allocation12 + $0x18] sm:$0xff] %v10236_v57  ;;  %v10246_v59 = vmax.f32 %v18891_v3, 0.0  ;;  %v10247_v54 = vmax.f32 %v18895_v8, 0.0  ;;  %v10248_v2 = vmax.f32 %v18899_v17, 0.0 }
 0xd0d   :  { %10301 = vst [vmem:[#allocation12 + $0x20] sm:$0xff] %v10237_v6  ;;  %v10249_v27 = vmax.f32 %v18903_v33, 0.0  ;;  %10302 = vst [vmem:[#allocation12 + $0x28] sm:$0xff] %v10238_v52  ;;  %v10250_v22 = vmax.f32 %v18907_v28, 0.0  ;;  %v10251_v16 = vmax.f32 %v18911_v31, 0.0  ;;  %v10252_v4 = vmax.f32 %v18915_v10, 0.0 }
 0xd0e   :  { %10303 = vst [vmem:[#allocation12 + $0x30] sm:$0xff] %v10239_v29  ;;  %10305 = vst [vmem:[#allocation12 + $0x40] sm:$0xff] %v10241_v25  ;;  %v10253_v36 = vmax.f32 %v18919_v30, 0.0  ;;  %v10254_v9 = vmax.f32 %v18923_v44, 0.0  ;;  %v10255_v47 = vmax.f32 %v18927_v18, 0.0  ;;  %v10256_v15 = vmax.f32 %v18931_v63, 0.0 }
 0xd0f   :  { %10306 = vst [vmem:[#allocation12 + $0x48] sm:$0xff] %v10242_v37  ;;  %10307 = vst [vmem:[#allocation12 + $0x50] sm:$0xff] %v10243_v38  ;;  %v10257_v3 = vmax.f32 %v18935_v39, 0.0  ;;  %v10258_v8 = vmax.f32 %v18939_v40, 0.0  ;;  %v10259_v17 = vmax.f32 %v18943_v21, 0.0  ;;  %v10260_v33 = vmax.f32 %v18947_v55, 0.0 }
 0xd10   :  { %10308 = vst [vmem:[#allocation12 + $0x58] sm:$0xff] %v10244_v43  ;;  %10309 = vst [vmem:[#allocation12 + $0x60] sm:$0xff] %v10245_v42  ;;  %v10261_v28 = vmax.f32 %v18951_v32, 0.0  ;;  %v10262_v31 = vmax.f32 %v18955_v13, 0.0  ;;  %v10263_v10 = vmax.f32 %v18959_v51, 0.0  ;;  %v10264_v30 = vmax.f32 %v18963_v49, 0.0 }
 0xd11   :  { %10310 = vst [vmem:[#allocation12 + $0x68] sm:$0xff] %v10246_v59  ;;  %10311 = vst [vmem:[#allocation12 + $0x70] sm:$0xff] %v10247_v54  ;;  %v10265_v44 = vmax.f32 %v18967_v58, 0.0  ;;  %v10266_v18 = vmax.f32 %v18971_v46, 0.0  ;;  %v10267_v63 = vmax.f32 %v18975_v1, 0.0  ;;  %v10268_v39 = vmax.f32 %v18979_v5, 0.0 }
 0xd12   :  { %10312 = vst [vmem:[#allocation12 + $0x78] sm:$0xff] %v10248_v2  ;;  %10313 = vst [vmem:[#allocation12 + $0x80] sm:$0xff] %v10249_v27  ;;  %v10269_v40 = vmax.f32 %v18983_v20, 0.0  ;;  %v10270_v21 = vmax.f32 %v18987_v19, 0.0  ;;  %v10271_v55 = vmax.f32 %v18991_v26, 0.0  ;;  %v10272_v32 = vmax.f32 %v18995_v35, 0.0 }
 0xd13   :  { %10314 = vst [vmem:[#allocation12 + $0x88] sm:$0xff] %v10250_v22  ;;  %10315 = vst [vmem:[#allocation12 + $0x90] sm:$0xff] %v10251_v16  ;;  %v10273_v13 = vmax.f32 %v18999_v50, 0.0  ;;  %v10274_v51 = vmax.f32 %v19003_v14, 0.0  ;;  %v10275_v49 = vmax.f32 %v19007_v23, 0.0  ;;  %v10276_v58 = vmax.f32 %v19011_v56, 0.0 }
 0xd14   :  { %10316 = vst [vmem:[#allocation12 + $0x98] sm:$0xff] %v10252_v4  ;;  %10317 = vst [vmem:[#allocation12 + $0xa0] sm:$0xff] %v10253_v36  ;;  %v10277_v46 = vmax.f32 %v19015_v45, 0.0  ;;  %v20406_v1 = vld [vmem:[#allocation95_spill] sm:$0xff]  ;;  %v20407_v20 = vld [vmem:[#allocation36_spill] sm:$0xff]  ;;  %v10283_v56 = vmax.f32 %v19039_v24, 0.0 }
 0xd15   :  { %10318 = vst [vmem:[#allocation12 + $0xa8] sm:$0xff] %v10254_v9  ;;  %10319 = vst [vmem:[#allocation12 + $0xb0] sm:$0xff] %v10255_v47  ;;  %v10278_v5 = vmax.f32 %v20406_v1, 0.0  ;;  %v10279_v19 = vmax.f32 %v20407_v20, 0.0  ;;  %v20408_v26 = vld [vmem:[#allocation90_spill] sm:$0xff]  ;;  %v20409_v50 = vld [vmem:[#allocation105_spill] sm:$0xff] }
 0xd16   :  { %10320 = vst [vmem:[#allocation12 + $0xb8] sm:$0xff] %v10256_v15  ;;  %10321 = vst [vmem:[#allocation12 + $0xc0] sm:$0xff] %v10257_v3  ;;  %v10280_v35 = vmax.f32 %v20408_v26, 0.0  ;;  %v10281_v12 = vmax.f32 %v20409_v50, 0.0  ;;  %v20410_v14 = vld [vmem:[#allocation114_spill] sm:$0xff]  ;;  %v10284_v45 = vmax.f32 %v19043_v61, 0.0 }
 0xd17   :  { %10322 = vst [vmem:[#allocation12 + $0xc8] sm:$0xff] %v10258_v8  ;;  %10323 = vst [vmem:[#allocation12 + $0xd0] sm:$0xff] %v10259_v17  ;;  %v10282_v23 = vmax.f32 %v20410_v14, 0.0  ;;  %v10285_v11 = vmax.f32 %v19047_v53, 0.0  ;;  %v10286_v6 = vmax.f32 %v19051_v60, 0.0  ;;  %v10287_v29 = vmax.f32 %v19055_v41, 0.0 }
 0xd18   :  { %10324 = vst [vmem:[#allocation12 + $0xd8] sm:$0xff] %v10260_v33  ;;  %10325 = vst [vmem:[#allocation12 + $0xe0] sm:$0xff] %v10261_v28  ;;  %v10288_v25 = vmax.f32 %v19059_v7, 0.0  ;;  %v10289_v34 = vmax.f32 %v19063_v62, 0.0  ;;  %v20411_v24 = vld [vmem:[#allocation100_spill] sm:$0xff]  ;;  %v20412_v57 = vld [vmem:[#allocation113_spill] sm:$0xff] }
 0xd19   :  { %10326 = vst [vmem:[#allocation12 + $0xe8] sm:$0xff] %v10262_v31  ;;  %10327 = vst [vmem:[#allocation12 + $0xf0] sm:$0xff] %v10263_v10  ;;  %v10290_v61 = vmax.f32 %v20411_v24, 0.0  ;;  %v10291_v53 = vmax.f32 %v20412_v57, 0.0  ;;  %v20413_v52 = vld [vmem:[#allocation116_spill] sm:$0xff]  ;;  %v20414_v37 = vld [vmem:[#allocation63_spill] sm:$0xff] }
 0xd1a   :  { %10328 = vst [vmem:[#allocation12 + $0xf8] sm:$0xff] %v10264_v30  ;;  %10329 = vst [vmem:[#allocation12 + $0x100] sm:$0xff] %v10265_v44  ;;  %v10292_v0 = vmax.f32 %v20413_v52, 0.0  ;;  %v10293_v38 = vmax.f32 %v20414_v37, 0.0  ;;  %v20415_v60 = vld [vmem:[#allocation59_spill] sm:$0xff]  ;;  %v10296_v7 = vmax.f32 %v19087_v48, 0.0 }
 0xd1b   :  { %10330 = vst [vmem:[#allocation12 + $0x108] sm:$0xff] %v10266_v18  ;;  %10331 = vst [vmem:[#allocation12 + $0x110] sm:$0xff] %v10267_v63  ;;  %v10295_v41 = vmax.f32 %v20415_v60, 0.0 }
 0xd1c   :  { %10332 = vst [vmem:[#allocation12 + $0x118] sm:$0xff] %v10268_v39  ;;  %10333 = vst [vmem:[#allocation12 + $0x120] sm:$0xff] %v10269_v40 }
 0xd1d   :  { %10334 = vst [vmem:[#allocation12 + $0x128] sm:$0xff] %v10270_v21  ;;  %10335 = vst [vmem:[#allocation12 + $0x130] sm:$0xff] %v10271_v55 }
 0xd1e   :  { %10336 = vst [vmem:[#allocation12 + $0x138] sm:$0xff] %v10272_v32  ;;  %10337 = vst [vmem:[#allocation12 + $0x140] sm:$0xff] %v10273_v13 }
 0xd1f   :  { %10338 = vst [vmem:[#allocation12 + $0x148] sm:$0xff] %v10274_v51  ;;  %10339 = vst [vmem:[#allocation12 + $0x150] sm:$0xff] %v10275_v49 }
 0xd20   :  { %10340 = vst [vmem:[#allocation12 + $0x158] sm:$0xff] %v10276_v58  ;;  %10341 = vst [vmem:[#allocation12 + $0x160] sm:$0xff] %v10277_v46 }
 0xd21   :  { %10342 = vst [vmem:[#allocation12 + $0x168] sm:$0xff] %v10278_v5  ;;  %10343 = vst [vmem:[#allocation12 + $0x170] sm:$0xff] %v10279_v19 }
 0xd22   :  { %10344 = vst [vmem:[#allocation12 + $0x178] sm:$0xff] %v10280_v35  ;;  %10345 = vst [vmem:[#allocation12 + $0x180] sm:$0xff] %v10281_v12 }
 0xd23   :  { %10346 = vst [vmem:[#allocation12 + $0x188] sm:$0xff] %v10282_v23  ;;  %10347 = vst [vmem:[#allocation12 + $0x190] sm:$0xff] %v10283_v56 }
 0xd24   :  { %10348 = vst [vmem:[#allocation12 + $0x198] sm:$0xff] %v10284_v45  ;;  %10349 = vst [vmem:[#allocation12 + $0x1a0] sm:$0xff] %v10285_v11 }
 0xd25   :  { %10350 = vst [vmem:[#allocation12 + $0x1a8] sm:$0xff] %v10286_v6  ;;  %10351 = vst [vmem:[#allocation12 + $0x1b0] sm:$0xff] %v10287_v29 }
 0xd26   :  { %10352 = vst [vmem:[#allocation12 + $0x1b8] sm:$0xff] %v10288_v25  ;;  %10353 = vst [vmem:[#allocation12 + $0x1c0] sm:$0xff] %v10289_v34 }
 0xd27   :  { %10354 = vst [vmem:[#allocation12 + $0x1c8] sm:$0xff] %v10290_v61  ;;  %10355 = vst [vmem:[#allocation12 + $0x1d0] sm:$0xff] %v10291_v53 }
 0xd28   :  { %10356 = vst [vmem:[#allocation12 + $0x1d8] sm:$0xff] %v10292_v0  ;;  %10357 = vst [vmem:[#allocation12 + $0x1e0] sm:$0xff] %v10293_v38 }
 0xd29   :  { %10359 = vst [vmem:[#allocation12 + $0x1f0] sm:$0xff] %v10295_v41  ;;  %10360 = vst [vmem:[#allocation12 + $0x1f8] sm:$0xff] %v10296_v7 }
 0xd2a   :  { %12521 = shalt.err (!%p12518_p8)
}
 0xd2b   :  { %s12522_s0 = scalar_lea.hbm %s19181_s10, 8192 }
 0xd2c   :  { %p12523_p9 = scmp.ne.s32.totalorder %s19181_s10, %s12522_s0  ;;  %p12526_p10 = scmp.lt.u32.totalorder %s12522_s0, %s19181_s10 }
 0xd2e   :  { %p12528_p11 = pnand %p12526_p10, %p12523_p9 }
 0xd30   :  { %12531 = shalt.err (!%p12528_p11)
}
 0xd31   :  { %s12548_s17 = smov 128   ;;  %s12549_s18 = smov 8  }
 0xd32   :  { %10372 = dma.vmem_to_hbm [thread:$0]  %s19150_s9, 8192, %s19181_s10, [#allocation6], %s12548_s17, %s12548_s17, %s12549_s18  }
 0xd33   :  { %12538 = dma.done.wait [#allocation6], 8192  }
 0xd34   :  { %12539 = vsyncadd [#allocation6], 4294959104 }
 0xd35   :  { %10376 = vsyncpa [#allocation5], 1 }
 0xd36   :  { %10377 = vsyncpa [#allocation8], 1 }
 0xd37   :  { %10378 = vsyncpa [#allocation11], 1 }
 0xd38   :  { %10379 = vsyncpa [#allocation6], 1 }

</bundles_post_ra>
